<compile_context>
chip_gen: v7x
topology: tpu7x:2x2x1
jax: 0.10.0
libtpu: 0.0.40
codegen_flags: <defaults>
</compile_context>

<pallas_src>
import functools

import jax
import jax.numpy as jnp
from jax import lax
from jax.experimental import pallas as pl
from jax.experimental.pallas import tpu as pltpu


# ----------------------------------------------------------------------------
# helpers
# ----------------------------------------------------------------------------
def _round_up(x, m):
    return -(-x // m) * m


# ----------------------------------------------------------------------------
# Pallas kernels
# ----------------------------------------------------------------------------
def _matmul_bn_kernel(apply_relu, add_residual, *refs):
    """Single-step: out = cast( patches @ w_folded + shift [+ res] [relu] )."""
    if add_residual:
        p_ref, w_ref, shift_ref, res_ref, out_ref = refs
    else:
        p_ref, w_ref, shift_ref, out_ref = refs
        res_ref = None

    y = jnp.dot(p_ref[...], w_ref[...], preferred_element_type=jnp.float32)
    y = y + shift_ref[...]
    if add_residual:
        y = y + res_ref[...].astype(jnp.float32)
    if apply_relu:
        y = jnp.maximum(y, 0.0)
    out_ref[...] = y.astype(out_ref.dtype)


def _maxpool_kernel(ee_ref, eo_ref, oe_ref, oo_ref, o_ref):
    """3x3 / stride-2 / pad-1 max-pool from even/odd parity planes.

    Window rows {2i, 2i+1, 2i+2} and cols {2j, 2j+1, 2j+2} decompose into 9
    UNSTRIDED slices of the four parity planes (all shifts are +0/+1)."""
    _, Ho, Wo, _ = o_ref.shape
    ee = ee_ref[0]            # (Ho+1, Wo+1, C)  rows even, cols even
    eo = eo_ref[0]            # rows even, cols odd
    oe = oe_ref[0]            # rows odd,  cols even
    oo = oo_ref[0]            # rows odd,  cols odd
    r = oo[:Ho, :Wo]
    for di in (0, 1):
        for dj in (0, 1):
            r = jnp.maximum(r, ee[di:di + Ho, dj:dj + Wo])
    for di in (0, 1):
        r = jnp.maximum(r, eo[di:di + Ho, :Wo])
    for dj in (0, 1):
        r = jnp.maximum(r, oe[:Ho, dj:dj + Wo])
    o_ref[0] = r


def _self_attention_kernel(x_ref, wqk_ref, bqk_ref, wv_ref, bv_ref, g_ref, o_ref):
    x = x_ref[0]                                                        # (N, C) bf16
    cqp = wqk_ref.shape[1] // 2
    # fused Q/K projection (each lane-padded to 128); bf16 operands, f32 accumulation
    pqk = jnp.dot(x, wqk_ref[...], preferred_element_type=jnp.float32) + bqk_ref[...]
    pq = pqk[:, :cqp]                                                   # (N, CqP) f32
    pk = pqk[:, cqp:]                                                   # (N, CqP) f32
    pv = jnp.dot(x, wv_ref[...], preferred_element_type=jnp.float32) + bv_ref[...]
    # energy[i, j] = sum_c pq[i, c] * pk[j, c]  (zero-padded columns contribute 0)
    energy = lax.dot_general(pq, pk, (((1,), (1,)), ((), ())),
                             preferred_element_type=jnp.float32)        # (N, N)
    energy = energy - jnp.max(energy, axis=-1, keepdims=True)           # stable softmax
    e = jnp.exp(energy)
    attn = e * pl.reciprocal(jnp.sum(e, axis=-1, keepdims=True), approx=True)
    # torch: out = V @ attn^T  -> out[i, c] = sum_j attn[i, j] * V[c, j]
    out = jnp.dot(attn.astype(jnp.bfloat16), pv.astype(jnp.bfloat16),
                  preferred_element_type=jnp.float32)                   # (N, C) f32
    o_ref[0] = (g_ref[...] * out + x.astype(jnp.float32)).astype(o_ref.dtype)


# ----------------------------------------------------------------------------
# JAX glue (NHWC im2col / padding / parameter plumbing)
# ----------------------------------------------------------------------------
def _im2col_nhwc(x, kh, kw, stride, pad):
    B, H, W, C = x.shape
    Ho = (H + 2 * pad - kh) // stride + 1
    Wo = (W + 2 * pad - kw) // stride + 1
    xp = jnp.pad(x, ((0, 0), (pad, pad), (pad, pad), (0, 0)))
    cols = []
    for i in range(kh):
        for j in range(kw):
            cols.append(xp[:, i:i + stride * (Ho - 1) + 1:stride,
                           j:j + stride * (Wo - 1) + 1:stride, :])
    # (B, Ho, Wo, kh*kw, C) -> (B*Ho*Wo, kh*kw*C)   (K order = window-major, C-minor)
    patches = jnp.stack(cols, axis=3).reshape(B * Ho * Wo, kh * kw * C)
    return patches, Ho, Wo


def conv_bn_act(x, w, bn, *, stride, pad, relu, residual=None):
    """Conv2d(bias=False) + BatchNorm2d(eval) [+ residual add] [+ ReLU], NHWC in/out (bf16)."""
    B, H, W, Cin = x.shape
    Cout, _, kh, kw = w.shape
    # im2col on bf16 input so the patches intermediate is half-width in HBM.
    patches, Ho, Wo = _im2col_nhwc(x.astype(jnp.bfloat16), kh, kw, stride, pad)
    M, K = patches.shape

    # Fold BN scale into weights (host side); epilogue only needs the shift.
    eps = 1e-5
    scale = bn['gamma'] / jnp.sqrt(bn['var'] + eps)                     # (Cout,)
    shift = bn['beta'] - bn['mean'] * scale                             # (Cout,)
    wm = (jnp.transpose(w, (2, 3, 1, 0)).reshape(K, Cout)
          * scale[None, :]).astype(jnp.bfloat16)

    # Tile sizes: full-K single reduction step (K <= 2304 always fits VMEM);
    # tm in multiples of 16 (bf16 sublane packing); single M tile whenever possible.
    padded_N = _round_up(Cout, 128)
    tn = padded_N if padded_N <= 512 else 256
    padded_K = _round_up(K, 128)
    tk = padded_K
    if M <= 1024:
        tm = _round_up(M, 16)
        padded_M = tm
    else:
        tm = 512
        padded_M = _round_up(M, tm)

    p_pad = jnp.pad(patches, ((0, padded_M - M), (0, padded_K - K)))
    w_pad = jnp.pad(wm, ((0, padded_K - K), (0, padded_N - Cout)))
    s_pad = jnp.pad(shift.reshape(1, Cout), ((0, 0), (0, padded_N - Cout)))

    args = [p_pad, w_pad, s_pad]
    in_specs = [
        pl.BlockSpec((tm, tk), lambda i, j: (i, 0)),
        pl.BlockSpec((tk, tn), lambda i, j: (0, j)),
        pl.BlockSpec((1, tn), lambda i, j: (0, j)),
    ]
    if residual is not None:
        r = residual.reshape(M, Cout).astype(jnp.bfloat16)
        args.append(jnp.pad(r, ((0, padded_M - M), (0, padded_N - Cout))))
        in_specs.append(pl.BlockSpec((tm, tn), lambda i, j: (i, j)))

    grid = (padded_M // tm, padded_N // tn)
    kernel = functools.partial(_matmul_bn_kernel, relu, residual is not None)
    out = pl.pallas_call(
        kernel,
        out_shape=jax.ShapeDtypeStruct((padded_M, padded_N), jnp.bfloat16),
        grid=grid,
        in_specs=in_specs,
        out_specs=pl.BlockSpec((tm, tn), lambda i, j: (i, j)),
        compiler_params=pltpu.CompilerParams(
            dimension_semantics=("parallel", "parallel"),
            vmem_limit_bytes=32 * 1024 * 1024),
    )(*args)
    return out[:M, :Cout].reshape(B, Ho, Wo, Cout)


def maxpool_3x3_s2_p1(x):
    """MaxPool2d(kernel=3, stride=2, padding=1), NHWC in/out (bf16)."""
    B, H, W, C = x.shape
    Ho = (H + 2 - 3) // 2 + 1
    Wo = (W + 2 - 3) // 2 + 1
    Hp, Wp = 2 * Ho + 2, 2 * Wo + 2          # even extents covering all windows
    xp = jnp.pad(x, ((0, 0), (1, Hp - H - 1), (1, Wp - W - 1), (0, 0)),
                 constant_values=-jnp.inf)
    # Even/odd parity planes along rows and cols (single ~1x HBM copy instead of 9 views).
    ee = xp[:, 0::2, 0::2, :]
    eo = xp[:, 0::2, 1::2, :]
    oe = xp[:, 1::2, 0::2, :]
    oo = xp[:, 1::2, 1::2, :]
    in_spec = pl.BlockSpec((1, Ho + 1, Wo + 1, C), lambda b: (b, 0, 0, 0))
    out = pl.pallas_call(
        _maxpool_kernel,
        out_shape=jax.ShapeDtypeStruct((B, Ho, Wo, C), x.dtype),
        grid=(B,),
        in_specs=[in_spec] * 4,
        out_specs=pl.BlockSpec((1, Ho, Wo, C), lambda b: (b, 0, 0, 0)),
        compiler_params=pltpu.CompilerParams(
            dimension_semantics=("parallel",),
            vmem_limit_bytes=32 * 1024 * 1024),
    )(ee, eo, oe, oo)
    return out


def self_attention(x, p):
    """SelfAttention on NHWC bf16 input; one grid step per batch element."""
    B, H, W, C = x.shape
    N = H * W
    xf = x.astype(jnp.bfloat16).reshape(B, N, C)            # (b, n, c)
    Cq = p['wq'].shape[0]
    CqP = _round_up(Cq, 128)
    wq = jnp.pad(p['wq'].T, ((0, 0), (0, CqP - Cq)))        # (C, CqP), zero-padded
    wk = jnp.pad(p['wk'].T, ((0, 0), (0, CqP - Cq)))
    wqk = jnp.concatenate([wq, wk], axis=1).astype(jnp.bfloat16)   # (C, 2*CqP) fused Q|K
    bqk = jnp.concatenate([jnp.pad(p['bq'], (0, CqP - Cq)),
                           jnp.pad(p['bk'], (0, CqP - Cq))]).reshape(1, 2 * CqP)
    wv = p['wv'].T.astype(jnp.bfloat16)                     # (C, C)
    bv = p['bv'].reshape(1, C)
    gamma = p['gamma'].reshape(1, 1)

    def full2d(shape):
        return pl.BlockSpec(shape, lambda b: (0, 0))

    out = pl.pallas_call(
        _self_attention_kernel,
        out_shape=jax.ShapeDtypeStruct((B, N, C), jnp.bfloat16),
        grid=(B,),
        in_specs=[
            pl.BlockSpec((1, N, C), lambda b: (b, 0, 0)),
            full2d((C, 2 * CqP)), full2d((1, 2 * CqP)),
            full2d((C, C)), full2d((1, C)),
            full2d((1, 1)),
        ],
        out_specs=pl.BlockSpec((1, N, C), lambda b: (b, 0, 0)),
        compiler_params=pltpu.CompilerParams(
            dimension_semantics=("parallel",),
            vmem_limit_bytes=32 * 1024 * 1024),
    )(xf, wqk, bqk, wv, bv, gamma)
    return out.reshape(B, H, W, C)


# ----------------------------------------------------------------------------
# ResNetEncoder forward (structure mirrors the PyTorch module), NHWC bf16 internally
# ----------------------------------------------------------------------------
def basic_block(x, p):
    stride = p['stride']
    if 'conv_sc' in p:                       # should_apply_shortcut
        residual = conv_bn_act(x, p['conv_sc'], p['bn_sc'],
                               stride=stride, pad=0, relu=False)
    else:
        residual = x
    y = conv_bn_act(x, p['conv1'], p['bn1'], stride=stride, pad=1, relu=True)
    # ReLU is applied after the residual add (as in the PyTorch block)
    y = conv_bn_act(y, p['conv2'], p['bn2'], stride=1, pad=1, relu=True,
                    residual=residual)
    return y


def resnet_layer(x, layer_params):
    for bp in layer_params:
        x = basic_block(x, bp)
    return x


def resnet_encoder_forward(x_nchw, params):
    x = jnp.transpose(x_nchw, (0, 2, 3, 1))                  # NCHW -> NHWC once
    # gate: Conv(3x3, stride=1, pad=3) + BN + ReLU + MaxPool(3, stride=2, pad=1)
    x = conv_bn_act(x, params['gate_conv'], params['gate_bn'],
                    stride=1, pad=3, relu=True)
    x = maxpool_3x3_s2_p1(x)
    x = resnet_layer(x, params['layers'][0])   # 32 -> 32
    x = resnet_layer(x, params['layers'][1])   # 32 -> 64 (downsample 2)
    x = self_attention(x, params['att'])       # SelfAttention(64)
    x = resnet_layer(x, params['layers'][2])   # 64 -> 128 (downsample 2)
    x = self_attention(x, params['att2'])      # SelfAttention(128)
    x = resnet_layer(x, params['layers'][3])   # 128 -> 256 (downsample 2)
    x = jnp.transpose(x, (0, 3, 1, 2))                        # NHWC -> NCHW once
    return x.astype(jnp.float32)


# ----------------------------------------------------------------------------
# Deterministic parameter initialization (shapes per the module __init__)
# ----------------------------------------------------------------------------
def _init_conv(key, cout, cin, kh, kw):
    fan_in = cin * kh * kw
    return jax.random.normal(key, (cout, cin, kh, kw), jnp.float32) * (2.0 / fan_in) ** 0.5


def _init_bn(key, c):
    k1, k2, k3, k4 = jax.random.split(key, 4)
    return {
        'gamma': 1.0 + 0.1 * jax.random.normal(k1, (c,), jnp.float32),
        'beta': 0.05 * jax.random.normal(k2, (c,), jnp.float32),
        'mean': 0.1 * jax.random.normal(k3, (c,), jnp.float32),
        'var': 0.5 + jax.random.uniform(k4, (c,), dtype=jnp.float32),
    }


def _init_block(key, cin, cout, stride):
    ks = jax.random.split(key, 6)
    p = {
        'stride': stride,
        'conv1': _init_conv(ks[0], cout, cin, 3, 3),
        'bn1': _init_bn(ks[1], cout),
        'conv2': _init_conv(ks[2], cout, cout, 3, 3),
        'bn2': _init_bn(ks[3], cout),
    }
    if cin != cout:                              # 1x1 shortcut conv + BN
        p['conv_sc'] = _init_conv(ks[4], cout, cin, 1, 1)
        p['bn_sc'] = _init_bn(ks[5], cout)
    return p


def _init_layer(key, cin, cout, n):
    downsampling = 2 if cin != cout else 1
    ks = jax.random.split(key, n)
    blocks = [_init_block(ks[0], cin, cout, downsampling)]
    for i in range(1, n):
        blocks.append(_init_block(ks[i], cout, cout, 1))
    return blocks


def _init_attention(key, c):
    cq = c // 10
    ks = jax.random.split(key, 6)
    sc = 1.0 / (c ** 0.5)
    return {
        'wq': sc * jax.random.normal(ks[0], (cq, c), jnp.float32),
        'bq': sc * jax.random.normal(ks[1], (cq,), jnp.float32),
        'wk': sc * jax.random.normal(ks[2], (cq, c), jnp.float32),
        'bk': sc * jax.random.normal(ks[3], (cq,), jnp.float32),
        'wv': sc * jax.random.normal(ks[4], (c, c), jnp.float32),
        'bv': sc * jax.random.normal(ks[5], (c,), jnp.float32),
        # nn.Parameter(torch.zeros(1)) -> attention branch gated off at init
        'gamma': jnp.zeros((1, 1), jnp.float32),
    }


def build_params(key, in_channels=3, blocks_sizes=(32, 64, 128, 256),
                 deepths=(2, 2, 2, 2)):
    ks = jax.random.split(key, 4 + len(deepths))
    params = {
        'gate_conv': _init_conv(ks[0], blocks_sizes[0], in_channels, 3, 3),
        'gate_bn': _init_bn(ks[1], blocks_sizes[0]),
        'att': _init_attention(ks[2], 64),
        'att2': _init_attention(ks[3], 128),
    }
    layer_io = [(blocks_sizes[0], blocks_sizes[0])] + list(zip(blocks_sizes, blocks_sizes[1:]))
    layers = []
    for i, ((cin, cout), n) in enumerate(zip(layer_io, deepths)):
        layers.append(_init_layer(ks[4 + i], cin, cout, n))
    params['layers'] = layers
    return params


if __name__ == "__main__":
    key = jax.random.PRNGKey(0)
    kx, kp = jax.random.split(key)
    # small NCHW input consistent with the module (in_channels=3)
    x = jax.random.normal(kx, (2, 3, 16, 16), jnp.float32)
    params = build_params(kp)
    fwd = jax.jit(lambda inp: resnet_encoder_forward(inp, params))
    out = jax.block_until_ready(fwd(x))
    assert out.shape == (2, 256, 2, 2), out.shape
    assert bool(jnp.all(jnp.isfinite(out)))
    print("KERNEL_OK")
</pallas_src>

<mosaic_0001>
module attributes {stable_mosaic.version = 11 : i64} {
  func.func @_matmul_bn_kernel(%arg0: i32, %arg1: i32, %arg2: memref<800x128xbf16, #tpu.memory_space<vmem>>, %arg3: memref<128x128xbf16, #tpu.memory_space<vmem>>, %arg4: memref<1x128xf32, #tpu.memory_space<vmem>>, %arg5: memref<800x128xbf16, #tpu.memory_space<vmem>>) attributes {dimension_semantics = [#tpu.dimension_semantics<parallel>, #tpu.dimension_semantics<parallel>], iteration_bounds = array<i64: 1, 1>, scalar_prefetch = 0 : i64, scratch_operands = 0 : i64, tpu.core_type = #tpu.core_type<tc>, window_params = [{transform_indices = @transform_0, window_bounds = array<i64: 800, 128>}, {transform_indices = @transform_1, window_bounds = array<i64: 128, 128>}, {transform_indices = @transform_2, window_bounds = array<i64: 1, 128>}, {transform_indices = @transform_3, window_bounds = array<i64: 800, 128>}]} {
    %c0 = arith.constant 0 : index
    %c0_0 = arith.constant 0 : index
    %0 = vector.load %arg2[%c0, %c0_0] : memref<800x128xbf16, #tpu.memory_space<vmem>>, vector<800x128xbf16>
    %c0_1 = arith.constant 0 : index
    %c0_2 = arith.constant 0 : index
    %1 = vector.load %arg3[%c0_1, %c0_2] : memref<128x128xbf16, #tpu.memory_space<vmem>>, vector<128x128xbf16>
    %cst = arith.constant dense<0.000000e+00> : vector<800x128xf32>
    %2 = tpu.matmul %0, %1, %cst {dimension_numbers = #tpu.dot_dimension_numbers<[1], [0], [0], [1], [0, 0, 1, 1], [], []>} : vector<800x128xbf16>, vector<128x128xbf16>, vector<800x128xf32> -> vector<800x128xf32>
    %c0_3 = arith.constant 0 : index
    %c0_4 = arith.constant 0 : index
    %3 = vector.load %arg4[%c0_3, %c0_4] : memref<1x128xf32, #tpu.memory_space<vmem>>, vector<1x128xf32>
    %4 = vector.broadcast %3 : vector<1x128xf32> to vector<800x128xf32>
    %5 = arith.addf %2, %4 : vector<800x128xf32>
    %cst_5 = arith.constant 0.000000e+00 : f32
    %6 = vector.broadcast %cst_5 : f32 to vector<800x128xf32>
    %7 = arith.maximumf %5, %6 : vector<800x128xf32>
    %8 = arith.truncf %7 : vector<800x128xf32> to vector<800x128xbf16>
    %c0_6 = arith.constant 0 : index
    %c0_7 = arith.constant 0 : index
    %9 = vector.load %arg5[%c0_6, %c0_7] : memref<800x128xbf16, #tpu.memory_space<vmem>>, vector<800x128xbf16>
    tpu.vector_store %arg5[%c0_6, %c0_7], %8 {strides = array<i32>} : memref<800x128xbf16, #tpu.memory_space<vmem>>, vector<800x128xbf16>,
    return
  }
  func.func @transform_0(%arg0: i32, %arg1: i32) -> (i32, i32) {
    %c0_i32 = arith.constant 0 : i32
    %c0_i32_0 = arith.constant 0 : i32
    return %arg0, %c0_i32 : i32, i32
  }
  func.func @transform_1(%arg0: i32, %arg1: i32) -> (i32, i32) {
    %c0_i32 = arith.constant 0 : i32
    %c0_i32_0 = arith.constant 0 : i32
    return %c0_i32, %arg1 : i32, i32
  }
  func.func @transform_2(%arg0: i32, %arg1: i32) -> (i32, i32) {
    %c0_i32 = arith.constant 0 : i32
    %c0_i32_0 = arith.constant 0 : i32
    return %c0_i32, %arg1 : i32, i32
  }
  func.func @transform_3(%arg0: i32, %arg1: i32) -> (i32, i32) {
    %c0_i32 = arith.constant 0 : i32
    return %arg0, %arg1 : i32, i32
  }
}

module attributes {stable_mosaic.version = 11 : i64} {
  func.func @_maxpool_kernel(%arg0: i32, %arg1: memref<1x11x11x32xbf16, #tpu.memory_space<vmem>>, %arg2: memref<1x11x11x32xbf16, #tpu.memory_space<vmem>>, %arg3: memref<1x11x11x32xbf16, #tpu.memory_space<vmem>>, %arg4: memref<1x11x11x32xbf16, #tpu.memory_space<vmem>>, %arg5: memref<1x10x10x32xbf16, #tpu.memory_space<vmem>>) attributes {dimension_semantics = [#tpu.dimension_semantics<parallel>], iteration_bounds = array<i64: 2>, scalar_prefetch = 0 : i64, scratch_operands = 0 : i64, tpu.core_type = #tpu.core_type<tc>, window_params = [{transform_indices = @transform_0, window_bounds = array<i64: 1, 11, 11, 32>}, {transform_indices = @transform_1, window_bounds = array<i64: 1, 11, 11, 32>}, {transform_indices = @transform_2, window_bounds = array<i64: 1, 11, 11, 32>}, {transform_indices = @transform_3, window_bounds = array<i64: 1, 11, 11, 32>}, {transform_indices = @transform_4, window_bounds = array<i64: 1, 10, 10, 32>}]} {
    %c0 = arith.constant 0 : index
    %c0_0 = arith.constant 0 : index
    %c0_1 = arith.constant 0 : index
    %c0_2 = arith.constant 0 : index
    %0 = vector.load %arg1[%c0, %c0_0, %c0_1, %c0_2] : memref<1x11x11x32xbf16, #tpu.memory_space<vmem>>, vector<1x11x11x32xbf16>
    %1 = vector.shape_cast %0 : vector<1x11x11x32xbf16> to vector<11x11x32xbf16>
    %c0_3 = arith.constant 0 : index
    %c0_4 = arith.constant 0 : index
    %c0_5 = arith.constant 0 : index
    %c0_6 = arith.constant 0 : index
    %2 = vector.load %arg2[%c0_3, %c0_4, %c0_5, %c0_6] : memref<1x11x11x32xbf16, #tpu.memory_space<vmem>>, vector<1x11x11x32xbf16>
    %3 = vector.shape_cast %2 : vector<1x11x11x32xbf16> to vector<11x11x32xbf16>
    %c0_7 = arith.constant 0 : index
    %c0_8 = arith.constant 0 : index
    %c0_9 = arith.constant 0 : index
    %c0_10 = arith.constant 0 : index
    %4 = vector.load %arg3[%c0_7, %c0_8, %c0_9, %c0_10] : memref<1x11x11x32xbf16, #tpu.memory_space<vmem>>, vector<1x11x11x32xbf16>
    %5 = vector.shape_cast %4 : vector<1x11x11x32xbf16> to vector<11x11x32xbf16>
    %c0_11 = arith.constant 0 : index
    %c0_12 = arith.constant 0 : index
    %c0_13 = arith.constant 0 : index
    %c0_14 = arith.constant 0 : index
    %6 = vector.load %arg4[%c0_11, %c0_12, %c0_13, %c0_14] : memref<1x11x11x32xbf16, #tpu.memory_space<vmem>>, vector<1x11x11x32xbf16>
    %7 = vector.shape_cast %6 : vector<1x11x11x32xbf16> to vector<11x11x32xbf16>
    %8 = vector.extract_strided_slice %7 {offsets = [0, 0, 0], sizes = [10, 10, 32], strides = [1, 1, 1]} : vector<11x11x32xbf16> to vector<10x10x32xbf16>
    %9 = vector.extract_strided_slice %1 {offsets = [0, 0, 0], sizes = [10, 10, 32], strides = [1, 1, 1]} : vector<11x11x32xbf16> to vector<10x10x32xbf16>
    %10 = arith.maximumf %8, %9 : vector<10x10x32xbf16>
    %11 = vector.extract_strided_slice %1 {offsets = [0, 1, 0], sizes = [10, 10, 32], strides = [1, 1, 1]} : vector<11x11x32xbf16> to vector<10x10x32xbf16>
    %12 = arith.maximumf %10, %11 : vector<10x10x32xbf16>
    %13 = vector.extract_strided_slice %1 {offsets = [1, 0, 0], sizes = [10, 10, 32], strides = [1, 1, 1]} : vector<11x11x32xbf16> to vector<10x10x32xbf16>
    %14 = arith.maximumf %12, %13 : vector<10x10x32xbf16>
    %15 = vector.extract_strided_slice %1 {offsets = [1, 1, 0], sizes = [10, 10, 32], strides = [1, 1, 1]} : vector<11x11x32xbf16> to vector<10x10x32xbf16>
    %16 = arith.maximumf %14, %15 : vector<10x10x32xbf16>
    %17 = vector.extract_strided_slice %3 {offsets = [0, 0, 0], sizes = [10, 10, 32], strides = [1, 1, 1]} : vector<11x11x32xbf16> to vector<10x10x32xbf16>
    %18 = arith.maximumf %16, %17 : vector<10x10x32xbf16>
    %19 = vector.extract_strided_slice %3 {offsets = [1, 0, 0], sizes = [10, 10, 32], strides = [1, 1, 1]} : vector<11x11x32xbf16> to vector<10x10x32xbf16>
    %20 = arith.maximumf %18, %19 : vector<10x10x32xbf16>
    %21 = vector.extract_strided_slice %5 {offsets = [0, 0, 0], sizes = [10, 10, 32], strides = [1, 1, 1]} : vector<11x11x32xbf16> to vector<10x10x32xbf16>
    %22 = arith.maximumf %20, %21 : vector<10x10x32xbf16>
    %23 = vector.extract_strided_slice %5 {offsets = [0, 1, 0], sizes = [10, 10, 32], strides = [1, 1, 1]} : vector<11x11x32xbf16> to vector<10x10x32xbf16>
    %24 = arith.maximumf %22, %23 : vector<10x10x32xbf16>
    %c0_15 = arith.constant 0 : index
    %c0_16 = arith.constant 0 : index
    %c0_17 = arith.constant 0 : index
    %c0_18 = arith.constant 0 : index
    %25 = vector.load %arg5[%c0_15, %c0_16, %c0_17, %c0_18] : memref<1x10x10x32xbf16, #tpu.memory_space<vmem>>, vector<1x10x10x32xbf16>
    %26 = vector.shape_cast %25 : vector<1x10x10x32xbf16> to vector<10x10x32xbf16>
    %27 = vector.shape_cast %24 : vector<10x10x32xbf16> to vector<1x10x10x32xbf16>
    tpu.vector_store %arg5[%c0_15, %c0_16, %c0_17, %c0_18], %27 {strides = array<i32>} : memref<1x10x10x32xbf16, #tpu.memory_space<vmem>>, vector<1x10x10x32xbf16>,
    return
  }
  func.func @transform_0(%arg0: i32) -> (i32, i32, i32, i32) {
    %c0_i32 = arith.constant 0 : i32
    %c0_i32_0 = arith.constant 0 : i32
    %c0_i32_1 = arith.constant 0 : i32
    %c0_i32_2 = arith.constant 0 : i32
    return %arg0, %c0_i32, %c0_i32_0, %c0_i32_1 : i32, i32, i32, i32
  }
  func.func @transform_1(%arg0: i32) -> (i32, i32, i32, i32) {
    %c0_i32 = arith.constant 0 : i32
    %c0_i32_0 = arith.constant 0 : i32
    %c0_i32_1 = arith.constant 0 : i32
    %c0_i32_2 = arith.constant 0 : i32
    return %arg0, %c0_i32, %c0_i32_0, %c0_i32_1 : i32, i32, i32, i32
  }
  func.func @transform_2(%arg0: i32) -> (i32, i32, i32, i32) {
    %c0_i32 = arith.constant 0 : i32
    %c0_i32_0 = arith.constant 0 : i32
    %c0_i32_1 = arith.constant 0 : i32
    %c0_i32_2 = arith.constant 0 : i32
    return %arg0, %c0_i32, %c0_i32_0, %c0_i32_1 : i32, i32, i32, i32
  }
  func.func @transform_3(%arg0: i32) -> (i32, i32, i32, i32) {
    %c0_i32 = arith.constant 0 : i32
    %c0_i32_0 = arith.constant 0 : i32
    %c0_i32_1 = arith.constant 0 : i32
    %c0_i32_2 = arith.constant 0 : i32
    return %arg0, %c0_i32, %c0_i32_0, %c0_i32_1 : i32, i32, i32, i32
  }
  func.func @transform_4(%arg0: i32) -> (i32, i32, i32, i32) {
    %c0_i32 = arith.constant 0 : i32
    %c0_i32_0 = arith.constant 0 : i32
    %c0_i32_1 = arith.constant 0 : i32
    %c0_i32_2 = arith.constant 0 : i32
    return %arg0, %c0_i32, %c0_i32_0, %c0_i32_1 : i32, i32, i32, i32
  }
}

module attributes {stable_mosaic.version = 11 : i64} {
  func.func @_matmul_bn_kernel(%arg0: i32, %arg1: i32, %arg2: memref<208x384xbf16, #tpu.memory_space<vmem>>, %arg3: memref<384x128xbf16, #tpu.memory_space<vmem>>, %arg4: memref<1x128xf32, #tpu.memory_space<vmem>>, %arg5: memref<208x128xbf16, #tpu.memory_space<vmem>>) attributes {dimension_semantics = [#tpu.dimension_semantics<parallel>, #tpu.dimension_semantics<parallel>], iteration_bounds = array<i64: 1, 1>, scalar_prefetch = 0 : i64, scratch_operands = 0 : i64, tpu.core_type = #tpu.core_type<tc>, window_params = [{transform_indices = @transform_0, window_bounds = array<i64: 208, 384>}, {transform_indices = @transform_1, window_bounds = array<i64: 384, 128>}, {transform_indices = @transform_2, window_bounds = array<i64: 1, 128>}, {transform_indices = @transform_3, window_bounds = array<i64: 208, 128>}]} {
    %c0 = arith.constant 0 : index
    %c0_0 = arith.constant 0 : index
    %0 = vector.load %arg2[%c0, %c0_0] : memref<208x384xbf16, #tpu.memory_space<vmem>>, vector<208x384xbf16>
    %c0_1 = arith.constant 0 : index
    %c0_2 = arith.constant 0 : index
    %1 = vector.load %arg3[%c0_1, %c0_2] : memref<384x128xbf16, #tpu.memory_space<vmem>>, vector<384x128xbf16>
    %cst = arith.constant dense<0.000000e+00> : vector<208x128xf32>
    %2 = tpu.matmul %0, %1, %cst {dimension_numbers = #tpu.dot_dimension_numbers<[1], [0], [0], [1], [0, 0, 1, 1], [], []>} : vector<208x384xbf16>, vector<384x128xbf16>, vector<208x128xf32> -> vector<208x128xf32>
    %c0_3 = arith.constant 0 : index
    %c0_4 = arith.constant 0 : index
    %3 = vector.load %arg4[%c0_3, %c0_4] : memref<1x128xf32, #tpu.memory_space<vmem>>, vector<1x128xf32>
    %4 = vector.broadcast %3 : vector<1x128xf32> to vector<208x128xf32>
    %5 = arith.addf %2, %4 : vector<208x128xf32>
    %cst_5 = arith.constant 0.000000e+00 : f32
    %6 = vector.broadcast %cst_5 : f32 to vector<208x128xf32>
    %7 = arith.maximumf %5, %6 : vector<208x128xf32>
    %8 = arith.truncf %7 : vector<208x128xf32> to vector<208x128xbf16>
    %c0_6 = arith.constant 0 : index
    %c0_7 = arith.constant 0 : index
    %9 = vector.load %arg5[%c0_6, %c0_7] : memref<208x128xbf16, #tpu.memory_space<vmem>>, vector<208x128xbf16>
    tpu.vector_store %arg5[%c0_6, %c0_7], %8 {strides = array<i32>} : memref<208x128xbf16, #tpu.memory_space<vmem>>, vector<208x128xbf16>,
    return
  }
  func.func @transform_0(%arg0: i32, %arg1: i32) -> (i32, i32) {
    %c0_i32 = arith.constant 0 : i32
    %c0_i32_0 = arith.constant 0 : i32
    return %arg0, %c0_i32 : i32, i32
  }
  func.func @transform_1(%arg0: i32, %arg1: i32) -> (i32, i32) {
    %c0_i32 = arith.constant 0 : i32
    %c0_i32_0 = arith.constant 0 : i32
    return %c0_i32, %arg1 : i32, i32
  }
  func.func @transform_2(%arg0: i32, %arg1: i32) -> (i32, i32) {
    %c0_i32 = arith.constant 0 : i32
    %c0_i32_0 = arith.constant 0 : i32
    return %c0_i32, %arg1 : i32, i32
  }
  func.func @transform_3(%arg0: i32, %arg1: i32) -> (i32, i32) {
    %c0_i32 = arith.constant 0 : i32
    return %arg0, %arg1 : i32, i32
  }
}

module attributes {stable_mosaic.version = 11 : i64} {
  func.func @_matmul_bn_kernel(%arg0: i32, %arg1: i32, %arg2: memref<208x384xbf16, #tpu.memory_space<vmem>>, %arg3: memref<384x128xbf16, #tpu.memory_space<vmem>>, %arg4: memref<1x128xf32, #tpu.memory_space<vmem>>, %arg5: memref<208x128xbf16, #tpu.memory_space<vmem>>, %arg6: memref<208x128xbf16, #tpu.memory_space<vmem>>) attributes {dimension_semantics = [#tpu.dimension_semantics<parallel>, #tpu.dimension_semantics<parallel>], iteration_bounds = array<i64: 1, 1>, scalar_prefetch = 0 : i64, scratch_operands = 0 : i64, tpu.core_type = #tpu.core_type<tc>, window_params = [{transform_indices = @transform_0, window_bounds = array<i64: 208, 384>}, {transform_indices = @transform_1, window_bounds = array<i64: 384, 128>}, {transform_indices = @transform_2, window_bounds = array<i64: 1, 128>}, {transform_indices = @transform_3, window_bounds = array<i64: 208, 128>}, {transform_indices = @transform_4, window_bounds = array<i64: 208, 128>}]} {
    %c0 = arith.constant 0 : index
    %c0_0 = arith.constant 0 : index
    %0 = vector.load %arg2[%c0, %c0_0] : memref<208x384xbf16, #tpu.memory_space<vmem>>, vector<208x384xbf16>
    %c0_1 = arith.constant 0 : index
    %c0_2 = arith.constant 0 : index
    %1 = vector.load %arg3[%c0_1, %c0_2] : memref<384x128xbf16, #tpu.memory_space<vmem>>, vector<384x128xbf16>
    %cst = arith.constant dense<0.000000e+00> : vector<208x128xf32>
    %2 = tpu.matmul %0, %1, %cst {dimension_numbers = #tpu.dot_dimension_numbers<[1], [0], [0], [1], [0, 0, 1, 1], [], []>} : vector<208x384xbf16>, vector<384x128xbf16>, vector<208x128xf32> -> vector<208x128xf32>
    %c0_3 = arith.constant 0 : index
    %c0_4 = arith.constant 0 : index
    %3 = vector.load %arg4[%c0_3, %c0_4] : memref<1x128xf32, #tpu.memory_space<vmem>>, vector<1x128xf32>
    %4 = vector.broadcast %3 : vector<1x128xf32> to vector<208x128xf32>
    %5 = arith.addf %2, %4 : vector<208x128xf32>
    %c0_5 = arith.constant 0 : index
    %c0_6 = arith.constant 0 : index
    %6 = vector.load %arg5[%c0_5, %c0_6] : memref<208x128xbf16, #tpu.memory_space<vmem>>, vector<208x128xbf16>
    %7 = arith.extf %6 : vector<208x128xbf16> to vector<208x128xf32>
    %8 = arith.addf %5, %7 : vector<208x128xf32>
    %cst_7 = arith.constant 0.000000e+00 : f32
    %9 = vector.broadcast %cst_7 : f32 to vector<208x128xf32>
    %10 = arith.maximumf %8, %9 : vector<208x128xf32>
    %11 = arith.truncf %10 : vector<208x128xf32> to vector<208x128xbf16>
    %c0_8 = arith.constant 0 : index
    %c0_9 = arith.constant 0 : index
    %12 = vector.load %arg6[%c0_8, %c0_9] : memref<208x128xbf16, #tpu.memory_space<vmem>>, vector<208x128xbf16>
    tpu.vector_store %arg6[%c0_8, %c0_9], %11 {strides = array<i32>} : memref<208x128xbf16, #tpu.memory_space<vmem>>, vector<208x128xbf16>,
    return
  }
  func.func @transform_0(%arg0: i32, %arg1: i32) -> (i32, i32) {
    %c0_i32 = arith.constant 0 : i32
    %c0_i32_0 = arith.constant 0 : i32
    return %arg0, %c0_i32 : i32, i32
  }
  func.func @transform_1(%arg0: i32, %arg1: i32) -> (i32, i32) {
    %c0_i32 = arith.constant 0 : i32
    %c0_i32_0 = arith.constant 0 : i32
    return %c0_i32, %arg1 : i32, i32
  }
  func.func @transform_2(%arg0: i32, %arg1: i32) -> (i32, i32) {
    %c0_i32 = arith.constant 0 : i32
    %c0_i32_0 = arith.constant 0 : i32
    return %c0_i32, %arg1 : i32, i32
  }
  func.func @transform_3(%arg0: i32, %arg1: i32) -> (i32, i32) {
    %c0_i32 = arith.constant 0 : i32
    return %arg0, %arg1 : i32, i32
  }
  func.func @transform_4(%arg0: i32, %arg1: i32) -> (i32, i32) {
    %c0_i32 = arith.constant 0 : i32
    return %arg0, %arg1 : i32, i32
  }
}

module attributes {stable_mosaic.version = 11 : i64} {
  func.func @_matmul_bn_kernel(%arg0: i32, %arg1: i32, %arg2: memref<64x384xbf16, #tpu.memory_space<vmem>>, %arg3: memref<384x128xbf16, #tpu.memory_space<vmem>>, %arg4: memref<1x128xf32, #tpu.memory_space<vmem>>, %arg5: memref<64x128xbf16, #tpu.memory_space<vmem>>) attributes {dimension_semantics = [#tpu.dimension_semantics<parallel>, #tpu.dimension_semantics<parallel>], iteration_bounds = array<i64: 1, 1>, scalar_prefetch = 0 : i64, scratch_operands = 0 : i64, tpu.core_type = #tpu.core_type<tc>, window_params = [{transform_indices = @transform_0, window_bounds = array<i64: 64, 384>}, {transform_indices = @transform_1, window_bounds = array<i64: 384, 128>}, {transform_indices = @transform_2, window_bounds = array<i64: 1, 128>}, {transform_indices = @transform_3, window_bounds = array<i64: 64, 128>}]} {
    %c0 = arith.constant 0 : index
    %c0_0 = arith.constant 0 : index
    %0 = vector.load %arg2[%c0, %c0_0] : memref<64x384xbf16, #tpu.memory_space<vmem>>, vector<64x384xbf16>
    %c0_1 = arith.constant 0 : index
    %c0_2 = arith.constant 0 : index
    %1 = vector.load %arg3[%c0_1, %c0_2] : memref<384x128xbf16, #tpu.memory_space<vmem>>, vector<384x128xbf16>
    %cst = arith.constant dense<0.000000e+00> : vector<64x128xf32>
    %2 = tpu.matmul %0, %1, %cst {dimension_numbers = #tpu.dot_dimension_numbers<[1], [0], [0], [1], [0, 0, 1, 1], [], []>} : vector<64x384xbf16>, vector<384x128xbf16>, vector<64x128xf32> -> vector<64x128xf32>
    %c0_3 = arith.constant 0 : index
    %c0_4 = arith.constant 0 : index
    %3 = vector.load %arg4[%c0_3, %c0_4] : memref<1x128xf32, #tpu.memory_space<vmem>>, vector<1x128xf32>
    %4 = vector.broadcast %3 : vector<1x128xf32> to vector<64x128xf32>
    %5 = arith.addf %2, %4 : vector<64x128xf32>
    %cst_5 = arith.constant 0.000000e+00 : f32
    %6 = vector.broadcast %cst_5 : f32 to vector<64x128xf32>
    %7 = arith.maximumf %5, %6 : vector<64x128xf32>
    %8 = arith.truncf %7 : vector<64x128xf32> to vector<64x128xbf16>
    %c0_6 = arith.constant 0 : index
    %c0_7 = arith.constant 0 : index
    %9 = vector.load %arg5[%c0_6, %c0_7] : memref<64x128xbf16, #tpu.memory_space<vmem>>, vector<64x128xbf16>
    tpu.vector_store %arg5[%c0_6, %c0_7], %8 {strides = array<i32>} : memref<64x128xbf16, #tpu.memory_space<vmem>>, vector<64x128xbf16>,
    return
  }
  func.func @transform_0(%arg0: i32, %arg1: i32) -> (i32, i32) {
    %c0_i32 = arith.constant 0 : i32
    %c0_i32_0 = arith.constant 0 : i32
    return %arg0, %c0_i32 : i32, i32
  }
  func.func @transform_1(%arg0: i32, %arg1: i32) -> (i32, i32) {
    %c0_i32 = arith.constant 0 : i32
    %c0_i32_0 = arith.constant 0 : i32
    return %c0_i32, %arg1 : i32, i32
  }
  func.func @transform_2(%arg0: i32, %arg1: i32) -> (i32, i32) {
    %c0_i32 = arith.constant 0 : i32
    %c0_i32_0 = arith.constant 0 : i32
    return %c0_i32, %arg1 : i32, i32
  }
  func.func @transform_3(%arg0: i32, %arg1: i32) -> (i32, i32) {
    %c0_i32 = arith.constant 0 : i32
    return %arg0, %arg1 : i32, i32
  }
}

module attributes {stable_mosaic.version = 11 : i64} {
  func.func @_matmul_bn_kernel(%arg0: i32, %arg1: i32, %arg2: memref<64x128xbf16, #tpu.memory_space<vmem>>, %arg3: memref<128x128xbf16, #tpu.memory_space<vmem>>, %arg4: memref<1x128xf32, #tpu.memory_space<vmem>>, %arg5: memref<64x128xbf16, #tpu.memory_space<vmem>>) attributes {dimension_semantics = [#tpu.dimension_semantics<parallel>, #tpu.dimension_semantics<parallel>], iteration_bounds = array<i64: 1, 1>, scalar_prefetch = 0 : i64, scratch_operands = 0 : i64, tpu.core_type = #tpu.core_type<tc>, window_params = [{transform_indices = @transform_0, window_bounds = array<i64: 64, 128>}, {transform_indices = @transform_1, window_bounds = array<i64: 128, 128>}, {transform_indices = @transform_2, window_bounds = array<i64: 1, 128>}, {transform_indices = @transform_3, window_bounds = array<i64: 64, 128>}]} {
    %c0 = arith.constant 0 : index
    %c0_0 = arith.constant 0 : index
    %0 = vector.load %arg2[%c0, %c0_0] : memref<64x128xbf16, #tpu.memory_space<vmem>>, vector<64x128xbf16>
    %c0_1 = arith.constant 0 : index
    %c0_2 = arith.constant 0 : index
    %1 = vector.load %arg3[%c0_1, %c0_2] : memref<128x128xbf16, #tpu.memory_space<vmem>>, vector<128x128xbf16>
    %cst = arith.constant dense<0.000000e+00> : vector<64x128xf32>
    %2 = tpu.matmul %0, %1, %cst {dimension_numbers = #tpu.dot_dimension_numbers<[1], [0], [0], [1], [0, 0, 1, 1], [], []>} : vector<64x128xbf16>, vector<128x128xbf16>, vector<64x128xf32> -> vector<64x128xf32>
    %c0_3 = arith.constant 0 : index
    %c0_4 = arith.constant 0 : index
    %3 = vector.load %arg4[%c0_3, %c0_4] : memref<1x128xf32, #tpu.memory_space<vmem>>, vector<1x128xf32>
    %4 = vector.broadcast %3 : vector<1x128xf32> to vector<64x128xf32>
    %5 = arith.addf %2, %4 : vector<64x128xf32>
    %6 = arith.truncf %5 : vector<64x128xf32> to vector<64x128xbf16>
    %c0_5 = arith.constant 0 : index
    %c0_6 = arith.constant 0 : index
    %7 = vector.load %arg5[%c0_5, %c0_6] : memref<64x128xbf16, #tpu.memory_space<vmem>>, vector<64x128xbf16>
    tpu.vector_store %arg5[%c0_5, %c0_6], %6 {strides = array<i32>} : memref<64x128xbf16, #tpu.memory_space<vmem>>, vector<64x128xbf16>,
    return
  }
  func.func @transform_0(%arg0: i32, %arg1: i32) -> (i32, i32) {
    %c0_i32 = arith.constant 0 : i32
    %c0_i32_0 = arith.constant 0 : i32
    return %arg0, %c0_i32 : i32, i32
  }
  func.func @transform_1(%arg0: i32, %arg1: i32) -> (i32, i32) {
    %c0_i32 = arith.constant 0 : i32
    %c0_i32_0 = arith.constant 0 : i32
    return %c0_i32, %arg1 : i32, i32
  }
  func.func @transform_2(%arg0: i32, %arg1: i32) -> (i32, i32) {
    %c0_i32 = arith.constant 0 : i32
    %c0_i32_0 = arith.constant 0 : i32
    return %c0_i32, %arg1 : i32, i32
  }
  func.func @transform_3(%arg0: i32, %arg1: i32) -> (i32, i32) {
    %c0_i32 = arith.constant 0 : i32
    return %arg0, %arg1 : i32, i32
  }
}

module attributes {stable_mosaic.version = 11 : i64} {
  func.func @_self_attention_kernel(%arg0: i32, %arg1: memref<1x25x64xbf16, #tpu.memory_space<vmem>>, %arg2: memref<64x256xbf16, #tpu.memory_space<vmem>>, %arg3: memref<1x256xf32, #tpu.memory_space<vmem>>, %arg4: memref<64x64xbf16, #tpu.memory_space<vmem>>, %arg5: memref<1x64xf32, #tpu.memory_space<vmem>>, %arg6: memref<1x1xf32, #tpu.memory_space<vmem>>, %arg7: memref<1x25x64xbf16, #tpu.memory_space<vmem>>) attributes {dimension_semantics = [#tpu.dimension_semantics<parallel>], iteration_bounds = array<i64: 2>, scalar_prefetch = 0 : i64, scratch_operands = 0 : i64, tpu.core_type = #tpu.core_type<tc>, window_params = [{transform_indices = @transform_0, window_bounds = array<i64: 1, 25, 64>}, {pipeline_mode = #tpu.pipeline_mode<synchronous>, transform_indices = @transform_1, window_bounds = array<i64: 64, 256>}, {pipeline_mode = #tpu.pipeline_mode<synchronous>, transform_indices = @transform_2, window_bounds = array<i64: 1, 256>}, {pipeline_mode = #tpu.pipeline_mode<synchronous>, transform_indices = @transform_3, window_bounds = array<i64: 64, 64>}, {pipeline_mode = #tpu.pipeline_mode<synchronous>, transform_indices = @transform_4, window_bounds = array<i64: 1, 64>}, {pipeline_mode = #tpu.pipeline_mode<synchronous>, transform_indices = @transform_5, window_bounds = array<i64: 1, 1>}, {transform_indices = @transform_6, window_bounds = array<i64: 1, 25, 64>}]} {
    %c0 = arith.constant 0 : index
    %c0_0 = arith.constant 0 : index
    %c0_1 = arith.constant 0 : index
    %0 = vector.load %arg1[%c0, %c0_0, %c0_1] : memref<1x25x64xbf16, #tpu.memory_space<vmem>>, vector<1x25x64xbf16>
    %1 = vector.shape_cast %0 : vector<1x25x64xbf16> to vector<25x64xbf16>
    %c0_2 = arith.constant 0 : index
    %c0_3 = arith.constant 0 : index
    %2 = vector.load %arg2[%c0_2, %c0_3] : memref<64x256xbf16, #tpu.memory_space<vmem>>, vector<64x256xbf16>
    %cst = arith.constant dense<0.000000e+00> : vector<25x256xf32>
    %3 = tpu.matmul %1, %2, %cst {dimension_numbers = #tpu.dot_dimension_numbers<[1], [0], [0], [1], [0, 0, 1, 1], [], []>} : vector<25x64xbf16>, vector<64x256xbf16>, vector<25x256xf32> -> vector<25x256xf32>
    %c0_4 = arith.constant 0 : index
    %c0_5 = arith.constant 0 : index
    %4 = vector.load %arg3[%c0_4, %c0_5] : memref<1x256xf32, #tpu.memory_space<vmem>>, vector<1x256xf32>
    %5 = vector.broadcast %4 : vector<1x256xf32> to vector<25x256xf32>
    %6 = arith.addf %3, %5 : vector<25x256xf32>
    %7 = vector.extract_strided_slice %6 {offsets = [0, 0], sizes = [25, 128], strides = [1, 1]} : vector<25x256xf32> to vector<25x128xf32>
    %8 = vector.extract_strided_slice %6 {offsets = [0, 128], sizes = [25, 128], strides = [1, 1]} : vector<25x256xf32> to vector<25x128xf32>
    %c0_6 = arith.constant 0 : index
    %c0_7 = arith.constant 0 : index
    %9 = vector.load %arg4[%c0_6, %c0_7] : memref<64x64xbf16, #tpu.memory_space<vmem>>, vector<64x64xbf16>
    %cst_8 = arith.constant dense<0.000000e+00> : vector<25x64xf32>
    %10 = tpu.matmul %1, %9, %cst_8 {dimension_numbers = #tpu.dot_dimension_numbers<[1], [0], [0], [1], [0, 0, 1, 1], [], []>} : vector<25x64xbf16>, vector<64x64xbf16>, vector<25x64xf32> -> vector<25x64xf32>
    %c0_9 = arith.constant 0 : index
    %c0_10 = arith.constant 0 : index
    %11 = vector.load %arg5[%c0_9, %c0_10] : memref<1x64xf32, #tpu.memory_space<vmem>>, vector<1x64xf32>
    %12 = vector.broadcast %11 : vector<1x64xf32> to vector<25x64xf32>
    %13 = arith.addf %10, %12 : vector<25x64xf32>
    %cst_11 = arith.constant dense<0.000000e+00> : vector<25x25xf32>
    %14 = tpu.matmul %7, %8, %cst_11 {dimension_numbers = #tpu.dot_dimension_numbers<[1], [1], [0], [0], [0, 0, 1, 0], [], []>} : vector<25x128xf32>, vector<25x128xf32>, vector<25x25xf32> -> vector<25x25xf32>
    %cst_12 = arith.constant dense<0xFF800000> : vector<25xf32>
    %15 = vector.multi_reduction <maximumf>, %14, %cst_12 [1] : vector<25x25xf32> to vector<25xf32>
    %16 = vector.shape_cast %15 : vector<25xf32> to vector<25x1xf32>
    %17 = vector.broadcast %16 : vector<25x1xf32> to vector<25x25xf32>
    %18 = arith.subf %14, %17 : vector<25x25xf32>
    %19 = math.exp %18 : vector<25x25xf32>
    %cst_13 = arith.constant dense<0.000000e+00> : vector<25xf32>
    %20 = vector.multi_reduction <add>, %19, %cst_13 [1] : vector<25x25xf32> to vector<25xf32>
    %21 = vector.shape_cast %20 : vector<25xf32> to vector<25x1xf32>
    %22 = tpu.reciprocal %21 {approx = true} : vector<25x1xf32> -> vector<25x1xf32>
    %23 = vector.broadcast %22 : vector<25x1xf32> to vector<25x25xf32>
    %24 = arith.mulf %19, %23 : vector<25x25xf32>
    %25 = arith.truncf %24 : vector<25x25xf32> to vector<25x25xbf16>
    %26 = arith.truncf %13 : vector<25x64xf32> to vector<25x64xbf16>
    %cst_14 = arith.constant dense<0.000000e+00> : vector<25x64xf32>
    %27 = tpu.matmul %25, %26, %cst_14 {dimension_numbers = #tpu.dot_dimension_numbers<[1], [0], [0], [1], [0, 0, 1, 1], [], []>} : vector<25x25xbf16>, vector<25x64xbf16>, vector<25x64xf32> -> vector<25x64xf32>
    %c0_15 = arith.constant 0 : index
    %c0_16 = arith.constant 0 : index
    %28 = vector.load %arg6[%c0_15, %c0_16] : memref<1x1xf32, #tpu.memory_space<vmem>>, vector<1x1xf32>
    %29 = vector.broadcast %28 : vector<1x1xf32> to vector<25x64xf32>
    %30 = arith.mulf %29, %27 : vector<25x64xf32>
    %31 = arith.extf %1 : vector<25x64xbf16> to vector<25x64xf32>
    %32 = arith.addf %30, %31 : vector<25x64xf32>
    %33 = arith.truncf %32 : vector<25x64xf32> to vector<25x64xbf16>
    %c0_17 = arith.constant 0 : index
    %c0_18 = arith.constant 0 : index
    %c0_19 = arith.constant 0 : index
    %34 = vector.load %arg7[%c0_17, %c0_18, %c0_19] : memref<1x25x64xbf16, #tpu.memory_space<vmem>>, vector<1x25x64xbf16>
    %35 = vector.shape_cast %34 : vector<1x25x64xbf16> to vector<25x64xbf16>
    %36 = vector.shape_cast %33 : vector<25x64xbf16> to vector<1x25x64xbf16>
    tpu.vector_store %arg7[%c0_17, %c0_18, %c0_19], %36 {strides = array<i32>} : memref<1x25x64xbf16, #tpu.memory_space<vmem>>, vector<1x25x64xbf16>,
    return
  }
  func.func @transform_0(%arg0: i32) -> (i32, i32, i32) {
    %c0_i32 = arith.constant 0 : i32
    %c0_i32_0 = arith.constant 0 : i32
    %c0_i32_1 = arith.constant 0 : i32
    return %arg0, %c0_i32, %c0_i32_0 : i32, i32, i32
  }
  func.func @transform_1(%arg0: i32) -> (i32, i32) {
    %c0_i32 = arith.constant 0 : i32
    %c0_i32_0 = arith.constant 0 : i32
    %c0_i32_1 = arith.constant 0 : i32
    return %c0_i32, %c0_i32_0 : i32, i32
  }
  func.func @transform_2(%arg0: i32) -> (i32, i32) {
    %c0_i32 = arith.constant 0 : i32
    %c0_i32_0 = arith.constant 0 : i32
    %c0_i32_1 = arith.constant 0 : i32
    return %c0_i32, %c0_i32_0 : i32, i32
  }
  func.func @transform_3(%arg0: i32) -> (i32, i32) {
    %c0_i32 = arith.constant 0 : i32
    %c0_i32_0 = arith.constant 0 : i32
    %c0_i32_1 = arith.constant 0 : i32
    return %c0_i32, %c0_i32_0 : i32, i32
  }
  func.func @transform_4(%arg0: i32) -> (i32, i32) {
    %c0_i32 = arith.constant 0 : i32
    %c0_i32_0 = arith.constant 0 : i32
    %c0_i32_1 = arith.constant 0 : i32
    return %c0_i32, %c0_i32_0 : i32, i32
  }
  func.func @transform_5(%arg0: i32) -> (i32, i32) {
    %c0_i32 = arith.constant 0 : i32
    %c0_i32_0 = arith.constant 0 : i32
    %c0_i32_1 = arith.constant 0 : i32
    return %c0_i32, %c0_i32_0 : i32, i32
  }
  func.func @transform_6(%arg0: i32) -> (i32, i32, i32) {
    %c0_i32 = arith.constant 0 : i32
    %c0_i32_0 = arith.constant 0 : i32
    %c0_i32_1 = arith.constant 0 : i32
    return %arg0, %c0_i32, %c0_i32_0 : i32, i32, i32
  }
}

module attributes {stable_mosaic.version = 11 : i64} {
  func.func @_matmul_bn_kernel(%arg0: i32, %arg1: i32, %arg2: memref<64x640xbf16, #tpu.memory_space<vmem>>, %arg3: memref<640x128xbf16, #tpu.memory_space<vmem>>, %arg4: memref<1x128xf32, #tpu.memory_space<vmem>>, %arg5: memref<64x128xbf16, #tpu.memory_space<vmem>>, %arg6: memref<64x128xbf16, #tpu.memory_space<vmem>>) attributes {dimension_semantics = [#tpu.dimension_semantics<parallel>, #tpu.dimension_semantics<parallel>], iteration_bounds = array<i64: 1, 1>, scalar_prefetch = 0 : i64, scratch_operands = 0 : i64, tpu.core_type = #tpu.core_type<tc>, window_params = [{transform_indices = @transform_0, window_bounds = array<i64: 64, 640>}, {transform_indices = @transform_1, window_bounds = array<i64: 640, 128>}, {transform_indices = @transform_2, window_bounds = array<i64: 1, 128>}, {transform_indices = @transform_3, window_bounds = array<i64: 64, 128>}, {transform_indices = @transform_4, window_bounds = array<i64: 64, 128>}]} {
    %c0 = arith.constant 0 : index
    %c0_0 = arith.constant 0 : index
    %0 = vector.load %arg2[%c0, %c0_0] : memref<64x640xbf16, #tpu.memory_space<vmem>>, vector<64x640xbf16>
    %c0_1 = arith.constant 0 : index
    %c0_2 = arith.constant 0 : index
    %1 = vector.load %arg3[%c0_1, %c0_2] : memref<640x128xbf16, #tpu.memory_space<vmem>>, vector<640x128xbf16>
    %cst = arith.constant dense<0.000000e+00> : vector<64x128xf32>
    %2 = tpu.matmul %0, %1, %cst {dimension_numbers = #tpu.dot_dimension_numbers<[1], [0], [0], [1], [0, 0, 1, 1], [], []>} : vector<64x640xbf16>, vector<640x128xbf16>, vector<64x128xf32> -> vector<64x128xf32>
    %c0_3 = arith.constant 0 : index
    %c0_4 = arith.constant 0 : index
    %3 = vector.load %arg4[%c0_3, %c0_4] : memref<1x128xf32, #tpu.memory_space<vmem>>, vector<1x128xf32>
    %4 = vector.broadcast %3 : vector<1x128xf32> to vector<64x128xf32>
    %5 = arith.addf %2, %4 : vector<64x128xf32>
    %c0_5 = arith.constant 0 : index
    %c0_6 = arith.constant 0 : index
    %6 = vector.load %arg5[%c0_5, %c0_6] : memref<64x128xbf16, #tpu.memory_space<vmem>>, vector<64x128xbf16>
    %7 = arith.extf %6 : vector<64x128xbf16> to vector<64x128xf32>
    %8 = arith.addf %5, %7 : vector<64x128xf32>
    %cst_7 = arith.constant 0.000000e+00 : f32
    %9 = vector.broadcast %cst_7 : f32 to vector<64x128xf32>
    %10 = arith.maximumf %8, %9 : vector<64x128xf32>
    %11 = arith.truncf %10 : vector<64x128xf32> to vector<64x128xbf16>
    %c0_8 = arith.constant 0 : index
    %c0_9 = arith.constant 0 : index
    %12 = vector.load %arg6[%c0_8, %c0_9] : memref<64x128xbf16, #tpu.memory_space<vmem>>, vector<64x128xbf16>
    tpu.vector_store %arg6[%c0_8, %c0_9], %11 {strides = array<i32>} : memref<64x128xbf16, #tpu.memory_space<vmem>>, vector<64x128xbf16>,
    return
  }
  func.func @transform_0(%arg0: i32, %arg1: i32) -> (i32, i32) {
    %c0_i32 = arith.constant 0 : i32
    %c0_i32_0 = arith.constant 0 : i32
    return %arg0, %c0_i32 : i32, i32
  }
  func.func @transform_1(%arg0: i32, %arg1: i32) -> (i32, i32) {
    %c0_i32 = arith.constant 0 : i32
    %c0_i32_0 = arith.constant 0 : i32
    return %c0_i32, %arg1 : i32, i32
  }
  func.func @transform_2(%arg0: i32, %arg1: i32) -> (i32, i32) {
    %c0_i32 = arith.constant 0 : i32
    %c0_i32_0 = arith.constant 0 : i32
    return %c0_i32, %arg1 : i32, i32
  }
  func.func @transform_3(%arg0: i32, %arg1: i32) -> (i32, i32) {
    %c0_i32 = arith.constant 0 : i32
    return %arg0, %arg1 : i32, i32
  }
  func.func @transform_4(%arg0: i32, %arg1: i32) -> (i32, i32) {
    %c0_i32 = arith.constant 0 : i32
    return %arg0, %arg1 : i32, i32
  }
}

module attributes {stable_mosaic.version = 11 : i64} {
  func.func @_matmul_bn_kernel(%arg0: i32, %arg1: i32, %arg2: memref<64x640xbf16, #tpu.memory_space<vmem>>, %arg3: memref<640x128xbf16, #tpu.memory_space<vmem>>, %arg4: memref<1x128xf32, #tpu.memory_space<vmem>>, %arg5: memref<64x128xbf16, #tpu.memory_space<vmem>>) attributes {dimension_semantics = [#tpu.dimension_semantics<parallel>, #tpu.dimension_semantics<parallel>], iteration_bounds = array<i64: 1, 1>, scalar_prefetch = 0 : i64, scratch_operands = 0 : i64, tpu.core_type = #tpu.core_type<tc>, window_params = [{transform_indices = @transform_0, window_bounds = array<i64: 64, 640>}, {transform_indices = @transform_1, window_bounds = array<i64: 640, 128>}, {transform_indices = @transform_2, window_bounds = array<i64: 1, 128>}, {transform_indices = @transform_3, window_bounds = array<i64: 64, 128>}]} {
    %c0 = arith.constant 0 : index
    %c0_0 = arith.constant 0 : index
    %0 = vector.load %arg2[%c0, %c0_0] : memref<64x640xbf16, #tpu.memory_space<vmem>>, vector<64x640xbf16>
    %c0_1 = arith.constant 0 : index
    %c0_2 = arith.constant 0 : index
    %1 = vector.load %arg3[%c0_1, %c0_2] : memref<640x128xbf16, #tpu.memory_space<vmem>>, vector<640x128xbf16>
    %cst = arith.constant dense<0.000000e+00> : vector<64x128xf32>
    %2 = tpu.matmul %0, %1, %cst {dimension_numbers = #tpu.dot_dimension_numbers<[1], [0], [0], [1], [0, 0, 1, 1], [], []>} : vector<64x640xbf16>, vector<640x128xbf16>, vector<64x128xf32> -> vector<64x128xf32>
    %c0_3 = arith.constant 0 : index
    %c0_4 = arith.constant 0 : index
    %3 = vector.load %arg4[%c0_3, %c0_4] : memref<1x128xf32, #tpu.memory_space<vmem>>, vector<1x128xf32>
    %4 = vector.broadcast %3 : vector<1x128xf32> to vector<64x128xf32>
    %5 = arith.addf %2, %4 : vector<64x128xf32>
    %cst_5 = arith.constant 0.000000e+00 : f32
    %6 = vector.broadcast %cst_5 : f32 to vector<64x128xf32>
    %7 = arith.maximumf %5, %6 : vector<64x128xf32>
    %8 = arith.truncf %7 : vector<64x128xf32> to vector<64x128xbf16>
    %c0_6 = arith.constant 0 : index
    %c0_7 = arith.constant 0 : index
    %9 = vector.load %arg5[%c0_6, %c0_7] : memref<64x128xbf16, #tpu.memory_space<vmem>>, vector<64x128xbf16>
    tpu.vector_store %arg5[%c0_6, %c0_7], %8 {strides = array<i32>} : memref<64x128xbf16, #tpu.memory_space<vmem>>, vector<64x128xbf16>,
    return
  }
  func.func @transform_0(%arg0: i32, %arg1: i32) -> (i32, i32) {
    %c0_i32 = arith.constant 0 : i32
    %c0_i32_0 = arith.constant 0 : i32
    return %arg0, %c0_i32 : i32, i32
  }
  func.func @transform_1(%arg0: i32, %arg1: i32) -> (i32, i32) {
    %c0_i32 = arith.constant 0 : i32
    %c0_i32_0 = arith.constant 0 : i32
    return %c0_i32, %arg1 : i32, i32
  }
  func.func @transform_2(%arg0: i32, %arg1: i32) -> (i32, i32) {
    %c0_i32 = arith.constant 0 : i32
    %c0_i32_0 = arith.constant 0 : i32
    return %c0_i32, %arg1 : i32, i32
  }
  func.func @transform_3(%arg0: i32, %arg1: i32) -> (i32, i32) {
    %c0_i32 = arith.constant 0 : i32
    return %arg0, %arg1 : i32, i32
  }
}

module attributes {stable_mosaic.version = 11 : i64} {
  func.func @_matmul_bn_kernel(%arg0: i32, %arg1: i32, %arg2: memref<32x640xbf16, #tpu.memory_space<vmem>>, %arg3: memref<640x128xbf16, #tpu.memory_space<vmem>>, %arg4: memref<1x128xf32, #tpu.memory_space<vmem>>, %arg5: memref<32x128xbf16, #tpu.memory_space<vmem>>) attributes {dimension_semantics = [#tpu.dimension_semantics<parallel>, #tpu.dimension_semantics<parallel>], iteration_bounds = array<i64: 1, 1>, scalar_prefetch = 0 : i64, scratch_operands = 0 : i64, tpu.core_type = #tpu.core_type<tc>, window_params = [{transform_indices = @transform_0, window_bounds = array<i64: 32, 640>}, {transform_indices = @transform_1, window_bounds = array<i64: 640, 128>}, {transform_indices = @transform_2, window_bounds = array<i64: 1, 128>}, {transform_indices = @transform_3, window_bounds = array<i64: 32, 128>}]} {
    %c0 = arith.constant 0 : index
    %c0_0 = arith.constant 0 : index
    %0 = vector.load %arg2[%c0, %c0_0] : memref<32x640xbf16, #tpu.memory_space<vmem>>, vector<32x640xbf16>
    %c0_1 = arith.constant 0 : index
    %c0_2 = arith.constant 0 : index
    %1 = vector.load %arg3[%c0_1, %c0_2] : memref<640x128xbf16, #tpu.memory_space<vmem>>, vector<640x128xbf16>
    %cst = arith.constant dense<0.000000e+00> : vector<32x128xf32>
    %2 = tpu.matmul %0, %1, %cst {dimension_numbers = #tpu.dot_dimension_numbers<[1], [0], [0], [1], [0, 0, 1, 1], [], []>} : vector<32x640xbf16>, vector<640x128xbf16>, vector<32x128xf32> -> vector<32x128xf32>
    %c0_3 = arith.constant 0 : index
    %c0_4 = arith.constant 0 : index
    %3 = vector.load %arg4[%c0_3, %c0_4] : memref<1x128xf32, #tpu.memory_space<vmem>>, vector<1x128xf32>
    %4 = vector.broadcast %3 : vector<1x128xf32> to vector<32x128xf32>
    %5 = arith.addf %2, %4 : vector<32x128xf32>
    %cst_5 = arith.constant 0.000000e+00 : f32
    %6 = vector.broadcast %cst_5 : f32 to vector<32x128xf32>
    %7 = arith.maximumf %5, %6 : vector<32x128xf32>
    %8 = arith.truncf %7 : vector<32x128xf32> to vector<32x128xbf16>
    %c0_6 = arith.constant 0 : index
    %c0_7 = arith.constant 0 : index
    %9 = vector.load %arg5[%c0_6, %c0_7] : memref<32x128xbf16, #tpu.memory_space<vmem>>, vector<32x128xbf16>
    tpu.vector_store %arg5[%c0_6, %c0_7], %8 {strides = array<i32>} : memref<32x128xbf16, #tpu.memory_space<vmem>>, vector<32x128xbf16>,
    return
  }
  func.func @transform_0(%arg0: i32, %arg1: i32) -> (i32, i32) {
    %c0_i32 = arith.constant 0 : i32
    %c0_i32_0 = arith.constant 0 : i32
    return %arg0, %c0_i32 : i32, i32
  }
  func.func @transform_1(%arg0: i32, %arg1: i32) -> (i32, i32) {
    %c0_i32 = arith.constant 0 : i32
    %c0_i32_0 = arith.constant 0 : i32
    return %c0_i32, %arg1 : i32, i32
  }
  func.func @transform_2(%arg0: i32, %arg1: i32) -> (i32, i32) {
    %c0_i32 = arith.constant 0 : i32
    %c0_i32_0 = arith.constant 0 : i32
    return %c0_i32, %arg1 : i32, i32
  }
  func.func @transform_3(%arg0: i32, %arg1: i32) -> (i32, i32) {
    %c0_i32 = arith.constant 0 : i32
    return %arg0, %arg1 : i32, i32
  }
}

module attributes {stable_mosaic.version = 11 : i64} {
  func.func @_matmul_bn_kernel(%arg0: i32, %arg1: i32, %arg2: memref<32x1152xbf16, #tpu.memory_space<vmem>>, %arg3: memref<1152x128xbf16, #tpu.memory_space<vmem>>, %arg4: memref<1x128xf32, #tpu.memory_space<vmem>>, %arg5: memref<32x128xbf16, #tpu.memory_space<vmem>>, %arg6: memref<32x128xbf16, #tpu.memory_space<vmem>>) attributes {dimension_semantics = [#tpu.dimension_semantics<parallel>, #tpu.dimension_semantics<parallel>], iteration_bounds = array<i64: 1, 1>, scalar_prefetch = 0 : i64, scratch_operands = 0 : i64, tpu.core_type = #tpu.core_type<tc>, window_params = [{transform_indices = @transform_0, window_bounds = array<i64: 32, 1152>}, {transform_indices = @transform_1, window_bounds = array<i64: 1152, 128>}, {transform_indices = @transform_2, window_bounds = array<i64: 1, 128>}, {transform_indices = @transform_3, window_bounds = array<i64: 32, 128>}, {transform_indices = @transform_4, window_bounds = array<i64: 32, 128>}]} {
    %c0 = arith.constant 0 : index
    %c0_0 = arith.constant 0 : index
    %0 = vector.load %arg2[%c0, %c0_0] : memref<32x1152xbf16, #tpu.memory_space<vmem>>, vector<32x1152xbf16>
    %c0_1 = arith.constant 0 : index
    %c0_2 = arith.constant 0 : index
    %1 = vector.load %arg3[%c0_1, %c0_2] : memref<1152x128xbf16, #tpu.memory_space<vmem>>, vector<1152x128xbf16>
    %cst = arith.constant dense<0.000000e+00> : vector<32x128xf32>
    %2 = tpu.matmul %0, %1, %cst {dimension_numbers = #tpu.dot_dimension_numbers<[1], [0], [0], [1], [0, 0, 1, 1], [], []>} : vector<32x1152xbf16>, vector<1152x128xbf16>, vector<32x128xf32> -> vector<32x128xf32>
    %c0_3 = arith.constant 0 : index
    %c0_4 = arith.constant 0 : index
    %3 = vector.load %arg4[%c0_3, %c0_4] : memref<1x128xf32, #tpu.memory_space<vmem>>, vector<1x128xf32>
    %4 = vector.broadcast %3 : vector<1x128xf32> to vector<32x128xf32>
    %5 = arith.addf %2, %4 : vector<32x128xf32>
    %c0_5 = arith.constant 0 : index
    %c0_6 = arith.constant 0 : index
    %6 = vector.load %arg5[%c0_5, %c0_6] : memref<32x128xbf16, #tpu.memory_space<vmem>>, vector<32x128xbf16>
    %7 = arith.extf %6 : vector<32x128xbf16> to vector<32x128xf32>
    %8 = arith.addf %5, %7 : vector<32x128xf32>
    %cst_7 = arith.constant 0.000000e+00 : f32
    %9 = vector.broadcast %cst_7 : f32 to vector<32x128xf32>
    %10 = arith.maximumf %8, %9 : vector<32x128xf32>
    %11 = arith.truncf %10 : vector<32x128xf32> to vector<32x128xbf16>
    %c0_8 = arith.constant 0 : index
    %c0_9 = arith.constant 0 : index
    %12 = vector.load %arg6[%c0_8, %c0_9] : memref<32x128xbf16, #tpu.memory_space<vmem>>, vector<32x128xbf16>
    tpu.vector_store %arg6[%c0_8, %c0_9], %11 {strides = array<i32>} : memref<32x128xbf16, #tpu.memory_space<vmem>>, vector<32x128xbf16>,
    return
  }
  func.func @transform_0(%arg0: i32, %arg1: i32) -> (i32, i32) {
    %c0_i32 = arith.constant 0 : i32
    %c0_i32_0 = arith.constant 0 : i32
    return %arg0, %c0_i32 : i32, i32
  }
  func.func @transform_1(%arg0: i32, %arg1: i32) -> (i32, i32) {
    %c0_i32 = arith.constant 0 : i32
    %c0_i32_0 = arith.constant 0 : i32
    return %c0_i32, %arg1 : i32, i32
  }
  func.func @transform_2(%arg0: i32, %arg1: i32) -> (i32, i32) {
    %c0_i32 = arith.constant 0 : i32
    %c0_i32_0 = arith.constant 0 : i32
    return %c0_i32, %arg1 : i32, i32
  }
  func.func @transform_3(%arg0: i32, %arg1: i32) -> (i32, i32) {
    %c0_i32 = arith.constant 0 : i32
    return %arg0, %arg1 : i32, i32
  }
  func.func @transform_4(%arg0: i32, %arg1: i32) -> (i32, i32) {
    %c0_i32 = arith.constant 0 : i32
    return %arg0, %arg1 : i32, i32
  }
}

module attributes {stable_mosaic.version = 11 : i64} {
  func.func @_matmul_bn_kernel(%arg0: i32, %arg1: i32, %arg2: memref<32x128xbf16, #tpu.memory_space<vmem>>, %arg3: memref<128x128xbf16, #tpu.memory_space<vmem>>, %arg4: memref<1x128xf32, #tpu.memory_space<vmem>>, %arg5: memref<32x128xbf16, #tpu.memory_space<vmem>>) attributes {dimension_semantics = [#tpu.dimension_semantics<parallel>, #tpu.dimension_semantics<parallel>], iteration_bounds = array<i64: 1, 1>, scalar_prefetch = 0 : i64, scratch_operands = 0 : i64, tpu.core_type = #tpu.core_type<tc>, window_params = [{transform_indices = @transform_0, window_bounds = array<i64: 32, 128>}, {transform_indices = @transform_1, window_bounds = array<i64: 128, 128>}, {transform_indices = @transform_2, window_bounds = array<i64: 1, 128>}, {transform_indices = @transform_3, window_bounds = array<i64: 32, 128>}]} {
    %c0 = arith.constant 0 : index
    %c0_0 = arith.constant 0 : index
    %0 = vector.load %arg2[%c0, %c0_0] : memref<32x128xbf16, #tpu.memory_space<vmem>>, vector<32x128xbf16>
    %c0_1 = arith.constant 0 : index
    %c0_2 = arith.constant 0 : index
    %1 = vector.load %arg3[%c0_1, %c0_2] : memref<128x128xbf16, #tpu.memory_space<vmem>>, vector<128x128xbf16>
    %cst = arith.constant dense<0.000000e+00> : vector<32x128xf32>
    %2 = tpu.matmul %0, %1, %cst {dimension_numbers = #tpu.dot_dimension_numbers<[1], [0], [0], [1], [0, 0, 1, 1], [], []>} : vector<32x128xbf16>, vector<128x128xbf16>, vector<32x128xf32> -> vector<32x128xf32>
    %c0_3 = arith.constant 0 : index
    %c0_4 = arith.constant 0 : index
    %3 = vector.load %arg4[%c0_3, %c0_4] : memref<1x128xf32, #tpu.memory_space<vmem>>, vector<1x128xf32>
    %4 = vector.broadcast %3 : vector<1x128xf32> to vector<32x128xf32>
    %5 = arith.addf %2, %4 : vector<32x128xf32>
    %6 = arith.truncf %5 : vector<32x128xf32> to vector<32x128xbf16>
    %c0_5 = arith.constant 0 : index
    %c0_6 = arith.constant 0 : index
    %7 = vector.load %arg5[%c0_5, %c0_6] : memref<32x128xbf16, #tpu.memory_space<vmem>>, vector<32x128xbf16>
    tpu.vector_store %arg5[%c0_5, %c0_6], %6 {strides = array<i32>} : memref<32x128xbf16, #tpu.memory_space<vmem>>, vector<32x128xbf16>,
    return
  }
  func.func @transform_0(%arg0: i32, %arg1: i32) -> (i32, i32) {
    %c0_i32 = arith.constant 0 : i32
    %c0_i32_0 = arith.constant 0 : i32
    return %arg0, %c0_i32 : i32, i32
  }
  func.func @transform_1(%arg0: i32, %arg1: i32) -> (i32, i32) {
    %c0_i32 = arith.constant 0 : i32
    %c0_i32_0 = arith.constant 0 : i32
    return %c0_i32, %arg1 : i32, i32
  }
  func.func @transform_2(%arg0: i32, %arg1: i32) -> (i32, i32) {
    %c0_i32 = arith.constant 0 : i32
    %c0_i32_0 = arith.constant 0 : i32
    return %c0_i32, %arg1 : i32, i32
  }
  func.func @transform_3(%arg0: i32, %arg1: i32) -> (i32, i32) {
    %c0_i32 = arith.constant 0 : i32
    return %arg0, %arg1 : i32, i32
  }
}

module attributes {stable_mosaic.version = 11 : i64} {
  func.func @_self_attention_kernel(%arg0: i32, %arg1: memref<1x9x128xbf16, #tpu.memory_space<vmem>>, %arg2: memref<128x256xbf16, #tpu.memory_space<vmem>>, %arg3: memref<1x256xf32, #tpu.memory_space<vmem>>, %arg4: memref<128x128xbf16, #tpu.memory_space<vmem>>, %arg5: memref<1x128xf32, #tpu.memory_space<vmem>>, %arg6: memref<1x1xf32, #tpu.memory_space<vmem>>, %arg7: memref<1x9x128xbf16, #tpu.memory_space<vmem>>) attributes {dimension_semantics = [#tpu.dimension_semantics<parallel>], iteration_bounds = array<i64: 2>, scalar_prefetch = 0 : i64, scratch_operands = 0 : i64, tpu.core_type = #tpu.core_type<tc>, window_params = [{transform_indices = @transform_0, window_bounds = array<i64: 1, 9, 128>}, {pipeline_mode = #tpu.pipeline_mode<synchronous>, transform_indices = @transform_1, window_bounds = array<i64: 128, 256>}, {pipeline_mode = #tpu.pipeline_mode<synchronous>, transform_indices = @transform_2, window_bounds = array<i64: 1, 256>}, {pipeline_mode = #tpu.pipeline_mode<synchronous>, transform_indices = @transform_3, window_bounds = array<i64: 128, 128>}, {pipeline_mode = #tpu.pipeline_mode<synchronous>, transform_indices = @transform_4, window_bounds = array<i64: 1, 128>}, {pipeline_mode = #tpu.pipeline_mode<synchronous>, transform_indices = @transform_5, window_bounds = array<i64: 1, 1>}, {transform_indices = @transform_6, window_bounds = array<i64: 1, 9, 128>}]} {
    %c0 = arith.constant 0 : index
    %c0_0 = arith.constant 0 : index
    %c0_1 = arith.constant 0 : index
    %0 = vector.load %arg1[%c0, %c0_0, %c0_1] : memref<1x9x128xbf16, #tpu.memory_space<vmem>>, vector<1x9x128xbf16>
    %1 = vector.shape_cast %0 : vector<1x9x128xbf16> to vector<9x128xbf16>
    %c0_2 = arith.constant 0 : index
    %c0_3 = arith.constant 0 : index
    %2 = vector.load %arg2[%c0_2, %c0_3] : memref<128x256xbf16, #tpu.memory_space<vmem>>, vector<128x256xbf16>
    %cst = arith.constant dense<0.000000e+00> : vector<9x256xf32>
    %3 = tpu.matmul %1, %2, %cst {dimension_numbers = #tpu.dot_dimension_numbers<[1], [0], [0], [1], [0, 0, 1, 1], [], []>} : vector<9x128xbf16>, vector<128x256xbf16>, vector<9x256xf32> -> vector<9x256xf32>
    %c0_4 = arith.constant 0 : index
    %c0_5 = arith.constant 0 : index
    %4 = vector.load %arg3[%c0_4, %c0_5] : memref<1x256xf32, #tpu.memory_space<vmem>>, vector<1x256xf32>
    %5 = vector.broadcast %4 : vector<1x256xf32> to vector<9x256xf32>
    %6 = arith.addf %3, %5 : vector<9x256xf32>
    %7 = vector.extract_strided_slice %6 {offsets = [0, 0], sizes = [9, 128], strides = [1, 1]} : vector<9x256xf32> to vector<9x128xf32>
    %8 = vector.extract_strided_slice %6 {offsets = [0, 128], sizes = [9, 128], strides = [1, 1]} : vector<9x256xf32> to vector<9x128xf32>
    %c0_6 = arith.constant 0 : index
    %c0_7 = arith.constant 0 : index
    %9 = vector.load %arg4[%c0_6, %c0_7] : memref<128x128xbf16, #tpu.memory_space<vmem>>, vector<128x128xbf16>
    %cst_8 = arith.constant dense<0.000000e+00> : vector<9x128xf32>
    %10 = tpu.matmul %1, %9, %cst_8 {dimension_numbers = #tpu.dot_dimension_numbers<[1], [0], [0], [1], [0, 0, 1, 1], [], []>} : vector<9x128xbf16>, vector<128x128xbf16>, vector<9x128xf32> -> vector<9x128xf32>
    %c0_9 = arith.constant 0 : index
    %c0_10 = arith.constant 0 : index
    %11 = vector.load %arg5[%c0_9, %c0_10] : memref<1x128xf32, #tpu.memory_space<vmem>>, vector<1x128xf32>
    %12 = vector.broadcast %11 : vector<1x128xf32> to vector<9x128xf32>
    %13 = arith.addf %10, %12 : vector<9x128xf32>
    %cst_11 = arith.constant dense<0.000000e+00> : vector<9x9xf32>
    %14 = tpu.matmul %7, %8, %cst_11 {dimension_numbers = #tpu.dot_dimension_numbers<[1], [1], [0], [0], [0, 0, 1, 0], [], []>} : vector<9x128xf32>, vector<9x128xf32>, vector<9x9xf32> -> vector<9x9xf32>
    %cst_12 = arith.constant dense<0xFF800000> : vector<9xf32>
    %15 = vector.multi_reduction <maximumf>, %14, %cst_12 [1] : vector<9x9xf32> to vector<9xf32>
    %16 = vector.shape_cast %15 : vector<9xf32> to vector<9x1xf32>
    %17 = vector.broadcast %16 : vector<9x1xf32> to vector<9x9xf32>
    %18 = arith.subf %14, %17 : vector<9x9xf32>
    %19 = math.exp %18 : vector<9x9xf32>
    %cst_13 = arith.constant dense<0.000000e+00> : vector<9xf32>
    %20 = vector.multi_reduction <add>, %19, %cst_13 [1] : vector<9x9xf32> to vector<9xf32>
    %21 = vector.shape_cast %20 : vector<9xf32> to vector<9x1xf32>
    %22 = tpu.reciprocal %21 {approx = true} : vector<9x1xf32> -> vector<9x1xf32>
    %23 = vector.broadcast %22 : vector<9x1xf32> to vector<9x9xf32>
    %24 = arith.mulf %19, %23 : vector<9x9xf32>
    %25 = arith.truncf %24 : vector<9x9xf32> to vector<9x9xbf16>
    %26 = arith.truncf %13 : vector<9x128xf32> to vector<9x128xbf16>
    %cst_14 = arith.constant dense<0.000000e+00> : vector<9x128xf32>
    %27 = tpu.matmul %25, %26, %cst_14 {dimension_numbers = #tpu.dot_dimension_numbers<[1], [0], [0], [1], [0, 0, 1, 1], [], []>} : vector<9x9xbf16>, vector<9x128xbf16>, vector<9x128xf32> -> vector<9x128xf32>
    %c0_15 = arith.constant 0 : index
    %c0_16 = arith.constant 0 : index
    %28 = vector.load %arg6[%c0_15, %c0_16] : memref<1x1xf32, #tpu.memory_space<vmem>>, vector<1x1xf32>
    %29 = vector.broadcast %28 : vector<1x1xf32> to vector<9x128xf32>
    %30 = arith.mulf %29, %27 : vector<9x128xf32>
    %31 = arith.extf %1 : vector<9x128xbf16> to vector<9x128xf32>
    %32 = arith.addf %30, %31 : vector<9x128xf32>
    %33 = arith.truncf %32 : vector<9x128xf32> to vector<9x128xbf16>
    %c0_17 = arith.constant 0 : index
    %c0_18 = arith.constant 0 : index
    %c0_19 = arith.constant 0 : index
    %34 = vector.load %arg7[%c0_17, %c0_18, %c0_19] : memref<1x9x128xbf16, #tpu.memory_space<vmem>>, vector<1x9x128xbf16>
    %35 = vector.shape_cast %34 : vector<1x9x128xbf16> to vector<9x128xbf16>
    %36 = vector.shape_cast %33 : vector<9x128xbf16> to vector<1x9x128xbf16>
    tpu.vector_store %arg7[%c0_17, %c0_18, %c0_19], %36 {strides = array<i32>} : memref<1x9x128xbf16, #tpu.memory_space<vmem>>, vector<1x9x128xbf16>,
    return
  }
  func.func @transform_0(%arg0: i32) -> (i32, i32, i32) {
    %c0_i32 = arith.constant 0 : i32
    %c0_i32_0 = arith.constant 0 : i32
    %c0_i32_1 = arith.constant 0 : i32
    return %arg0, %c0_i32, %c0_i32_0 : i32, i32, i32
  }
  func.func @transform_1(%arg0: i32) -> (i32, i32) {
    %c0_i32 = arith.constant 0 : i32
    %c0_i32_0 = arith.constant 0 : i32
    %c0_i32_1 = arith.constant 0 : i32
    return %c0_i32, %c0_i32_0 : i32, i32
  }
  func.func @transform_2(%arg0: i32) -> (i32, i32) {
    %c0_i32 = arith.constant 0 : i32
    %c0_i32_0 = arith.constant 0 : i32
    %c0_i32_1 = arith.constant 0 : i32
    return %c0_i32, %c0_i32_0 : i32, i32
  }
  func.func @transform_3(%arg0: i32) -> (i32, i32) {
    %c0_i32 = arith.constant 0 : i32
    %c0_i32_0 = arith.constant 0 : i32
    %c0_i32_1 = arith.constant 0 : i32
    return %c0_i32, %c0_i32_0 : i32, i32
  }
  func.func @transform_4(%arg0: i32) -> (i32, i32) {
    %c0_i32 = arith.constant 0 : i32
    %c0_i32_0 = arith.constant 0 : i32
    %c0_i32_1 = arith.constant 0 : i32
    return %c0_i32, %c0_i32_0 : i32, i32
  }
  func.func @transform_5(%arg0: i32) -> (i32, i32) {
    %c0_i32 = arith.constant 0 : i32
    %c0_i32_0 = arith.constant 0 : i32
    %c0_i32_1 = arith.constant 0 : i32
    return %c0_i32, %c0_i32_0 : i32, i32
  }
  func.func @transform_6(%arg0: i32) -> (i32, i32, i32) {
    %c0_i32 = arith.constant 0 : i32
    %c0_i32_0 = arith.constant 0 : i32
    %c0_i32_1 = arith.constant 0 : i32
    return %arg0, %c0_i32, %c0_i32_0 : i32, i32, i32
  }
}

module attributes {stable_mosaic.version = 11 : i64} {
  func.func @_matmul_bn_kernel(%arg0: i32, %arg1: i32, %arg2: memref<32x1152xbf16, #tpu.memory_space<vmem>>, %arg3: memref<1152x128xbf16, #tpu.memory_space<vmem>>, %arg4: memref<1x128xf32, #tpu.memory_space<vmem>>, %arg5: memref<32x128xbf16, #tpu.memory_space<vmem>>) attributes {dimension_semantics = [#tpu.dimension_semantics<parallel>, #tpu.dimension_semantics<parallel>], iteration_bounds = array<i64: 1, 1>, scalar_prefetch = 0 : i64, scratch_operands = 0 : i64, tpu.core_type = #tpu.core_type<tc>, window_params = [{transform_indices = @transform_0, window_bounds = array<i64: 32, 1152>}, {transform_indices = @transform_1, window_bounds = array<i64: 1152, 128>}, {transform_indices = @transform_2, window_bounds = array<i64: 1, 128>}, {transform_indices = @transform_3, window_bounds = array<i64: 32, 128>}]} {
    %c0 = arith.constant 0 : index
    %c0_0 = arith.constant 0 : index
    %0 = vector.load %arg2[%c0, %c0_0] : memref<32x1152xbf16, #tpu.memory_space<vmem>>, vector<32x1152xbf16>
    %c0_1 = arith.constant 0 : index
    %c0_2 = arith.constant 0 : index
    %1 = vector.load %arg3[%c0_1, %c0_2] : memref<1152x128xbf16, #tpu.memory_space<vmem>>, vector<1152x128xbf16>
    %cst = arith.constant dense<0.000000e+00> : vector<32x128xf32>
    %2 = tpu.matmul %0, %1, %cst {dimension_numbers = #tpu.dot_dimension_numbers<[1], [0], [0], [1], [0, 0, 1, 1], [], []>} : vector<32x1152xbf16>, vector<1152x128xbf16>, vector<32x128xf32> -> vector<32x128xf32>
    %c0_3 = arith.constant 0 : index
    %c0_4 = arith.constant 0 : index
    %3 = vector.load %arg4[%c0_3, %c0_4] : memref<1x128xf32, #tpu.memory_space<vmem>>, vector<1x128xf32>
    %4 = vector.broadcast %3 : vector<1x128xf32> to vector<32x128xf32>
    %5 = arith.addf %2, %4 : vector<32x128xf32>
    %cst_5 = arith.constant 0.000000e+00 : f32
    %6 = vector.broadcast %cst_5 : f32 to vector<32x128xf32>
    %7 = arith.maximumf %5, %6 : vector<32x128xf32>
    %8 = arith.truncf %7 : vector<32x128xf32> to vector<32x128xbf16>
    %c0_6 = arith.constant 0 : index
    %c0_7 = arith.constant 0 : index
    %9 = vector.load %arg5[%c0_6, %c0_7] : memref<32x128xbf16, #tpu.memory_space<vmem>>, vector<32x128xbf16>
    tpu.vector_store %arg5[%c0_6, %c0_7], %8 {strides = array<i32>} : memref<32x128xbf16, #tpu.memory_space<vmem>>, vector<32x128xbf16>,
    return
  }
  func.func @transform_0(%arg0: i32, %arg1: i32) -> (i32, i32) {
    %c0_i32 = arith.constant 0 : i32
    %c0_i32_0 = arith.constant 0 : i32
    return %arg0, %c0_i32 : i32, i32
  }
  func.func @transform_1(%arg0: i32, %arg1: i32) -> (i32, i32) {
    %c0_i32 = arith.constant 0 : i32
    %c0_i32_0 = arith.constant 0 : i32
    return %c0_i32, %arg1 : i32, i32
  }
  func.func @transform_2(%arg0: i32, %arg1: i32) -> (i32, i32) {
    %c0_i32 = arith.constant 0 : i32
    %c0_i32_0 = arith.constant 0 : i32
    return %c0_i32, %arg1 : i32, i32
  }
  func.func @transform_3(%arg0: i32, %arg1: i32) -> (i32, i32) {
    %c0_i32 = arith.constant 0 : i32
    return %arg0, %arg1 : i32, i32
  }
}

module attributes {stable_mosaic.version = 11 : i64} {
  func.func @_matmul_bn_kernel(%arg0: i32, %arg1: i32, %arg2: memref<16x1152xbf16, #tpu.memory_space<vmem>>, %arg3: memref<1152x256xbf16, #tpu.memory_space<vmem>>, %arg4: memref<1x256xf32, #tpu.memory_space<vmem>>, %arg5: memref<16x256xbf16, #tpu.memory_space<vmem>>) attributes {dimension_semantics = [#tpu.dimension_semantics<parallel>, #tpu.dimension_semantics<parallel>], iteration_bounds = array<i64: 1, 1>, scalar_prefetch = 0 : i64, scratch_operands = 0 : i64, tpu.core_type = #tpu.core_type<tc>, window_params = [{transform_indices = @transform_0, window_bounds = array<i64: 16, 1152>}, {transform_indices = @transform_1, window_bounds = array<i64: 1152, 256>}, {transform_indices = @transform_2, window_bounds = array<i64: 1, 256>}, {transform_indices = @transform_3, window_bounds = array<i64: 16, 256>}]} {
    %c0 = arith.constant 0 : index
    %c0_0 = arith.constant 0 : index
    %0 = vector.load %arg2[%c0, %c0_0] : memref<16x1152xbf16, #tpu.memory_space<vmem>>, vector<16x1152xbf16>
    %c0_1 = arith.constant 0 : index
    %c0_2 = arith.constant 0 : index
    %1 = vector.load %arg3[%c0_1, %c0_2] : memref<1152x256xbf16, #tpu.memory_space<vmem>>, vector<1152x256xbf16>
    %cst = arith.constant dense<0.000000e+00> : vector<16x256xf32>
    %2 = tpu.matmul %0, %1, %cst {dimension_numbers = #tpu.dot_dimension_numbers<[1], [0], [0], [1], [0, 0, 1, 1], [], []>} : vector<16x1152xbf16>, vector<1152x256xbf16>, vector<16x256xf32> -> vector<16x256xf32>
    %c0_3 = arith.constant 0 : index
    %c0_4 = arith.constant 0 : index
    %3 = vector.load %arg4[%c0_3, %c0_4] : memref<1x256xf32, #tpu.memory_space<vmem>>, vector<1x256xf32>
    %4 = vector.broadcast %3 : vector<1x256xf32> to vector<16x256xf32>
    %5 = arith.addf %2, %4 : vector<16x256xf32>
    %cst_5 = arith.constant 0.000000e+00 : f32
    %6 = vector.broadcast %cst_5 : f32 to vector<16x256xf32>
    %7 = arith.maximumf %5, %6 : vector<16x256xf32>
    %8 = arith.truncf %7 : vector<16x256xf32> to vector<16x256xbf16>
    %c0_6 = arith.constant 0 : index
    %c0_7 = arith.constant 0 : index
    %9 = vector.load %arg5[%c0_6, %c0_7] : memref<16x256xbf16, #tpu.memory_space<vmem>>, vector<16x256xbf16>
    tpu.vector_store %arg5[%c0_6, %c0_7], %8 {strides = array<i32>} : memref<16x256xbf16, #tpu.memory_space<vmem>>, vector<16x256xbf16>,
    return
  }
  func.func @transform_0(%arg0: i32, %arg1: i32) -> (i32, i32) {
    %c0_i32 = arith.constant 0 : i32
    %c0_i32_0 = arith.constant 0 : i32
    return %arg0, %c0_i32 : i32, i32
  }
  func.func @transform_1(%arg0: i32, %arg1: i32) -> (i32, i32) {
    %c0_i32 = arith.constant 0 : i32
    %c0_i32_0 = arith.constant 0 : i32
    return %c0_i32, %arg1 : i32, i32
  }
  func.func @transform_2(%arg0: i32, %arg1: i32) -> (i32, i32) {
    %c0_i32 = arith.constant 0 : i32
    %c0_i32_0 = arith.constant 0 : i32
    return %c0_i32, %arg1 : i32, i32
  }
  func.func @transform_3(%arg0: i32, %arg1: i32) -> (i32, i32) {
    %c0_i32 = arith.constant 0 : i32
    return %arg0, %arg1 : i32, i32
  }
}

module attributes {stable_mosaic.version = 11 : i64} {
  func.func @_matmul_bn_kernel(%arg0: i32, %arg1: i32, %arg2: memref<16x128xbf16, #tpu.memory_space<vmem>>, %arg3: memref<128x256xbf16, #tpu.memory_space<vmem>>, %arg4: memref<1x256xf32, #tpu.memory_space<vmem>>, %arg5: memref<16x256xbf16, #tpu.memory_space<vmem>>) attributes {dimension_semantics = [#tpu.dimension_semantics<parallel>, #tpu.dimension_semantics<parallel>], iteration_bounds = array<i64: 1, 1>, scalar_prefetch = 0 : i64, scratch_operands = 0 : i64, tpu.core_type = #tpu.core_type<tc>, window_params = [{transform_indices = @transform_0, window_bounds = array<i64: 16, 128>}, {transform_indices = @transform_1, window_bounds = array<i64: 128, 256>}, {transform_indices = @transform_2, window_bounds = array<i64: 1, 256>}, {transform_indices = @transform_3, window_bounds = array<i64: 16, 256>}]} {
    %c0 = arith.constant 0 : index
    %c0_0 = arith.constant 0 : index
    %0 = vector.load %arg2[%c0, %c0_0] : memref<16x128xbf16, #tpu.memory_space<vmem>>, vector<16x128xbf16>
    %c0_1 = arith.constant 0 : index
    %c0_2 = arith.constant 0 : index
    %1 = vector.load %arg3[%c0_1, %c0_2] : memref<128x256xbf16, #tpu.memory_space<vmem>>, vector<128x256xbf16>
    %cst = arith.constant dense<0.000000e+00> : vector<16x256xf32>
    %2 = tpu.matmul %0, %1, %cst {dimension_numbers = #tpu.dot_dimension_numbers<[1], [0], [0], [1], [0, 0, 1, 1], [], []>} : vector<16x128xbf16>, vector<128x256xbf16>, vector<16x256xf32> -> vector<16x256xf32>
    %c0_3 = arith.constant 0 : index
    %c0_4 = arith.constant 0 : index
    %3 = vector.load %arg4[%c0_3, %c0_4] : memref<1x256xf32, #tpu.memory_space<vmem>>, vector<1x256xf32>
    %4 = vector.broadcast %3 : vector<1x256xf32> to vector<16x256xf32>
    %5 = arith.addf %2, %4 : vector<16x256xf32>
    %6 = arith.truncf %5 : vector<16x256xf32> to vector<16x256xbf16>
    %c0_5 = arith.constant 0 : index
    %c0_6 = arith.constant 0 : index
    %7 = vector.load %arg5[%c0_5, %c0_6] : memref<16x256xbf16, #tpu.memory_space<vmem>>, vector<16x256xbf16>
    tpu.vector_store %arg5[%c0_5, %c0_6], %6 {strides = array<i32>} : memref<16x256xbf16, #tpu.memory_space<vmem>>, vector<16x256xbf16>,
    return
  }
  func.func @transform_0(%arg0: i32, %arg1: i32) -> (i32, i32) {
    %c0_i32 = arith.constant 0 : i32
    %c0_i32_0 = arith.constant 0 : i32
    return %arg0, %c0_i32 : i32, i32
  }
  func.func @transform_1(%arg0: i32, %arg1: i32) -> (i32, i32) {
    %c0_i32 = arith.constant 0 : i32
    %c0_i32_0 = arith.constant 0 : i32
    return %c0_i32, %arg1 : i32, i32
  }
  func.func @transform_2(%arg0: i32, %arg1: i32) -> (i32, i32) {
    %c0_i32 = arith.constant 0 : i32
    %c0_i32_0 = arith.constant 0 : i32
    return %c0_i32, %arg1 : i32, i32
  }
  func.func @transform_3(%arg0: i32, %arg1: i32) -> (i32, i32) {
    %c0_i32 = arith.constant 0 : i32
    return %arg0, %arg1 : i32, i32
  }
}

module attributes {stable_mosaic.version = 11 : i64} {
  func.func @_matmul_bn_kernel(%arg0: i32, %arg1: i32, %arg2: memref<16x2304xbf16, #tpu.memory_space<vmem>>, %arg3: memref<2304x256xbf16, #tpu.memory_space<vmem>>, %arg4: memref<1x256xf32, #tpu.memory_space<vmem>>, %arg5: memref<16x256xbf16, #tpu.memory_space<vmem>>, %arg6: memref<16x256xbf16, #tpu.memory_space<vmem>>) attributes {dimension_semantics = [#tpu.dimension_semantics<parallel>, #tpu.dimension_semantics<parallel>], iteration_bounds = array<i64: 1, 1>, scalar_prefetch = 0 : i64, scratch_operands = 0 : i64, tpu.core_type = #tpu.core_type<tc>, window_params = [{transform_indices = @transform_0, window_bounds = array<i64: 16, 2304>}, {transform_indices = @transform_1, window_bounds = array<i64: 2304, 256>}, {transform_indices = @transform_2, window_bounds = array<i64: 1, 256>}, {transform_indices = @transform_3, window_bounds = array<i64: 16, 256>}, {transform_indices = @transform_4, window_bounds = array<i64: 16, 256>}]} {
    %c0 = arith.constant 0 : index
    %c0_0 = arith.constant 0 : index
    %0 = vector.load %arg2[%c0, %c0_0] : memref<16x2304xbf16, #tpu.memory_space<vmem>>, vector<16x2304xbf16>
    %c0_1 = arith.constant 0 : index
    %c0_2 = arith.constant 0 : index
    %1 = vector.load %arg3[%c0_1, %c0_2] : memref<2304x256xbf16, #tpu.memory_space<vmem>>, vector<2304x256xbf16>
    %cst = arith.constant dense<0.000000e+00> : vector<16x256xf32>
    %2 = tpu.matmul %0, %1, %cst {dimension_numbers = #tpu.dot_dimension_numbers<[1], [0], [0], [1], [0, 0, 1, 1], [], []>} : vector<16x2304xbf16>, vector<2304x256xbf16>, vector<16x256xf32> -> vector<16x256xf32>
    %c0_3 = arith.constant 0 : index
    %c0_4 = arith.constant 0 : index
    %3 = vector.load %arg4[%c0_3, %c0_4] : memref<1x256xf32, #tpu.memory_space<vmem>>, vector<1x256xf32>
    %4 = vector.broadcast %3 : vector<1x256xf32> to vector<16x256xf32>
    %5 = arith.addf %2, %4 : vector<16x256xf32>
    %c0_5 = arith.constant 0 : index
    %c0_6 = arith.constant 0 : index
    %6 = vector.load %arg5[%c0_5, %c0_6] : memref<16x256xbf16, #tpu.memory_space<vmem>>, vector<16x256xbf16>
    %7 = arith.extf %6 : vector<16x256xbf16> to vector<16x256xf32>
    %8 = arith.addf %5, %7 : vector<16x256xf32>
    %cst_7 = arith.constant 0.000000e+00 : f32
    %9 = vector.broadcast %cst_7 : f32 to vector<16x256xf32>
    %10 = arith.maximumf %8, %9 : vector<16x256xf32>
    %11 = arith.truncf %10 : vector<16x256xf32> to vector<16x256xbf16>
    %c0_8 = arith.constant 0 : index
    %c0_9 = arith.constant 0 : index
    %12 = vector.load %arg6[%c0_8, %c0_9] : memref<16x256xbf16, #tpu.memory_space<vmem>>, vector<16x256xbf16>
    tpu.vector_store %arg6[%c0_8, %c0_9], %11 {strides = array<i32>} : memref<16x256xbf16, #tpu.memory_space<vmem>>, vector<16x256xbf16>,
    return
  }
  func.func @transform_0(%arg0: i32, %arg1: i32) -> (i32, i32) {
    %c0_i32 = arith.constant 0 : i32
    %c0_i32_0 = arith.constant 0 : i32
    return %arg0, %c0_i32 : i32, i32
  }
  func.func @transform_1(%arg0: i32, %arg1: i32) -> (i32, i32) {
    %c0_i32 = arith.constant 0 : i32
    %c0_i32_0 = arith.constant 0 : i32
    return %c0_i32, %arg1 : i32, i32
  }
  func.func @transform_2(%arg0: i32, %arg1: i32) -> (i32, i32) {
    %c0_i32 = arith.constant 0 : i32
    %c0_i32_0 = arith.constant 0 : i32
    return %c0_i32, %arg1 : i32, i32
  }
  func.func @transform_3(%arg0: i32, %arg1: i32) -> (i32, i32) {
    %c0_i32 = arith.constant 0 : i32
    return %arg0, %arg1 : i32, i32
  }
  func.func @transform_4(%arg0: i32, %arg1: i32) -> (i32, i32) {
    %c0_i32 = arith.constant 0 : i32
    return %arg0, %arg1 : i32, i32
  }
}

module attributes {stable_mosaic.version = 11 : i64} {
  func.func @_matmul_bn_kernel(%arg0: i32, %arg1: i32, %arg2: memref<16x2304xbf16, #tpu.memory_space<vmem>>, %arg3: memref<2304x256xbf16, #tpu.memory_space<vmem>>, %arg4: memref<1x256xf32, #tpu.memory_space<vmem>>, %arg5: memref<16x256xbf16, #tpu.memory_space<vmem>>) attributes {dimension_semantics = [#tpu.dimension_semantics<parallel>, #tpu.dimension_semantics<parallel>], iteration_bounds = array<i64: 1, 1>, scalar_prefetch = 0 : i64, scratch_operands = 0 : i64, tpu.core_type = #tpu.core_type<tc>, window_params = [{transform_indices = @transform_0, window_bounds = array<i64: 16, 2304>}, {transform_indices = @transform_1, window_bounds = array<i64: 2304, 256>}, {transform_indices = @transform_2, window_bounds = array<i64: 1, 256>}, {transform_indices = @transform_3, window_bounds = array<i64: 16, 256>}]} {
    %c0 = arith.constant 0 : index
    %c0_0 = arith.constant 0 : index
    %0 = vector.load %arg2[%c0, %c0_0] : memref<16x2304xbf16, #tpu.memory_space<vmem>>, vector<16x2304xbf16>
    %c0_1 = arith.constant 0 : index
    %c0_2 = arith.constant 0 : index
    %1 = vector.load %arg3[%c0_1, %c0_2] : memref<2304x256xbf16, #tpu.memory_space<vmem>>, vector<2304x256xbf16>
    %cst = arith.constant dense<0.000000e+00> : vector<16x256xf32>
    %2 = tpu.matmul %0, %1, %cst {dimension_numbers = #tpu.dot_dimension_numbers<[1], [0], [0], [1], [0, 0, 1, 1], [], []>} : vector<16x2304xbf16>, vector<2304x256xbf16>, vector<16x256xf32> -> vector<16x256xf32>
    %c0_3 = arith.constant 0 : index
    %c0_4 = arith.constant 0 : index
    %3 = vector.load %arg4[%c0_3, %c0_4] : memref<1x256xf32, #tpu.memory_space<vmem>>, vector<1x256xf32>
    %4 = vector.broadcast %3 : vector<1x256xf32> to vector<16x256xf32>
    %5 = arith.addf %2, %4 : vector<16x256xf32>
    %cst_5 = arith.constant 0.000000e+00 : f32
    %6 = vector.broadcast %cst_5 : f32 to vector<16x256xf32>
    %7 = arith.maximumf %5, %6 : vector<16x256xf32>
    %8 = arith.truncf %7 : vector<16x256xf32> to vector<16x256xbf16>
    %c0_6 = arith.constant 0 : index
    %c0_7 = arith.constant 0 : index
    %9 = vector.load %arg5[%c0_6, %c0_7] : memref<16x256xbf16, #tpu.memory_space<vmem>>, vector<16x256xbf16>
    tpu.vector_store %arg5[%c0_6, %c0_7], %8 {strides = array<i32>} : memref<16x256xbf16, #tpu.memory_space<vmem>>, vector<16x256xbf16>,
    return
  }
  func.func @transform_0(%arg0: i32, %arg1: i32) -> (i32, i32) {
    %c0_i32 = arith.constant 0 : i32
    %c0_i32_0 = arith.constant 0 : i32
    return %arg0, %c0_i32 : i32, i32
  }
  func.func @transform_1(%arg0: i32, %arg1: i32) -> (i32, i32) {
    %c0_i32 = arith.constant 0 : i32
    %c0_i32_0 = arith.constant 0 : i32
    return %c0_i32, %arg1 : i32, i32
  }
  func.func @transform_2(%arg0: i32, %arg1: i32) -> (i32, i32) {
    %c0_i32 = arith.constant 0 : i32
    %c0_i32_0 = arith.constant 0 : i32
    return %c0_i32, %arg1 : i32, i32
  }
  func.func @transform_3(%arg0: i32, %arg1: i32) -> (i32, i32) {
    %c0_i32 = arith.constant 0 : i32
    return %arg0, %arg1 : i32, i32
  }
}

</mosaic_0001>

<bundles_post_ra>
// kernel: _lambda_.23
= control target key start
LH: loop header
LB: loop body
LE: loop exit
PB: predicated region body
PF: predicated region fallthrough
CT: control target
= control target key end

     0   :  { %s2778_s1 = inlined_call_operand.vmem [shape: bf16[128,128], index: 1, kind: input, shape index: {}]   ;;  %s2779_s0 = inlined_call_operand.vmem [shape: bf16[800,128], index: 0, kind: input, shape index: {}]   ;;  %s2780_s2 = inlined_call_operand.vmem [shape: f32[1,128], index: 2, kind: input, shape index: {}]   ;;  %s2781_s3 = inlined_call_operand.vmem [shape: bf16[800,128], index: 3, kind: output, shape index: {}]  }
   0x1   :  { %v2271_v0 = vld [vmem:[%s2778_s1] sm:$0xff]   ;;  %v2272_v1 = vld [vmem:[%s2778_s1 + $0x8] sm:$0xff]   ;;  %v2273_v2 = vld [vmem:[%s2778_s1 + $0x10] sm:$0xff]  }
   0x2   :  { %2139 = vmatprep.subr.bf16.mxu0 %v2271_v0  ;;  %2255 = vmatprep.subr.bf16.mxu1 %v2271_v0  ;;  %v2274_v3 = vld [vmem:[%s2778_s1 + $0x18] sm:$0xff]   ;;  %v2279_v4 = vld [vmem:[%s2779_s0] sm:$0xff]   ;;  %v2281_v5 = vld [vmem:[%s2779_s0 + $0xd0] sm:$0xff]  }
   0x3   :  { %2140 = vmatpush3.bf16.msra.mxu0 %v2271_v0  ;;  %2263 = vmatpush3.bf16.msra.mxu1 %v2271_v0  ;;  %v2275_v6 = vld [vmem:[%s2778_s1 + $0x20] sm:$0xff]   ;;  %v2276_v7 = vld [vmem:[%s2778_s1 + $0x28] sm:$0xff]   ;;  %v2277_v8 = vld [vmem:[%s2778_s1 + $0x30] sm:$0xff]  }
   0x4   :  { %2141 = vmatprep.subr.bf16.mxu0 %v2272_v1  ;;  %2256 = vmatprep.subr.bf16.mxu1 %v2272_v1  ;;  %v2278_v9 = vld [vmem:[%s2778_s1 + $0x38] sm:$0xff]   ;;  %v2280_v10 = vld [vmem:[%s2779_s0 + $0x8] sm:$0xff]   ;;  %v2283_v12 = vld [vmem:[%s2779_s0 + $0x10] sm:$0xff]  }
   0x5   :  { %2155 = vmatprep.mubr.bf16.mxu0 %v2279_v4  ;;  %2207 = vmatprep.mubr.bf16.mxu1 %v2281_v5  ;;  %v2282_v11 = vld [vmem:[%s2779_s0 + $0xd8] sm:$0xff]   ;;  %v2285_v13 = vld [vmem:[%s2779_s0 + $0xe0] sm:$0xff]   ;;  %v2286_v15 = vld [vmem:[%s2779_s0 + $0xe8] sm:$0xff]  }
   0x6   :  { %v2284_v14 = vld [vmem:[%s2779_s0 + $0x18] sm:$0xff]   ;;  %v2287_v16 = vld [vmem:[%s2779_s0 + $0x20] sm:$0xff]   ;;  %v2289_v17 = vld [vmem:[%s2779_s0 + $0xf0] sm:$0xff]  }
   0x7   :  { %2142 = vmatpush3.bf16.msra.mxu0 %v2272_v1  ;;  %2264 = vmatpush3.bf16.msra.mxu1 %v2272_v1  ;;  %v2288_v18 = vld [vmem:[%s2779_s0 + $0x28] sm:$0xff]   ;;  %v2290_v19 = vld [vmem:[%s2779_s0 + $0xf8] sm:$0xff]   ;;  %v2291_v20 = vld [vmem:[%s2779_s0 + $0x30] sm:$0xff]  }
   0x8   :  { %2143 = vmatprep.subr.bf16.mxu0 %v2273_v2  ;;  %2257 = vmatprep.subr.bf16.mxu1 %v2273_v2  ;;  %v2293_v21 = vld [vmem:[%s2779_s0 + $0x100] sm:$0xff]   ;;  %v2292_v22 = vld [vmem:[%s2779_s0 + $0x38] sm:$0xff]   ;;  %v2294_v23 = vld [vmem:[%s2779_s0 + $0x108] sm:$0xff]  }
   0x9   :  { %v2295_v24 = vld [vmem:[%s2779_s0 + $0x40] sm:$0xff]   ;;  %v2297_v25 = vld [vmem:[%s2779_s0 + $0x110] sm:$0xff]   ;;  %v2296_v26 = vld [vmem:[%s2779_s0 + $0x48] sm:$0xff]  }
   0xa   :  { %v2298_v27 = vld [vmem:[%s2779_s0 + $0x118] sm:$0xff]   ;;  %v2299_v28 = vld [vmem:[%s2779_s0 + $0x50] sm:$0xff]   ;;  %v2301_v29 = vld [vmem:[%s2779_s0 + $0x120] sm:$0xff]  }
   0xb   :  { %2144 = vmatpush3.bf16.msra.mxu0 %v2273_v2  ;;  %2265 = vmatpush3.bf16.msra.mxu1 %v2273_v2  ;;  %v2300_v30 = vld [vmem:[%s2779_s0 + $0x58] sm:$0xff]   ;;  %v2302_v31 = vld [vmem:[%s2779_s0 + $0x128] sm:$0xff]   ;;  %v2303_v32 = vld [vmem:[%s2779_s0 + $0x60] sm:$0xff]  }
   0xc   :  { %2145 = vmatprep.subr.bf16.mxu0 %v2274_v3  ;;  %2258 = vmatprep.subr.bf16.mxu1 %v2274_v3  ;;  %v2305_v33 = vld [vmem:[%s2779_s0 + $0x130] sm:$0xff]   ;;  %v2304_v34 = vld [vmem:[%s2779_s0 + $0x68] sm:$0xff]   ;;  %v2306_v35 = vld [vmem:[%s2779_s0 + $0x138] sm:$0xff]  }
   0xd   :  { %v2307_v36 = vld [vmem:[%s2779_s0 + $0x70] sm:$0xff]   ;;  %v2309_v37 = vld [vmem:[%s2779_s0 + $0x140] sm:$0xff]   ;;  %v2308_v38 = vld [vmem:[%s2779_s0 + $0x78] sm:$0xff]  }
   0xe   :  { %v2310_v39 = vld [vmem:[%s2779_s0 + $0x148] sm:$0xff]   ;;  %v2311_v40 = vld [vmem:[%s2779_s0 + $0x80] sm:$0xff]   ;;  %v2313_v41 = vld [vmem:[%s2779_s0 + $0x150] sm:$0xff]  }
   0xf   :  { %2146 = vmatpush3.bf16.msra.mxu0 %v2274_v3  ;;  %2266 = vmatpush3.bf16.msra.mxu1 %v2274_v3  ;;  %v2312_v42 = vld [vmem:[%s2779_s0 + $0x88] sm:$0xff]   ;;  %v2314_v43 = vld [vmem:[%s2779_s0 + $0x158] sm:$0xff]   ;;  %v2315_v44 = vld [vmem:[%s2779_s0 + $0x90] sm:$0xff]  }
  0x10   :  { %2147 = vmatprep.subr.bf16.mxu0 %v2275_v6  ;;  %2259 = vmatprep.subr.bf16.mxu1 %v2275_v6  ;;  %v2317_v45 = vld [vmem:[%s2779_s0 + $0x160] sm:$0xff]   ;;  %v2316_v46 = vld [vmem:[%s2779_s0 + $0x98] sm:$0xff]   ;;  %v2318_v47 = vld [vmem:[%s2779_s0 + $0x168] sm:$0xff]  }
  0x11   :  { %v2319_v48 = vld [vmem:[%s2779_s0 + $0xa0] sm:$0xff]   ;;  %v2321_v49 = vld [vmem:[%s2779_s0 + $0x170] sm:$0xff]   ;;  %v2320_v50 = vld [vmem:[%s2779_s0 + $0xa8] sm:$0xff]  }
  0x12   :  { %v2322_v51 = vld [vmem:[%s2779_s0 + $0x178] sm:$0xff]   ;;  %v2323_v52 = vld [vmem:[%s2779_s0 + $0xb0] sm:$0xff]   ;;  %v2325_v53 = vld [vmem:[%s2779_s0 + $0x180] sm:$0xff]  }
  0x13   :  { %2148 = vmatpush3.bf16.msra.mxu0 %v2275_v6  ;;  %2267 = vmatpush3.bf16.msra.mxu1 %v2275_v6  ;;  %v2324_v54 = vld [vmem:[%s2779_s0 + $0xb8] sm:$0xff]   ;;  %v2326_v55 = vld [vmem:[%s2779_s0 + $0x188] sm:$0xff]   ;;  %v2327_v56 = vld [vmem:[%s2779_s0 + $0xc0] sm:$0xff]  }
  0x14   :  { %2149 = vmatprep.subr.bf16.mxu0 %v2276_v7  ;;  %2260 = vmatprep.subr.bf16.mxu1 %v2276_v7  ;;  %v2328_v57 = vld [vmem:[%s2779_s0 + $0xc8] sm:$0xff]   ;;  %v2526_v58 = vld [vmem:[%s2780_s2] ss:$0 sm:$0xff] }
  0x17   :  { %2150 = vmatpush3.bf16.msra.mxu0 %v2276_v7  ;;  %2268 = vmatpush3.bf16.msra.mxu1 %v2276_v7 }
  0x18   :  { %2151 = vmatprep.subr.bf16.mxu0 %v2277_v8  ;;  %2261 = vmatprep.subr.bf16.mxu1 %v2277_v8 }
  0x1b   :  { %2152 = vmatpush3.bf16.msra.mxu0 %v2277_v8  ;;  %2269 = vmatpush3.bf16.msra.mxu1 %v2277_v8 }
  0x1c   :  { %2153 = vmatprep.subr.bf16.mxu0 %v2278_v9  ;;  %2262 = vmatprep.subr.bf16.mxu1 %v2278_v9 }
  0x1f   :  { %2154 = vmatpush3.bf16.msra.mxu0 %v2278_v9  ;;  %2270 = vmatpush3.bf16.msra.mxu1 %v2278_v9 }
  0x22   :  { %2156 = vmatmul.mubr.bf16.vlgmr.msra.gmra.mrb[0].mxu0 %v2280_v10  ;;  %2208 = vmatmul.mubr.bf16.vlgmr.msra.gmra.mrb[0].mxu1 %v2282_v11 }
  0x23   :  { %2159 = vmatprep.mubr.bf16.mxu0 %v2283_v12  ;;  %2211 = vmatprep.mubr.bf16.mxu1 %v2285_v13 }
  0x2a   :  { %2160 = vmatmul.mubr.bf16.gmra.mrb[4].mxu0 %v2284_v14  ;;  %2212 = vmatmul.mubr.bf16.gmra.mrb[4].mxu1 %v2286_v15 }
  0x2b   :  { %2163 = vmatprep.mubr.bf16.mxu0 %v2287_v16  ;;  %2215 = vmatprep.mubr.bf16.mxu1 %v2289_v17 }
  0x32   :  { %2164 = vmatmul.mubr.bf16.gmra.mrb[8].mxu0 %v2288_v18  ;;  %2216 = vmatmul.mubr.bf16.gmra.mrb[8].mxu1 %v2290_v19 }
  0x33   :  { %2167 = vmatprep.mubr.bf16.mxu0 %v2291_v20  ;;  %2219 = vmatprep.mubr.bf16.mxu1 %v2293_v21 }
  0x3a   :  { %2168 = vmatmul.mubr.bf16.gmra.mrb[12].mxu0 %v2292_v22  ;;  %2220 = vmatmul.mubr.bf16.gmra.mrb[12].mxu1 %v2294_v23 }
  0x3b   :  { %2171 = vmatprep.mubr.bf16.mxu0 %v2295_v24  ;;  %2223 = vmatprep.mubr.bf16.mxu1 %v2297_v25 }
  0x42   :  { %2172 = vmatmul.mubr.bf16.gmra.mrb[16].mxu0 %v2296_v26  ;;  %2224 = vmatmul.mubr.bf16.gmra.mrb[16].mxu1 %v2298_v27 }
  0x43   :  { %2175 = vmatprep.mubr.bf16.mxu0 %v2299_v28  ;;  %2227 = vmatprep.mubr.bf16.mxu1 %v2301_v29 }
  0x4a   :  { %2176 = vmatmul.mubr.bf16.gmra.mrb[20].mxu0 %v2300_v30  ;;  %2228 = vmatmul.mubr.bf16.gmra.mrb[20].mxu1 %v2302_v31 }
  0x4b   :  { %2179 = vmatprep.mubr.bf16.mxu0 %v2303_v32  ;;  %2231 = vmatprep.mubr.bf16.mxu1 %v2305_v33 }
  0x52   :  { %2180 = vmatmul.mubr.bf16.gmra.mrb[24].mxu0 %v2304_v34  ;;  %2232 = vmatmul.mubr.bf16.gmra.mrb[24].mxu1 %v2306_v35 }
  0x53   :  { %2183 = vmatprep.mubr.bf16.mxu0 %v2307_v36  ;;  %2235 = vmatprep.mubr.bf16.mxu1 %v2309_v37 }
  0x5a   :  { %2184 = vmatmul.mubr.bf16.gmra.mrb[28].mxu0 %v2308_v38  ;;  %2236 = vmatmul.mubr.bf16.gmra.mrb[28].mxu1 %v2310_v39 }
  0x5b   :  { %2187 = vmatprep.mubr.bf16.mxu0 %v2311_v40  ;;  %2239 = vmatprep.mubr.bf16.mxu1 %v2313_v41 }
  0x62   :  { %2188 = vmatmul.mubr.bf16.gmra.mrb[32].mxu0 %v2312_v42  ;;  %2240 = vmatmul.mubr.bf16.gmra.mrb[32].mxu1 %v2314_v43 }
  0x63   :  { %2191 = vmatprep.mubr.bf16.mxu0 %v2315_v44  ;;  %2243 = vmatprep.mubr.bf16.mxu1 %v2317_v45 }
  0x6a   :  { %2192 = vmatmul.mubr.bf16.gmra.mrb[36].mxu0 %v2316_v46  ;;  %2244 = vmatmul.mubr.bf16.gmra.mrb[36].mxu1 %v2318_v47 }
  0x6b   :  { %2195 = vmatprep.mubr.bf16.mxu0 %v2319_v48  ;;  %2247 = vmatprep.mubr.bf16.mxu1 %v2321_v49 }
  0x72   :  { %2196 = vmatmul.mubr.bf16.gmra.mrb[40].mxu0 %v2320_v50  ;;  %2248 = vmatmul.mubr.bf16.gmra.mrb[40].mxu1 %v2322_v51 }
  0x73   :  { %2199 = vmatprep.mubr.bf16.mxu0 %v2323_v52  ;;  %2251 = vmatprep.mubr.bf16.mxu1 %v2325_v53 }
  0x7a   :  { %2200 = vmatmul.mubr.bf16.gmra.mrb[44].mxu0 %v2324_v54  ;;  %2252 = vmatmul.mubr.bf16.gmra.mrb[44].mxu1 %v2326_v55 }
  0x7b   :  { %2203 = vmatprep.mubr.bf16.mxu0 %v2327_v56 }
  0x82   :  { %2204 = vmatmul.mubr.bf16.gmra.mrb[48].mxu0 %v2328_v57 }
  0xf5   :  { %v2157_v59 = vpop.f32.mrb[0].mxu0  ;;  %v2209_v60 = vpop.f32.mrb[0].mxu1 }
  0xf6   :  { %v529_v61 = vadd.f32 %v2157_v59, %v2526_v58  ;;  %v520_v62 = vpop.f32.mrb[1].mxu0  ;;  %v737_v63 = vadd.f32 %v2209_v60, %v2526_v58  ;;  %v728_v0 = vpop.f32.mrb[1].mxu1 }
  0xf7   :  { %v521_v1 = vadd.f32 %v2526_v58, %v520_v62  ;;  %v2158_v2 = vpop.f32.mrb[2].mxu0  ;;  %v729_v3 = vadd.f32 %v2526_v58, %v728_v0  ;;  %v2210_v4 = vpop.f32.mrb[2].mxu1 }
  0xf8   :  { %v532_v5 = vadd.f32 %v2158_v2, %v2526_v58  ;;  %v523_v6 = vpop.f32.mrb[3].mxu0  ;;  %v973_v7 = vmax.f32 %v737_v63, 0.0  ;;  %v740_v8 = vadd.f32 %v2210_v4, %v2526_v58  ;;  %v731_v9 = vpop.f32.mrb[3].mxu1  ;;  %v921_v13 = vmax.f32 %v529_v61, 0.0 }
  0xf9   :  { %v524_v10 = vadd.f32 %v2526_v58, %v523_v6  ;;  %v971_v11 = vmax.f32 %v729_v3, 0.0  ;;  %v732_v12 = vadd.f32 %v2526_v58, %v731_v9  ;;  %v919_v16 = vmax.f32 %v521_v1, 0.0 }
  0xfa   :  { %v922_v14 = vmax.f32 %v532_v5, 0.0  ;;  %v974_v15 = vmax.f32 %v740_v8, 0.0 }
  0xfb   :  { %v920_v17 = vmax.f32 %v524_v10, 0.0  ;;  %v972_v18 = vmax.f32 %v732_v12, 0.0 }
  0xfc   :  { %v1790_v19 = vpack.c.bf16 %v922_v14, %v921_v13  ;;  %v1920_v20 = vpack.c.bf16 %v974_v15, %v973_v7 }
  0xfd   :  { %v1785_v21 = vpack.c.bf16 %v920_v17, %v919_v16  ;;  %v2161_v22 = vpop.f32.mrb[4].mxu0  ;;  %v1915_v23 = vpack.c.bf16 %v972_v18, %v971_v11  ;;  %v2213_v24 = vpop.f32.mrb[4].mxu1 }
  0xfe   :  { %2032 = vst [vmem:[%s2781_s3 + $0x8] sm:$0xff] %v1790_v19   ;;  %2058 = vst [vmem:[%s2781_s3 + $0xd8] sm:$0xff] %v1920_v20   ;;  %v545_v25 = vadd.f32 %v2161_v22, %v2526_v58  ;;  %v536_v26 = vpop.f32.mrb[5].mxu0  ;;  %v753_v27 = vadd.f32 %v2213_v24, %v2526_v58  ;;  %v744_v28 = vpop.f32.mrb[5].mxu1 }
  0xff   :  { %1786 = vst [vmem:[%s2781_s3] sm:$0xff] %v1785_v21   ;;  %2057 = vst [vmem:[%s2781_s3 + $0xd0] sm:$0xff] %v1915_v23   ;;  %v537_v29 = vadd.f32 %v2526_v58, %v536_v26  ;;  %v2162_v30 = vpop.f32.mrb[6].mxu0  ;;  %v745_v31 = vadd.f32 %v2526_v58, %v744_v28  ;;  %v2214_v32 = vpop.f32.mrb[6].mxu1 }
 0x100   :  { %v548_v33 = vadd.f32 %v2162_v30, %v2526_v58  ;;  %v539_v34 = vpop.f32.mrb[7].mxu0  ;;  %v977_v35 = vmax.f32 %v753_v27, 0.0  ;;  %v756_v36 = vadd.f32 %v2214_v32, %v2526_v58  ;;  %v747_v37 = vpop.f32.mrb[7].mxu1  ;;  %v925_v41 = vmax.f32 %v545_v25, 0.0 }
 0x101   :  { %v540_v38 = vadd.f32 %v2526_v58, %v539_v34  ;;  %v975_v39 = vmax.f32 %v745_v31, 0.0  ;;  %v748_v40 = vadd.f32 %v2526_v58, %v747_v37  ;;  %v923_v44 = vmax.f32 %v537_v29, 0.0 }
 0x102   :  { %v926_v42 = vmax.f32 %v548_v33, 0.0  ;;  %v978_v43 = vmax.f32 %v756_v36, 0.0 }
 0x103   :  { %v924_v45 = vmax.f32 %v540_v38, 0.0  ;;  %v976_v46 = vmax.f32 %v748_v40, 0.0 }
 0x104   :  { %v1800_v47 = vpack.c.bf16 %v926_v42, %v925_v41  ;;  %v1930_v48 = vpack.c.bf16 %v978_v43, %v977_v35 }
 0x105   :  { %v1795_v49 = vpack.c.bf16 %v924_v45, %v923_v44  ;;  %v2165_v50 = vpop.f32.mrb[8].mxu0  ;;  %v1925_v51 = vpack.c.bf16 %v976_v46, %v975_v39  ;;  %v2217_v52 = vpop.f32.mrb[8].mxu1 }
 0x106   :  { %2034 = vst [vmem:[%s2781_s3 + $0x18] sm:$0xff] %v1800_v47   ;;  %2060 = vst [vmem:[%s2781_s3 + $0xe8] sm:$0xff] %v1930_v48   ;;  %v561_v53 = vadd.f32 %v2165_v50, %v2526_v58  ;;  %v552_v54 = vpop.f32.mrb[9].mxu0  ;;  %v769_v55 = vadd.f32 %v2217_v52, %v2526_v58  ;;  %v760_v56 = vpop.f32.mrb[9].mxu1 }
 0x107   :  { %2033 = vst [vmem:[%s2781_s3 + $0x10] sm:$0xff] %v1795_v49   ;;  %2059 = vst [vmem:[%s2781_s3 + $0xe0] sm:$0xff] %v1925_v51   ;;  %v553_v57 = vadd.f32 %v2526_v58, %v552_v54  ;;  %v2166_v59 = vpop.f32.mrb[10].mxu0  ;;  %v761_v60 = vadd.f32 %v2526_v58, %v760_v56  ;;  %v2218_v61 = vpop.f32.mrb[10].mxu1 }
 0x108   :  { %v564_v62 = vadd.f32 %v2166_v59, %v2526_v58  ;;  %v555_v63 = vpop.f32.mrb[11].mxu0  ;;  %v981_v0 = vmax.f32 %v769_v55, 0.0  ;;  %v772_v1 = vadd.f32 %v2218_v61, %v2526_v58  ;;  %v763_v2 = vpop.f32.mrb[11].mxu1  ;;  %v929_v6 = vmax.f32 %v561_v53, 0.0 }
 0x109   :  { %v556_v3 = vadd.f32 %v2526_v58, %v555_v63  ;;  %v979_v4 = vmax.f32 %v761_v60, 0.0  ;;  %v764_v5 = vadd.f32 %v2526_v58, %v763_v2  ;;  %v927_v9 = vmax.f32 %v553_v57, 0.0 }
 0x10a   :  { %v930_v7 = vmax.f32 %v564_v62, 0.0  ;;  %v982_v8 = vmax.f32 %v772_v1, 0.0 }
 0x10b   :  { %v928_v10 = vmax.f32 %v556_v3, 0.0  ;;  %v980_v11 = vmax.f32 %v764_v5, 0.0 }
 0x10c   :  { %v1810_v12 = vpack.c.bf16 %v930_v7, %v929_v6  ;;  %v1940_v13 = vpack.c.bf16 %v982_v8, %v981_v0 }
 0x10d   :  { %v1805_v14 = vpack.c.bf16 %v928_v10, %v927_v9  ;;  %v2169_v15 = vpop.f32.mrb[12].mxu0  ;;  %v1935_v16 = vpack.c.bf16 %v980_v11, %v979_v4  ;;  %v2221_v17 = vpop.f32.mrb[12].mxu1 }
 0x10e   :  { %2036 = vst [vmem:[%s2781_s3 + $0x28] sm:$0xff] %v1810_v12   ;;  %2062 = vst [vmem:[%s2781_s3 + $0xf8] sm:$0xff] %v1940_v13   ;;  %v577_v18 = vadd.f32 %v2169_v15, %v2526_v58  ;;  %v568_v19 = vpop.f32.mrb[13].mxu0  ;;  %v785_v20 = vadd.f32 %v2221_v17, %v2526_v58  ;;  %v776_v21 = vpop.f32.mrb[13].mxu1 }
 0x10f   :  { %2035 = vst [vmem:[%s2781_s3 + $0x20] sm:$0xff] %v1805_v14   ;;  %2061 = vst [vmem:[%s2781_s3 + $0xf0] sm:$0xff] %v1935_v16   ;;  %v569_v22 = vadd.f32 %v2526_v58, %v568_v19  ;;  %v2170_v23 = vpop.f32.mrb[14].mxu0  ;;  %v777_v24 = vadd.f32 %v2526_v58, %v776_v21  ;;  %v2222_v25 = vpop.f32.mrb[14].mxu1 }
 0x110   :  { %v580_v26 = vadd.f32 %v2170_v23, %v2526_v58  ;;  %v571_v27 = vpop.f32.mrb[15].mxu0  ;;  %v985_v28 = vmax.f32 %v785_v20, 0.0  ;;  %v788_v29 = vadd.f32 %v2222_v25, %v2526_v58  ;;  %v779_v30 = vpop.f32.mrb[15].mxu1  ;;  %v933_v34 = vmax.f32 %v577_v18, 0.0 }
 0x111   :  { %v572_v31 = vadd.f32 %v2526_v58, %v571_v27  ;;  %v983_v32 = vmax.f32 %v777_v24, 0.0  ;;  %v780_v33 = vadd.f32 %v2526_v58, %v779_v30  ;;  %v931_v37 = vmax.f32 %v569_v22, 0.0 }
 0x112   :  { %v934_v35 = vmax.f32 %v580_v26, 0.0  ;;  %v986_v36 = vmax.f32 %v788_v29, 0.0 }
 0x113   :  { %v932_v38 = vmax.f32 %v572_v31, 0.0  ;;  %v984_v39 = vmax.f32 %v780_v33, 0.0 }
 0x114   :  { %v1820_v40 = vpack.c.bf16 %v934_v35, %v933_v34  ;;  %v1950_v41 = vpack.c.bf16 %v986_v36, %v985_v28 }
 0x115   :  { %v1815_v42 = vpack.c.bf16 %v932_v38, %v931_v37  ;;  %v2173_v43 = vpop.f32.mrb[16].mxu0  ;;  %v1945_v44 = vpack.c.bf16 %v984_v39, %v983_v32  ;;  %v2225_v45 = vpop.f32.mrb[16].mxu1 }
 0x116   :  { %2038 = vst [vmem:[%s2781_s3 + $0x38] sm:$0xff] %v1820_v40   ;;  %2064 = vst [vmem:[%s2781_s3 + $0x108] sm:$0xff] %v1950_v41   ;;  %v593_v46 = vadd.f32 %v2173_v43, %v2526_v58  ;;  %v584_v47 = vpop.f32.mrb[17].mxu0  ;;  %v801_v48 = vadd.f32 %v2225_v45, %v2526_v58  ;;  %v792_v49 = vpop.f32.mrb[17].mxu1 }
 0x117   :  { %2037 = vst [vmem:[%s2781_s3 + $0x30] sm:$0xff] %v1815_v42   ;;  %2063 = vst [vmem:[%s2781_s3 + $0x100] sm:$0xff] %v1945_v44   ;;  %v585_v50 = vadd.f32 %v2526_v58, %v584_v47  ;;  %v2174_v51 = vpop.f32.mrb[18].mxu0  ;;  %v793_v52 = vadd.f32 %v2526_v58, %v792_v49  ;;  %v2226_v53 = vpop.f32.mrb[18].mxu1 }
 0x118   :  { %v596_v54 = vadd.f32 %v2174_v51, %v2526_v58  ;;  %v587_v55 = vpop.f32.mrb[19].mxu0  ;;  %v989_v56 = vmax.f32 %v801_v48, 0.0  ;;  %v804_v57 = vadd.f32 %v2226_v53, %v2526_v58  ;;  %v795_v59 = vpop.f32.mrb[19].mxu1  ;;  %v937_v63 = vmax.f32 %v593_v46, 0.0 }
 0x119   :  { %v588_v60 = vadd.f32 %v2526_v58, %v587_v55  ;;  %v987_v61 = vmax.f32 %v793_v52, 0.0  ;;  %v796_v62 = vadd.f32 %v2526_v58, %v795_v59  ;;  %v935_v2 = vmax.f32 %v585_v50, 0.0 }
 0x11a   :  { %v938_v0 = vmax.f32 %v596_v54, 0.0  ;;  %v990_v1 = vmax.f32 %v804_v57, 0.0 }
 0x11b   :  { %v936_v3 = vmax.f32 %v588_v60, 0.0  ;;  %v988_v4 = vmax.f32 %v796_v62, 0.0 }
 0x11c   :  { %v1830_v5 = vpack.c.bf16 %v938_v0, %v937_v63  ;;  %v1960_v6 = vpack.c.bf16 %v990_v1, %v989_v56 }
 0x11d   :  { %v1825_v7 = vpack.c.bf16 %v936_v3, %v935_v2  ;;  %v2177_v8 = vpop.f32.mrb[20].mxu0  ;;  %v1955_v9 = vpack.c.bf16 %v988_v4, %v987_v61  ;;  %v2229_v10 = vpop.f32.mrb[20].mxu1 }
 0x11e   :  { %2040 = vst [vmem:[%s2781_s3 + $0x48] sm:$0xff] %v1830_v5   ;;  %2066 = vst [vmem:[%s2781_s3 + $0x118] sm:$0xff] %v1960_v6   ;;  %v609_v11 = vadd.f32 %v2177_v8, %v2526_v58  ;;  %v600_v12 = vpop.f32.mrb[21].mxu0  ;;  %v817_v13 = vadd.f32 %v2229_v10, %v2526_v58  ;;  %v808_v14 = vpop.f32.mrb[21].mxu1 }
 0x11f   :  { %2039 = vst [vmem:[%s2781_s3 + $0x40] sm:$0xff] %v1825_v7   ;;  %2065 = vst [vmem:[%s2781_s3 + $0x110] sm:$0xff] %v1955_v9   ;;  %v601_v15 = vadd.f32 %v2526_v58, %v600_v12  ;;  %v2178_v16 = vpop.f32.mrb[22].mxu0  ;;  %v809_v17 = vadd.f32 %v2526_v58, %v808_v14  ;;  %v2230_v18 = vpop.f32.mrb[22].mxu1 }
 0x120   :  { %v612_v19 = vadd.f32 %v2178_v16, %v2526_v58  ;;  %v603_v20 = vpop.f32.mrb[23].mxu0  ;;  %v993_v21 = vmax.f32 %v817_v13, 0.0  ;;  %v820_v22 = vadd.f32 %v2230_v18, %v2526_v58  ;;  %v811_v23 = vpop.f32.mrb[23].mxu1  ;;  %v941_v27 = vmax.f32 %v609_v11, 0.0 }
 0x121   :  { %v604_v24 = vadd.f32 %v2526_v58, %v603_v20  ;;  %v991_v25 = vmax.f32 %v809_v17, 0.0  ;;  %v812_v26 = vadd.f32 %v2526_v58, %v811_v23  ;;  %v939_v30 = vmax.f32 %v601_v15, 0.0 }
 0x122   :  { %v942_v28 = vmax.f32 %v612_v19, 0.0  ;;  %v994_v29 = vmax.f32 %v820_v22, 0.0 }
 0x123   :  { %v940_v31 = vmax.f32 %v604_v24, 0.0  ;;  %v992_v32 = vmax.f32 %v812_v26, 0.0 }
 0x124   :  { %v1840_v33 = vpack.c.bf16 %v942_v28, %v941_v27  ;;  %v1970_v34 = vpack.c.bf16 %v994_v29, %v993_v21 }
 0x125   :  { %v1835_v35 = vpack.c.bf16 %v940_v31, %v939_v30  ;;  %v2181_v36 = vpop.f32.mrb[24].mxu0  ;;  %v1965_v37 = vpack.c.bf16 %v992_v32, %v991_v25  ;;  %v2233_v38 = vpop.f32.mrb[24].mxu1 }
 0x126   :  { %2042 = vst [vmem:[%s2781_s3 + $0x58] sm:$0xff] %v1840_v33   ;;  %2068 = vst [vmem:[%s2781_s3 + $0x128] sm:$0xff] %v1970_v34   ;;  %v625_v39 = vadd.f32 %v2181_v36, %v2526_v58  ;;  %v616_v40 = vpop.f32.mrb[25].mxu0  ;;  %v833_v41 = vadd.f32 %v2233_v38, %v2526_v58  ;;  %v824_v42 = vpop.f32.mrb[25].mxu1 }
 0x127   :  { %2041 = vst [vmem:[%s2781_s3 + $0x50] sm:$0xff] %v1835_v35   ;;  %2067 = vst [vmem:[%s2781_s3 + $0x120] sm:$0xff] %v1965_v37   ;;  %v617_v43 = vadd.f32 %v2526_v58, %v616_v40  ;;  %v2182_v44 = vpop.f32.mrb[26].mxu0  ;;  %v825_v45 = vadd.f32 %v2526_v58, %v824_v42  ;;  %v2234_v46 = vpop.f32.mrb[26].mxu1 }
 0x128   :  { %v628_v47 = vadd.f32 %v2182_v44, %v2526_v58  ;;  %v619_v48 = vpop.f32.mrb[27].mxu0  ;;  %v997_v49 = vmax.f32 %v833_v41, 0.0  ;;  %v836_v50 = vadd.f32 %v2234_v46, %v2526_v58  ;;  %v827_v51 = vpop.f32.mrb[27].mxu1  ;;  %v945_v55 = vmax.f32 %v625_v39, 0.0 }
 0x129   :  { %v620_v52 = vadd.f32 %v2526_v58, %v619_v48  ;;  %v995_v53 = vmax.f32 %v825_v45, 0.0  ;;  %v828_v54 = vadd.f32 %v2526_v58, %v827_v51  ;;  %v943_v59 = vmax.f32 %v617_v43, 0.0 }
 0x12a   :  { %v946_v56 = vmax.f32 %v628_v47, 0.0  ;;  %v998_v57 = vmax.f32 %v836_v50, 0.0 }
 0x12b   :  { %v944_v60 = vmax.f32 %v620_v52, 0.0  ;;  %v996_v61 = vmax.f32 %v828_v54, 0.0 }
 0x12c   :  { %v1850_v62 = vpack.c.bf16 %v946_v56, %v945_v55  ;;  %v1980_v63 = vpack.c.bf16 %v998_v57, %v997_v49 }
 0x12d   :  { %v1845_v0 = vpack.c.bf16 %v944_v60, %v943_v59  ;;  %v2185_v1 = vpop.f32.mrb[28].mxu0  ;;  %v1975_v2 = vpack.c.bf16 %v996_v61, %v995_v53  ;;  %v2237_v3 = vpop.f32.mrb[28].mxu1 }
 0x12e   :  { %2044 = vst [vmem:[%s2781_s3 + $0x68] sm:$0xff] %v1850_v62   ;;  %2070 = vst [vmem:[%s2781_s3 + $0x138] sm:$0xff] %v1980_v63   ;;  %v641_v4 = vadd.f32 %v2185_v1, %v2526_v58  ;;  %v632_v5 = vpop.f32.mrb[29].mxu0  ;;  %v849_v6 = vadd.f32 %v2237_v3, %v2526_v58  ;;  %v840_v7 = vpop.f32.mrb[29].mxu1 }
 0x12f   :  { %2043 = vst [vmem:[%s2781_s3 + $0x60] sm:$0xff] %v1845_v0   ;;  %2069 = vst [vmem:[%s2781_s3 + $0x130] sm:$0xff] %v1975_v2   ;;  %v633_v8 = vadd.f32 %v2526_v58, %v632_v5  ;;  %v2186_v9 = vpop.f32.mrb[30].mxu0  ;;  %v841_v10 = vadd.f32 %v2526_v58, %v840_v7  ;;  %v2238_v11 = vpop.f32.mrb[30].mxu1 }
 0x130   :  { %v644_v12 = vadd.f32 %v2186_v9, %v2526_v58  ;;  %v635_v13 = vpop.f32.mrb[31].mxu0  ;;  %v1001_v14 = vmax.f32 %v849_v6, 0.0  ;;  %v852_v15 = vadd.f32 %v2238_v11, %v2526_v58  ;;  %v843_v16 = vpop.f32.mrb[31].mxu1  ;;  %v949_v20 = vmax.f32 %v641_v4, 0.0 }
 0x131   :  { %v636_v17 = vadd.f32 %v2526_v58, %v635_v13  ;;  %v999_v18 = vmax.f32 %v841_v10, 0.0  ;;  %v844_v19 = vadd.f32 %v2526_v58, %v843_v16  ;;  %v947_v23 = vmax.f32 %v633_v8, 0.0 }
 0x132   :  { %v950_v21 = vmax.f32 %v644_v12, 0.0  ;;  %v1002_v22 = vmax.f32 %v852_v15, 0.0 }
 0x133   :  { %v948_v24 = vmax.f32 %v636_v17, 0.0  ;;  %v1000_v25 = vmax.f32 %v844_v19, 0.0 }
 0x134   :  { %v1860_v26 = vpack.c.bf16 %v950_v21, %v949_v20  ;;  %v1990_v27 = vpack.c.bf16 %v1002_v22, %v1001_v14 }
 0x135   :  { %v1855_v28 = vpack.c.bf16 %v948_v24, %v947_v23  ;;  %v2189_v29 = vpop.f32.mrb[32].mxu0  ;;  %v1985_v30 = vpack.c.bf16 %v1000_v25, %v999_v18  ;;  %v2241_v31 = vpop.f32.mrb[32].mxu1 }
 0x136   :  { %2046 = vst [vmem:[%s2781_s3 + $0x78] sm:$0xff] %v1860_v26   ;;  %2072 = vst [vmem:[%s2781_s3 + $0x148] sm:$0xff] %v1990_v27   ;;  %v657_v32 = vadd.f32 %v2189_v29, %v2526_v58  ;;  %v648_v33 = vpop.f32.mrb[33].mxu0  ;;  %v865_v34 = vadd.f32 %v2241_v31, %v2526_v58  ;;  %v856_v35 = vpop.f32.mrb[33].mxu1 }
 0x137   :  { %2045 = vst [vmem:[%s2781_s3 + $0x70] sm:$0xff] %v1855_v28   ;;  %2071 = vst [vmem:[%s2781_s3 + $0x140] sm:$0xff] %v1985_v30   ;;  %v649_v36 = vadd.f32 %v2526_v58, %v648_v33  ;;  %v2190_v37 = vpop.f32.mrb[34].mxu0  ;;  %v857_v38 = vadd.f32 %v2526_v58, %v856_v35  ;;  %v2242_v39 = vpop.f32.mrb[34].mxu1 }
 0x138   :  { %v660_v40 = vadd.f32 %v2190_v37, %v2526_v58  ;;  %v651_v41 = vpop.f32.mrb[35].mxu0  ;;  %v1005_v42 = vmax.f32 %v865_v34, 0.0  ;;  %v868_v43 = vadd.f32 %v2242_v39, %v2526_v58  ;;  %v859_v44 = vpop.f32.mrb[35].mxu1  ;;  %v953_v48 = vmax.f32 %v657_v32, 0.0 }
 0x139   :  { %v652_v45 = vadd.f32 %v2526_v58, %v651_v41  ;;  %v1003_v46 = vmax.f32 %v857_v38, 0.0  ;;  %v860_v47 = vadd.f32 %v2526_v58, %v859_v44  ;;  %v951_v51 = vmax.f32 %v649_v36, 0.0 }
 0x13a   :  { %v954_v49 = vmax.f32 %v660_v40, 0.0  ;;  %v1006_v50 = vmax.f32 %v868_v43, 0.0 }
 0x13b   :  { %v952_v52 = vmax.f32 %v652_v45, 0.0  ;;  %v1004_v53 = vmax.f32 %v860_v47, 0.0 }
 0x13c   :  { %v1870_v54 = vpack.c.bf16 %v954_v49, %v953_v48  ;;  %v2000_v55 = vpack.c.bf16 %v1006_v50, %v1005_v42 }
 0x13d   :  { %v1865_v56 = vpack.c.bf16 %v952_v52, %v951_v51  ;;  %v2193_v57 = vpop.f32.mrb[36].mxu0  ;;  %v1995_v59 = vpack.c.bf16 %v1004_v53, %v1003_v46  ;;  %v2245_v60 = vpop.f32.mrb[36].mxu1 }
 0x13e   :  { %2048 = vst [vmem:[%s2781_s3 + $0x88] sm:$0xff] %v1870_v54   ;;  %2074 = vst [vmem:[%s2781_s3 + $0x158] sm:$0xff] %v2000_v55   ;;  %v673_v61 = vadd.f32 %v2193_v57, %v2526_v58  ;;  %v664_v62 = vpop.f32.mrb[37].mxu0  ;;  %v881_v63 = vadd.f32 %v2245_v60, %v2526_v58  ;;  %v872_v0 = vpop.f32.mrb[37].mxu1 }
 0x13f   :  { %2047 = vst [vmem:[%s2781_s3 + $0x80] sm:$0xff] %v1865_v56   ;;  %2073 = vst [vmem:[%s2781_s3 + $0x150] sm:$0xff] %v1995_v59   ;;  %v665_v1 = vadd.f32 %v2526_v58, %v664_v62  ;;  %v2194_v2 = vpop.f32.mrb[38].mxu0  ;;  %v873_v3 = vadd.f32 %v2526_v58, %v872_v0  ;;  %v2246_v4 = vpop.f32.mrb[38].mxu1 }
 0x140   :  { %v676_v5 = vadd.f32 %v2194_v2, %v2526_v58  ;;  %v667_v6 = vpop.f32.mrb[39].mxu0  ;;  %v1009_v7 = vmax.f32 %v881_v63, 0.0  ;;  %v884_v8 = vadd.f32 %v2246_v4, %v2526_v58  ;;  %v875_v9 = vpop.f32.mrb[39].mxu1  ;;  %v957_v13 = vmax.f32 %v673_v61, 0.0 }
 0x141   :  { %v668_v10 = vadd.f32 %v2526_v58, %v667_v6  ;;  %v1007_v11 = vmax.f32 %v873_v3, 0.0  ;;  %v876_v12 = vadd.f32 %v2526_v58, %v875_v9  ;;  %v955_v16 = vmax.f32 %v665_v1, 0.0 }
 0x142   :  { %v958_v14 = vmax.f32 %v676_v5, 0.0  ;;  %v1010_v15 = vmax.f32 %v884_v8, 0.0 }
 0x143   :  { %v956_v17 = vmax.f32 %v668_v10, 0.0  ;;  %v1008_v18 = vmax.f32 %v876_v12, 0.0 }
 0x144   :  { %v1880_v19 = vpack.c.bf16 %v958_v14, %v957_v13  ;;  %v2010_v20 = vpack.c.bf16 %v1010_v15, %v1009_v7 }
 0x145   :  { %v1875_v21 = vpack.c.bf16 %v956_v17, %v955_v16  ;;  %v2197_v22 = vpop.f32.mrb[40].mxu0  ;;  %v2005_v23 = vpack.c.bf16 %v1008_v18, %v1007_v11  ;;  %v2249_v24 = vpop.f32.mrb[40].mxu1 }
 0x146   :  { %2050 = vst [vmem:[%s2781_s3 + $0x98] sm:$0xff] %v1880_v19   ;;  %2076 = vst [vmem:[%s2781_s3 + $0x168] sm:$0xff] %v2010_v20   ;;  %v689_v25 = vadd.f32 %v2197_v22, %v2526_v58  ;;  %v680_v26 = vpop.f32.mrb[41].mxu0  ;;  %v897_v27 = vadd.f32 %v2249_v24, %v2526_v58  ;;  %v888_v28 = vpop.f32.mrb[41].mxu1 }
 0x147   :  { %2049 = vst [vmem:[%s2781_s3 + $0x90] sm:$0xff] %v1875_v21   ;;  %2075 = vst [vmem:[%s2781_s3 + $0x160] sm:$0xff] %v2005_v23   ;;  %v681_v29 = vadd.f32 %v2526_v58, %v680_v26  ;;  %v2198_v30 = vpop.f32.mrb[42].mxu0  ;;  %v889_v31 = vadd.f32 %v2526_v58, %v888_v28  ;;  %v2250_v32 = vpop.f32.mrb[42].mxu1 }
 0x148   :  { %v692_v33 = vadd.f32 %v2198_v30, %v2526_v58  ;;  %v683_v34 = vpop.f32.mrb[43].mxu0  ;;  %v1013_v35 = vmax.f32 %v897_v27, 0.0  ;;  %v900_v36 = vadd.f32 %v2250_v32, %v2526_v58  ;;  %v891_v37 = vpop.f32.mrb[43].mxu1  ;;  %v961_v41 = vmax.f32 %v689_v25, 0.0 }
 0x149   :  { %v684_v38 = vadd.f32 %v2526_v58, %v683_v34  ;;  %v1011_v39 = vmax.f32 %v889_v31, 0.0  ;;  %v892_v40 = vadd.f32 %v2526_v58, %v891_v37  ;;  %v959_v44 = vmax.f32 %v681_v29, 0.0 }
 0x14a   :  { %v962_v42 = vmax.f32 %v692_v33, 0.0  ;;  %v1014_v43 = vmax.f32 %v900_v36, 0.0 }
 0x14b   :  { %v960_v45 = vmax.f32 %v684_v38, 0.0  ;;  %v1012_v46 = vmax.f32 %v892_v40, 0.0 }
 0x14c   :  { %v1890_v47 = vpack.c.bf16 %v962_v42, %v961_v41  ;;  %v2020_v48 = vpack.c.bf16 %v1014_v43, %v1013_v35 }
 0x14d   :  { %v1885_v49 = vpack.c.bf16 %v960_v45, %v959_v44  ;;  %v2201_v50 = vpop.f32.mrb[44].mxu0  ;;  %v2015_v51 = vpack.c.bf16 %v1012_v46, %v1011_v39  ;;  %v2253_v52 = vpop.f32.mrb[44].mxu1 }
 0x14e   :  { %2052 = vst [vmem:[%s2781_s3 + $0xa8] sm:$0xff] %v1890_v47   ;;  %2078 = vst [vmem:[%s2781_s3 + $0x178] sm:$0xff] %v2020_v48   ;;  %v705_v53 = vadd.f32 %v2201_v50, %v2526_v58  ;;  %v696_v54 = vpop.f32.mrb[45].mxu0  ;;  %v913_v55 = vadd.f32 %v2253_v52, %v2526_v58  ;;  %v904_v56 = vpop.f32.mrb[45].mxu1 }
 0x14f   :  { %2051 = vst [vmem:[%s2781_s3 + $0xa0] sm:$0xff] %v1885_v49   ;;  %2077 = vst [vmem:[%s2781_s3 + $0x170] sm:$0xff] %v2015_v51   ;;  %v697_v57 = vadd.f32 %v2526_v58, %v696_v54  ;;  %v2202_v59 = vpop.f32.mrb[46].mxu0  ;;  %v905_v60 = vadd.f32 %v2526_v58, %v904_v56  ;;  %v2254_v61 = vpop.f32.mrb[46].mxu1 }
 0x150   :  { %v708_v62 = vadd.f32 %v2202_v59, %v2526_v58  ;;  %v699_v63 = vpop.f32.mrb[47].mxu0  ;;  %v1017_v0 = vmax.f32 %v913_v55, 0.0  ;;  %v916_v1 = vadd.f32 %v2254_v61, %v2526_v58  ;;  %v907_v2 = vpop.f32.mrb[47].mxu1  ;;  %v965_v6 = vmax.f32 %v705_v53, 0.0 }
 0x151   :  { %v700_v3 = vadd.f32 %v2526_v58, %v699_v63  ;;  %v1015_v4 = vmax.f32 %v905_v60, 0.0  ;;  %v908_v5 = vadd.f32 %v2526_v58, %v907_v2  ;;  %v963_v9 = vmax.f32 %v697_v57, 0.0 }
 0x152   :  { %v966_v7 = vmax.f32 %v708_v62, 0.0  ;;  %v1018_v8 = vmax.f32 %v916_v1, 0.0 }
 0x153   :  { %v964_v10 = vmax.f32 %v700_v3, 0.0  ;;  %v1016_v11 = vmax.f32 %v908_v5, 0.0 }
 0x154   :  { %v1900_v12 = vpack.c.bf16 %v966_v7, %v965_v6  ;;  %v2030_v13 = vpack.c.bf16 %v1018_v8, %v1017_v0 }
 0x155   :  { %v1895_v14 = vpack.c.bf16 %v964_v10, %v963_v9  ;;  %v2205_v15 = vpop.f32.mrb[48].mxu0  ;;  %v2025_v16 = vpack.c.bf16 %v1016_v11, %v1015_v4 }
 0x156   :  { %2054 = vst [vmem:[%s2781_s3 + $0xb8] sm:$0xff] %v1900_v12   ;;  %2080 = vst [vmem:[%s2781_s3 + $0x188] sm:$0xff] %v2030_v13   ;;  %v721_v17 = vadd.f32 %v2205_v15, %v2526_v58  ;;  %v712_v18 = vpop.f32.mrb[49].mxu0 }
 0x157   :  { %2053 = vst [vmem:[%s2781_s3 + $0xb0] sm:$0xff] %v1895_v14   ;;  %2079 = vst [vmem:[%s2781_s3 + $0x180] sm:$0xff] %v2025_v16   ;;  %v713_v19 = vadd.f32 %v2526_v58, %v712_v18  ;;  %v2206_v20 = vpop.f32.mrb[50].mxu0 }
 0x158   :  { %v724_v21 = vadd.f32 %v2206_v20, %v2526_v58  ;;  %v715_v22 = vpop.f32.mrb[51].mxu0  ;;  %v969_v24 = vmax.f32 %v721_v17, 0.0 }
 0x159   :  { %v716_v23 = vadd.f32 %v2526_v58, %v715_v22  ;;  %v967_v26 = vmax.f32 %v713_v19, 0.0 }
 0x15a   :  { %v970_v25 = vmax.f32 %v724_v21, 0.0 }
 0x15b   :  { %v968_v27 = vmax.f32 %v716_v23, 0.0 }
 0x15c   :  { %v1910_v28 = vpack.c.bf16 %v970_v25, %v969_v24 }
 0x15d   :  { %v1905_v29 = vpack.c.bf16 %v968_v27, %v967_v26 }
 0x15e   :  { %2056 = vst [vmem:[%s2781_s3 + $0xc8] sm:$0xff] %v1910_v28  }
 0x15f   :  { %2055 = vst [vmem:[%s2781_s3 + $0xc0] sm:$0xff] %v1905_v29  }

// kernel: _lambda_.24
= control target key start
LH: loop header
LB: loop body
LE: loop exit
PB: predicated region body
PF: predicated region fallthrough
CT: control target
= control target key end

     0   :  { %s1114_s15 = smov 0   ;;  %s1571_s0 = inlined_call_operand.vmem [shape: bf16[2,11,11,32], index: 0, kind: input, shape index: {}]   ;;  %s1572_s1 = inlined_call_operand.vmem [shape: bf16[2,11,11,32], index: 1, kind: input, shape index: {}]   ;;  %s1573_s2 = inlined_call_operand.vmem [shape: bf16[2,11,11,32], index: 2, kind: input, shape index: {}]   ;;  %s1574_s3 = inlined_call_operand.vmem [shape: bf16[2,11,11,32], index: 3, kind: input, shape index: {}]   ;;  %s1575_s4 = inlined_call_operand.vmem [shape: bf16[2,10,10,32], index: 4, kind: output, shape index: {}]  }
   0x1 LB: > { %s1059_s16 = sadd.s32 4294967295, %s1087_s15   ;;  %p1063_p0 = scmp.ge.s32.totalorder %s1087_s15, 1  ;;  %s1087_s15 = sphi %s1114_s15, %s14_s15  }
   0x2   : > { %p192_p1 = scmp.lt.s32.totalorder %s1087_s15, 3 }
   0x4   : > { %p193_p2 = pnand %p1063_p0, %p192_p1 }
   0x5   : > { %p233_p3 = scmp.lt.s32.totalorder (!%p193_p2), %s1059_s16, 1  ;;  %vm362_vm0 = vsmask.f32 (!%p193_p2), 3328  ;;  %vm363_vm1 = vsmask.f32 (!%p193_p2), 7440  ;;  %vm946_vm3 = vcmask (!%p193_p2), 257024  }
   0x6   : > { %196 = sbr.rel (%p193_p2) target bundleno = 138 (0x8a), region = 36  ;;  %vm1178_vm2 = vmor (!%p193_p2), %vm362_vm0, %vm363_vm1  ;;  %vm948_vm4 = vcmask (!%p193_p2), 253952  }
   0xd   : > { %s1579_s16 = smov (!%p233_p3, %s1059_s16), 1 }
   0xe   : > { %s1125_s17 = smul.u32 88, %s1579_s16 }
   0xf   : > { %s1072_s30 = smul.u32 80, %s1579_s16 }
  0x10   : > { %s1131_s20 = scalar_lea.vmem %s1571_s0, %s1125_s17  ;;  %s1137_s23 = scalar_lea.vmem %s1573_s2, %s1125_s17 }
  0x11   : > { %s1143_s26 = scalar_lea.vmem %s1574_s3, %s1125_s17  ;;  %v258_v0 = vld [vmem:[%s1131_s20] sm:$0xf]  ;;  %v1147_v1 = vld [vmem:[%s1131_s20 + $0x4] sm:$0x3]  ;;  %v1150_v2 = vld [vmem:[%s1131_s20 + $0x8] sm:$0xf]  ;;  %s1196_s29 = scalar_lea.vmem %s1572_s1, %s1125_s17 }
  0x12   : > { %v1153_v3 = vld [vmem:[%s1131_s20 + $0xc] sm:$0x3]  ;;  %v1156_v4 = vld [vmem:[%s1137_s23] sm:$0xf]  ;;  %v324_v6 = vld [vmem:[%s1143_s26 + $0x8] sm:$0xf]  ;;  %s1246_s7 = scalar_lea.vmem %s1575_s4, %s1072_s30 }
  0x13   : > { %v322_v5 = vld [vmem:[%s1143_s26] sm:$0xf]  ;;  %v366_v8 = vshrl.u32 %v258_v0, 16  ;;  %v369_v9 = vshll.u32 %v258_v0, 16  ;;  %v375_v10 = vshll.u32 %v1147_v1, 16  ;;  %v344_v12 = vmax.bf16 %v324_v6, %v1150_v2 }
  0x14   : > { %v342_v7 = vmax.bf16 %v322_v5, %v258_v0  ;;  %v1162_v11 = vld [vmem:[%s1137_s23 + $0x4] sm:$0x3]  ;;  %v385_v13 = vshrl.u32 %v1150_v2, 16  ;;  %v388_v14 = vshll.u32 %v1150_v2, 16  ;;  %v394_v15 = vshll.u32 %v1153_v3, 16 }
  0x15   : > { %v368_v16 = vrot.slane %v366_v8, 4  ;;  %v371_v17 = vrot.slane %v369_v9, 5  ;;  %v377_v18 = vrot.slane %v375_v10, 5  ;;  %v717_v19 = vshrl.u32 %v1156_v4, 16  ;;  %v323_v24 = vld [vmem:[%s1143_s26 + $0x4] sm:$0x3] }
  0x16   : > { %v387_v20 = vrot.slane %v385_v13, 4  ;;  %v390_v21 = vrot.slane %v388_v14, 5  ;;  %v396_v22 = vrot.slane %v394_v15, 5  ;;  %v720_v23 = vshll.u32 %v1156_v4, 16  ;;  %v1174_v29 = vld [vmem:[%s1131_s20 + $0x10] sm:$0xf] }
  0x17   : > { %v372_v25 = vor.u32 %v371_v17, %v368_v16  ;;  %v719_v26 = vrot.slane %v717_v19, 4  ;;  %v726_v27 = vshll.u32 %v1162_v11, 16  ;;  %v343_v28 = vmax.bf16 %v323_v24, %v1147_v1  ;;  %v326_v45 = vld [vmem:[%s1143_s26 + $0x10] sm:$0xf]  ;;  %v1201_v52 = vld [vmem:[%s1131_s20 + $0x14] sm:$0x3] }
  0x18   : > { %v391_v31 = vor.u32 %v390_v21, %v387_v20  ;;  %v722_v32 = vrot.slane %v720_v23, 5  ;;  %v379_v33 = vshrl.u32 %v1147_v1, 16  ;;  %v398_v34 = vshrl.u32 %v1153_v3, 16  ;;  %v1205_v56 = vld [vmem:[%s1137_s23 + $0x8] sm:$0xf] }
  0x19   : > { %v373_v35 = vrot.slane %v372_v25, 4  ;;  %v1184_v36 = vrot.slane %v726_v27, 5  ;;  %v730_v37 = vshrl.u32 %v1162_v11, 16  ;;  %v404_v38 = vshrl.u32 %v1174_v29, 16  ;;  %v1213_v61 = vld [vmem:[%s1137_s23 + $0xc] sm:$0x3] }
  0x1a   : > { %v392_v39 = vrot.slane %v391_v31, 4  ;;  %v723_v40 = vor.u32 %v722_v32, %v719_v26  ;;  %v381_v41 = vrot.slane %v379_v33, 4  ;;  %v400_v42 = vrot.slane %v398_v34, 4  ;;  %v325_v63 = vld [vmem:[%s1143_s26 + $0xc] sm:$0x3] }
  0x1b   : > { %v378_v43 = vsel %vm1178_vm2, %v373_v35, %v377_v18  ;;  %v732_v44 = vrot.slane %v730_v37, 4  ;;  %v406_v46 = vrot.slane %v404_v38, 4  ;;  %v407_v47 = vshll.u32 %v1174_v29, 16  ;;  %v280_v0 = vld [vmem:[%s1196_s29] sm:$0xf] }
  0x1c   : > { %v397_v48 = vsel %vm1178_vm2, %v392_v39, %v396_v22  ;;  %v575_v49 = vmax.bf16 %v378_v43, %v342_v7  ;;  %v724_v50 = vrot.slane %v723_v40, 4  ;;  %v382_v51 = vor.u32 %v381_v41, %v377_v18  ;;  %v282_v16 = vld [vmem:[%s1196_s29 + $0x8] sm:$0xf]  ;;  %v281_v21 = vld [vmem:[%s1196_s29 + $0x4] sm:$0x3] }
  0x1d   : > { %v577_v53 = vmax.bf16 %v397_v48, %v344_v12  ;;  %v401_v54 = vor.u32 %v400_v42, %v396_v22  ;;  %v733_v55 = vor.u32 %v732_v44, %v1184_v36  ;;  %v346_v57 = vmax.bf16 %v326_v45, %v1174_v29  ;;  %v1239_v35 = vld [vmem:[%s1131_s20 + $0x18] sm:$0xf]  ;;  %v283_v40 = vld [vmem:[%s1196_s29 + $0xc] sm:$0x3]  ;;  %v1250_v44 = vld [vmem:[%s1131_s20 + $0x1c] sm:$0x3] }
  0x1e   : > { %v595_v58 = vmax.bf16 %v575_v49, %v1150_v2  ;;  %v729_v59 = vsel %vm1178_vm2, %v724_v50, %v1184_v36  ;;  %v383_v60 = vrot.slane %v382_v51, 4  ;;  %v409_v62 = vrot.slane %v407_v47, 5  ;;  %v1255_v47 = vld [vmem:[%s1196_s29 + $0x10] sm:$0xf] }
  0x1f   : > { %v402_v1 = vrot.slane %v401_v54, 4  ;;  %v1217_v5 = vrot.slane %v733_v55, 4  ;;  %v413_v6 = vshll.u32 %v1201_v52, 16  ;;  %v597_v2 = vmax.bf16 %v577_v53, %v1174_v29  ;;  %v1262_v54 = vld [vmem:[%s1137_s23 + $0x10] sm:$0xf] }
  0x20   : > { %v636_v7 = vmax.bf16 %v595_v58, %v397_v48  ;;  %v576_v8 = vmax.bf16 %v383_v60, %v343_v28  ;;  %v410_v9 = vor.u32 %v409_v62, %v406_v46  ;;  %v736_v10 = vshrl.u32 %v1205_v56, 16 }
  0x21   : > { %v415_v12 = vrot.slane %v413_v6, 5  ;;  %v739_v13 = vshll.u32 %v1205_v56, 16  ;;  %v745_v14 = vshll.u32 %v1213_v61, 16  ;;  %v345_v15 = vmax.bf16 %v325_v63, %v1153_v3 }
  0x22   : > { %v656_v17 = vmax.bf16 %v636_v7, %v280_v0  ;;  %v596_v18 = vmax.bf16 %v576_v8, %v1153_v3  ;;  %v411_v19 = vrot.slane %v410_v9, 4  ;;  %v738_v20 = vrot.slane %v736_v10, 4  ;;  %v1234_v3 = vld [vmem:[%s1143_s26 + $0x18] sm:$0xf] }
  0x23   : > { %v741_v22 = vrot.slane %v739_v13, 5  ;;  %v747_v23 = vrot.slane %v745_v14, 5  ;;  %v417_v24 = vshrl.u32 %v1201_v52, 16  ;;  %v578_v25 = vmax.bf16 %v402_v1, %v345_v15  ;;  %v1284_v15 = vld [vmem:[%s1143_s26 + $0x20] sm:$0xf] }
  0x24   : > { %v676_v26 = vmax.bf16 %v656_v17, %v282_v16  ;;  %v637_v27 = vmax.bf16 %v596_v18, %v402_v1  ;;  %v416_v28 = vsel %vm1178_vm2, %v411_v19, %v415_v12  ;;  %v749_v29 = vshrl.u32 %v1213_v61, 16  ;;  %v1291_v19 = vld [vmem:[%s1131_s20 + $0x20] sm:$0xf] }
  0x25   : > { %v1236_v31 = vmax.bf16 %v416_v28, %v346_v57  ;;  %v638_v32 = vmax.bf16 %v597_v2, %v416_v28  ;;  %v742_v33 = vor.u32 %v741_v22, %v738_v20  ;;  %v419_v34 = vrot.slane %v417_v24, 4  ;;  %v327_v2 = vld [vmem:[%s1143_s26 + $0x14] sm:$0x3] }
  0x26   : > { %v696_v36 = vmax.bf16 %v676_v26, %v1156_v4  ;;  %v657_v37 = vmax.bf16 %v637_v27, %v281_v21  ;;  %v598_v38 = vmax.bf16 %v578_v25, %v1201_v52  ;;  %v751_v39 = vrot.slane %v749_v29, 4 }
  0x27   : > { %v658_v41 = vmax.bf16 %v638_v32, %v282_v16  ;;  %v743_v42 = vrot.slane %v742_v33, 4  ;;  %v420_v43 = vor.u32 %v419_v34, %v415_v12  ;;  %v348_v4 = vmax.bf16 %v1234_v3, %v1239_v35  ;;  %v1280_v12 = vld [vmem:[%s1196_s29 + $0x14] sm:$0x3] }
  0x28   : > { %v926_v45 = vmax.bf16 %v729_v59, %v696_v36  ;;  %v677_v46 = vmax.bf16 %v657_v37, %v283_v40  ;;  %v752_v48 = vor.u32 %v751_v39, %v747_v23  ;;  %v423_v49 = vshrl.u32 %v1239_v35, 16  ;;  %v1269_v59 = vld [vmem:[%s1137_s23 + $0x14] sm:$0x3]  ;;  %v1307_v36 = vld [vmem:[%s1137_s23 + $0x18] sm:$0xf] }
  0x29   : > { %v678_v50 = vmax.bf16 %v658_v41, %v1255_v47  ;;  %v748_v51 = vsel %vm1178_vm2, %v743_v42, %v747_v23  ;;  %v421_v53 = vrot.slane %v420_v43, 4  ;;  %v426_v55 = vshll.u32 %v1239_v35, 16  ;;  %v1314_v43 = vld [vmem:[%s1137_s23 + $0x1c] sm:$0x3] }
  0x2a   : > { %947 = vst.msk [vmem:[%s1246_s7] sm:$0xf] %vm946_vm3, %v926_v45  ;;  %v697_v57 = vmax.bf16 %v677_v46, %v1162_v11  ;;  %v753_v58 = vrot.slane %v752_v48, 4  ;;  %v425_v60 = vrot.slane %v423_v49, 4  ;;  %v432_v62 = vshll.u32 %v1250_v44, 16 }
  0x2b   : > { %v698_v63 = vmax.bf16 %v678_v50, %v1205_v56  ;;  %v639_v0 = vmax.bf16 %v598_v38, %v421_v53  ;;  %v428_v1 = vrot.slane %v426_v55, 5  ;;  %v599_v6 = vmax.bf16 %v1236_v31, %v1239_v35  ;;  %v1304_v35 = vld [vmem:[%s1131_s20 + $0x24] sm:$0x3]  ;;  %v329_v45 = vld [vmem:[%s1143_s26 + $0x1c] sm:$0x3] }
  0x2c   : > { %v927_v7 = vmax.bf16 %v1217_v5, %v697_v57  ;;  %v434_v11 = vrot.slane %v432_v62, 5  ;;  %v755_v8 = vshrl.u32 %v1262_v54, 16  ;;  %v758_v9 = vshll.u32 %v1262_v54, 16  ;;  %v286_v46 = vld [vmem:[%s1196_s29 + $0x18] sm:$0xf] }
  0x2d   : > { %v928_v10 = vmax.bf16 %v748_v51, %v698_v63  ;;  %v659_v13 = vmax.bf16 %v639_v0, %v283_v40  ;;  %v429_v56 = vor.u32 %v428_v1, %v425_v60  ;;  %v764_v14 = vshll.u32 %v1269_v59, 16  ;;  %v1329_v1 = vld [vmem:[%s1196_s29 + $0x1c] sm:$0x3] }
  0x2e   : > { %949 = vst.msk [vmem:[%s1246_s7 + $0x4] sm:$0x1] %vm948_vm4, %v927_v7  ;;  %v757_v16 = vrot.slane %v755_v8, 4  ;;  %v760_v17 = vrot.slane %v758_v9, 5  ;;  %v347_v5 = vmax.bf16 %v327_v2, %v1201_v52  ;;  %v436_v18 = vshrl.u32 %v1250_v44, 16 }
  0x2f   : > { %950 = vst.msk [vmem:[%s1246_s7 + $0x8] sm:$0xf] %vm946_vm3, %v928_v10  ;;  %v679_v20 = vmax.bf16 %v659_v13, %v1280_v12  ;;  %v430_v21 = vrot.slane %v429_v56, 4  ;;  %v766_v22 = vrot.slane %v764_v14, 5  ;;  %v768_v23 = vshrl.u32 %v1269_v59, 16 }
  0x30   : > { %v761_v24 = vor.u32 %v760_v17, %v757_v16  ;;  %v438_v25 = vrot.slane %v436_v18, 4  ;;  %v580_v26 = vmax.bf16 %v421_v53, %v347_v5  ;;  %v350_v52 = vmax.bf16 %v1284_v15, %v1291_v19  ;;  %v1338_v56 = vld [vmem:[%s1131_s20 + $0x28] sm:$0xf] }
  0x31   : > { %v699_v27 = vmax.bf16 %v679_v20, %v1213_v61  ;;  %v435_v28 = vsel %vm1178_vm2, %v430_v21, %v434_v11  ;;  %v770_v29 = vrot.slane %v768_v23, 4  ;;  %v442_v3 = vshrl.u32 %v1291_v19, 16  ;;  %v1350_v21 = vld [vmem:[%s1131_s20 + $0x2c] sm:$0x3] }
  0x32   : > { %v581_v31 = vmax.bf16 %v435_v28, %v348_v4  ;;  %v640_v32 = vmax.bf16 %v599_v6, %v435_v28  ;;  %v762_v33 = vrot.slane %v761_v24, 4  ;;  %v439_v34 = vor.u32 %v438_v25, %v434_v11  ;;  %v1333_v11 = vld [vmem:[%s1143_s26 + $0x28] sm:$0xf] }
  0x33   : > { %v929_v37 = vmax.bf16 %v753_v58, %v699_v27  ;;  %v600_v61 = vmax.bf16 %v580_v26, %v1250_v44  ;;  %v771_v38 = vor.u32 %v770_v29, %v766_v22  ;;  %v444_v39 = vrot.slane %v442_v3, 4  ;;  %v1354_v27 = vld [vmem:[%s1137_s23 + $0x20] sm:$0xf]  ;;  %v1359_v29 = vld [vmem:[%s1137_s23 + $0x24] sm:$0x3] }
  0x34   : > { %v660_v40 = vmax.bf16 %v640_v32, %v1255_v47  ;;  %v767_v41 = vsel %vm1178_vm2, %v762_v33, %v766_v22  ;;  %v440_v42 = vrot.slane %v439_v34, 4  ;;  %v445_v4 = vshll.u32 %v1291_v19, 16 }
  0x35   : > { %951 = vst.msk [vmem:[%s1246_s7 + $0xc] sm:$0x1] %vm948_vm4, %v929_v37  ;;  %v772_v48 = vrot.slane %v771_v38, 4  ;;  %v451_v49 = vshll.u32 %v1304_v35, 16  ;;  %v601_v50 = vmax.bf16 %v581_v31, %v1291_v19  ;;  %v774_v47 = vshrl.u32 %v1307_v36, 16 }
  0x36   : > { %v680_v51 = vmax.bf16 %v660_v40, %v286_v46  ;;  %v641_v53 = vmax.bf16 %v600_v61, %v440_v42  ;;  %v447_v55 = vrot.slane %v445_v4, 5  ;;  %v777_v57 = vshll.u32 %v1307_v36, 16  ;;  %v331_v37 = vld [vmem:[%s1143_s26 + $0x24] sm:$0x3]  ;;  %v288_v61 = vld [vmem:[%s1196_s29 + $0x20] sm:$0xf] }
  0x37   : > { %v453_v58 = vrot.slane %v451_v49, 5  ;;  %v776_v60 = vrot.slane %v774_v47, 4  ;;  %v783_v62 = vshll.u32 %v1314_v43, 16  ;;  %v349_v63 = vmax.bf16 %v329_v45, %v1250_v44 }
  0x38   : > { %v700_v0 = vmax.bf16 %v680_v51, %v1262_v54  ;;  %v661_v6 = vmax.bf16 %v641_v53, %v1280_v12  ;;  %v448_v2 = vor.u32 %v447_v55, %v444_v39  ;;  %v779_v7 = vrot.slane %v777_v57, 5  ;;  %v1373_v51 = vld [vmem:[%s1143_s26 + $0x30] sm:$0xf] }
  0x39   : > { %v785_v8 = vrot.slane %v783_v62, 5  ;;  %v455_v9 = vshrl.u32 %v1304_v35, 16  ;;  %v582_v10 = vmax.bf16 %v440_v42, %v349_v63  ;;  %v787_v13 = vshrl.u32 %v1314_v43, 16 }
  0x3a   : > { %v930_v44 = vmax.bf16 %v767_v41, %v700_v0  ;;  %v681_v54 = vmax.bf16 %v661_v6, %v1329_v1  ;;  %v449_v14 = vrot.slane %v448_v2, 4  ;;  %v780_v12 = vor.u32 %v779_v7, %v776_v60  ;;  %v289_v60 = vld [vmem:[%s1196_s29 + $0x24] sm:$0x3]  ;;  %v1381_v2 = vld [vmem:[%s1131_s20 + $0x30] sm:$0xf] }
  0x3b   : > { %v457_v15 = vrot.slane %v455_v9, 4  ;;  %v602_v16 = vmax.bf16 %v582_v10, %v1304_v35  ;;  %v789_v17 = vrot.slane %v787_v13, 4  ;;  %v352_v5 = vmax.bf16 %v1333_v11, %v1338_v56  ;;  %v1389_v13 = vld [vmem:[%s1131_s20 + $0x34] sm:$0x3] }
  0x3c   : > { %952 = vst.msk [vmem:[%s1246_s7 + $0x10] sm:$0xf] %vm946_vm3, %v930_v44  ;;  %v701_v18 = vmax.bf16 %v681_v54, %v1269_v59  ;;  %v454_v19 = vsel %vm1178_vm2, %v449_v14, %v453_v58  ;;  %v781_v20 = vrot.slane %v780_v12, 4  ;;  %v461_v22 = vshrl.u32 %v1338_v56, 16 }
  0x3d   : > { %v583_v23 = vmax.bf16 %v454_v19, %v350_v52  ;;  %v642_v24 = vmax.bf16 %v601_v50, %v454_v19  ;;  %v458_v25 = vor.u32 %v457_v15, %v453_v58  ;;  %v790_v26 = vor.u32 %v789_v17, %v785_v8 }
  0x3e   : > { %v931_v28 = vmax.bf16 %v772_v48, %v701_v18  ;;  %v786_v59 = vsel %vm1178_vm2, %v781_v20, %v785_v8  ;;  %v463_v3 = vrot.slane %v461_v22, 4  ;;  %v464_v31 = vshll.u32 %v1338_v56, 16 }
  0x3f   : > { %v662_v32 = vmax.bf16 %v642_v24, %v286_v46  ;;  %v459_v33 = vrot.slane %v458_v25, 4  ;;  %v791_v34 = vrot.slane %v790_v26, 4  ;;  %v470_v52 = vshll.u32 %v1350_v21, 16  ;;  %v290_v24 = vld [vmem:[%s1196_s29 + $0x28] sm:$0xf] }
  0x40   : > { %953 = vst.msk [vmem:[%s1246_s7 + $0x14] sm:$0x1] %vm948_vm4, %v931_v28  ;;  %v466_v38 = vrot.slane %v464_v31, 5  ;;  %v603_v39 = vmax.bf16 %v583_v23, %v1338_v56  ;;  %v793_v40 = vshrl.u32 %v1354_v27, 16  ;;  %v796_v41 = vshll.u32 %v1354_v27, 16 }
  0x41   : > { %v682_v42 = vmax.bf16 %v662_v32, %v288_v61  ;;  %v643_v4 = vmax.bf16 %v602_v16, %v459_v33  ;;  %v472_v45 = vrot.slane %v470_v52, 5  ;;  %v802_v46 = vshll.u32 %v1359_v29, 16  ;;  %v1397_v16 = vld [vmem:[%s1137_s23 + $0x28] sm:$0xf]  ;;  %v1402_v23 = vld [vmem:[%s1137_s23 + $0x2c] sm:$0x3] }
  0x42   : > { %v467_v48 = vor.u32 %v466_v38, %v463_v3  ;;  %v795_v49 = vrot.slane %v793_v40, 4  ;;  %v798_v50 = vrot.slane %v796_v41, 5  ;;  %v351_v47 = vmax.bf16 %v331_v37, %v1304_v35 }
  0x43   : > { %v702_v53 = vmax.bf16 %v682_v42, %v1307_v36  ;;  %v663_v55 = vmax.bf16 %v643_v4, %v1329_v1  ;;  %v804_v57 = vrot.slane %v802_v46, 5  ;;  %v474_v58 = vshrl.u32 %v1350_v21, 16  ;;  %v1417_v42 = vld [vmem:[%s1143_s26 + $0x38] sm:$0xf]  ;;  %v291_v4 = vld [vmem:[%s1196_s29 + $0x2c] sm:$0x3] }
  0x44   : > { %v468_v62 = vrot.slane %v467_v48, 4  ;;  %v799_v63 = vor.u32 %v798_v50, %v795_v49  ;;  %v584_v0 = vmax.bf16 %v459_v33, %v351_v47  ;;  %v806_v6 = vshrl.u32 %v1359_v29, 16 }
  0x45   : > { %v932_v35 = vmax.bf16 %v786_v59, %v702_v53  ;;  %v683_v7 = vmax.bf16 %v663_v55, %v289_v60  ;;  %v476_v11 = vrot.slane %v474_v58, 4  ;;  %v354_v36 = vmax.bf16 %v1373_v51, %v1381_v2  ;;  %v272_v53 = vld [vmem:[%s1131_s20 + $0x38] sm:$0xf]  ;;  %v1426_v58 = vld [vmem:[%s1131_s20 + $0x3c] sm:$0x3] }
  0x46   : > { %v473_v1 = vsel %vm1178_vm2, %v468_v62, %v472_v45  ;;  %v800_v8 = vrot.slane %v799_v63, 4  ;;  %v604_v9 = vmax.bf16 %v584_v0, %v1350_v21  ;;  %v808_v10 = vrot.slane %v806_v6, 4 }
  0x47   : > { %954 = vst.msk [vmem:[%s1246_s7 + $0x18] sm:$0xf] %vm946_vm3, %v932_v35  ;;  %v703_v56 = vmax.bf16 %v683_v7, %v1314_v43  ;;  %v585_v44 = vmax.bf16 %v473_v1, %v352_v5  ;;  %v644_v54 = vmax.bf16 %v603_v39, %v473_v1  ;;  %v477_v14 = vor.u32 %v476_v11, %v472_v45  ;;  %v333_v5 = vld [vmem:[%s1143_s26 + $0x2c] sm:$0x3] }
  0x48   : > { %v805_v12 = vsel %vm1178_vm2, %v800_v8, %v804_v57  ;;  %v809_v15 = vor.u32 %v808_v10, %v804_v57  ;;  %v480_v17 = vshrl.u32 %v1381_v2, 16  ;;  %v483_v18 = vshll.u32 %v1381_v2, 16  ;;  %v292_v8 = vld [vmem:[%s1196_s29 + $0x30] sm:$0xf] }
  0x49   : > { %v933_v19 = vmax.bf16 %v791_v34, %v703_v56  ;;  %v664_v20 = vmax.bf16 %v644_v54, %v288_v61  ;;  %v478_v22 = vrot.slane %v477_v14, 4  ;;  %v489_v43 = vshll.u32 %v1389_v13, 16  ;;  %v1434_v56 = vld [vmem:[%s1137_s23 + $0x30] sm:$0xf]  ;;  %v1440_v54 = vld [vmem:[%s1137_s23 + $0x34] sm:$0x3] }
  0x4a   : > { %v810_v25 = vrot.slane %v809_v15, 4  ;;  %v482_v26 = vrot.slane %v480_v17, 4  ;;  %v485_v28 = vrot.slane %v483_v18, 5  ;;  %v605_v59 = vmax.bf16 %v585_v44, %v1381_v2  ;;  %v335_v15 = vld [vmem:[%s1143_s26 + $0x34] sm:$0x3] }
  0x4b   : > { %955 = vst.msk [vmem:[%s1246_s7 + $0x1c] sm:$0x1] %vm948_vm4, %v933_v19  ;;  %v684_v3 = vmax.bf16 %v664_v20, %v290_v24  ;;  %v645_v31 = vmax.bf16 %v604_v9, %v478_v22  ;;  %v491_v32 = vrot.slane %v489_v43, 5  ;;  %v812_v33 = vshrl.u32 %v1397_v16, 16 }
  0x4c   : > { %v486_v34 = vor.u32 %v485_v28, %v482_v26  ;;  %v815_v52 = vshll.u32 %v1397_v16, 16  ;;  %v821_v37 = vshll.u32 %v1402_v23, 16  ;;  %v353_v61 = vmax.bf16 %v333_v5, %v1350_v21 }
  0x4d   : > { %v704_v38 = vmax.bf16 %v684_v3, %v1354_v27  ;;  %v665_v39 = vmax.bf16 %v645_v31, %v289_v60  ;;  %v814_v40 = vrot.slane %v812_v33, 4  ;;  %v493_v41 = vshrl.u32 %v1389_v13, 16  ;;  %v293_v3 = vld [vmem:[%s1196_s29 + $0x34] sm:$0x3] }
  0x4e   : > { %v487_v45 = vrot.slane %v486_v34, 4  ;;  %v817_v46 = vrot.slane %v815_v52, 5  ;;  %v823_v48 = vrot.slane %v821_v37, 5  ;;  %v586_v49 = vmax.bf16 %v478_v22, %v353_v61 }
  0x4f   : > { %v934_v50 = vmax.bf16 %v805_v12, %v704_v38  ;;  %v685_v47 = vmax.bf16 %v665_v39, %v291_v4  ;;  %v495_v51 = vrot.slane %v493_v41, 4  ;;  %v825_v21 = vshrl.u32 %v1402_v23, 16  ;;  %v1453_v39 = vld [vmem:[%s1143_s26 + $0x40] sm:$0xf] }
  0x50   : > { %v492_v27 = vsel %vm1178_vm2, %v487_v45, %v491_v32  ;;  %v818_v55 = vor.u32 %v817_v46, %v814_v40  ;;  %v606_v57 = vmax.bf16 %v586_v49, %v1389_v13  ;;  %v356_v60 = vmax.bf16 %v1417_v42, %v272_v53  ;;  %v274_v42 = vld [vmem:[%s1131_s20 + $0x40] sm:$0xf]  ;;  %v1464_v49 = vld [vmem:[%s1131_s20 + $0x44] sm:$0x3] }
  0x51   : > { %956 = vst.msk [vmem:[%s1246_s7 + $0x20] sm:$0xf] %vm946_vm3, %v934_v50  ;;  %v705_v62 = vmax.bf16 %v685_v47, %v1359_v29  ;;  %v587_v63 = vmax.bf16 %v492_v27, %v354_v36  ;;  %v646_v0 = vmax.bf16 %v605_v59, %v492_v27  ;;  %v496_v6 = vor.u32 %v495_v51, %v491_v32 }
  0x52   : > { %v819_v2 = vrot.slane %v818_v55, 4  ;;  %v827_v35 = vrot.slane %v825_v21, 4  ;;  %v499_v7 = vshrl.u32 %v272_v53, 16  ;;  %v502_v11 = vshll.u32 %v272_v53, 16  ;;  %v1468_v55 = vld [vmem:[%s1137_s23 + $0x38] sm:$0xf] }
  0x53   : > { %v935_v1 = vmax.bf16 %v810_v25, %v705_v62  ;;  %v666_v9 = vmax.bf16 %v646_v0, %v290_v24  ;;  %v497_v10 = vrot.slane %v496_v6, 4  ;;  %v508_v44 = vshll.u32 %v1426_v58, 16  ;;  %v1474_v6 = vld [vmem:[%s1137_s23 + $0x3c] sm:$0x3] }
  0x54   : > { %v824_v29 = vsel %vm1178_vm2, %v819_v2, %v823_v48  ;;  %v828_v36 = vor.u32 %v827_v35, %v823_v48  ;;  %v501_v14 = vrot.slane %v499_v7, 4  ;;  %v504_v12 = vrot.slane %v502_v11, 5 }
  0x55   : > { %957 = vst.msk [vmem:[%s1246_s7 + $0x24] sm:$0x1] %vm948_vm4, %v935_v1  ;;  %v686_v17 = vmax.bf16 %v666_v9, %v292_v8  ;;  %v647_v18 = vmax.bf16 %v606_v57, %v497_v10  ;;  %v510_v19 = vrot.slane %v508_v44, 5  ;;  %v607_v20 = vmax.bf16 %v587_v63, %v272_v53 }
  0x56   : > { %v829_v22 = vrot.slane %v828_v36, 4  ;;  %v505_v43 = vor.u32 %v504_v12, %v501_v14  ;;  %v831_v5 = vshrl.u32 %v1434_v56, 16  ;;  %v834_v24 = vshll.u32 %v1434_v56, 16 }
  0x57   : > { %v706_v25 = vmax.bf16 %v686_v17, %v1397_v16  ;;  %v667_v26 = vmax.bf16 %v647_v18, %v291_v4  ;;  %v840_v28 = vshll.u32 %v1440_v54, 16  ;;  %v355_v59 = vmax.bf16 %v335_v15, %v1389_v13 }
  0x58   : > { %v506_v31 = vrot.slane %v505_v43, 4  ;;  %v833_v32 = vrot.slane %v831_v5, 4  ;;  %v836_v33 = vrot.slane %v834_v24, 5  ;;  %v512_v34 = vshrl.u32 %v1426_v58, 16  ;;  %v1490_v43 = vld [vmem:[%s1143_s26 + $0x48] sm:$0xf] }
  0x59   : > { %v936_v52 = vmax.bf16 %v824_v29, %v706_v25  ;;  %v687_v37 = vmax.bf16 %v667_v26, %v293_v3  ;;  %v842_v61 = vrot.slane %v840_v28, 5  ;;  %v588_v38 = vmax.bf16 %v497_v10, %v355_v59  ;;  %v295_v24 = vld [vmem:[%s1196_s29 + $0x3c] sm:$0x3] }
  0x5a   : > { %v511_v16 = vsel %vm1178_vm2, %v506_v31, %v510_v19  ;;  %v837_v40 = vor.u32 %v836_v33, %v833_v32  ;;  %v514_v13 = vrot.slane %v512_v34, 4  ;;  %v844_v41 = vshrl.u32 %v1440_v54, 16 }
  0x5b   : > { %958 = vst.msk [vmem:[%s1246_s7 + $0x28] sm:$0xf] %vm946_vm3, %v936_v52  ;;  %v707_v4 = vmax.bf16 %v687_v37, %v1402_v23  ;;  %v589_v45 = vmax.bf16 %v511_v16, %v356_v60  ;;  %v648_v46 = vmax.bf16 %v607_v20, %v511_v16  ;;  %v608_v48 = vmax.bf16 %v588_v38, %v1426_v58  ;;  %v294_v60 = vld [vmem:[%s1196_s29 + $0x38] sm:$0xf] }
  0x5c   : > { %v838_v50 = vrot.slane %v837_v40, 4  ;;  %v515_v47 = vor.u32 %v514_v13, %v510_v19  ;;  %v846_v51 = vrot.slane %v844_v41, 4  ;;  %v358_v21 = vmax.bf16 %v1453_v39, %v274_v42  ;;  %v1503_v39 = vld [vmem:[%s1131_s20 + $0x4c] sm:$0x3]  ;;  %v1507_v41 = vld [vmem:[%s1137_s23 + $0x40] sm:$0xf] }
  0x5d   : > { %v937_v53 = vmax.bf16 %v829_v22, %v707_v4  ;;  %v668_v27 = vmax.bf16 %v648_v46, %v292_v8  ;;  %v518_v57 = vshrl.u32 %v274_v42, 16  ;;  %v521_v23 = vshll.u32 %v274_v42, 16  ;;  %v337_v8 = vld [vmem:[%s1143_s26 + $0x3c] sm:$0x3]  ;;  %v1487_v22 = vld [vmem:[%s1131_s20 + $0x48] sm:$0xf] }
  0x5e   : > { %v843_v62 = vsel %vm1178_vm2, %v838_v50, %v842_v61  ;;  %v516_v63 = vrot.slane %v515_v47, 4  ;;  %v847_v0 = vor.u32 %v846_v51, %v842_v61  ;;  %v527_v2 = vshll.u32 %v1464_v49, 16  ;;  %v296_v50 = vld [vmem:[%s1196_s29 + $0x40] sm:$0xf] }
  0x5f   : > { %959 = vst.msk [vmem:[%s1246_s7 + $0x2c] sm:$0x1] %vm948_vm4, %v937_v53  ;;  %v688_v35 = vmax.bf16 %v668_v27, %v294_v60  ;;  %v520_v7 = vrot.slane %v518_v57, 4  ;;  %v523_v11 = vrot.slane %v521_v23, 5  ;;  %v609_v1 = vmax.bf16 %v589_v45, %v274_v42 }
  0x60   : > { %v649_v9 = vmax.bf16 %v608_v48, %v516_v63  ;;  %v848_v10 = vrot.slane %v847_v0, 4  ;;  %v529_v44 = vrot.slane %v527_v2, 5  ;;  %v850_v29 = vshrl.u32 %v1468_v55, 16  ;;  %v1510_v48 = vld [vmem:[%s1137_s23 + $0x44] sm:$0x3] }
  0x61   : > { %v708_v36 = vmax.bf16 %v688_v35, %v1434_v56  ;;  %v524_v14 = vor.u32 %v523_v11, %v520_v7  ;;  %v853_v12 = vshll.u32 %v1468_v55, 16  ;;  %v859_v15 = vshll.u32 %v1474_v6, 16 }
  0x62   : > { %v669_v17 = vmax.bf16 %v649_v9, %v293_v3  ;;  %v852_v18 = vrot.slane %v850_v29, 4  ;;  %v357_v19 = vmax.bf16 %v337_v8, %v1426_v58  ;;  %v531_v20 = vshrl.u32 %v1464_v49, 16  ;;  %v1526_v9 = vld [vmem:[%s1131_s20 + $0x50] sm:$0xf] }
  0x63   : > { %v938_v5 = vmax.bf16 %v843_v62, %v708_v36  ;;  %v525_v25 = vrot.slane %v524_v14, 4  ;;  %v855_v56 = vrot.slane %v853_v12, 5  ;;  %v861_v26 = vrot.slane %v859_v15, 5  ;;  %v339_v62 = vld [vmem:[%s1143_s26 + $0x44] sm:$0x3] }
  0x64   : > { %v689_v28 = vmax.bf16 %v669_v17, %v295_v24  ;;  %v533_v59 = vrot.slane %v531_v20, 4  ;;  %v590_v31 = vmax.bf16 %v516_v63, %v357_v19  ;;  %v863_v3 = vshrl.u32 %v1474_v6, 16 }
  0x65   : > { %960 = vst.msk [vmem:[%s1246_s7 + $0x30] sm:$0xf] %vm946_vm3, %v938_v5  ;;  %v530_v58 = vsel %vm1178_vm2, %v525_v25, %v529_v44  ;;  %v856_v32 = vor.u32 %v855_v56, %v852_v18  ;;  %v360_v33 = vmax.bf16 %v1490_v43, %v1487_v22  ;;  %v537_v34 = vshrl.u32 %v1487_v22, 16 }
  0x66   : > { %v709_v52 = vmax.bf16 %v689_v28, %v1440_v54  ;;  %v591_v37 = vmax.bf16 %v530_v58, %v358_v21  ;;  %v650_v61 = vmax.bf16 %v609_v1, %v530_v58  ;;  %v534_v38 = vor.u32 %v533_v59, %v529_v44  ;;  %v279_v59 = vld [vmem:[%s1131_s20 + $0x54] sm:$0x3] }
  0x67   : > { %v857_v16 = vrot.slane %v856_v32, 4  ;;  %v610_v40 = vmax.bf16 %v590_v31, %v1464_v49  ;;  %v865_v13 = vrot.slane %v863_v3, 4  ;;  %v539_v42 = vrot.slane %v537_v34, 4  ;;  %v320_v31 = vld [vmem:[%s1137_s23 + $0x48] sm:$0xf] }
  0x68   : > { %v939_v4 = vmax.bf16 %v848_v10, %v709_v52  ;;  %v670_v45 = vmax.bf16 %v650_v61, %v294_v60  ;;  %v535_v46 = vrot.slane %v534_v38, 4  ;;  %v540_v54 = vshll.u32 %v1487_v22, 16  ;;  %v297_v10 = vld [vmem:[%s1196_s29 + $0x44] sm:$0x3]  ;;  %v321_v52 = vld [vmem:[%s1137_s23 + $0x4c] sm:$0x3] }
  0x69   : > { %v862_v47 = vsel %vm1178_vm2, %v857_v16, %v861_v26  ;;  %v866_v51 = vor.u32 %v865_v13, %v861_v26  ;;  %v546_v21 = vshll.u32 %v1503_v39, 16  ;;  %v611_v53 = vmax.bf16 %v591_v37, %v1487_v22  ;;  %v341_v61 = vld [vmem:[%s1143_s26 + $0x4c] sm:$0x3]  ;;  %v298_v38 = vld [vmem:[%s1196_s29 + $0x48] sm:$0xf] }
  0x6a   : > { %961 = vst.msk [vmem:[%s1246_s7 + $0x34] sm:$0x1] %vm948_vm4, %v939_v4  ;;  %v690_v27 = vmax.bf16 %v670_v45, %v296_v50  ;;  %v651_v57 = vmax.bf16 %v610_v40, %v535_v46  ;;  %v542_v23 = vrot.slane %v540_v54, 5  ;;  %v869_v60 = vshrl.u32 %v1507_v41, 16 }
  0x6b   : > { %v867_v63 = vrot.slane %v866_v51, 4  ;;  %v548_v0 = vrot.slane %v546_v21, 5  ;;  %v872_v2 = vshll.u32 %v1507_v41, 16  ;;  %v878_v35 = vshll.u32 %v1510_v48, 16 }
  0x6c   : > { %v710_v7 = vmax.bf16 %v690_v27, %v1468_v55  ;;  %v671_v11 = vmax.bf16 %v651_v57, %v295_v24  ;;  %v543_v1 = vor.u32 %v542_v23, %v539_v42  ;;  %v871_v8 = vrot.slane %v869_v60, 4  ;;  %v299_v23 = vld [vmem:[%s1196_s29 + $0x4c] sm:$0x3] }
  0x6d   : > { %v874_v44 = vrot.slane %v872_v2, 5  ;;  %v880_v29 = vrot.slane %v878_v35, 5  ;;  %v359_v36 = vmax.bf16 %v339_v62, %v1464_v49  ;;  %v550_v14 = vshrl.u32 %v1503_v39, 16 }
  0x6e   : > { %v940_v12 = vmax.bf16 %v862_v47, %v710_v7  ;;  %v691_v15 = vmax.bf16 %v671_v11, %v297_v10  ;;  %v544_v17 = vrot.slane %v543_v1, 4  ;;  %v882_v55 = vshrl.u32 %v1510_v48, 16 }
  0x6f   : > { %v875_v18 = vor.u32 %v874_v44, %v871_v8  ;;  %v552_v19 = vrot.slane %v550_v14, 4  ;;  %v592_v20 = vmax.bf16 %v535_v46, %v359_v36  ;;  %v616_v22 = vshrl.u32 %v1526_v9, 16 }
  0x70   : > { %962 = vst.msk [vmem:[%s1246_s7 + $0x38] sm:$0xf] %vm946_vm3, %v940_v12  ;;  %v711_v43 = vmax.bf16 %v691_v15, %v1474_v6  ;;  %v549_v49 = vsel %vm1178_vm2, %v544_v17, %v548_v0  ;;  %v884_v5 = vrot.slane %v882_v55, 4  ;;  %v619_v24 = vshll.u32 %v1526_v9, 16 }
  0x71   : > { %v593_v25 = vmax.bf16 %v549_v49, %v360_v33  ;;  %v652_v56 = vmax.bf16 %v611_v53, %v549_v49  ;;  %v876_v26 = vrot.slane %v875_v18, 4  ;;  %v553_v28 = vor.u32 %v552_v19, %v548_v0 }
  0x72   : > { %v941_v3 = vmax.bf16 %v867_v63, %v711_v43  ;;  %v612_v58 = vmax.bf16 %v592_v20, %v1503_v39  ;;  %v618_v32 = vrot.slane %v616_v22, 4  ;;  %v885_v16 = vor.u32 %v884_v5, %v880_v29  ;;  %v301_v22 = vld [vmem:[%s1196_s29 + $0x54] sm:$0x3] }
  0x73   : > { %v672_v6 = vmax.bf16 %v652_v56, %v296_v50  ;;  %v554_v34 = vrot.slane %v553_v28, 4  ;;  %v613_v37 = vmax.bf16 %v593_v25, %v1526_v9  ;;  %v621_v33 = vrot.slane %v619_v24, 5 }
  0x74   : > { %963 = vst.msk [vmem:[%s1246_s7 + $0x3c] sm:$0x1] %vm948_vm4, %v941_v3  ;;  %v625_v40 = vshll.u32 %v279_v59, 16  ;;  %v888_v13 = vshrl.u32 %v320_v31, 16  ;;  %v881_v4 = vsel %vm1178_vm2, %v876_v26, %v880_v29  ;;  %v891_v46 = vshll.u32 %v320_v31, 16 }
  0x75   : > { %v692_v42 = vmax.bf16 %v672_v6, %v298_v38  ;;  %v653_v45 = vmax.bf16 %v612_v58, %v554_v34  ;;  %v622_v54 = vor.u32 %v621_v33, %v618_v32  ;;  %v897_v47 = vshll.u32 %v321_v52, 16 }
  0x76   : > { %v890_v50 = vrot.slane %v888_v13, 4  ;;  %v361_v51 = vmax.bf16 %v341_v61, %v1503_v39  ;;  %v627_v27 = vrot.slane %v625_v40, 5  ;;  %v893_v57 = vrot.slane %v891_v46, 5 }
  0x77   : > { %v712_v21 = vmax.bf16 %v692_v42, %v1507_v41  ;;  %v673_v53 = vmax.bf16 %v653_v45, %v297_v10  ;;  %v623_v60 = vrot.slane %v622_v54, 4  ;;  %v629_v63 = vshrl.u32 %v279_v59, 16  ;;  %v300_v10 = vld [vmem:[%s1196_s29 + $0x50] sm:$0xf] }
  0x78   : > { %v594_v62 = vmax.bf16 %v554_v34, %v361_v51  ;;  %v901_v0 = vshrl.u32 %v321_v52, 16  ;;  %v886_v7 = vrot.slane %v885_v16, 4  ;;  %v894_v11 = vor.u32 %v893_v57, %v890_v50 }
  0x79   : > { %v942_v2 = vmax.bf16 %v881_v4, %v712_v21  ;;  %v693_v35 = vmax.bf16 %v673_v53, %v299_v23  ;;  %v628_v39 = vsel %vm1178_vm2, %v623_v60, %v627_v27  ;;  %v631_v41 = vrot.slane %v629_v63, 4 }
  0x7a   : > { %v614_v1 = vmax.bf16 %v594_v62, %v279_v59  ;;  %v654_v9 = vmax.bf16 %v628_v39, %v613_v37  ;;  %v895_v44 = vrot.slane %v894_v11, 4  ;;  %v899_v29 = vrot.slane %v897_v47, 5 }
  0x7b   : > { %964 = vst.msk [vmem:[%s1246_s7 + $0x40] sm:$0xf] %vm946_vm3, %v942_v2  ;;  %v713_v8 = vmax.bf16 %v693_v35, %v1510_v48  ;;  %v632_v36 = vor.u32 %v631_v41, %v627_v27  ;;  %v903_v14 = vrot.slane %v901_v0, 4 }
  0x7c   : > { %v674_v15 = vmax.bf16 %v654_v9, %v298_v38  ;;  %v900_v18 = vsel %vm1178_vm2, %v895_v44, %v899_v29 }
  0x7d   : > { %v943_v12 = vmax.bf16 %v886_v7, %v713_v8  ;;  %v633_v17 = vrot.slane %v632_v36, 4  ;;  %v904_v48 = vor.u32 %v903_v14, %v899_v29 }
  0x7e   : > { %v694_v55 = vmax.bf16 %v674_v15, %v300_v10 }
  0x7f   : > { %965 = vst.msk [vmem:[%s1246_s7 + $0x44] sm:$0x1] %vm948_vm4, %v943_v12  ;;  %v655_v19 = vmax.bf16 %v633_v17, %v614_v1  ;;  %v905_v24 = vrot.slane %v904_v48, 4 }
  0x80   : > { %v714_v20 = vmax.bf16 %v694_v55, %v320_v31 }
  0x81   : > { %v675_v43 = vmax.bf16 %v655_v19, %v299_v23 }
  0x82   : > { %v944_v49 = vmax.bf16 %v900_v18, %v714_v20 }
  0x83   : > { %v695_v5 = vmax.bf16 %v675_v43, %v301_v22 }
  0x84   : > { %966 = vst.msk [vmem:[%s1246_s7 + $0x48] sm:$0xf] %vm946_vm3, %v944_v49 }
  0x85   : > { %v715_v25 = vmax.bf16 %v695_v5, %v321_v52 }
  0x87   : > { %v945_v56 = vmax.bf16 %v905_v24, %v715_v25 }
  0x89   : > { %967 = vst.msk [vmem:[%s1246_s7 + $0x4c] sm:$0x1] %vm948_vm4, %v945_v56 }
  0x8a PF: > { %s14_s15 = sadd.s32 1, %s1087_s15  }
  0x8b   : > { %p11_p4 = scmp.ge.s32.totalorder %s14_s15, 4  }
  0x8d   :  { %13 = sbr.rel (!%p11_p4) target bundleno = 1 (0x1), region = 75 }

// kernel: _lambda_.25
= control target key start
LH: loop header
LB: loop body
LE: loop exit
PB: predicated region body
PF: predicated region fallthrough
CT: control target
= control target key end

     0   :  { %v1362_v1 = vmov 0.0   ;;  %vm1363_vm0 = vmmov 0   ;;  %s1677_s1 = inlined_call_operand.vmem [shape: bf16[384,128], index: 1, kind: input, shape index: {}]   ;;  %s1678_s0 = inlined_call_operand.vmem [shape: bf16[208,384], index: 0, kind: input, shape index: {}]   ;;  %s1679_s2 = inlined_call_operand.vmem [shape: f32[1,128], index: 2, kind: input, shape index: {}]   ;;  %s1680_s3 = inlined_call_operand.vmem [shape: bf16[208,128], index: 3, kind: output, shape index: {}]  }
   0x1   :  { %v1286_v0 = vld [vmem:[%s1677_s1 + $0x40] sm:$0xff]   ;;  %1216 = vmatprep.subr.bf16.mxu1 %v1362_v1  ;;  %1232 = vmatprep.mubr.msk.bf16.mxu1 %vm1363_vm0, %v1362_v1  ;;  %v1289_v4 = vld [vmem:[%s1677_s1 + $0x48] sm:$0xff]   ;;  %v1292_v7 = vld [vmem:[%s1677_s1 + $0x50] sm:$0xff]  }
   0x2   :  { %v1287_v2 = vld [vmem:[%s1677_s1] sm:$0xff]   ;;  %1101 = vmatprep.subr.bf16.mxu0 %v1286_v0  ;;  %v1290_v5 = vld [vmem:[%s1677_s1 + $0x8] sm:$0xff]   ;;  %v1293_v8 = vld [vmem:[%s1677_s1 + $0x10] sm:$0xff]  }
   0x3   :  { %v1288_v3 = vld [vmem:[%s1677_s1 + $0x80] sm:$0xff]   ;;  %1102 = vmatpush3.bf16.msra.mxu0 %v1287_v2  ;;  %v1291_v6 = vld [vmem:[%s1677_s1 + $0x88] sm:$0xff]   ;;  %v1294_v9 = vld [vmem:[%s1677_s1 + $0x90] sm:$0xff]  }
   0x4   :  { %1217 = vmatpush3.bf16.msra.mxu1 %v1288_v3  ;;  %1103 = vmatprep.subr.bf16.mxu0 %v1289_v4  ;;  %v1295_v10 = vld [vmem:[%s1677_s1 + $0x58] sm:$0xff]   ;;  %v1298_v13 = vld [vmem:[%s1677_s1 + $0x60] sm:$0xff]   ;;  %v1301_v16 = vld [vmem:[%s1677_s1 + $0x68] sm:$0xff]  }
   0x5   :  { %1218 = vmatprep.subr.bf16.mxu1 %v1362_v1  ;;  %v1296_v11 = vld [vmem:[%s1677_s1 + $0x18] sm:$0xff]   ;;  %v1299_v14 = vld [vmem:[%s1677_s1 + $0x20] sm:$0xff]   ;;  %v1302_v17 = vld [vmem:[%s1677_s1 + $0x28] sm:$0xff]  }
   0x6   :  { %v1297_v12 = vld [vmem:[%s1677_s1 + $0x98] sm:$0xff]   ;;  %v1300_v15 = vld [vmem:[%s1677_s1 + $0xa0] sm:$0xff]   ;;  %v1303_v18 = vld [vmem:[%s1677_s1 + $0xa8] sm:$0xff]  }
   0x7   :  { %1104 = vmatpush3.bf16.msra.mxu0 %v1290_v5  ;;  %v1304_v19 = vld [vmem:[%s1677_s1 + $0x70] sm:$0xff]   ;;  %v1307_v22 = vld [vmem:[%s1677_s1 + $0x78] sm:$0xff]   ;;  %v1309_v26 = vld [vmem:[%s1678_s0] ss:$12 sps:$4 sm:$0xff]  }
   0x8   :  { %1219 = vmatpush3.bf16.msra.mxu1 %v1291_v6  ;;  %1105 = vmatprep.subr.bf16.mxu0 %v1292_v7  ;;  %v1305_v20 = vld [vmem:[%s1677_s1 + $0x30] sm:$0xff]   ;;  %v1308_v24 = vld [vmem:[%s1677_s1 + $0x38] sm:$0xff]   ;;  %v1317_v30 = vld [vmem:[%s1678_s0 + $0x20] ss:$12 sps:$4 sm:$0xff]  }
   0x9   :  { %1220 = vmatprep.subr.bf16.mxu1 %v1362_v1  ;;  %v1306_v21 = vld [vmem:[%s1677_s1 + $0xb0] sm:$0xff]   ;;  %v1312_v25 = vld [vmem:[%s1677_s1 + $0xb8] sm:$0xff]   ;;  %v1328_v38 = vld [vmem:[%s1678_s0 + $0x60] ss:$12 sps:$4 sm:$0xff]  }
   0xa   :  { %v1311_v23 = vld [vmem:[%s1678_s0 + $0x4] ss:$12 sps:$4 sm:$0xff]   ;;  %v1313_v27 = vld [vmem:[%s1678_s0 + $0x8] ss:$12 sps:$4 sm:$0xff]   ;;  %v1322_v34 = vld [vmem:[%s1678_s0 + $0x4c] ss:$12 sps:$4 sm:$0xff]  }
   0xb   :  { %1106 = vmatpush3.bf16.msra.mxu0 %v1293_v8  ;;  %506 = vmatprep.mubr.bf16.mxu0 %v1311_v23  ;;  %v1314_v28 = vld [vmem:[%s1678_s0 + $0x1c] ss:$12 sps:$4 sm:$0xff]   ;;  %v1316_v29 = vld [vmem:[%s1678_s0 + $0x18] ss:$12 sps:$4 sm:$0xff]   ;;  %v1318_v31 = vld [vmem:[%s1678_s0 + $0x34] ss:$12 sps:$4 sm:$0xff]  }
   0xc   :  { %1221 = vmatpush3.bf16.msra.mxu1 %v1294_v9  ;;  %1107 = vmatprep.subr.bf16.mxu0 %v1295_v10  ;;  %v1320_v32 = vld [vmem:[%s1678_s0 + $0x30] ss:$12 sps:$4 sm:$0xff]   ;;  %v1321_v33 = vld [vmem:[%s1678_s0 + $0x38] ss:$12 sps:$4 sm:$0xff]   ;;  %v1324_v35 = vld [vmem:[%s1678_s0 + $0x48] ss:$12 sps:$4 sm:$0xff]  }
   0xd   :  { %1222 = vmatprep.subr.bf16.mxu1 %v1362_v1  ;;  %v1325_v36 = vld [vmem:[%s1678_s0 + $0x50] ss:$12 sps:$4 sm:$0xff]   ;;  %v1329_v39 = vld [vmem:[%s1678_s0 + $0x68] ss:$12 sps:$4 sm:$0xff]   ;;  %v1332_v41 = vld [vmem:[%s1678_s0 + $0x78] ss:$12 sps:$4 sm:$0xff]  }
   0xe   :  { %v1326_v37 = vld [vmem:[%s1678_s0 + $0x64] ss:$12 sps:$4 sm:$0xff]   ;;  %v1330_v40 = vld [vmem:[%s1678_s0 + $0x7c] ss:$12 sps:$4 sm:$0xff]   ;;  %v1333_v42 = vld [vmem:[%s1678_s0 + $0x80] ss:$12 sps:$4 sm:$0xff]  }
   0xf   :  { %1108 = vmatpush3.bf16.msra.mxu0 %v1296_v11  ;;  %v1334_v43 = vld [vmem:[%s1678_s0 + $0x94] ss:$12 sps:$4 sm:$0xff]   ;;  %v1336_v44 = vld [vmem:[%s1678_s0 + $0x90] ss:$12 sps:$4 sm:$0xff]   ;;  %v1337_v45 = vld [vmem:[%s1678_s0 + $0x98] ss:$12 sps:$4 sm:$0xff]  }
  0x10   :  { %1223 = vmatpush3.bf16.msra.mxu1 %v1297_v12  ;;  %1109 = vmatprep.subr.bf16.mxu0 %v1298_v13  ;;  %v1338_v46 = vld [vmem:[%s1678_s0 + $0xac] ss:$12 sps:$4 sm:$0xff]   ;;  %v1340_v47 = vld [vmem:[%s1678_s0 + $0xa8] ss:$12 sps:$4 sm:$0xff]   ;;  %v1341_v48 = vld [vmem:[%s1678_s0 + $0xb0] ss:$12 sps:$4 sm:$0xff]  }
  0x11   :  { %1224 = vmatprep.subr.bf16.mxu1 %v1362_v1  ;;  %v1342_v49 = vld [vmem:[%s1678_s0 + $0xc4] ss:$12 sps:$4 sm:$0xff]   ;;  %v1344_v50 = vld [vmem:[%s1678_s0 + $0xc0] ss:$12 sps:$4 sm:$0xff]   ;;  %v1345_v51 = vld [vmem:[%s1678_s0 + $0xc8] ss:$12 sps:$4 sm:$0xff]  }
  0x12   :  { %v1346_v52 = vld [vmem:[%s1678_s0 + $0xdc] ss:$12 sps:$4 sm:$0xff]   ;;  %v1348_v53 = vld [vmem:[%s1678_s0 + $0xd8] ss:$12 sps:$4 sm:$0xff]   ;;  %v1349_v54 = vld [vmem:[%s1678_s0 + $0xe0] ss:$12 sps:$4 sm:$0xff]  }
  0x13   :  { %1110 = vmatpush3.bf16.msra.mxu0 %v1299_v14  ;;  %v1350_v55 = vld [vmem:[%s1678_s0 + $0xf4] ss:$12 sps:$4 sm:$0xff]   ;;  %v1352_v56 = vld [vmem:[%s1678_s0 + $0xf0] ss:$12 sps:$4 sm:$0xff]   ;;  %v1353_v57 = vld [vmem:[%s1678_s0 + $0xf8] ss:$12 sps:$4 sm:$0xff]  }
  0x14   :  { %1225 = vmatpush3.bf16.msra.mxu1 %v1300_v15  ;;  %1111 = vmatprep.subr.bf16.mxu0 %v1301_v16  ;;  %v1354_v58 = vld [vmem:[%s1678_s0 + $0x10c] ss:$12 sps:$4 sm:$0xff]   ;;  %v1356_v59 = vld [vmem:[%s1678_s0 + $0x108] ss:$12 sps:$4 sm:$0xff]   ;;  %v1357_v60 = vld [vmem:[%s1678_s0 + $0x110] ss:$12 sps:$4 sm:$0xff]  }
  0x15   :  { %1226 = vmatprep.subr.bf16.mxu1 %v1362_v1  ;;  %v1358_v61 = vld [vmem:[%s1678_s0 + $0x124] ss:$12 sps:$4 sm:$0xff]   ;;  %v1360_v62 = vld [vmem:[%s1678_s0 + $0x120] ss:$12 sps:$4 sm:$0xff]   ;;  %v1361_v63 = vld [vmem:[%s1678_s0 + $0x128] ss:$12 sps:$4 sm:$0xff]  }
  0x16   :  { %v1610_v3 = vld [vmem:[%s1679_s2] ss:$0 sm:$0xff] }
  0x17   :  { %1112 = vmatpush3.bf16.msra.mxu0 %v1302_v17 }
  0x18   :  { %1227 = vmatpush3.bf16.msra.mxu1 %v1303_v18  ;;  %1113 = vmatprep.subr.bf16.mxu0 %v1304_v19 }
  0x19   :  { %1228 = vmatprep.subr.bf16.mxu1 %v1362_v1 }
  0x1b   :  { %1114 = vmatpush3.bf16.msra.mxu0 %v1305_v20 }
  0x1c   :  { %1229 = vmatpush3.bf16.msra.mxu1 %v1306_v21  ;;  %1115 = vmatprep.subr.bf16.mxu0 %v1307_v22 }
  0x1d   :  { %1230 = vmatprep.subr.bf16.mxu1 %v1362_v1 }
  0x1f   :  { %1116 = vmatpush3.bf16.msra.mxu0 %v1308_v24 }
  0x20   :  { %1231 = vmatpush3.bf16.msra.mxu1 %v1312_v25 }
  0x22   :  { %507 = vmatmul.mubr.bf16.vlgmr.msra.gmra.mrb[0].mxu0 %v1309_v26 }
  0x23   :  { %1233 = vmatmul.mubr.bf16.vlgmr.msra.gmra.mrb[0].mxu1 %v1313_v27  ;;  %514 = vmatprep.mubr.bf16.mxu0 %v1314_v28 }
  0x24   :  { %1236 = vmatprep.mubr.msk.bf16.mxu1 %vm1363_vm0, %v1362_v1 }
  0x2a   :  { %515 = vmatmul.mubr.bf16.gmra.mrb[4].mxu0 %v1316_v29 }
  0x2b   :  { %1237 = vmatmul.mubr.bf16.gmra.mrb[4].mxu1 %v1317_v30  ;;  %522 = vmatprep.mubr.bf16.mxu0 %v1318_v31 }
  0x2c   :  { %1240 = vmatprep.mubr.msk.bf16.mxu1 %vm1363_vm0, %v1362_v1 }
  0x32   :  { %523 = vmatmul.mubr.bf16.gmra.mrb[8].mxu0 %v1320_v32 }
  0x33   :  { %1241 = vmatmul.mubr.bf16.gmra.mrb[8].mxu1 %v1321_v33  ;;  %530 = vmatprep.mubr.bf16.mxu0 %v1322_v34 }
  0x34   :  { %1244 = vmatprep.mubr.msk.bf16.mxu1 %vm1363_vm0, %v1362_v1 }
  0x3a   :  { %531 = vmatmul.mubr.bf16.gmra.mrb[12].mxu0 %v1324_v35 }
  0x3b   :  { %1245 = vmatmul.mubr.bf16.gmra.mrb[12].mxu1 %v1325_v36  ;;  %538 = vmatprep.mubr.bf16.mxu0 %v1326_v37 }
  0x3c   :  { %1248 = vmatprep.mubr.msk.bf16.mxu1 %vm1363_vm0, %v1362_v1 }
  0x42   :  { %539 = vmatmul.mubr.bf16.gmra.mrb[16].mxu0 %v1328_v38 }
  0x43   :  { %1249 = vmatmul.mubr.bf16.gmra.mrb[16].mxu1 %v1329_v39  ;;  %546 = vmatprep.mubr.bf16.mxu0 %v1330_v40 }
  0x44   :  { %1252 = vmatprep.mubr.msk.bf16.mxu1 %vm1363_vm0, %v1362_v1 }
  0x4a   :  { %547 = vmatmul.mubr.bf16.gmra.mrb[20].mxu0 %v1332_v41 }
  0x4b   :  { %1253 = vmatmul.mubr.bf16.gmra.mrb[20].mxu1 %v1333_v42  ;;  %554 = vmatprep.mubr.bf16.mxu0 %v1334_v43 }
  0x4c   :  { %1256 = vmatprep.mubr.msk.bf16.mxu1 %vm1363_vm0, %v1362_v1 }
  0x52   :  { %555 = vmatmul.mubr.bf16.gmra.mrb[24].mxu0 %v1336_v44 }
  0x53   :  { %1257 = vmatmul.mubr.bf16.gmra.mrb[24].mxu1 %v1337_v45  ;;  %562 = vmatprep.mubr.bf16.mxu0 %v1338_v46 }
  0x54   :  { %1260 = vmatprep.mubr.msk.bf16.mxu1 %vm1363_vm0, %v1362_v1 }
  0x5a   :  { %563 = vmatmul.mubr.bf16.gmra.mrb[28].mxu0 %v1340_v47 }
  0x5b   :  { %1261 = vmatmul.mubr.bf16.gmra.mrb[28].mxu1 %v1341_v48  ;;  %570 = vmatprep.mubr.bf16.mxu0 %v1342_v49 }
  0x5c   :  { %1264 = vmatprep.mubr.msk.bf16.mxu1 %vm1363_vm0, %v1362_v1 }
  0x62   :  { %571 = vmatmul.mubr.bf16.gmra.mrb[32].mxu0 %v1344_v50 }
  0x63   :  { %1265 = vmatmul.mubr.bf16.gmra.mrb[32].mxu1 %v1345_v51  ;;  %578 = vmatprep.mubr.bf16.mxu0 %v1346_v52 }
  0x64   :  { %1268 = vmatprep.mubr.msk.bf16.mxu1 %vm1363_vm0, %v1362_v1 }
  0x6a   :  { %579 = vmatmul.mubr.bf16.gmra.mrb[36].mxu0 %v1348_v53 }
  0x6b   :  { %1269 = vmatmul.mubr.bf16.gmra.mrb[36].mxu1 %v1349_v54  ;;  %586 = vmatprep.mubr.bf16.mxu0 %v1350_v55 }
  0x6c   :  { %1272 = vmatprep.mubr.msk.bf16.mxu1 %vm1363_vm0, %v1362_v1 }
  0x72   :  { %587 = vmatmul.mubr.bf16.gmra.mrb[40].mxu0 %v1352_v56 }
  0x73   :  { %1273 = vmatmul.mubr.bf16.gmra.mrb[40].mxu1 %v1353_v57  ;;  %594 = vmatprep.mubr.bf16.mxu0 %v1354_v58 }
  0x74   :  { %1276 = vmatprep.mubr.msk.bf16.mxu1 %vm1363_vm0, %v1362_v1 }
  0x7a   :  { %595 = vmatmul.mubr.bf16.gmra.mrb[44].mxu0 %v1356_v59 }
  0x7b   :  { %1277 = vmatmul.mubr.bf16.gmra.mrb[44].mxu1 %v1357_v60  ;;  %602 = vmatprep.mubr.bf16.mxu0 %v1358_v61 }
  0x7c   :  { %1280 = vmatprep.mubr.msk.bf16.mxu1 %vm1363_vm0, %v1362_v1 }
  0x82   :  { %603 = vmatmul.mubr.bf16.gmra.mrb[48].mxu0 %v1360_v62 }
  0x83   :  { %1281 = vmatmul.mubr.bf16.gmra.mrb[48].mxu1 %v1361_v63 }
  0xf5   :  { %v1117_v0 = vpop.f32.mrb[0].mxu0 }
  0xf6   :  { %v1118_v2 = vpop.f32.mrb[1].mxu0  ;;  %v645_v4 = vpop.f32.mrb[0].mxu1 }
  0xf7   :  { %v1119_v5 = vadd.f32 %v1118_v2, %v1117_v0  ;;  %v1120_v1 = vpop.f32.mrb[2].mxu0  ;;  %v1234_v6 = vpop.f32.mrb[1].mxu1 }
  0xf8   :  { %v1121_v7 = vpop.f32.mrb[3].mxu0  ;;  %v648_v8 = vpop.f32.mrb[2].mxu1 }
  0xf9   :  { %v509_v9 = vadd.f32 %v1119_v5, %v1610_v3  ;;  %v1122_v10 = vadd.f32 %v1121_v7, %v1120_v1  ;;  %v1235_v11 = vpop.f32.mrb[3].mxu1 }
  0xfb   :  { %v646_v12 = vadd.f32 %v645_v4, %v509_v9  ;;  %v512_v13 = vadd.f32 %v1122_v10, %v1610_v3 }
  0xfd   :  { %v649_v14 = vadd.f32 %v648_v8, %v512_v13  ;;  %v1123_v15 = vpop.f32.mrb[4].mxu0  ;;  %v748_v18 = vmax.f32 %v646_v12, 0.0 }
  0xfe   :  { %v1124_v16 = vpop.f32.mrb[5].mxu0  ;;  %v653_v17 = vpop.f32.mrb[4].mxu1 }
  0xff   :  { %v749_v19 = vmax.f32 %v649_v14, 0.0  ;;  %v1125_v20 = vadd.f32 %v1124_v16, %v1123_v15  ;;  %v1126_v21 = vpop.f32.mrb[6].mxu0  ;;  %v1238_v22 = vpop.f32.mrb[5].mxu1 }
 0x100   :  { %v1127_v23 = vpop.f32.mrb[7].mxu0  ;;  %v656_v24 = vpop.f32.mrb[6].mxu1 }
 0x101   :  { %v1027_v25 = vpack.c.bf16 %v749_v19, %v748_v18  ;;  %v517_v26 = vadd.f32 %v1125_v20, %v1610_v3  ;;  %v1128_v27 = vadd.f32 %v1127_v23, %v1126_v21  ;;  %v1239_v28 = vpop.f32.mrb[7].mxu1 }
 0x103   :  { %1028 = vst [vmem:[%s1680_s3] sm:$0xff] %v1027_v25   ;;  %v654_v29 = vadd.f32 %v653_v17, %v517_v26  ;;  %v520_v30 = vadd.f32 %v1128_v27, %v1610_v3 }
 0x105   :  { %v657_v31 = vadd.f32 %v656_v24, %v520_v30  ;;  %v1129_v32 = vpop.f32.mrb[8].mxu0  ;;  %v750_v35 = vmax.f32 %v654_v29, 0.0 }
 0x106   :  { %v1130_v33 = vpop.f32.mrb[9].mxu0  ;;  %v661_v34 = vpop.f32.mrb[8].mxu1 }
 0x107   :  { %v751_v36 = vmax.f32 %v657_v31, 0.0  ;;  %v1131_v37 = vadd.f32 %v1130_v33, %v1129_v32  ;;  %v1132_v38 = vpop.f32.mrb[10].mxu0  ;;  %v1242_v39 = vpop.f32.mrb[9].mxu1 }
 0x108   :  { %v1133_v40 = vpop.f32.mrb[11].mxu0  ;;  %v664_v41 = vpop.f32.mrb[10].mxu1 }
 0x109   :  { %v1032_v42 = vpack.c.bf16 %v751_v36, %v750_v35  ;;  %v525_v43 = vadd.f32 %v1131_v37, %v1610_v3  ;;  %v1134_v44 = vadd.f32 %v1133_v40, %v1132_v38  ;;  %v1243_v45 = vpop.f32.mrb[11].mxu1 }
 0x10b   :  { %1089 = vst [vmem:[%s1680_s3 + $0x8] sm:$0xff] %v1032_v42   ;;  %v662_v46 = vadd.f32 %v661_v34, %v525_v43  ;;  %v528_v47 = vadd.f32 %v1134_v44, %v1610_v3 }
 0x10d   :  { %v665_v48 = vadd.f32 %v664_v41, %v528_v47  ;;  %v1135_v49 = vpop.f32.mrb[12].mxu0  ;;  %v752_v52 = vmax.f32 %v662_v46, 0.0 }
 0x10e   :  { %v1136_v50 = vpop.f32.mrb[13].mxu0  ;;  %v669_v51 = vpop.f32.mrb[12].mxu1 }
 0x10f   :  { %v753_v53 = vmax.f32 %v665_v48, 0.0  ;;  %v1137_v54 = vadd.f32 %v1136_v50, %v1135_v49  ;;  %v1138_v55 = vpop.f32.mrb[14].mxu0  ;;  %v1246_v56 = vpop.f32.mrb[13].mxu1 }
 0x110   :  { %v1139_v57 = vpop.f32.mrb[15].mxu0  ;;  %v672_v58 = vpop.f32.mrb[14].mxu1 }
 0x111   :  { %v1037_v59 = vpack.c.bf16 %v753_v53, %v752_v52  ;;  %v533_v60 = vadd.f32 %v1137_v54, %v1610_v3  ;;  %v1140_v61 = vadd.f32 %v1139_v57, %v1138_v55  ;;  %v1247_v62 = vpop.f32.mrb[15].mxu1 }
 0x113   :  { %1090 = vst [vmem:[%s1680_s3 + $0x10] sm:$0xff] %v1037_v59   ;;  %v670_v63 = vadd.f32 %v669_v51, %v533_v60  ;;  %v536_v0 = vadd.f32 %v1140_v61, %v1610_v3 }
 0x115   :  { %v673_v2 = vadd.f32 %v672_v58, %v536_v0  ;;  %v1141_v4 = vpop.f32.mrb[16].mxu0  ;;  %v754_v6 = vmax.f32 %v670_v63, 0.0 }
 0x116   :  { %v1142_v5 = vpop.f32.mrb[17].mxu0  ;;  %v677_v1 = vpop.f32.mrb[16].mxu1 }
 0x117   :  { %v755_v7 = vmax.f32 %v673_v2, 0.0  ;;  %v1143_v8 = vadd.f32 %v1142_v5, %v1141_v4  ;;  %v1144_v9 = vpop.f32.mrb[18].mxu0  ;;  %v1250_v10 = vpop.f32.mrb[17].mxu1 }
 0x118   :  { %v1145_v11 = vpop.f32.mrb[19].mxu0  ;;  %v680_v12 = vpop.f32.mrb[18].mxu1 }
 0x119   :  { %v1042_v13 = vpack.c.bf16 %v755_v7, %v754_v6  ;;  %v541_v14 = vadd.f32 %v1143_v8, %v1610_v3  ;;  %v1146_v15 = vadd.f32 %v1145_v11, %v1144_v9  ;;  %v1251_v16 = vpop.f32.mrb[19].mxu1 }
 0x11b   :  { %1091 = vst [vmem:[%s1680_s3 + $0x18] sm:$0xff] %v1042_v13   ;;  %v678_v17 = vadd.f32 %v677_v1, %v541_v14  ;;  %v544_v18 = vadd.f32 %v1146_v15, %v1610_v3 }
 0x11d   :  { %v681_v19 = vadd.f32 %v680_v12, %v544_v18  ;;  %v1147_v20 = vpop.f32.mrb[20].mxu0  ;;  %v756_v23 = vmax.f32 %v678_v17, 0.0 }
 0x11e   :  { %v1148_v21 = vpop.f32.mrb[21].mxu0  ;;  %v685_v22 = vpop.f32.mrb[20].mxu1 }
 0x11f   :  { %v757_v24 = vmax.f32 %v681_v19, 0.0  ;;  %v1149_v25 = vadd.f32 %v1148_v21, %v1147_v20  ;;  %v1150_v26 = vpop.f32.mrb[22].mxu0  ;;  %v1254_v27 = vpop.f32.mrb[21].mxu1 }
 0x120   :  { %v1151_v28 = vpop.f32.mrb[23].mxu0  ;;  %v688_v29 = vpop.f32.mrb[22].mxu1 }
 0x121   :  { %v1047_v30 = vpack.c.bf16 %v757_v24, %v756_v23  ;;  %v549_v31 = vadd.f32 %v1149_v25, %v1610_v3  ;;  %v1152_v32 = vadd.f32 %v1151_v28, %v1150_v26  ;;  %v1255_v33 = vpop.f32.mrb[23].mxu1 }
 0x123   :  { %1092 = vst [vmem:[%s1680_s3 + $0x20] sm:$0xff] %v1047_v30   ;;  %v686_v34 = vadd.f32 %v685_v22, %v549_v31  ;;  %v552_v35 = vadd.f32 %v1152_v32, %v1610_v3 }
 0x125   :  { %v689_v36 = vadd.f32 %v688_v29, %v552_v35  ;;  %v1153_v37 = vpop.f32.mrb[24].mxu0  ;;  %v758_v40 = vmax.f32 %v686_v34, 0.0 }
 0x126   :  { %v1154_v38 = vpop.f32.mrb[25].mxu0  ;;  %v693_v39 = vpop.f32.mrb[24].mxu1 }
 0x127   :  { %v759_v41 = vmax.f32 %v689_v36, 0.0  ;;  %v1155_v42 = vadd.f32 %v1154_v38, %v1153_v37  ;;  %v1156_v43 = vpop.f32.mrb[26].mxu0  ;;  %v1258_v44 = vpop.f32.mrb[25].mxu1 }
 0x128   :  { %v1157_v45 = vpop.f32.mrb[27].mxu0  ;;  %v696_v46 = vpop.f32.mrb[26].mxu1 }
 0x129   :  { %v1052_v47 = vpack.c.bf16 %v759_v41, %v758_v40  ;;  %v557_v48 = vadd.f32 %v1155_v42, %v1610_v3  ;;  %v1158_v49 = vadd.f32 %v1157_v45, %v1156_v43  ;;  %v1259_v50 = vpop.f32.mrb[27].mxu1 }
 0x12b   :  { %1093 = vst [vmem:[%s1680_s3 + $0x28] sm:$0xff] %v1052_v47   ;;  %v694_v51 = vadd.f32 %v693_v39, %v557_v48  ;;  %v560_v52 = vadd.f32 %v1158_v49, %v1610_v3 }
 0x12d   :  { %v697_v53 = vadd.f32 %v696_v46, %v560_v52  ;;  %v1159_v54 = vpop.f32.mrb[28].mxu0  ;;  %v760_v57 = vmax.f32 %v694_v51, 0.0 }
 0x12e   :  { %v1160_v55 = vpop.f32.mrb[29].mxu0  ;;  %v701_v56 = vpop.f32.mrb[28].mxu1 }
 0x12f   :  { %v761_v58 = vmax.f32 %v697_v53, 0.0  ;;  %v1161_v59 = vadd.f32 %v1160_v55, %v1159_v54  ;;  %v1162_v60 = vpop.f32.mrb[30].mxu0  ;;  %v1262_v61 = vpop.f32.mrb[29].mxu1 }
 0x130   :  { %v1163_v62 = vpop.f32.mrb[31].mxu0  ;;  %v704_v63 = vpop.f32.mrb[30].mxu1 }
 0x131   :  { %v1057_v0 = vpack.c.bf16 %v761_v58, %v760_v57  ;;  %v565_v2 = vadd.f32 %v1161_v59, %v1610_v3  ;;  %v1164_v4 = vadd.f32 %v1163_v62, %v1162_v60  ;;  %v1263_v5 = vpop.f32.mrb[31].mxu1 }
 0x133   :  { %1094 = vst [vmem:[%s1680_s3 + $0x30] sm:$0xff] %v1057_v0   ;;  %v702_v1 = vadd.f32 %v701_v56, %v565_v2  ;;  %v568_v6 = vadd.f32 %v1164_v4, %v1610_v3 }
 0x135   :  { %v705_v7 = vadd.f32 %v704_v63, %v568_v6  ;;  %v1165_v8 = vpop.f32.mrb[32].mxu0  ;;  %v762_v11 = vmax.f32 %v702_v1, 0.0 }
 0x136   :  { %v1166_v9 = vpop.f32.mrb[33].mxu0  ;;  %v709_v10 = vpop.f32.mrb[32].mxu1 }
 0x137   :  { %v763_v12 = vmax.f32 %v705_v7, 0.0  ;;  %v1167_v13 = vadd.f32 %v1166_v9, %v1165_v8  ;;  %v1168_v14 = vpop.f32.mrb[34].mxu0  ;;  %v1266_v15 = vpop.f32.mrb[33].mxu1 }
 0x138   :  { %v1169_v16 = vpop.f32.mrb[35].mxu0  ;;  %v712_v17 = vpop.f32.mrb[34].mxu1 }
 0x139   :  { %v1062_v18 = vpack.c.bf16 %v763_v12, %v762_v11  ;;  %v573_v19 = vadd.f32 %v1167_v13, %v1610_v3  ;;  %v1170_v20 = vadd.f32 %v1169_v16, %v1168_v14  ;;  %v1267_v21 = vpop.f32.mrb[35].mxu1 }
 0x13b   :  { %1095 = vst [vmem:[%s1680_s3 + $0x38] sm:$0xff] %v1062_v18   ;;  %v710_v22 = vadd.f32 %v709_v10, %v573_v19  ;;  %v576_v23 = vadd.f32 %v1170_v20, %v1610_v3 }
 0x13d   :  { %v713_v24 = vadd.f32 %v712_v17, %v576_v23  ;;  %v1171_v25 = vpop.f32.mrb[36].mxu0  ;;  %v764_v28 = vmax.f32 %v710_v22, 0.0 }
 0x13e   :  { %v1172_v26 = vpop.f32.mrb[37].mxu0  ;;  %v717_v27 = vpop.f32.mrb[36].mxu1 }
 0x13f   :  { %v765_v29 = vmax.f32 %v713_v24, 0.0  ;;  %v1173_v30 = vadd.f32 %v1172_v26, %v1171_v25  ;;  %v1174_v31 = vpop.f32.mrb[38].mxu0  ;;  %v1270_v32 = vpop.f32.mrb[37].mxu1 }
 0x140   :  { %v1175_v33 = vpop.f32.mrb[39].mxu0  ;;  %v720_v34 = vpop.f32.mrb[38].mxu1 }
 0x141   :  { %v1067_v35 = vpack.c.bf16 %v765_v29, %v764_v28  ;;  %v581_v36 = vadd.f32 %v1173_v30, %v1610_v3  ;;  %v1176_v37 = vadd.f32 %v1175_v33, %v1174_v31  ;;  %v1271_v38 = vpop.f32.mrb[39].mxu1 }
 0x143   :  { %1096 = vst [vmem:[%s1680_s3 + $0x40] sm:$0xff] %v1067_v35   ;;  %v718_v39 = vadd.f32 %v717_v27, %v581_v36  ;;  %v584_v40 = vadd.f32 %v1176_v37, %v1610_v3 }
 0x145   :  { %v721_v41 = vadd.f32 %v720_v34, %v584_v40  ;;  %v1177_v42 = vpop.f32.mrb[40].mxu0  ;;  %v766_v45 = vmax.f32 %v718_v39, 0.0 }
 0x146   :  { %v1178_v43 = vpop.f32.mrb[41].mxu0  ;;  %v725_v44 = vpop.f32.mrb[40].mxu1 }
 0x147   :  { %v767_v46 = vmax.f32 %v721_v41, 0.0  ;;  %v1179_v47 = vadd.f32 %v1178_v43, %v1177_v42  ;;  %v1180_v48 = vpop.f32.mrb[42].mxu0  ;;  %v1274_v49 = vpop.f32.mrb[41].mxu1 }
 0x148   :  { %v1181_v50 = vpop.f32.mrb[43].mxu0  ;;  %v728_v51 = vpop.f32.mrb[42].mxu1 }
 0x149   :  { %v1072_v52 = vpack.c.bf16 %v767_v46, %v766_v45  ;;  %v589_v53 = vadd.f32 %v1179_v47, %v1610_v3  ;;  %v1182_v54 = vadd.f32 %v1181_v50, %v1180_v48  ;;  %v1275_v55 = vpop.f32.mrb[43].mxu1 }
 0x14b   :  { %1097 = vst [vmem:[%s1680_s3 + $0x48] sm:$0xff] %v1072_v52   ;;  %v726_v56 = vadd.f32 %v725_v44, %v589_v53  ;;  %v592_v57 = vadd.f32 %v1182_v54, %v1610_v3 }
 0x14d   :  { %v729_v58 = vadd.f32 %v728_v51, %v592_v57  ;;  %v1183_v59 = vpop.f32.mrb[44].mxu0  ;;  %v768_v62 = vmax.f32 %v726_v56, 0.0 }
 0x14e   :  { %v1184_v60 = vpop.f32.mrb[45].mxu0  ;;  %v733_v61 = vpop.f32.mrb[44].mxu1 }
 0x14f   :  { %v769_v63 = vmax.f32 %v729_v58, 0.0  ;;  %v1185_v0 = vadd.f32 %v1184_v60, %v1183_v59  ;;  %v1186_v2 = vpop.f32.mrb[46].mxu0  ;;  %v1278_v4 = vpop.f32.mrb[45].mxu1 }
 0x150   :  { %v1187_v5 = vpop.f32.mrb[47].mxu0  ;;  %v736_v1 = vpop.f32.mrb[46].mxu1 }
 0x151   :  { %v1077_v6 = vpack.c.bf16 %v769_v63, %v768_v62  ;;  %v597_v7 = vadd.f32 %v1185_v0, %v1610_v3  ;;  %v1188_v8 = vadd.f32 %v1187_v5, %v1186_v2  ;;  %v1279_v9 = vpop.f32.mrb[47].mxu1 }
 0x153   :  { %1098 = vst [vmem:[%s1680_s3 + $0x50] sm:$0xff] %v1077_v6   ;;  %v734_v10 = vadd.f32 %v733_v61, %v597_v7  ;;  %v600_v11 = vadd.f32 %v1188_v8, %v1610_v3 }
 0x155   :  { %v737_v12 = vadd.f32 %v736_v1, %v600_v11  ;;  %v1189_v13 = vpop.f32.mrb[48].mxu0  ;;  %v770_v16 = vmax.f32 %v734_v10, 0.0 }
 0x156   :  { %v1190_v14 = vpop.f32.mrb[49].mxu0  ;;  %v741_v15 = vpop.f32.mrb[48].mxu1 }
 0x157   :  { %v771_v17 = vmax.f32 %v737_v12, 0.0  ;;  %v1191_v18 = vadd.f32 %v1190_v14, %v1189_v13  ;;  %v1192_v19 = vpop.f32.mrb[50].mxu0  ;;  %v1282_v20 = vpop.f32.mrb[49].mxu1 }
 0x158   :  { %v1193_v21 = vpop.f32.mrb[51].mxu0  ;;  %v744_v22 = vpop.f32.mrb[50].mxu1 }
 0x159   :  { %v1082_v23 = vpack.c.bf16 %v771_v17, %v770_v16  ;;  %v605_v24 = vadd.f32 %v1191_v18, %v1610_v3  ;;  %v1194_v25 = vadd.f32 %v1193_v21, %v1192_v19  ;;  %v1283_v26 = vpop.f32.mrb[51].mxu1 }
 0x15b   :  { %1099 = vst [vmem:[%s1680_s3 + $0x58] sm:$0xff] %v1082_v23   ;;  %v742_v27 = vadd.f32 %v741_v15, %v605_v24  ;;  %v608_v28 = vadd.f32 %v1194_v25, %v1610_v3 }
 0x15d   :  { %v745_v29 = vadd.f32 %v744_v22, %v608_v28  ;;  %v772_v30 = vmax.f32 %v742_v27, 0.0 }
 0x15f   :  { %v773_v31 = vmax.f32 %v745_v29, 0.0 }
 0x161   :  { %v1087_v32 = vpack.c.bf16 %v773_v31, %v772_v30 }
 0x163   :  { %1100 = vst [vmem:[%s1680_s3 + $0x60] sm:$0xff] %v1087_v32  }

// kernel: _lambda_.26
= control target key start
LH: loop header
LB: loop body
LE: loop exit
PB: predicated region body
PF: predicated region fallthrough
CT: control target
= control target key end

     0   :  { %v1507_v1 = vmov 0.0   ;;  %vm1508_vm0 = vmmov 0   ;;  %s1866_s1 = inlined_call_operand.vmem [shape: bf16[384,128], index: 1, kind: input, shape index: {}]   ;;  %s1867_s0 = inlined_call_operand.vmem [shape: bf16[208,384], index: 0, kind: input, shape index: {}]   ;;  %s1868_s2 = inlined_call_operand.vmem [shape: f32[1,128], index: 2, kind: input, shape index: {}]   ;;  %s1869_s3 = inlined_call_operand.vmem [shape: bf16[208,128], index: 3, kind: input, shape index: {}]   ;;  %s1870_s4 = inlined_call_operand.vmem [shape: bf16[208,128], index: 4, kind: output, shape index: {}]  }
   0x1   :  { %v1431_v0 = vld [vmem:[%s1866_s1 + $0x40] sm:$0xff]   ;;  %1361 = vmatprep.subr.bf16.mxu1 %v1507_v1  ;;  %1377 = vmatprep.mubr.msk.bf16.mxu1 %vm1508_vm0, %v1507_v1  ;;  %v1434_v4 = vld [vmem:[%s1866_s1 + $0x48] sm:$0xff]   ;;  %v1437_v7 = vld [vmem:[%s1866_s1 + $0x50] sm:$0xff]  }
   0x2   :  { %v1432_v2 = vld [vmem:[%s1866_s1] sm:$0xff]   ;;  %1246 = vmatprep.subr.bf16.mxu0 %v1431_v0  ;;  %v1435_v5 = vld [vmem:[%s1866_s1 + $0x8] sm:$0xff]   ;;  %v1438_v8 = vld [vmem:[%s1866_s1 + $0x10] sm:$0xff]  }
   0x3   :  { %v1433_v3 = vld [vmem:[%s1866_s1 + $0x80] sm:$0xff]   ;;  %1247 = vmatpush3.bf16.msra.mxu0 %v1432_v2  ;;  %v1436_v6 = vld [vmem:[%s1866_s1 + $0x88] sm:$0xff]   ;;  %v1439_v9 = vld [vmem:[%s1866_s1 + $0x90] sm:$0xff]  }
   0x4   :  { %1362 = vmatpush3.bf16.msra.mxu1 %v1433_v3  ;;  %1248 = vmatprep.subr.bf16.mxu0 %v1434_v4  ;;  %v1440_v10 = vld [vmem:[%s1866_s1 + $0x58] sm:$0xff]   ;;  %v1443_v13 = vld [vmem:[%s1866_s1 + $0x60] sm:$0xff]   ;;  %v1446_v16 = vld [vmem:[%s1866_s1 + $0x68] sm:$0xff]  }
   0x5   :  { %1363 = vmatprep.subr.bf16.mxu1 %v1507_v1  ;;  %v1441_v11 = vld [vmem:[%s1866_s1 + $0x18] sm:$0xff]   ;;  %v1444_v14 = vld [vmem:[%s1866_s1 + $0x20] sm:$0xff]   ;;  %v1447_v17 = vld [vmem:[%s1866_s1 + $0x28] sm:$0xff]  }
   0x6   :  { %v1442_v12 = vld [vmem:[%s1866_s1 + $0x98] sm:$0xff]   ;;  %v1445_v15 = vld [vmem:[%s1866_s1 + $0xa0] sm:$0xff]   ;;  %v1448_v18 = vld [vmem:[%s1866_s1 + $0xa8] sm:$0xff]  }
   0x7   :  { %1249 = vmatpush3.bf16.msra.mxu0 %v1435_v5  ;;  %v1449_v19 = vld [vmem:[%s1866_s1 + $0x70] sm:$0xff]   ;;  %v1452_v22 = vld [vmem:[%s1866_s1 + $0x78] sm:$0xff]   ;;  %v1454_v26 = vld [vmem:[%s1867_s0] ss:$12 sps:$4 sm:$0xff]  }
   0x8   :  { %1364 = vmatpush3.bf16.msra.mxu1 %v1436_v6  ;;  %1250 = vmatprep.subr.bf16.mxu0 %v1437_v7  ;;  %v1450_v20 = vld [vmem:[%s1866_s1 + $0x30] sm:$0xff]   ;;  %v1453_v24 = vld [vmem:[%s1866_s1 + $0x38] sm:$0xff]   ;;  %v1462_v30 = vld [vmem:[%s1867_s0 + $0x20] ss:$12 sps:$4 sm:$0xff]  }
   0x9   :  { %1365 = vmatprep.subr.bf16.mxu1 %v1507_v1  ;;  %v1451_v21 = vld [vmem:[%s1866_s1 + $0xb0] sm:$0xff]   ;;  %v1457_v25 = vld [vmem:[%s1866_s1 + $0xb8] sm:$0xff]   ;;  %v1473_v38 = vld [vmem:[%s1867_s0 + $0x60] ss:$12 sps:$4 sm:$0xff]  }
   0xa   :  { %v1456_v23 = vld [vmem:[%s1867_s0 + $0x4] ss:$12 sps:$4 sm:$0xff]   ;;  %v1458_v27 = vld [vmem:[%s1867_s0 + $0x8] ss:$12 sps:$4 sm:$0xff]   ;;  %v1467_v34 = vld [vmem:[%s1867_s0 + $0x4c] ss:$12 sps:$4 sm:$0xff]  }
   0xb   :  { %1251 = vmatpush3.bf16.msra.mxu0 %v1438_v8  ;;  %509 = vmatprep.mubr.bf16.mxu0 %v1456_v23  ;;  %v1459_v28 = vld [vmem:[%s1867_s0 + $0x1c] ss:$12 sps:$4 sm:$0xff]   ;;  %v1461_v29 = vld [vmem:[%s1867_s0 + $0x18] ss:$12 sps:$4 sm:$0xff]   ;;  %v1463_v31 = vld [vmem:[%s1867_s0 + $0x34] ss:$12 sps:$4 sm:$0xff]  }
   0xc   :  { %1366 = vmatpush3.bf16.msra.mxu1 %v1439_v9  ;;  %1252 = vmatprep.subr.bf16.mxu0 %v1440_v10  ;;  %v1465_v32 = vld [vmem:[%s1867_s0 + $0x30] ss:$12 sps:$4 sm:$0xff]   ;;  %v1466_v33 = vld [vmem:[%s1867_s0 + $0x38] ss:$12 sps:$4 sm:$0xff]   ;;  %v1469_v35 = vld [vmem:[%s1867_s0 + $0x48] ss:$12 sps:$4 sm:$0xff]  }
   0xd   :  { %1367 = vmatprep.subr.bf16.mxu1 %v1507_v1  ;;  %v1470_v36 = vld [vmem:[%s1867_s0 + $0x50] ss:$12 sps:$4 sm:$0xff]   ;;  %v1474_v39 = vld [vmem:[%s1867_s0 + $0x68] ss:$12 sps:$4 sm:$0xff]   ;;  %v1477_v41 = vld [vmem:[%s1867_s0 + $0x78] ss:$12 sps:$4 sm:$0xff]  }
   0xe   :  { %v1471_v37 = vld [vmem:[%s1867_s0 + $0x64] ss:$12 sps:$4 sm:$0xff]   ;;  %v1475_v40 = vld [vmem:[%s1867_s0 + $0x7c] ss:$12 sps:$4 sm:$0xff]   ;;  %v1478_v42 = vld [vmem:[%s1867_s0 + $0x80] ss:$12 sps:$4 sm:$0xff]  }
   0xf   :  { %1253 = vmatpush3.bf16.msra.mxu0 %v1441_v11  ;;  %v1479_v43 = vld [vmem:[%s1867_s0 + $0x94] ss:$12 sps:$4 sm:$0xff]   ;;  %v1481_v44 = vld [vmem:[%s1867_s0 + $0x90] ss:$12 sps:$4 sm:$0xff]   ;;  %v1482_v45 = vld [vmem:[%s1867_s0 + $0x98] ss:$12 sps:$4 sm:$0xff]  }
  0x10   :  { %1368 = vmatpush3.bf16.msra.mxu1 %v1442_v12  ;;  %1254 = vmatprep.subr.bf16.mxu0 %v1443_v13  ;;  %v1483_v46 = vld [vmem:[%s1867_s0 + $0xac] ss:$12 sps:$4 sm:$0xff]   ;;  %v1485_v47 = vld [vmem:[%s1867_s0 + $0xa8] ss:$12 sps:$4 sm:$0xff]   ;;  %v1486_v48 = vld [vmem:[%s1867_s0 + $0xb0] ss:$12 sps:$4 sm:$0xff]  }
  0x11   :  { %1369 = vmatprep.subr.bf16.mxu1 %v1507_v1  ;;  %v1487_v49 = vld [vmem:[%s1867_s0 + $0xc4] ss:$12 sps:$4 sm:$0xff]   ;;  %v1489_v50 = vld [vmem:[%s1867_s0 + $0xc0] ss:$12 sps:$4 sm:$0xff]   ;;  %v1490_v51 = vld [vmem:[%s1867_s0 + $0xc8] ss:$12 sps:$4 sm:$0xff]  }
  0x12   :  { %v1491_v52 = vld [vmem:[%s1867_s0 + $0xdc] ss:$12 sps:$4 sm:$0xff]   ;;  %v1493_v53 = vld [vmem:[%s1867_s0 + $0xd8] ss:$12 sps:$4 sm:$0xff]   ;;  %v1494_v54 = vld [vmem:[%s1867_s0 + $0xe0] ss:$12 sps:$4 sm:$0xff]  }
  0x13   :  { %1255 = vmatpush3.bf16.msra.mxu0 %v1444_v14  ;;  %v1495_v55 = vld [vmem:[%s1867_s0 + $0xf4] ss:$12 sps:$4 sm:$0xff]   ;;  %v1497_v56 = vld [vmem:[%s1867_s0 + $0xf0] ss:$12 sps:$4 sm:$0xff]   ;;  %v1498_v57 = vld [vmem:[%s1867_s0 + $0xf8] ss:$12 sps:$4 sm:$0xff]  }
  0x14   :  { %1370 = vmatpush3.bf16.msra.mxu1 %v1445_v15  ;;  %1256 = vmatprep.subr.bf16.mxu0 %v1446_v16  ;;  %v1499_v58 = vld [vmem:[%s1867_s0 + $0x10c] ss:$12 sps:$4 sm:$0xff]   ;;  %v1501_v59 = vld [vmem:[%s1867_s0 + $0x108] ss:$12 sps:$4 sm:$0xff]   ;;  %v1502_v60 = vld [vmem:[%s1867_s0 + $0x110] ss:$12 sps:$4 sm:$0xff]  }
  0x15   :  { %1371 = vmatprep.subr.bf16.mxu1 %v1507_v1  ;;  %v1503_v61 = vld [vmem:[%s1867_s0 + $0x124] ss:$12 sps:$4 sm:$0xff]   ;;  %v1505_v62 = vld [vmem:[%s1867_s0 + $0x120] ss:$12 sps:$4 sm:$0xff]   ;;  %v1506_v63 = vld [vmem:[%s1867_s0 + $0x128] ss:$12 sps:$4 sm:$0xff]  }
  0x16   :  { %v1760_v3 = vld [vmem:[%s1868_s2] ss:$0 sm:$0xff] }
  0x17   :  { %1257 = vmatpush3.bf16.msra.mxu0 %v1447_v17 }
  0x18   :  { %1372 = vmatpush3.bf16.msra.mxu1 %v1448_v18  ;;  %1258 = vmatprep.subr.bf16.mxu0 %v1449_v19 }
  0x19   :  { %1373 = vmatprep.subr.bf16.mxu1 %v1507_v1 }
  0x1b   :  { %1259 = vmatpush3.bf16.msra.mxu0 %v1450_v20  ;;  %v1222_v20 = vld [vmem:[%s1869_s3 + $0x8] sm:$0xff]  }
  0x1c   :  { %1374 = vmatpush3.bf16.msra.mxu1 %v1451_v21  ;;  %1260 = vmatprep.subr.bf16.mxu0 %v1452_v22 }
  0x1d   :  { %1375 = vmatprep.subr.bf16.mxu1 %v1507_v1 }
  0x1f   :  { %1261 = vmatpush3.bf16.msra.mxu0 %v1453_v24 }
  0x20   :  { %1376 = vmatpush3.bf16.msra.mxu1 %v1457_v25 }
  0x22   :  { %510 = vmatmul.mubr.bf16.vlgmr.msra.gmra.mrb[0].mxu0 %v1454_v26 }
  0x23   :  { %1378 = vmatmul.mubr.bf16.vlgmr.msra.gmra.mrb[0].mxu1 %v1458_v27  ;;  %517 = vmatprep.mubr.bf16.mxu0 %v1459_v28  ;;  %v1111_v27 = vunpack.c.l.bf16 %v1222_v20 }
  0x24   :  { %1381 = vmatprep.mubr.msk.bf16.mxu1 %vm1508_vm0, %v1507_v1 }
  0x2a   :  { %518 = vmatmul.mubr.bf16.gmra.mrb[4].mxu0 %v1461_v29 }
  0x2b   :  { %1382 = vmatmul.mubr.bf16.gmra.mrb[4].mxu1 %v1462_v30  ;;  %525 = vmatprep.mubr.bf16.mxu0 %v1463_v31 }
  0x2c   :  { %1385 = vmatprep.mubr.msk.bf16.mxu1 %vm1508_vm0, %v1507_v1 }
  0x32   :  { %526 = vmatmul.mubr.bf16.gmra.mrb[8].mxu0 %v1465_v32 }
  0x33   :  { %1386 = vmatmul.mubr.bf16.gmra.mrb[8].mxu1 %v1466_v33  ;;  %533 = vmatprep.mubr.bf16.mxu0 %v1467_v34 }
  0x34   :  { %1389 = vmatprep.mubr.msk.bf16.mxu1 %vm1508_vm0, %v1507_v1 }
  0x3a   :  { %534 = vmatmul.mubr.bf16.gmra.mrb[12].mxu0 %v1469_v35 }
  0x3b   :  { %1390 = vmatmul.mubr.bf16.gmra.mrb[12].mxu1 %v1470_v36  ;;  %541 = vmatprep.mubr.bf16.mxu0 %v1471_v37 }
  0x3c   :  { %1393 = vmatprep.mubr.msk.bf16.mxu1 %vm1508_vm0, %v1507_v1 }
  0x42   :  { %542 = vmatmul.mubr.bf16.gmra.mrb[16].mxu0 %v1473_v38  ;;  %v1112_v38 = vunpack.c.h.bf16 %v1222_v20 }
  0x43   :  { %1394 = vmatmul.mubr.bf16.gmra.mrb[16].mxu1 %v1474_v39  ;;  %549 = vmatprep.mubr.bf16.mxu0 %v1475_v40 }
  0x44   :  { %1397 = vmatprep.mubr.msk.bf16.mxu1 %vm1508_vm0, %v1507_v1 }
  0x4a   :  { %550 = vmatmul.mubr.bf16.gmra.mrb[20].mxu0 %v1477_v41 }
  0x4b   :  { %1398 = vmatmul.mubr.bf16.gmra.mrb[20].mxu1 %v1478_v42  ;;  %557 = vmatprep.mubr.bf16.mxu0 %v1479_v43  ;;  %v1223_v42 = vld [vmem:[%s1869_s3 + $0x10] sm:$0xff]  }
  0x4c   :  { %1401 = vmatprep.mubr.msk.bf16.mxu1 %vm1508_vm0, %v1507_v1 }
  0x52   :  { %558 = vmatmul.mubr.bf16.gmra.mrb[24].mxu0 %v1481_v44 }
  0x53   :  { %1402 = vmatmul.mubr.bf16.gmra.mrb[24].mxu1 %v1482_v45  ;;  %565 = vmatprep.mubr.bf16.mxu0 %v1483_v46 }
  0x54   :  { %1405 = vmatprep.mubr.msk.bf16.mxu1 %vm1508_vm0, %v1507_v1 }
  0x5a   :  { %566 = vmatmul.mubr.bf16.gmra.mrb[28].mxu0 %v1485_v47 }
  0x5b   :  { %1406 = vmatmul.mubr.bf16.gmra.mrb[28].mxu1 %v1486_v48  ;;  %573 = vmatprep.mubr.bf16.mxu0 %v1487_v49  ;;  %v1115_v49 = vunpack.c.l.bf16 %v1223_v42 }
  0x5c   :  { %1409 = vmatprep.mubr.msk.bf16.mxu1 %vm1508_vm0, %v1507_v1 }
  0x62   :  { %574 = vmatmul.mubr.bf16.gmra.mrb[32].mxu0 %v1489_v50 }
  0x63   :  { %1410 = vmatmul.mubr.bf16.gmra.mrb[32].mxu1 %v1490_v51  ;;  %581 = vmatprep.mubr.bf16.mxu0 %v1491_v52 }
  0x64   :  { %1413 = vmatprep.mubr.msk.bf16.mxu1 %vm1508_vm0, %v1507_v1 }
  0x6a   :  { %582 = vmatmul.mubr.bf16.gmra.mrb[36].mxu0 %v1493_v53 }
  0x6b   :  { %1414 = vmatmul.mubr.bf16.gmra.mrb[36].mxu1 %v1494_v54  ;;  %589 = vmatprep.mubr.bf16.mxu0 %v1495_v55 }
  0x6c   :  { %1417 = vmatprep.mubr.msk.bf16.mxu1 %vm1508_vm0, %v1507_v1 }
  0x72   :  { %590 = vmatmul.mubr.bf16.gmra.mrb[40].mxu0 %v1497_v56 }
  0x73   :  { %1418 = vmatmul.mubr.bf16.gmra.mrb[40].mxu1 %v1498_v57  ;;  %597 = vmatprep.mubr.bf16.mxu0 %v1499_v58 }
  0x74   :  { %1421 = vmatprep.mubr.msk.bf16.mxu1 %vm1508_vm0, %v1507_v1 }
  0x7a   :  { %598 = vmatmul.mubr.bf16.gmra.mrb[44].mxu0 %v1501_v59 }
  0x7b   :  { %1422 = vmatmul.mubr.bf16.gmra.mrb[44].mxu1 %v1502_v60  ;;  %605 = vmatprep.mubr.bf16.mxu0 %v1503_v61  ;;  %v1116_v60 = vunpack.c.h.bf16 %v1223_v42 }
  0x7c   :  { %1425 = vmatprep.mubr.msk.bf16.mxu1 %vm1508_vm0, %v1507_v1  ;;  %v1106_v1 = vld [vmem:[%s1869_s3] sm:$0xff]  }
  0x7d   :  { %v1107_v11 = vunpack.c.l.bf16 %v1106_v1  ;;  %v1108_v16 = vunpack.c.h.bf16 %v1106_v1 }
  0x82   :  { %606 = vmatmul.mubr.bf16.gmra.mrb[48].mxu0 %v1505_v62 }
  0x83   :  { %1426 = vmatmul.mubr.bf16.gmra.mrb[48].mxu1 %v1506_v63 }
  0xf5   :  { %v1262_v0 = vpop.f32.mrb[0].mxu0 }
  0xf6   :  { %v1263_v2 = vpop.f32.mrb[1].mxu0  ;;  %v648_v4 = vpop.f32.mrb[0].mxu1 }
  0xf7   :  { %v1264_v5 = vadd.f32 %v1263_v2, %v1262_v0  ;;  %v1265_v6 = vpop.f32.mrb[2].mxu0  ;;  %v1379_v7 = vpop.f32.mrb[1].mxu1  ;;  %v1224_v0 = vld [vmem:[%s1869_s3 + $0x18] sm:$0xff]  }
  0xf8   :  { %v1266_v8 = vpop.f32.mrb[3].mxu0  ;;  %v651_v9 = vpop.f32.mrb[2].mxu1 }
  0xf9   :  { %v512_v10 = vadd.f32 %v1264_v5, %v1760_v3  ;;  %v1267_v12 = vadd.f32 %v1266_v8, %v1265_v6  ;;  %v1380_v13 = vpop.f32.mrb[3].mxu1  ;;  %v1119_v8 = vunpack.c.l.bf16 %v1224_v0 }
  0xfb   :  { %v649_v14 = vadd.f32 %v648_v4, %v512_v10  ;;  %v515_v15 = vadd.f32 %v1267_v12, %v1760_v3 }
  0xfd   :  { %v803_v17 = vadd.f32 %v1107_v11, %v649_v14  ;;  %v652_v18 = vadd.f32 %v651_v9, %v515_v15  ;;  %v1268_v19 = vpop.f32.mrb[4].mxu0 }
  0xfe   :  { %v1269_v21 = vpop.f32.mrb[5].mxu0  ;;  %v656_v22 = vpop.f32.mrb[4].mxu1 }
  0xff   :  { %v804_v23 = vadd.f32 %v1108_v16, %v652_v18  ;;  %v1270_v24 = vadd.f32 %v1269_v21, %v1268_v19  ;;  %v1271_v25 = vpop.f32.mrb[6].mxu0  ;;  %v1383_v26 = vpop.f32.mrb[5].mxu1  ;;  %v829_v30 = vmax.f32 %v803_v17, 0.0  ;;  %v1120_v19 = vunpack.c.h.bf16 %v1224_v0 }
 0x100   :  { %v1272_v28 = vpop.f32.mrb[7].mxu0  ;;  %v659_v29 = vpop.f32.mrb[6].mxu1 }
 0x101   :  { %v830_v31 = vmax.f32 %v804_v23, 0.0  ;;  %v520_v32 = vadd.f32 %v1270_v24, %v1760_v3  ;;  %v1273_v33 = vadd.f32 %v1272_v28, %v1271_v25  ;;  %v1384_v34 = vpop.f32.mrb[7].mxu1  ;;  %v1225_v23 = vld [vmem:[%s1869_s3 + $0x20] sm:$0xff]  }
 0x103   :  { %v1160_v35 = vpack.c.bf16 %v830_v31, %v829_v30  ;;  %v657_v36 = vadd.f32 %v656_v22, %v520_v32  ;;  %v523_v37 = vadd.f32 %v1273_v33, %v1760_v3  ;;  %v1123_v30 = vunpack.c.l.bf16 %v1225_v23 }
 0x105   :  { %1161 = vst [vmem:[%s1870_s4] sm:$0xff] %v1160_v35   ;;  %v805_v39 = vadd.f32 %v1111_v27, %v657_v36  ;;  %v660_v40 = vadd.f32 %v659_v29, %v523_v37  ;;  %v1274_v41 = vpop.f32.mrb[8].mxu0 }
 0x106   :  { %v1275_v43 = vpop.f32.mrb[9].mxu0  ;;  %v664_v44 = vpop.f32.mrb[8].mxu1 }
 0x107   :  { %v806_v45 = vadd.f32 %v1112_v38, %v660_v40  ;;  %v1276_v46 = vadd.f32 %v1275_v43, %v1274_v41  ;;  %v1277_v47 = vpop.f32.mrb[10].mxu0  ;;  %v1387_v48 = vpop.f32.mrb[9].mxu1  ;;  %v831_v52 = vmax.f32 %v805_v39, 0.0  ;;  %v1124_v41 = vunpack.c.h.bf16 %v1225_v23 }
 0x108   :  { %v1278_v50 = vpop.f32.mrb[11].mxu0  ;;  %v667_v51 = vpop.f32.mrb[10].mxu1 }
 0x109   :  { %v832_v53 = vmax.f32 %v806_v45, 0.0  ;;  %v528_v54 = vadd.f32 %v1276_v46, %v1760_v3  ;;  %v1279_v55 = vadd.f32 %v1278_v50, %v1277_v47  ;;  %v1388_v56 = vpop.f32.mrb[11].mxu1  ;;  %v1226_v45 = vld [vmem:[%s1869_s3 + $0x28] sm:$0xff]  }
 0x10b   :  { %v1165_v57 = vpack.c.bf16 %v832_v53, %v831_v52  ;;  %v665_v58 = vadd.f32 %v664_v44, %v528_v54  ;;  %v531_v59 = vadd.f32 %v1279_v55, %v1760_v3  ;;  %v1127_v52 = vunpack.c.l.bf16 %v1226_v45 }
 0x10d   :  { %1234 = vst [vmem:[%s1870_s4 + $0x8] sm:$0xff] %v1165_v57   ;;  %v807_v61 = vadd.f32 %v1115_v49, %v665_v58  ;;  %v668_v62 = vadd.f32 %v667_v51, %v531_v59  ;;  %v1280_v63 = vpop.f32.mrb[12].mxu0 }
 0x10e   :  { %v1281_v2 = vpop.f32.mrb[13].mxu0  ;;  %v672_v4 = vpop.f32.mrb[12].mxu1 }
 0x10f   :  { %v808_v1 = vadd.f32 %v1116_v60, %v668_v62  ;;  %v1282_v5 = vadd.f32 %v1281_v2, %v1280_v63  ;;  %v1283_v6 = vpop.f32.mrb[14].mxu0  ;;  %v1391_v7 = vpop.f32.mrb[13].mxu1  ;;  %v833_v11 = vmax.f32 %v807_v61, 0.0  ;;  %v1128_v63 = vunpack.c.h.bf16 %v1226_v45 }
 0x110   :  { %v1284_v9 = vpop.f32.mrb[15].mxu0  ;;  %v675_v10 = vpop.f32.mrb[14].mxu1 }
 0x111   :  { %v834_v12 = vmax.f32 %v808_v1, 0.0  ;;  %v536_v13 = vadd.f32 %v1282_v5, %v1760_v3  ;;  %v1285_v14 = vadd.f32 %v1284_v9, %v1283_v6  ;;  %v1392_v15 = vpop.f32.mrb[15].mxu1  ;;  %v1227_v1 = vld [vmem:[%s1869_s3 + $0x30] sm:$0xff]  }
 0x113   :  { %v1170_v16 = vpack.c.bf16 %v834_v12, %v833_v11  ;;  %v673_v17 = vadd.f32 %v672_v4, %v536_v13  ;;  %v539_v18 = vadd.f32 %v1285_v14, %v1760_v3  ;;  %v1131_v11 = vunpack.c.l.bf16 %v1227_v1 }
 0x115   :  { %1235 = vst [vmem:[%s1870_s4 + $0x10] sm:$0xff] %v1170_v16   ;;  %v809_v20 = vadd.f32 %v1119_v8, %v673_v17  ;;  %v676_v21 = vadd.f32 %v675_v10, %v539_v18  ;;  %v1286_v22 = vpop.f32.mrb[16].mxu0 }
 0x116   :  { %v1287_v24 = vpop.f32.mrb[17].mxu0  ;;  %v680_v25 = vpop.f32.mrb[16].mxu1 }
 0x117   :  { %v810_v26 = vadd.f32 %v1120_v19, %v676_v21  ;;  %v1288_v27 = vadd.f32 %v1287_v24, %v1286_v22  ;;  %v1289_v28 = vpop.f32.mrb[18].mxu0  ;;  %v1395_v29 = vpop.f32.mrb[17].mxu1  ;;  %v835_v33 = vmax.f32 %v809_v20, 0.0  ;;  %v1132_v22 = vunpack.c.h.bf16 %v1227_v1 }
 0x118   :  { %v1290_v31 = vpop.f32.mrb[19].mxu0  ;;  %v683_v32 = vpop.f32.mrb[18].mxu1 }
 0x119   :  { %v836_v34 = vmax.f32 %v810_v26, 0.0  ;;  %v544_v35 = vadd.f32 %v1288_v27, %v1760_v3  ;;  %v1291_v36 = vadd.f32 %v1290_v31, %v1289_v28  ;;  %v1396_v37 = vpop.f32.mrb[19].mxu1  ;;  %v1228_v26 = vld [vmem:[%s1869_s3 + $0x38] sm:$0xff]  }
 0x11b   :  { %v1175_v38 = vpack.c.bf16 %v836_v34, %v835_v33  ;;  %v681_v39 = vadd.f32 %v680_v25, %v544_v35  ;;  %v547_v40 = vadd.f32 %v1291_v36, %v1760_v3  ;;  %v1135_v33 = vunpack.c.l.bf16 %v1228_v26 }
 0x11d   :  { %1236 = vst [vmem:[%s1870_s4 + $0x18] sm:$0xff] %v1175_v38   ;;  %v811_v42 = vadd.f32 %v1123_v30, %v681_v39  ;;  %v684_v43 = vadd.f32 %v683_v32, %v547_v40  ;;  %v1292_v44 = vpop.f32.mrb[20].mxu0 }
 0x11e   :  { %v1293_v46 = vpop.f32.mrb[21].mxu0  ;;  %v688_v47 = vpop.f32.mrb[20].mxu1 }
 0x11f   :  { %v812_v48 = vadd.f32 %v1124_v41, %v684_v43  ;;  %v1294_v49 = vadd.f32 %v1293_v46, %v1292_v44  ;;  %v1295_v50 = vpop.f32.mrb[22].mxu0  ;;  %v1399_v51 = vpop.f32.mrb[21].mxu1  ;;  %v837_v55 = vmax.f32 %v811_v42, 0.0  ;;  %v1136_v44 = vunpack.c.h.bf16 %v1228_v26 }
 0x120   :  { %v1296_v53 = vpop.f32.mrb[23].mxu0  ;;  %v691_v54 = vpop.f32.mrb[22].mxu1 }
 0x121   :  { %v838_v56 = vmax.f32 %v812_v48, 0.0  ;;  %v552_v57 = vadd.f32 %v1294_v49, %v1760_v3  ;;  %v1297_v58 = vadd.f32 %v1296_v53, %v1295_v50  ;;  %v1400_v59 = vpop.f32.mrb[23].mxu1  ;;  %v1229_v48 = vld [vmem:[%s1869_s3 + $0x40] sm:$0xff]  }
 0x123   :  { %v1180_v60 = vpack.c.bf16 %v838_v56, %v837_v55  ;;  %v689_v61 = vadd.f32 %v688_v47, %v552_v57  ;;  %v555_v62 = vadd.f32 %v1297_v58, %v1760_v3  ;;  %v1139_v55 = vunpack.c.l.bf16 %v1229_v48 }
 0x125   :  { %1237 = vst [vmem:[%s1870_s4 + $0x20] sm:$0xff] %v1180_v60   ;;  %v813_v0 = vadd.f32 %v1127_v52, %v689_v61  ;;  %v692_v2 = vadd.f32 %v691_v54, %v555_v62  ;;  %v1298_v4 = vpop.f32.mrb[24].mxu0 }
 0x126   :  { %v1299_v5 = vpop.f32.mrb[25].mxu0  ;;  %v696_v6 = vpop.f32.mrb[24].mxu1 }
 0x127   :  { %v814_v7 = vadd.f32 %v1128_v63, %v692_v2  ;;  %v1300_v8 = vadd.f32 %v1299_v5, %v1298_v4  ;;  %v1301_v9 = vpop.f32.mrb[26].mxu0  ;;  %v1403_v10 = vpop.f32.mrb[25].mxu1  ;;  %v839_v14 = vmax.f32 %v813_v0, 0.0  ;;  %v1140_v4 = vunpack.c.h.bf16 %v1229_v48 }
 0x128   :  { %v1302_v12 = vpop.f32.mrb[27].mxu0  ;;  %v699_v13 = vpop.f32.mrb[26].mxu1 }
 0x129   :  { %v840_v15 = vmax.f32 %v814_v7, 0.0  ;;  %v560_v16 = vadd.f32 %v1300_v8, %v1760_v3  ;;  %v1303_v17 = vadd.f32 %v1302_v12, %v1301_v9  ;;  %v1404_v18 = vpop.f32.mrb[27].mxu1  ;;  %v1230_v7 = vld [vmem:[%s1869_s3 + $0x48] sm:$0xff]  }
 0x12b   :  { %v1185_v19 = vpack.c.bf16 %v840_v15, %v839_v14  ;;  %v697_v20 = vadd.f32 %v696_v6, %v560_v16  ;;  %v563_v21 = vadd.f32 %v1303_v17, %v1760_v3  ;;  %v1143_v14 = vunpack.c.l.bf16 %v1230_v7 }
 0x12d   :  { %1238 = vst [vmem:[%s1870_s4 + $0x28] sm:$0xff] %v1185_v19   ;;  %v815_v23 = vadd.f32 %v1131_v11, %v697_v20  ;;  %v700_v24 = vadd.f32 %v699_v13, %v563_v21  ;;  %v1304_v25 = vpop.f32.mrb[28].mxu0 }
 0x12e   :  { %v1305_v27 = vpop.f32.mrb[29].mxu0  ;;  %v704_v28 = vpop.f32.mrb[28].mxu1 }
 0x12f   :  { %v816_v29 = vadd.f32 %v1132_v22, %v700_v24  ;;  %v1306_v30 = vadd.f32 %v1305_v27, %v1304_v25  ;;  %v1307_v31 = vpop.f32.mrb[30].mxu0  ;;  %v1407_v32 = vpop.f32.mrb[29].mxu1  ;;  %v841_v36 = vmax.f32 %v815_v23, 0.0  ;;  %v1144_v25 = vunpack.c.h.bf16 %v1230_v7 }
 0x130   :  { %v1308_v34 = vpop.f32.mrb[31].mxu0  ;;  %v707_v35 = vpop.f32.mrb[30].mxu1 }
 0x131   :  { %v842_v37 = vmax.f32 %v816_v29, 0.0  ;;  %v568_v38 = vadd.f32 %v1306_v30, %v1760_v3  ;;  %v1309_v39 = vadd.f32 %v1308_v34, %v1307_v31  ;;  %v1408_v40 = vpop.f32.mrb[31].mxu1  ;;  %v1231_v29 = vld [vmem:[%s1869_s3 + $0x50] sm:$0xff]  }
 0x133   :  { %v1190_v41 = vpack.c.bf16 %v842_v37, %v841_v36  ;;  %v705_v42 = vadd.f32 %v704_v28, %v568_v38  ;;  %v571_v43 = vadd.f32 %v1309_v39, %v1760_v3  ;;  %v1147_v36 = vunpack.c.l.bf16 %v1231_v29 }
 0x135   :  { %1239 = vst [vmem:[%s1870_s4 + $0x30] sm:$0xff] %v1190_v41   ;;  %v817_v45 = vadd.f32 %v1135_v33, %v705_v42  ;;  %v708_v46 = vadd.f32 %v707_v35, %v571_v43  ;;  %v1310_v47 = vpop.f32.mrb[32].mxu0 }
 0x136   :  { %v1311_v49 = vpop.f32.mrb[33].mxu0  ;;  %v712_v50 = vpop.f32.mrb[32].mxu1 }
 0x137   :  { %v818_v51 = vadd.f32 %v1136_v44, %v708_v46  ;;  %v1312_v52 = vadd.f32 %v1311_v49, %v1310_v47  ;;  %v1313_v53 = vpop.f32.mrb[34].mxu0  ;;  %v1411_v54 = vpop.f32.mrb[33].mxu1  ;;  %v843_v58 = vmax.f32 %v817_v45, 0.0  ;;  %v1148_v47 = vunpack.c.h.bf16 %v1231_v29 }
 0x138   :  { %v1314_v56 = vpop.f32.mrb[35].mxu0  ;;  %v715_v57 = vpop.f32.mrb[34].mxu1 }
 0x139   :  { %v844_v59 = vmax.f32 %v818_v51, 0.0  ;;  %v576_v60 = vadd.f32 %v1312_v52, %v1760_v3  ;;  %v1315_v61 = vadd.f32 %v1314_v56, %v1313_v53  ;;  %v1412_v62 = vpop.f32.mrb[35].mxu1  ;;  %v1232_v51 = vld [vmem:[%s1869_s3 + $0x58] sm:$0xff]  }
 0x13b   :  { %v1195_v63 = vpack.c.bf16 %v844_v59, %v843_v58  ;;  %v713_v0 = vadd.f32 %v712_v50, %v576_v60  ;;  %v579_v2 = vadd.f32 %v1315_v61, %v1760_v3  ;;  %v1151_v58 = vunpack.c.l.bf16 %v1232_v51 }
 0x13d   :  { %1240 = vst [vmem:[%s1870_s4 + $0x38] sm:$0xff] %v1195_v63   ;;  %v819_v1 = vadd.f32 %v1139_v55, %v713_v0  ;;  %v716_v5 = vadd.f32 %v715_v57, %v579_v2  ;;  %v1316_v6 = vpop.f32.mrb[36].mxu0 }
 0x13e   :  { %v1317_v8 = vpop.f32.mrb[37].mxu0  ;;  %v720_v9 = vpop.f32.mrb[36].mxu1 }
 0x13f   :  { %v820_v10 = vadd.f32 %v1140_v4, %v716_v5  ;;  %v1318_v11 = vadd.f32 %v1317_v8, %v1316_v6  ;;  %v1319_v12 = vpop.f32.mrb[38].mxu0  ;;  %v1415_v13 = vpop.f32.mrb[37].mxu1  ;;  %v845_v17 = vmax.f32 %v819_v1, 0.0  ;;  %v1152_v6 = vunpack.c.h.bf16 %v1232_v51 }
 0x140   :  { %v1320_v15 = vpop.f32.mrb[39].mxu0  ;;  %v723_v16 = vpop.f32.mrb[38].mxu1 }
 0x141   :  { %v846_v18 = vmax.f32 %v820_v10, 0.0  ;;  %v584_v19 = vadd.f32 %v1318_v11, %v1760_v3  ;;  %v1321_v20 = vadd.f32 %v1320_v15, %v1319_v12  ;;  %v1416_v21 = vpop.f32.mrb[39].mxu1  ;;  %v1233_v10 = vld [vmem:[%s1869_s3 + $0x60] sm:$0xff]  }
 0x143   :  { %v1200_v22 = vpack.c.bf16 %v846_v18, %v845_v17  ;;  %v721_v23 = vadd.f32 %v720_v9, %v584_v19  ;;  %v587_v24 = vadd.f32 %v1321_v20, %v1760_v3  ;;  %v1155_v17 = vunpack.c.l.bf16 %v1233_v10 }
 0x145   :  { %1241 = vst [vmem:[%s1870_s4 + $0x40] sm:$0xff] %v1200_v22   ;;  %v821_v26 = vadd.f32 %v1143_v14, %v721_v23  ;;  %v724_v27 = vadd.f32 %v723_v16, %v587_v24  ;;  %v1322_v28 = vpop.f32.mrb[40].mxu0 }
 0x146   :  { %v1323_v30 = vpop.f32.mrb[41].mxu0  ;;  %v728_v31 = vpop.f32.mrb[40].mxu1 }
 0x147   :  { %v822_v32 = vadd.f32 %v1144_v25, %v724_v27  ;;  %v1324_v33 = vadd.f32 %v1323_v30, %v1322_v28  ;;  %v1325_v34 = vpop.f32.mrb[42].mxu0  ;;  %v1419_v35 = vpop.f32.mrb[41].mxu1  ;;  %v847_v39 = vmax.f32 %v821_v26, 0.0  ;;  %v1156_v28 = vunpack.c.h.bf16 %v1233_v10 }
 0x148   :  { %v1326_v37 = vpop.f32.mrb[43].mxu0  ;;  %v731_v38 = vpop.f32.mrb[42].mxu1 }
 0x149   :  { %v848_v40 = vmax.f32 %v822_v32, 0.0  ;;  %v592_v41 = vadd.f32 %v1324_v33, %v1760_v3  ;;  %v1327_v42 = vadd.f32 %v1326_v37, %v1325_v34  ;;  %v1420_v43 = vpop.f32.mrb[43].mxu1 }
 0x14b   :  { %v1205_v44 = vpack.c.bf16 %v848_v40, %v847_v39  ;;  %v729_v45 = vadd.f32 %v728_v31, %v592_v41  ;;  %v595_v46 = vadd.f32 %v1327_v42, %v1760_v3 }
 0x14d   :  { %1242 = vst [vmem:[%s1870_s4 + $0x48] sm:$0xff] %v1205_v44   ;;  %v823_v48 = vadd.f32 %v1147_v36, %v729_v45  ;;  %v732_v49 = vadd.f32 %v731_v38, %v595_v46  ;;  %v1328_v50 = vpop.f32.mrb[44].mxu0 }
 0x14e   :  { %v1329_v52 = vpop.f32.mrb[45].mxu0  ;;  %v736_v53 = vpop.f32.mrb[44].mxu1 }
 0x14f   :  { %v824_v54 = vadd.f32 %v1148_v47, %v732_v49  ;;  %v1330_v55 = vadd.f32 %v1329_v52, %v1328_v50  ;;  %v1331_v56 = vpop.f32.mrb[46].mxu0  ;;  %v1423_v57 = vpop.f32.mrb[45].mxu1  ;;  %v849_v61 = vmax.f32 %v823_v48, 0.0 }
 0x150   :  { %v1332_v59 = vpop.f32.mrb[47].mxu0  ;;  %v739_v60 = vpop.f32.mrb[46].mxu1 }
 0x151   :  { %v850_v62 = vmax.f32 %v824_v54, 0.0  ;;  %v600_v63 = vadd.f32 %v1330_v55, %v1760_v3  ;;  %v1333_v0 = vadd.f32 %v1332_v59, %v1331_v56  ;;  %v1424_v2 = vpop.f32.mrb[47].mxu1 }
 0x153   :  { %v1210_v4 = vpack.c.bf16 %v850_v62, %v849_v61  ;;  %v737_v1 = vadd.f32 %v736_v53, %v600_v63  ;;  %v603_v5 = vadd.f32 %v1333_v0, %v1760_v3 }
 0x155   :  { %1243 = vst [vmem:[%s1870_s4 + $0x50] sm:$0xff] %v1210_v4   ;;  %v825_v7 = vadd.f32 %v1151_v58, %v737_v1  ;;  %v740_v8 = vadd.f32 %v739_v60, %v603_v5  ;;  %v1334_v9 = vpop.f32.mrb[48].mxu0 }
 0x156   :  { %v1335_v11 = vpop.f32.mrb[49].mxu0  ;;  %v744_v12 = vpop.f32.mrb[48].mxu1 }
 0x157   :  { %v826_v13 = vadd.f32 %v1152_v6, %v740_v8  ;;  %v1336_v14 = vadd.f32 %v1335_v11, %v1334_v9  ;;  %v1337_v15 = vpop.f32.mrb[50].mxu0  ;;  %v1427_v16 = vpop.f32.mrb[49].mxu1  ;;  %v851_v20 = vmax.f32 %v825_v7, 0.0 }
 0x158   :  { %v1338_v18 = vpop.f32.mrb[51].mxu0  ;;  %v747_v19 = vpop.f32.mrb[50].mxu1 }
 0x159   :  { %v852_v21 = vmax.f32 %v826_v13, 0.0  ;;  %v608_v22 = vadd.f32 %v1336_v14, %v1760_v3  ;;  %v1339_v23 = vadd.f32 %v1338_v18, %v1337_v15  ;;  %v1428_v24 = vpop.f32.mrb[51].mxu1 }
 0x15b   :  { %v1215_v25 = vpack.c.bf16 %v852_v21, %v851_v20  ;;  %v745_v26 = vadd.f32 %v744_v12, %v608_v22  ;;  %v611_v27 = vadd.f32 %v1339_v23, %v1760_v3 }
 0x15d   :  { %1244 = vst [vmem:[%s1870_s4 + $0x58] sm:$0xff] %v1215_v25   ;;  %v827_v29 = vadd.f32 %v1155_v17, %v745_v26  ;;  %v748_v30 = vadd.f32 %v747_v19, %v611_v27 }
 0x15f   :  { %v828_v31 = vadd.f32 %v1156_v28, %v748_v30  ;;  %v853_v32 = vmax.f32 %v827_v29, 0.0 }
 0x161   :  { %v854_v33 = vmax.f32 %v828_v31, 0.0 }
 0x163   :  { %v1220_v34 = vpack.c.bf16 %v854_v33, %v853_v32 }
 0x165   :  { %1245 = vst [vmem:[%s1870_s4 + $0x60] sm:$0xff] %v1220_v34  }

// kernel: _lambda_.30
= control target key start
LH: loop header
LB: loop body
LE: loop exit
PB: predicated region body
PF: predicated region fallthrough
CT: control target
= control target key end

     0   :  { %s811_s1 = inlined_call_operand.vmem [shape: bf16[384,128], index: 1, kind: input, shape index: {}]   ;;  %s812_s0 = inlined_call_operand.vmem [shape: bf16[64,384], index: 0, kind: input, shape index: {}]   ;;  %s813_s2 = inlined_call_operand.vmem [shape: f32[1,128], index: 2, kind: input, shape index: {}]   ;;  %s814_s3 = inlined_call_operand.vmem [shape: bf16[64,128], index: 3, kind: output, shape index: {}]  }
   0x1   :  { %v628_v0 = vld [vmem:[%s811_s1 + $0x40] sm:$0xff]   ;;  %v630_v2 = vld [vmem:[%s811_s1 + $0x48] sm:$0xff]   ;;  %v633_v5 = vld [vmem:[%s811_s1 + $0x50] sm:$0xff]  }
   0x2   :  { %v629_v1 = vld [vmem:[%s811_s1] sm:$0xff]   ;;  %552 = vmatprep.subr.bf16.mxu0 %v628_v0  ;;  %v632_v4 = vld [vmem:[%s811_s1 + $0x8] sm:$0xff]   ;;  %v635_v7 = vld [vmem:[%s811_s1 + $0x10] sm:$0xff]  }
   0x3   :  { %553 = vmatpush3.bf16.msra.mxu0 %v629_v1  ;;  %v631_v3 = vld [vmem:[%s811_s1 + $0x80] sm:$0xff]   ;;  %v634_v6 = vld [vmem:[%s811_s1 + $0x88] sm:$0xff]   ;;  %v636_v8 = vld [vmem:[%s811_s1 + $0x58] sm:$0xff]  }
   0x4   :  { %554 = vmatprep.subr.bf16.mxu0 %v630_v2  ;;  %604 = vmatprep.subr.bf16.mxu1 %v631_v3  ;;  %v637_v9 = vld [vmem:[%s811_s1 + $0x90] sm:$0xff]   ;;  %v638_v10 = vld [vmem:[%s811_s1 + $0x18] sm:$0xff]   ;;  %v639_v11 = vld [vmem:[%s811_s1 + $0x60] sm:$0xff]  }
   0x5   :  { %605 = vmatpush3.bf16.msra.mxu1 %v631_v3  ;;  %v640_v12 = vld [vmem:[%s811_s1 + $0x98] sm:$0xff]   ;;  %v641_v13 = vld [vmem:[%s811_s1 + $0x20] sm:$0xff]   ;;  %v642_v15 = vld [vmem:[%s811_s1 + $0x68] sm:$0xff]  }
   0x6   :  { %606 = vmatprep.subr.bf16.mxu1 %v634_v6  ;;  %v643_v14 = vld [vmem:[%s811_s1 + $0xa0] sm:$0xff]   ;;  %v644_v16 = vld [vmem:[%s811_s1 + $0x28] sm:$0xff]   ;;  %v645_v18 = vld [vmem:[%s811_s1 + $0x70] sm:$0xff]  }
   0x7   :  { %555 = vmatpush3.bf16.msra.mxu0 %v632_v4  ;;  %v646_v17 = vld [vmem:[%s811_s1 + $0xa8] sm:$0xff]   ;;  %v647_v19 = vld [vmem:[%s811_s1 + $0x30] sm:$0xff]   ;;  %v648_v20 = vld [vmem:[%s811_s1 + $0x78] sm:$0xff]  }
   0x8   :  { %556 = vmatprep.subr.bf16.mxu0 %v633_v5  ;;  %v649_v21 = vld [vmem:[%s811_s1 + $0xb0] sm:$0xff]   ;;  %v650_v23 = vld [vmem:[%s811_s1 + $0x38] sm:$0xff]   ;;  %v651_v26 = vld [vmem:[%s812_s0] ss:$12 sps:$4 sm:$0xff]  }
   0x9   :  { %607 = vmatpush3.bf16.msra.mxu1 %v634_v6  ;;  %v653_v22 = vld [vmem:[%s812_s0 + $0x4] ss:$12 sps:$4 sm:$0xff]   ;;  %v655_v24 = vld [vmem:[%s812_s0 + $0x8] ss:$12 sps:$4 sm:$0xff]   ;;  %v654_v25 = vld [vmem:[%s811_s1 + $0xb8] sm:$0xff]  }
   0xa   :  { %608 = vmatprep.subr.bf16.mxu1 %v637_v9  ;;  %326 = vmatprep.mubr.bf16.mxu0 %v653_v22  ;;  %v657_v27 = vld [vmem:[%s812_s0 + $0x1c] ss:$12 sps:$4 sm:$0xff]   ;;  %v656_v28 = vld [vmem:[%s812_s0 + $0x20] ss:$12 sps:$4 sm:$0xff]   ;;  %v663_v29 = vld [vmem:[%s812_s0 + $0x38] ss:$12 sps:$4 sm:$0xff]  }
   0xb   :  { %557 = vmatpush3.bf16.msra.mxu0 %v635_v7  ;;  %620 = vmatprep.mubr.bf16.mxu1 %v655_v24  ;;  %v659_v30 = vld [vmem:[%s812_s0 + $0x18] ss:$12 sps:$4 sm:$0xff]   ;;  %v660_v31 = vld [vmem:[%s812_s0 + $0x34] ss:$12 sps:$4 sm:$0xff]   ;;  %v664_v32 = vld [vmem:[%s812_s0 + $0x50] ss:$12 sps:$4 sm:$0xff]  }
   0xc   :  { %558 = vmatprep.subr.bf16.mxu0 %v636_v8  ;;  %v662_v33 = vld [vmem:[%s812_s0 + $0x30] ss:$12 sps:$4 sm:$0xff]   ;;  %v665_v34 = vld [vmem:[%s812_s0 + $0x4c] ss:$12 sps:$4 sm:$0xff]   ;;  %v667_v35 = vld [vmem:[%s812_s0 + $0x48] ss:$12 sps:$4 sm:$0xff]  }
   0xd   :  { %609 = vmatpush3.bf16.msra.mxu1 %v637_v9  ;;  %v476_v38 = vld [vmem:[%s813_s2] ss:$0 sm:$0xff] }
   0xe   :  { %610 = vmatprep.subr.bf16.mxu1 %v640_v12 }
   0xf   :  { %559 = vmatpush3.bf16.msra.mxu0 %v638_v10 }
  0x10   :  { %560 = vmatprep.subr.bf16.mxu0 %v639_v11 }
  0x11   :  { %611 = vmatpush3.bf16.msra.mxu1 %v640_v12 }
  0x12   :  { %612 = vmatprep.subr.bf16.mxu1 %v643_v14 }
  0x13   :  { %561 = vmatpush3.bf16.msra.mxu0 %v641_v13 }
  0x14   :  { %562 = vmatprep.subr.bf16.mxu0 %v642_v15 }
  0x15   :  { %613 = vmatpush3.bf16.msra.mxu1 %v643_v14 }
  0x16   :  { %614 = vmatprep.subr.bf16.mxu1 %v646_v17 }
  0x17   :  { %563 = vmatpush3.bf16.msra.mxu0 %v644_v16 }
  0x18   :  { %564 = vmatprep.subr.bf16.mxu0 %v645_v18 }
  0x19   :  { %615 = vmatpush3.bf16.msra.mxu1 %v646_v17 }
  0x1a   :  { %616 = vmatprep.subr.bf16.mxu1 %v649_v21 }
  0x1b   :  { %565 = vmatpush3.bf16.msra.mxu0 %v647_v19 }
  0x1c   :  { %566 = vmatprep.subr.bf16.mxu0 %v648_v20 }
  0x1d   :  { %617 = vmatpush3.bf16.msra.mxu1 %v649_v21 }
  0x1e   :  { %618 = vmatprep.subr.bf16.mxu1 %v654_v25 }
  0x1f   :  { %567 = vmatpush3.bf16.msra.mxu0 %v650_v23 }
  0x21   :  { %619 = vmatpush3.bf16.msra.mxu1 %v654_v25 }
  0x22   :  { %327 = vmatmul.mubr.bf16.vlgmr.msra.gmra.mrb[0].mxu0 %v651_v26 }
  0x23   :  { %334 = vmatprep.mubr.bf16.mxu0 %v657_v27 }
  0x24   :  { %621 = vmatmul.mubr.bf16.vlgmr.msra.gmra.mrb[0].mxu1 %v656_v28 }
  0x25   :  { %624 = vmatprep.mubr.bf16.mxu1 %v663_v29 }
  0x2a   :  { %335 = vmatmul.mubr.bf16.gmra.mrb[4].mxu0 %v659_v30 }
  0x2b   :  { %342 = vmatprep.mubr.bf16.mxu0 %v660_v31 }
  0x2c   :  { %625 = vmatmul.mubr.bf16.gmra.mrb[4].mxu1 %v664_v32 }
  0x32   :  { %343 = vmatmul.mubr.bf16.gmra.mrb[8].mxu0 %v662_v33 }
  0x33   :  { %350 = vmatprep.mubr.bf16.mxu0 %v665_v34 }
  0x3a   :  { %351 = vmatmul.mubr.bf16.gmra.mrb[12].mxu0 %v667_v35 }
  0xf5   :  { %v568_v36 = vpop.f32.mrb[0].mxu0 }
  0xf6   :  { %v569_v37 = vpop.f32.mrb[1].mxu0 }
  0xf7   :  { %v570_v39 = vadd.f32 %v569_v37, %v568_v36  ;;  %v571_v40 = vpop.f32.mrb[2].mxu0  ;;  %v622_v42 = vpop.f32.mrb[0].mxu1 }
  0xf8   :  { %v572_v41 = vpop.f32.mrb[3].mxu0  ;;  %v393_v45 = vpop.f32.mrb[1].mxu1 }
  0xf9   :  { %v573_v43 = vadd.f32 %v572_v41, %v571_v40  ;;  %v329_v44 = vadd.f32 %v570_v39, %v476_v38  ;;  %v623_v46 = vpop.f32.mrb[2].mxu1 }
  0xfa   :  { %v396_v49 = vpop.f32.mrb[3].mxu1 }
  0xfb   :  { %v394_v47 = vadd.f32 %v393_v45, %v329_v44  ;;  %v332_v48 = vadd.f32 %v573_v43, %v476_v38 }
  0xfd   :  { %v397_v50 = vadd.f32 %v396_v49, %v332_v48  ;;  %v574_v51 = vpop.f32.mrb[4].mxu0  ;;  %v424_v53 = vmax.f32 %v394_v47, 0.0 }
  0xfe   :  { %v575_v52 = vpop.f32.mrb[5].mxu0 }
  0xff   :  { %v425_v54 = vmax.f32 %v397_v50, 0.0  ;;  %v576_v55 = vadd.f32 %v575_v52, %v574_v51  ;;  %v577_v56 = vpop.f32.mrb[6].mxu0  ;;  %v626_v58 = vpop.f32.mrb[4].mxu1 }
 0x100   :  { %v578_v57 = vpop.f32.mrb[7].mxu0  ;;  %v409_v62 = vpop.f32.mrb[5].mxu1 }
 0x101   :  { %v532_v59 = vpack.c.bf16 %v425_v54, %v424_v53  ;;  %v337_v60 = vadd.f32 %v576_v55, %v476_v38  ;;  %v579_v61 = vadd.f32 %v578_v57, %v577_v56  ;;  %v627_v63 = vpop.f32.mrb[6].mxu1 }
 0x102   :  { %v412_v2 = vpop.f32.mrb[7].mxu1 }
 0x103   :  { %533 = vst [vmem:[%s814_s3] sm:$0xff] %v532_v59   ;;  %v402_v0 = vadd.f32 %v622_v42, %v337_v60  ;;  %v340_v1 = vadd.f32 %v579_v61, %v476_v38 }
 0x105   :  { %v405_v3 = vadd.f32 %v623_v46, %v340_v1  ;;  %v580_v4 = vpop.f32.mrb[8].mxu0  ;;  %v426_v6 = vmax.f32 %v402_v0, 0.0 }
 0x106   :  { %v581_v5 = vpop.f32.mrb[9].mxu0 }
 0x107   :  { %v427_v7 = vmax.f32 %v405_v3, 0.0  ;;  %v582_v8 = vadd.f32 %v581_v5, %v580_v4  ;;  %v583_v9 = vpop.f32.mrb[10].mxu0 }
 0x108   :  { %v584_v10 = vpop.f32.mrb[11].mxu0 }
 0x109   :  { %v537_v11 = vpack.c.bf16 %v427_v7, %v426_v6  ;;  %v585_v12 = vadd.f32 %v584_v10, %v583_v9  ;;  %v345_v13 = vadd.f32 %v582_v8, %v476_v38 }
 0x10b   :  { %549 = vst [vmem:[%s814_s3 + $0x8] sm:$0xff] %v537_v11   ;;  %v410_v14 = vadd.f32 %v409_v62, %v345_v13  ;;  %v348_v15 = vadd.f32 %v585_v12, %v476_v38 }
 0x10d   :  { %v413_v16 = vadd.f32 %v412_v2, %v348_v15  ;;  %v586_v17 = vpop.f32.mrb[12].mxu0  ;;  %v428_v19 = vmax.f32 %v410_v14, 0.0 }
 0x10e   :  { %v587_v18 = vpop.f32.mrb[13].mxu0 }
 0x10f   :  { %v429_v20 = vmax.f32 %v413_v16, 0.0  ;;  %v588_v21 = vadd.f32 %v587_v18, %v586_v17  ;;  %v589_v22 = vpop.f32.mrb[14].mxu0 }
 0x110   :  { %v590_v23 = vpop.f32.mrb[15].mxu0 }
 0x111   :  { %v542_v24 = vpack.c.bf16 %v429_v20, %v428_v19  ;;  %v353_v25 = vadd.f32 %v588_v21, %v476_v38  ;;  %v591_v26 = vadd.f32 %v590_v23, %v589_v22 }
 0x113   :  { %550 = vst [vmem:[%s814_s3 + $0x10] sm:$0xff] %v542_v24   ;;  %v418_v27 = vadd.f32 %v626_v58, %v353_v25  ;;  %v356_v28 = vadd.f32 %v591_v26, %v476_v38 }
 0x115   :  { %v421_v29 = vadd.f32 %v627_v63, %v356_v28  ;;  %v430_v30 = vmax.f32 %v418_v27, 0.0 }
 0x117   :  { %v431_v31 = vmax.f32 %v421_v29, 0.0 }
 0x119   :  { %v547_v32 = vpack.c.bf16 %v431_v31, %v430_v30 }
 0x11b   :  { %551 = vst [vmem:[%s814_s3 + $0x18] sm:$0xff] %v547_v32  }

// kernel: _lambda_.29
= control target key start
LH: loop header
LB: loop body
LE: loop exit
PB: predicated region body
PF: predicated region fallthrough
CT: control target
= control target key end

     0   :  { %s414_s1 = inlined_call_operand.vmem [shape: bf16[128,128], index: 1, kind: input, shape index: {}]   ;;  %s415_s0 = inlined_call_operand.vmem [shape: bf16[64,128], index: 0, kind: input, shape index: {}]   ;;  %s416_s2 = inlined_call_operand.vmem [shape: f32[1,128], index: 2, kind: input, shape index: {}]   ;;  %s417_s3 = inlined_call_operand.vmem [shape: bf16[64,128], index: 3, kind: output, shape index: {}]  }
   0x1   :  { %v331_v0 = vld [vmem:[%s414_s1] sm:$0xff]   ;;  %v332_v1 = vld [vmem:[%s414_s1 + $0x8] sm:$0xff]   ;;  %v333_v2 = vld [vmem:[%s414_s1 + $0x10] sm:$0xff]  }
   0x2   :  { %291 = vmatprep.subr.bf16.mxu0 %v331_v0  ;;  %315 = vmatprep.subr.bf16.mxu1 %v331_v0  ;;  %v334_v3 = vld [vmem:[%s414_s1 + $0x18] sm:$0xff]   ;;  %v339_v4 = vld [vmem:[%s415_s0] sm:$0xff]   ;;  %v340_v5 = vld [vmem:[%s415_s0 + $0x10] sm:$0xff]  }
   0x3   :  { %292 = vmatpush3.bf16.msra.mxu0 %v331_v0  ;;  %323 = vmatpush3.bf16.msra.mxu1 %v331_v0  ;;  %v335_v6 = vld [vmem:[%s414_s1 + $0x20] sm:$0xff]   ;;  %v336_v7 = vld [vmem:[%s414_s1 + $0x28] sm:$0xff]   ;;  %v337_v8 = vld [vmem:[%s414_s1 + $0x30] sm:$0xff]  }
   0x4   :  { %293 = vmatprep.subr.bf16.mxu0 %v332_v1  ;;  %316 = vmatprep.subr.bf16.mxu1 %v332_v1  ;;  %v338_v9 = vld [vmem:[%s414_s1 + $0x38] sm:$0xff]   ;;  %v341_v10 = vld [vmem:[%s415_s0 + $0x8] sm:$0xff]   ;;  %v227_v13 = vld [vmem:[%s416_s2] ss:$0 sm:$0xff] }
   0x5   :  { %307 = vmatprep.mubr.bf16.mxu0 %v339_v4  ;;  %311 = vmatprep.mubr.bf16.mxu1 %v340_v5  ;;  %v342_v11 = vld [vmem:[%s415_s0 + $0x18] sm:$0xff]  }
   0x7   :  { %294 = vmatpush3.bf16.msra.mxu0 %v332_v1  ;;  %324 = vmatpush3.bf16.msra.mxu1 %v332_v1 }
   0x8   :  { %295 = vmatprep.subr.bf16.mxu0 %v333_v2  ;;  %317 = vmatprep.subr.bf16.mxu1 %v333_v2 }
   0xb   :  { %296 = vmatpush3.bf16.msra.mxu0 %v333_v2  ;;  %325 = vmatpush3.bf16.msra.mxu1 %v333_v2 }
   0xc   :  { %297 = vmatprep.subr.bf16.mxu0 %v334_v3  ;;  %318 = vmatprep.subr.bf16.mxu1 %v334_v3 }
   0xf   :  { %298 = vmatpush3.bf16.msra.mxu0 %v334_v3  ;;  %326 = vmatpush3.bf16.msra.mxu1 %v334_v3 }
  0x10   :  { %299 = vmatprep.subr.bf16.mxu0 %v335_v6  ;;  %319 = vmatprep.subr.bf16.mxu1 %v335_v6 }
  0x13   :  { %300 = vmatpush3.bf16.msra.mxu0 %v335_v6  ;;  %327 = vmatpush3.bf16.msra.mxu1 %v335_v6 }
  0x14   :  { %301 = vmatprep.subr.bf16.mxu0 %v336_v7  ;;  %320 = vmatprep.subr.bf16.mxu1 %v336_v7 }
  0x17   :  { %302 = vmatpush3.bf16.msra.mxu0 %v336_v7  ;;  %328 = vmatpush3.bf16.msra.mxu1 %v336_v7 }
  0x18   :  { %303 = vmatprep.subr.bf16.mxu0 %v337_v8  ;;  %321 = vmatprep.subr.bf16.mxu1 %v337_v8 }
  0x1b   :  { %304 = vmatpush3.bf16.msra.mxu0 %v337_v8  ;;  %329 = vmatpush3.bf16.msra.mxu1 %v337_v8 }
  0x1c   :  { %305 = vmatprep.subr.bf16.mxu0 %v338_v9  ;;  %322 = vmatprep.subr.bf16.mxu1 %v338_v9 }
  0x1f   :  { %306 = vmatpush3.bf16.msra.mxu0 %v338_v9  ;;  %330 = vmatpush3.bf16.msra.mxu1 %v338_v9 }
  0x22   :  { %308 = vmatmul.mubr.bf16.vlgmr.msra.gmra.mrb[0].mxu0 %v341_v10  ;;  %312 = vmatmul.mubr.bf16.vlgmr.msra.gmra.mrb[0].mxu1 %v342_v11 }
  0xf5   :  { %v309_v12 = vpop.f32.mrb[0].mxu0  ;;  %v313_v14 = vpop.f32.mrb[0].mxu1 }
  0xf6   :  { %v152_v15 = vpop.f32.mrb[1].mxu0  ;;  %v168_v16 = vpop.f32.mrb[1].mxu1  ;;  %v161_v19 = vadd.f32 %v309_v12, %v227_v13  ;;  %v177_v20 = vadd.f32 %v313_v14, %v227_v13 }
  0xf7   :  { %v310_v17 = vpop.f32.mrb[2].mxu0  ;;  %v314_v18 = vpop.f32.mrb[2].mxu1  ;;  %v153_v25 = vadd.f32 %v227_v13, %v152_v15  ;;  %v169_v26 = vadd.f32 %v227_v13, %v168_v16 }
  0xf8   :  { %v164_v21 = vadd.f32 %v310_v17, %v227_v13  ;;  %v180_v22 = vadd.f32 %v314_v18, %v227_v13  ;;  %v155_v23 = vpop.f32.mrb[3].mxu0  ;;  %v171_v24 = vpop.f32.mrb[3].mxu1 }
  0xf9   :  { %v156_v27 = vadd.f32 %v227_v13, %v155_v23  ;;  %v172_v28 = vadd.f32 %v227_v13, %v171_v24 }
  0xfa   :  { %v264_v29 = vpack.c.bf16 %v164_v21, %v161_v19  ;;  %v274_v30 = vpack.c.bf16 %v180_v22, %v177_v20 }
  0xfb   :  { %v259_v31 = vpack.c.bf16 %v156_v27, %v153_v25  ;;  %v269_v32 = vpack.c.bf16 %v172_v28, %v169_v26 }
  0xfc   :  { %276 = vst [vmem:[%s417_s3 + $0x8] sm:$0xff] %v264_v29   ;;  %278 = vst [vmem:[%s417_s3 + $0x18] sm:$0xff] %v274_v30  }
  0xfd   :  { %260 = vst [vmem:[%s417_s3] sm:$0xff] %v259_v31   ;;  %277 = vst [vmem:[%s417_s3 + $0x10] sm:$0xff] %v269_v32  }

// kernel: _lambda_.34
= control target key start
LH: loop header
LB: loop body
LE: loop exit
PB: predicated region body
PF: predicated region fallthrough
CT: control target
= control target key end

     0   :  { %s974_s23 = smov 0   ;;  %s1068_s0 = inlined_call_operand.vmem [shape: bf16[2,25,64], index: 0, kind: input, shape index: {}]   ;;  %s1069_s1 = inlined_call_operand.vmem [shape: bf16[64,256], index: 1, kind: input, shape index: {}]   ;;  %s1070_s2 = inlined_call_operand.vmem [shape: f32[1,256], index: 2, kind: input, shape index: {}]   ;;  %s1071_s3 = inlined_call_operand.vmem [shape: bf16[64,64], index: 3, kind: input, shape index: {}]   ;;  %s1072_s4 = inlined_call_operand.vmem [shape: f32[1,64], index: 4, kind: input, shape index: {}]   ;;  %s1073_s5 = inlined_call_operand.<no memory space> [shape: f32[1,1], index: 5, kind: input, shape index: {}]   ;;  %s1074_s6 = inlined_call_operand.vmem [shape: bf16[2,25,64], index: 6, kind: output, shape index: {}]  }
   0x1   :  { %v11_v0 = vstv %s1073_s5 }
   0x2   :  { %12 = vst [vmem:[#allocation2] sm:$0x1] %v11_v0 }
   0x3 LB: > { %s777_s24 = sadd.s32 4294967295, %s932_s23   ;;  %p781_p0 = scmp.ge.s32.totalorder %s932_s23, 1  ;;  %s932_s23 = sphi %s974_s23, %s18_s23  }
   0x4   : > { %p214_p1 = scmp.lt.s32.totalorder %s932_s23, 3 }
   0x6   : > { %p215_p2 = pnand %p781_p0, %p214_p1 }
   0x7   : > { %v891_v1 = vld [vmem:[%s1069_s1 + $0x4] ss:$8 sps:$4 sm:$0xff] (!%p215_p2)   ;;  %p244_p3 = scmp.lt.s32.totalorder (!%p215_p2), %s777_s24, 1  ;;  %v893_v2 = vld [vmem:[%s1069_s1] ss:$8 sps:$4 sm:$0xff] (!%p215_p2)   ;;  %v934_v3 = vmov (!%p215_p2), 0   ;;  %v269_v14 = vlaneseq (!%p215_p2) }
   0x8   : > { %218 = sbr.rel (%p215_p2) target bundleno = 1019 (0x3fb), region = 44  ;;  %368 = vmatprep.mubr.bf16.mxu0 (!%p215_p2), %v934_v3  ;;  %890 = vset.pattern.permute.xlu0 (!%p215_p2), %v934_v3  ;;  %v894_v4 = vld [vmem:[%s1069_s1 + $0x14] ss:$8 sps:$4 sm:$0xff] (!%p215_p2)   ;;  %v896_v5 = vld [vmem:[%s1069_s1 + $0x10] ss:$8 sps:$4 sm:$0xff] (!%p215_p2)   ;;  %vm329_vm0 = vcmask (!%p215_p2), 523264  }
   0x9   : > { %336 = vmatprep.subr.bf16.mxu0 (!%p215_p2), %v891_v1  ;;  %v897_v6 = vld [vmem:[%s1069_s1 + $0x24] ss:$8 sps:$4 sm:$0xff] (!%p215_p2)   ;;  %v899_v7 = vld [vmem:[%s1069_s1 + $0x20] ss:$8 sps:$4 sm:$0xff] (!%p215_p2)   ;;  %v900_v8 = vld [vmem:[%s1069_s1 + $0x34] ss:$8 sps:$4 sm:$0xff] (!%p215_p2)  }
   0xa   : > { %337 = vmatpush1.bf16.msra.mxu0 (!%p215_p2), %v893_v2  ;;  %v902_v10 = vld [vmem:[%s1069_s1 + $0x30] ss:$8 sps:$4 sm:$0xff] (!%p215_p2)   ;;  %v270_v15 = vshrl.u32 (!%p215_p2), %v269_v14, 7  ;;  %v267_v17 = vld [vmem:[%s1070_s2] sm:$0x3] (!%p215_p2)  ;;  %v906_v40 = vld [vmem:[%s1071_s3 + $0x8] sm:$0xff] (!%p215_p2)  }
   0xb   : > { %338 = vmatprep.subr.bf16.mxu0 (!%p215_p2), %v894_v4  ;;  %v905_v39 = vld [vmem:[%s1071_s3] sm:$0xff] (!%p215_p2)   ;;  %v907_v41 = vld [vmem:[%s1071_s3 + $0x10] sm:$0xff] (!%p215_p2)   ;;  %v908_v42 = vld [vmem:[%s1071_s3 + $0x18] sm:$0xff] (!%p215_p2)   ;;  %vm562_vm1 = vcmask (!%p215_p2), 203776   ;;  %vm572_vm2 = vcmask (!%p215_p2), 196608   ;;  %vm618_vm3 = vcmask (!%p215_p2), 1043456  }
   0xc   : > { %v271_v16 = vsub.s32 (!%p215_p2), 0, %v270_v15  ;;  %v275_v18 = vsub.s32 (!%p215_p2), 1, %v270_v15  ;;  %838 = vmatprep.subr.bf16.mxu1 (!%p215_p2), %v905_v39  ;;  %vm619_vm4 = vcmask (!%p215_p2), 1044480   ;;  %vm716_vm5 = vcmask (!%p215_p2), 516096  }
   0xd   : > { %839 = vmatpush3.bf16.msra.mxu1 (!%p215_p2), %v905_v39  ;;  %vm717_vm6 = vsmask.f32 (!%p215_p2), 256  ;;  %vm712_vm7 = vcmask (!%p215_p2), 519168  }
   0xe   : > { %339 = vmatpush1.bf16.msra.mxu0 (!%p215_p2), %v896_v5  ;;  %v272_v19 = vrot.slane (!%p215_p2), %v267_v17, %v271_v16  ;;  %v276_v21 = vrot.slane (!%p215_p2), %v267_v17, %v275_v18  ;;  %840 = vmatprep.subr.bf16.mxu1 (!%p215_p2), %v906_v40  ;;  %vm718_vm8 = vmand (!%p215_p2), %vm716_vm5, %vm717_vm6 }
   0xf   : > { %s1076_s24 = smov (!%p244_p3, %s777_s24), 1  ;;  %340 = vmatprep.subr.bf16.mxu0 %v897_v6 }
  0x10   : > { %s814_s10 = sshll.u32 %s1076_s24, 4 }
  0x11   : > { %s248_s13 = scalar_lea.vmem %s1068_s0, %s814_s10  ;;  %841 = vmatpush3.bf16.msra.mxu1 %v906_v40  ;;  %s253_s12 = scalar_lea.vmem %s1074_s6, %s814_s10 }
  0x12   : > { %v1011_v9 = vld [vmem:[%s248_s13] sm:$0xff]   ;;  %341 = vmatpush1.bf16.msra.mxu0 %v899_v7  ;;  %v1020_v11 = vld [vmem:[%s248_s13 + $0x8] sm:$0xf]  ;;  %v1022_v12 = vld [vmem:[%s248_s13 + $0xc] sm:$0x1]  ;;  %842 = vmatprep.subr.bf16.mxu1 %v907_v41 }
  0x13   : > { %846 = vmatprep.mubr.msk.bf16.mxu1 %vm329_vm0, %v1011_v9  ;;  %342 = vmatprep.subr.bf16.mxu0 %v900_v8  ;;  %v787_v13 = vcombine.low %v1020_v11, %v1022_v12  ;;  %v798_v8 = vld [vmem:[%s1072_s4] ss:$0 sm:$0xff] }
  0x15   : > { %843 = vmatpush3.bf16.msra.mxu1 %v907_v41  ;;  %v690_v41 = vunpack.c.l.bf16 %v1020_v11 }
  0x16   : > { %343 = vmatpush1.bf16.msra.mxu0 %v902_v10  ;;  %844 = vmatprep.subr.bf16.mxu1 %v908_v42 }
  0x19   : > { %796 = vmatmul.mubr.msk.bf16.vlgmr.msra.gmra.mrb[0].mxu0 %vm329_vm0, %v1011_v9  ;;  %845 = vmatpush3.bf16.msra.mxu1 %v908_v42 }
  0x1a   : > { %378 = vmatprep.mubr.bf16.mxu0 %v934_v3 }
  0x1c   : > { %847 = vmatmul.mubr.msk.bf16.vlgmr.msra.gmra.mrb[0].mxu1 %vm329_vm0, %v787_v13 }
  0x21   : > { %797 = vmatmul.mubr.msk.bf16.gmra.mrb[4].mxu0 %vm329_vm0, %v787_v13 }
  0xec   : > { %v370_v20 = vpop.f32.mrb[0].mxu0 }
  0xed   : > { %v371_v22 = vadd.f32 %v370_v20, %v272_v19  ;;  %v372_v23 = vpop.f32.mrb[1].mxu0 }
  0xee   : > { %v374_v24 = vpop.f32.mrb[2].mxu0  ;;  %v373_v26 = vadd.f32 %v372_v23, %v276_v21 }
  0xef   : > { %v376_v25 = vpop.f32.mrb[3].mxu0  ;;  %858 = vmatprep.mubr.f32.mxu0 %v371_v22  ;;  %v375_v36 = vadd.f32 %v374_v24, %v272_v19  ;;  %v848_v7 = vpop.f32.mrb[0].mxu1 }
  0xf0   : > { %v377_v27 = vadd.f32 %v376_v25, %v276_v21  ;;  %v471_v10 = vadd.f32 %v848_v7, %v798_v8  ;;  %v462_v13 = vpop.f32.mrb[1].mxu1  ;;  %v807_v25 = vld [vmem:[#allocation2] ss:$0 sm:$0xff] }
  0xf1   : > { %v849_v14 = vpop.f32.mrb[2].mxu1  ;;  %v463_v16 = vadd.f32 %v798_v8, %v462_v13 }
  0xf2   : > { %v872_v28 = vpack.c.bf16 %v377_v27, %v373_v26  ;;  %v474_v15 = vadd.f32 %v849_v14, %v798_v8  ;;  %v465_v18 = vpop.f32.mrb[3].mxu1 }
  0xf4   : > { %v380_v29 = vpop.f32.mrb[4].mxu0  ;;  %873 = vmatprep.subr.bf16.mxu0 %v872_v28  ;;  %v611_v17 = vpack.c.bf16 %v474_v15, %v471_v10 }
  0xf5   : > { %v382_v30 = vpop.f32.mrb[5].mxu0  ;;  %875 = vmatpush3.bf16.xpose.msra.mxu0 %v872_v28  ;;  %v381_v37 = vadd.f32 %v380_v29, %v272_v19 }
  0xf6   : > { %v384_v31 = vpop.f32.mrb[6].mxu0  ;;  %v383_v33 = vadd.f32 %v382_v30, %v276_v21 }
  0xf7   : > { %v386_v32 = vpop.f32.mrb[7].mxu0  ;;  %v385_v38 = vadd.f32 %v384_v31, %v272_v19  ;;  %v466_v19 = vadd.f32 %v798_v8, %v465_v18 }
  0xf8   : > { %v387_v34 = vadd.f32 %v386_v32, %v276_v21  ;;  %v935_v21 = vmov 65535  }
  0xf9   : > { %v610_v20 = vpack.c.bf16 %v466_v19, %v463_v16  ;;  %v620_v22 = vsel %vm618_vm3, 4294967295, %v935_v21 }
  0xfa   : > { %v876_v35 = vpack.c.bf16 %v387_v34, %v383_v33  ;;  %v621_v23 = vsel %vm619_vm4, %v620_v22, 0 }
  0xfb   : > { %864 = vmatprep.subr.bf16.mxu1 %v610_v20  ;;  %v623_v24 = vand.u32 %v621_v23, %v611_v17 }
  0xfc   : > { %877 = vmatprep.subr.bf16.mxu0 %v876_v35  ;;  %865 = vmatpush3.bf16.msra.mxu1 %v610_v20 }
  0xfd   : > { %879 = vmatpush3.bf16.xpose.msra.mxu0 %v876_v35  ;;  %866 = vmatprep.subr.bf16.mxu1 %v623_v24 }
 0x100   : > { %867 = vmatpush3.bf16.msra.mxu1 %v623_v24 }
 0x104   : > { %859 = vmatmul.mubr.f32.vlgmr.msra.gmra.mrb[8].mxu0 %v375_v36 }
 0x105   : > { %861 = vmatprep.mubr.f32.mxu0 %v381_v37 }
 0x108   : > { %862 = vmatmul.mubr.f32.gmra.mrb[10].mxu0 %v385_v38 }
 0x1d7   : > { %v860_v43 = vpop.f32.mrb[8].mxu0 }
 0x1d8   : > { %v543_v44 = vpop.f32.mrb[9].mxu0  ;;  %v566_v48 = vsel %vm562_vm1, %v860_v43, -inf }
 0x1d9   : > { %v563_v45 = vsel %vm562_vm1, %v543_v44, -inf }
 0x1da   : > { %564 = vmax.xlane.f32.xlu0 %v563_v45 }
 0x1db   : > { %v863_v46 = vpop.f32.mrb[10].mxu0 }
 0x1dc   : > { %v553_v47 = vpop.f32.mrb[11].mxu0  ;;  %v573_v50 = vsel %vm572_vm2, %v863_v46, -inf }
 0x1dd   : > { %v569_v49 = vsel %vm562_vm1, %v553_v47, -inf }
 0x1de   : > { %567 = vmax.xlane.f32.xlu0 %v566_v48  ;;  %570 = vmax.xlane.f32.xlu1 %v569_v49  ;;  %v689_v49 = vunpack.c.h.bf16 %v1011_v9 }
 0x1e2   : > { %574 = vmax.xlane.f32.xlu1 %v573_v50 }
 0x267   : > { %v565_v51 = vpop.xlane.xlu0 %564 }
 0x268   : > { %v576_v52 = vsub.f32 %v543_v44, %v565_v51 }
 0x26a   : > { %v580_v53 = vmul.f32 1.442695, %v576_v52 }
 0x26b   : > { %v568_v54 = vpop.xlane.xlu0 %567  ;;  %v571_v55 = vpop.xlane.xlu1 %570 }
 0x26c   : > { %910 = vpow2.f32 %v580_v53  ;;  %v577_v56 = vsub.f32 %v860_v43, %v568_v54  ;;  %v578_v57 = vsub.f32 %v553_v47, %v571_v55  ;;  %v688_v43 = vunpack.c.l.bf16 %v1011_v9 }
 0x26e   : > { %v582_v58 = vmul.f32 1.442695, %v577_v56  ;;  %v584_v59 = vmul.f32 1.442695, %v578_v57  ;;  %v719_v56 = vld [vmem:[%s253_s12 + $0xc] sm:$0x1] }
 0x26f   : > { %v575_v60 = vpop.xlane.xlu1 %574 }
 0x270   : > { %912 = vpow2.f32 %v582_v58  ;;  %v579_v61 = vsub.f32 %v863_v46, %v575_v60  ;;  %v691_v46 = vunpack.c.l.bf16 %v1022_v12 }
 0x271   : > { %914 = vpow2.f32 %v584_v59 }
 0x272   : > { %v586_v62 = vmul.f32 1.442695, %v579_v61 }
 0x274   : > { %916 = vpow2.f32 %v586_v62 }
 0x276   : > { %v911_v63 = vpop.eup %910 }
 0x277   : > { %v588_v0 = vsel %vm562_vm1, %v911_v63, 0.0 }
 0x278   : > { %589 = vadd.xlane.f32.xlu0 %v588_v0 }
 0x27a   : > { %v913_v1 = vpop.eup %912 }
 0x27b   : > { %v915_v2 = vpop.eup %914  ;;  %v591_v3 = vsel %vm562_vm1, %v913_v1, 0.0 }
 0x27c   : > { %592 = vadd.xlane.f32.xlu1 %v591_v3  ;;  %v594_v4 = vsel %vm562_vm1, %v915_v2, 0.0 }
 0x27d   : > { %595 = vadd.xlane.f32.xlu0 %v594_v4 }
 0x27e   : > { %v917_v5 = vpop.eup %916 }
 0x27f   : > { %v597_v6 = vsel %vm572_vm2, %v917_v5, 0.0 }
 0x280   : > { %598 = vadd.xlane.f32.xlu1 %v597_v6 }
 0x293   : > { %681 = vperm.xlu0 %890, %v807_v25  }
 0x305   : > { %v590_v26 = vpop.xlane.xlu0 %589 }
 0x306   : > { %918 = vrcp.f32 %v590_v26 }
 0x309   : > { %v593_v27 = vpop.xlane.xlu1 %592 }
 0x30a   : > { %v596_v28 = vpop.xlane.xlu0 %595  ;;  %920 = vrcp.f32 %v593_v27 }
 0x30b   : > { %922 = vrcp.f32 %v596_v28 }
 0x30d   : > { %v599_v29 = vpop.xlane.xlu1 %598 }
 0x30e   : > { %924 = vrcp.f32 %v599_v29 }
 0x310   : > { %v919_v30 = vpop.eup %918 }
 0x311   : > { %v604_v32 = vmul.f32 %v919_v30, %v911_v63 }
 0x312   : > { %v682_v40 = vpop.permute.xlu0 %681 }
 0x314   : > { %v921_v31 = vpop.eup %920 }
 0x315   : > { %v605_v33 = vmul.f32 %v921_v31, %v913_v1  ;;  %v923_v34 = vpop.eup %922 }
 0x316   : > { %v606_v37 = vmul.f32 %v923_v34, %v915_v2 }
 0x317   : > { %v608_v35 = vpack.c.bf16 %v605_v33, %v604_v32 }
 0x318   : > { %v925_v36 = vpop.eup %924 }
 0x319   : > { %v607_v38 = vmul.f32 %v925_v36, %v917_v5  ;;  %868 = vmatprep.mubr.msk.bf16.mxu1 %vm562_vm1, %v608_v35 }
 0x31b   : > { %v609_v39 = vpack.c.bf16 %v607_v38, %v606_v37 }
 0x31d   : > { %869 = vmatmul.mubr.msk.bf16.vlgmr.msra.gmra.mrb[4].mxu1 %vm562_vm1, %v609_v39 }
 0x3f0   : > { %v870_v42 = vpop.f32.mrb[4].mxu1 }
 0x3f1   : > { %v686_v44 = vmul.f32 %v870_v42, %v682_v40  ;;  %v659_v45 = vpop.f32.mrb[5].mxu1 }
 0x3f2   : > { %v684_v47 = vmul.f32 %v682_v40, %v659_v45  ;;  %v871_v48 = vpop.f32.mrb[6].mxu1 }
 0x3f3   : > { %v694_v50 = vadd.f32 %v690_v41, %v686_v44  ;;  %v687_v51 = vmul.f32 %v871_v48, %v682_v40  ;;  %v662_v11 = vpop.f32.mrb[7].mxu1 }
 0x3f4   : > { %v692_v52 = vadd.f32 %v688_v43, %v684_v47  ;;  %v685_v53 = vmul.f32 %v682_v40, %v662_v11 }
 0x3f5   : > { %v818_v54 = vpack.c.bf16 %v694_v50, %v694_v50  ;;  %v695_v55 = vadd.f32 %v691_v46, %v687_v51 }
 0x3f6   : > { %v816_v12 = vpack.c.bf16 %v692_v52, %v692_v52  ;;  %v693_v57 = vadd.f32 %v689_v49, %v685_v53 }
 0x3f7   : > { %715 = vst.msk [vmem:[%s253_s12 + $0x8] sm:$0xf] %vm712_vm7, %v818_v54  ;;  %v819_v9 = vpack.c.bf16 %v695_v55, %v695_v55 }
 0x3f8   : > { %713 = vst.msk [vmem:[%s253_s12] sm:$0xf] %vm712_vm7, %v816_v12  ;;  %v817_v58 = vpack.c.bf16 %v693_v57, %v693_v57 }
 0x3f9   : > { %v720_v59 = vsel %vm718_vm8, %v819_v9, %v719_v56 }
 0x3fa   : > { %721 = vst [vmem:[%s253_s12 + $0xc] sm:$0x1] %v720_v59  ;;  %714 = vst.msk [vmem:[%s253_s12 + $0x4] sm:$0xf] %vm712_vm7, %v817_v58 }
 0x3fb PF: > { %s18_s23 = sadd.s32 1, %s932_s23  }
 0x3fc   : > { %p15_p4 = scmp.ge.s32.totalorder %s18_s23, 4  }
 0x3fe   :  { %17 = sbr.rel (!%p15_p4) target bundleno = 3 (0x3), region = 74 }

// kernel: _lambda_.31
= control target key start
LH: loop header
LB: loop body
LE: loop exit
PB: predicated region body
PF: predicated region fallthrough
CT: control target
= control target key end

     0   :  { %s1301_s1 = inlined_call_operand.vmem [shape: bf16[640,128], index: 1, kind: input, shape index: {}]   ;;  %s1302_s0 = inlined_call_operand.vmem [shape: bf16[64,640], index: 0, kind: input, shape index: {}]   ;;  %s1303_s2 = inlined_call_operand.vmem [shape: f32[1,128], index: 2, kind: input, shape index: {}]   ;;  %s1304_s3 = inlined_call_operand.vmem [shape: bf16[64,128], index: 3, kind: input, shape index: {}]   ;;  %s1305_s4 = inlined_call_operand.vmem [shape: bf16[64,128], index: 4, kind: output, shape index: {}]  }
   0x1   :  { %v995_v0 = vld [vmem:[%s1301_s1 + $0x40] sm:$0xff]   ;;  %v999_v4 = vld [vmem:[%s1301_s1 + $0x48] sm:$0xff]   ;;  %v1003_v8 = vld [vmem:[%s1301_s1 + $0x50] sm:$0xff]  }
   0x2   :  { %v996_v1 = vld [vmem:[%s1301_s1 + $0xc0] sm:$0xff]   ;;  %863 = vmatprep.subr.bf16.mxu0 %v995_v0  ;;  %v1000_v5 = vld [vmem:[%s1301_s1 + $0xc8] sm:$0xff]   ;;  %v1004_v9 = vld [vmem:[%s1301_s1 + $0xd0] sm:$0xff]  }
   0x3   :  { %v997_v2 = vld [vmem:[%s1301_s1] sm:$0xff]   ;;  %903 = vmatprep.subr.bf16.mxu1 %v996_v1  ;;  %v1001_v6 = vld [vmem:[%s1301_s1 + $0x8] sm:$0xff]   ;;  %v1005_v10 = vld [vmem:[%s1301_s1 + $0x10] sm:$0xff]  }
   0x4   :  { %v998_v3 = vld [vmem:[%s1301_s1 + $0x80] sm:$0xff]   ;;  %864 = vmatpush3.bf16.msra.mxu0 %v997_v2  ;;  %v1002_v7 = vld [vmem:[%s1301_s1 + $0x88] sm:$0xff]   ;;  %v1006_v11 = vld [vmem:[%s1301_s1 + $0x90] sm:$0xff]  }
   0x5   :  { %904 = vmatpush3.bf16.msra.mxu1 %v998_v3  ;;  %865 = vmatprep.subr.bf16.mxu0 %v999_v4  ;;  %v1007_v12 = vld [vmem:[%s1301_s1 + $0x58] sm:$0xff]   ;;  %v1011_v16 = vld [vmem:[%s1301_s1 + $0x60] sm:$0xff]   ;;  %v1015_v20 = vld [vmem:[%s1301_s1 + $0x68] sm:$0xff]  }
   0x6   :  { %905 = vmatprep.subr.bf16.mxu1 %v1000_v5  ;;  %v1008_v13 = vld [vmem:[%s1301_s1 + $0xd8] sm:$0xff]   ;;  %v1012_v17 = vld [vmem:[%s1301_s1 + $0xe0] sm:$0xff]   ;;  %v1016_v21 = vld [vmem:[%s1301_s1 + $0xe8] sm:$0xff]  }
   0x7   :  { %v1009_v14 = vld [vmem:[%s1301_s1 + $0x18] sm:$0xff]   ;;  %v1013_v18 = vld [vmem:[%s1301_s1 + $0x20] sm:$0xff]   ;;  %v1017_v22 = vld [vmem:[%s1301_s1 + $0x28] sm:$0xff]  }
   0x8   :  { %866 = vmatpush3.bf16.msra.mxu0 %v1001_v6  ;;  %v1010_v15 = vld [vmem:[%s1301_s1 + $0x98] sm:$0xff]   ;;  %v1014_v19 = vld [vmem:[%s1301_s1 + $0xa0] sm:$0xff]   ;;  %v1018_v23 = vld [vmem:[%s1301_s1 + $0xa8] sm:$0xff]  }
   0x9   :  { %906 = vmatpush3.bf16.msra.mxu1 %v1002_v7  ;;  %867 = vmatprep.subr.bf16.mxu0 %v1003_v8  ;;  %v1019_v24 = vld [vmem:[%s1301_s1 + $0x70] sm:$0xff]   ;;  %v1023_v28 = vld [vmem:[%s1301_s1 + $0x78] sm:$0xff]   ;;  %v1032_v35 = vld [vmem:[%s1302_s0 + $0xc] ss:$20 sps:$4 sm:$0xff]  }
   0xa   :  { %907 = vmatprep.subr.bf16.mxu1 %v1004_v9  ;;  %v1020_v25 = vld [vmem:[%s1301_s1 + $0xf0] sm:$0xff]   ;;  %v1024_v29 = vld [vmem:[%s1301_s1 + $0xf8] sm:$0xff]   ;;  %v1033_v36 = vld [vmem:[%s1301_s1 + $0x100] sm:$0xff]   ;;  %570 = vmatprep.mubr.bf16.mxu1 %v1032_v35 }
   0xb   :  { %v1021_v26 = vld [vmem:[%s1301_s1 + $0x30] sm:$0xff]   ;;  %v1025_v30 = vld [vmem:[%s1301_s1 + $0x38] sm:$0xff]   ;;  %v1034_v37 = vld [vmem:[%s1301_s1 + $0x108] sm:$0xff]  }
   0xc   :  { %868 = vmatpush3.bf16.msra.mxu0 %v1005_v10  ;;  %v1022_v27 = vld [vmem:[%s1301_s1 + $0xb0] sm:$0xff]   ;;  %v1026_v31 = vld [vmem:[%s1301_s1 + $0xb8] sm:$0xff]   ;;  %v1035_v38 = vld [vmem:[%s1302_s0 + $0x2c] ss:$20 sps:$4 sm:$0xff]  }
   0xd   :  { %908 = vmatpush3.bf16.msra.mxu1 %v1006_v11  ;;  %869 = vmatprep.subr.bf16.mxu0 %v1007_v12  ;;  %v1027_v32 = vld [vmem:[%s1302_s0] ss:$20 sps:$4 sm:$0xff]   ;;  %v1029_v33 = vld [vmem:[%s1302_s0 + $0x4] ss:$20 sps:$4 sm:$0xff]   ;;  %v1030_v34 = vld [vmem:[%s1302_s0 + $0x8] ss:$20 sps:$4 sm:$0xff]  }
   0xe   :  { %909 = vmatprep.subr.bf16.mxu1 %v1008_v13  ;;  %505 = vmatprep.mubr.bf16.mxu0 %v1029_v33  ;;  %v1037_v39 = vld [vmem:[%s1302_s0 + $0x34] ss:$20 sps:$4 sm:$0xff]   ;;  %v1040_v42 = vld [vmem:[%s1302_s0 + $0x30] ss:$20 sps:$4 sm:$0xff]   ;;  %v1042_v44 = vld [vmem:[%s1301_s1 + $0x118] sm:$0xff]  }
   0xf   :  { %v1039_v40 = vld [vmem:[%s1302_s0 + $0x28] ss:$20 sps:$4 sm:$0xff]   ;;  %v1041_v41 = vld [vmem:[%s1301_s1 + $0x110] sm:$0xff]   ;;  %v1049_v46 = vld [vmem:[%s1301_s1 + $0x120] sm:$0xff]  }
  0x10   :  { %870 = vmatpush3.bf16.msra.mxu0 %v1009_v14  ;;  %v1043_v43 = vld [vmem:[%s1302_s0 + $0x54] ss:$20 sps:$4 sm:$0xff]   ;;  %v1045_v45 = vld [vmem:[%s1302_s0 + $0x5c] ss:$20 sps:$4 sm:$0xff]   ;;  %v1048_v48 = vld [vmem:[%s1302_s0 + $0x58] ss:$20 sps:$4 sm:$0xff]  }
  0x11   :  { %910 = vmatpush3.bf16.msra.mxu1 %v1010_v15  ;;  %871 = vmatprep.subr.bf16.mxu0 %v1011_v16  ;;  %v1047_v47 = vld [vmem:[%s1302_s0 + $0x50] ss:$20 sps:$4 sm:$0xff]   ;;  %v1050_v51 = vld [vmem:[%s1301_s1 + $0x128] sm:$0xff]   ;;  %v1056_v54 = vld [vmem:[%s1302_s0 + $0x80] ss:$20 sps:$4 sm:$0xff]  }
  0x12   :  { %911 = vmatprep.subr.bf16.mxu1 %v1012_v17  ;;  %v1051_v49 = vld [vmem:[%s1302_s0 + $0x7c] ss:$20 sps:$4 sm:$0xff]   ;;  %v1053_v50 = vld [vmem:[%s1302_s0 + $0x84] ss:$20 sps:$4 sm:$0xff]   ;;  %v1060_v56 = vld [vmem:[%s1302_s0 + $0x60] ss:$20 sps:$4 sm:$0xff]  }
  0x13   :  { %v1057_v52 = vld [vmem:[%s1301_s1 + $0x130] sm:$0xff]   ;;  %v1055_v53 = vld [vmem:[%s1302_s0 + $0x78] ss:$20 sps:$4 sm:$0xff]   ;;  %v1062_v59 = vld [vmem:[%s1302_s0 + $0x88] ss:$20 sps:$4 sm:$0xff]  }
  0x14   :  { %872 = vmatpush3.bf16.msra.mxu0 %v1013_v18  ;;  %v1059_v55 = vld [vmem:[%s1302_s0 + $0x10] ss:$20 sps:$4 sm:$0xff]   ;;  %v1058_v57 = vld [vmem:[%s1301_s1 + $0x138] sm:$0xff]   ;;  %v744_v62 = vld [vmem:[%s1303_s2] ss:$0 sm:$0xff] }
  0x15   :  { %912 = vmatpush3.bf16.msra.mxu1 %v1014_v19  ;;  %873 = vmatprep.subr.bf16.mxu0 %v1015_v20  ;;  %v1061_v58 = vld [vmem:[%s1302_s0 + $0x38] ss:$20 sps:$4 sm:$0xff]  }
  0x16   :  { %913 = vmatprep.subr.bf16.mxu1 %v1016_v21 }
  0x18   :  { %874 = vmatpush3.bf16.msra.mxu0 %v1017_v22 }
  0x19   :  { %914 = vmatpush3.bf16.msra.mxu1 %v1018_v23  ;;  %875 = vmatprep.subr.bf16.mxu0 %v1019_v24 }
  0x1a   :  { %915 = vmatprep.subr.bf16.mxu1 %v1020_v25 }
  0x1c   :  { %876 = vmatpush3.bf16.msra.mxu0 %v1021_v26 }
  0x1d   :  { %916 = vmatpush3.bf16.msra.mxu1 %v1022_v27  ;;  %877 = vmatprep.subr.bf16.mxu0 %v1023_v28 }
  0x1e   :  { %917 = vmatprep.subr.bf16.mxu1 %v1024_v29 }
  0x20   :  { %878 = vmatpush3.bf16.msra.mxu0 %v1025_v30 }
  0x21   :  { %918 = vmatpush3.bf16.msra.mxu1 %v1026_v31  ;;  %955 = vmatprep.subr.bf16.mxu0 %v1033_v36 }
  0x22   :  { %979 = vmatprep.subr.bf16.mxu1 %v1033_v36 }
  0x23   :  { %506 = vmatmul.mubr.bf16.vlgmr.msra.gmra.mrb[0].mxu0 %v1027_v32 }
  0x24   :  { %571 = vmatmul.mubr.bf16.vlgmr.msra.gmra.mrb[0].mxu1 %v1030_v34  ;;  %956 = vmatpush3.bf16.msra.mxu0 %v1033_v36 }
  0x25   :  { %987 = vmatpush3.bf16.msra.mxu1 %v1033_v36  ;;  %957 = vmatprep.subr.bf16.mxu0 %v1034_v37 }
  0x26   :  { %980 = vmatprep.subr.bf16.mxu1 %v1034_v37  ;;  %513 = vmatprep.mubr.bf16.mxu0 %v1035_v38 }
  0x27   :  { %578 = vmatprep.mubr.bf16.mxu1 %v1037_v39 }
  0x28   :  { %958 = vmatpush3.bf16.msra.mxu0 %v1034_v37 }
  0x29   :  { %988 = vmatpush3.bf16.msra.mxu1 %v1034_v37  ;;  %959 = vmatprep.subr.bf16.mxu0 %v1041_v41 }
  0x2a   :  { %981 = vmatprep.subr.bf16.mxu1 %v1041_v41 }
  0x2b   :  { %514 = vmatmul.mubr.bf16.gmra.mrb[4].mxu0 %v1039_v40 }
  0x2c   :  { %579 = vmatmul.mubr.bf16.gmra.mrb[4].mxu1 %v1040_v42  ;;  %521 = vmatprep.mubr.bf16.mxu0 %v1043_v43 }
  0x2d   :  { %960 = vmatpush3.bf16.msra.mxu0 %v1041_v41  ;;  %586 = vmatprep.mubr.bf16.mxu1 %v1045_v45 }
  0x2e   :  { %989 = vmatpush3.bf16.msra.mxu1 %v1041_v41  ;;  %961 = vmatprep.subr.bf16.mxu0 %v1042_v44 }
  0x2f   :  { %982 = vmatprep.subr.bf16.mxu1 %v1042_v44 }
  0x31   :  { %962 = vmatpush3.bf16.msra.mxu0 %v1042_v44 }
  0x32   :  { %990 = vmatpush3.bf16.msra.mxu1 %v1042_v44  ;;  %963 = vmatprep.subr.bf16.mxu0 %v1049_v46 }
  0x33   :  { %522 = vmatmul.mubr.bf16.gmra.mrb[8].mxu0 %v1047_v47  ;;  %983 = vmatprep.subr.bf16.mxu1 %v1049_v46 }
  0x34   :  { %587 = vmatmul.mubr.bf16.gmra.mrb[8].mxu1 %v1048_v48  ;;  %529 = vmatprep.mubr.bf16.mxu0 %v1051_v49 }
  0x35   :  { %964 = vmatpush3.bf16.msra.mxu0 %v1049_v46  ;;  %594 = vmatprep.mubr.bf16.mxu1 %v1053_v50 }
  0x36   :  { %991 = vmatpush3.bf16.msra.mxu1 %v1049_v46  ;;  %965 = vmatprep.subr.bf16.mxu0 %v1050_v51 }
  0x37   :  { %984 = vmatprep.subr.bf16.mxu1 %v1050_v51 }
  0x39   :  { %966 = vmatpush3.bf16.msra.mxu0 %v1050_v51 }
  0x3a   :  { %992 = vmatpush3.bf16.msra.mxu1 %v1050_v51  ;;  %967 = vmatprep.subr.bf16.mxu0 %v1057_v52 }
  0x3b   :  { %530 = vmatmul.mubr.bf16.gmra.mrb[12].mxu0 %v1055_v53  ;;  %985 = vmatprep.subr.bf16.mxu1 %v1057_v52 }
  0x3c   :  { %595 = vmatmul.mubr.bf16.gmra.mrb[12].mxu1 %v1056_v54  ;;  %971 = vmatprep.mubr.bf16.mxu0 %v1059_v55 }
  0x3d   :  { %968 = vmatpush3.bf16.msra.mxu0 %v1057_v52  ;;  %975 = vmatprep.mubr.bf16.mxu1 %v1060_v56 }
  0x3e   :  { %993 = vmatpush3.bf16.msra.mxu1 %v1057_v52  ;;  %969 = vmatprep.subr.bf16.mxu0 %v1058_v57 }
  0x3f   :  { %986 = vmatprep.subr.bf16.mxu1 %v1058_v57 }
  0x41   :  { %970 = vmatpush3.bf16.msra.mxu0 %v1058_v57 }
  0x42   :  { %994 = vmatpush3.bf16.msra.mxu1 %v1058_v57 }
  0x44   :  { %972 = vmatmul.mubr.bf16.vlgmr.msra.gmra.mrb[16].mxu0 %v1061_v58  ;;  %v857_v58 = vld [vmem:[%s1304_s3 + $0x8] sm:$0xff]  }
  0x45   :  { %976 = vmatmul.mubr.bf16.vlgmr.msra.gmra.mrb[16].mxu1 %v1062_v59 }
  0xf6   :  { %v879_v60 = vpop.f32.mrb[0].mxu0 }
  0xf7   :  { %v919_v61 = vpop.f32.mrb[0].mxu1  ;;  %v880_v63 = vpop.f32.mrb[1].mxu0 }
  0xf8   :  { %v881_v0 = vadd.f32 %v880_v63, %v879_v60  ;;  %v920_v1 = vpop.f32.mrb[1].mxu1  ;;  %v882_v2 = vpop.f32.mrb[2].mxu0  ;;  %v822_v63 = vld [vmem:[%s1304_s3] sm:$0xff]  }
  0xf9   :  { %v921_v3 = vadd.f32 %v920_v1, %v919_v61  ;;  %v922_v4 = vpop.f32.mrb[2].mxu1  ;;  %v883_v5 = vpop.f32.mrb[3].mxu0  ;;  %v859_v61 = vld [vmem:[%s1304_s3 + $0x18] sm:$0xff]   ;;  %v827_v1 = vunpack.c.l.bf16 %v857_v58 }
  0xfa   :  { %v508_v6 = vadd.f32 %v881_v0, %v744_v62  ;;  %v884_v7 = vadd.f32 %v883_v5, %v882_v2  ;;  %v923_v8 = vpop.f32.mrb[3].mxu1  ;;  %v858_v0 = vld [vmem:[%s1304_s3 + $0x10] sm:$0xff]   ;;  %v823_v5 = vunpack.c.l.bf16 %v822_v63 }
  0xfb   :  { %v924_v9 = vadd.f32 %v923_v8, %v922_v4  ;;  %v835_v4 = vunpack.c.l.bf16 %v859_v61  ;;  %v831_v8 = vunpack.c.l.bf16 %v858_v0 }
  0xfc   :  { %v511_v10 = vadd.f32 %v884_v7, %v744_v62  ;;  %v1271_v11 = vadd.f32 %v921_v3, %v508_v6 }
  0xfe   :  { %v885_v12 = vpop.f32.mrb[4].mxu0  ;;  %v1273_v13 = vadd.f32 %v924_v9, %v511_v10  ;;  %v828_v9 = vunpack.c.h.bf16 %v857_v58 }
  0xff   :  { %v925_v14 = vpop.f32.mrb[4].mxu1  ;;  %v886_v15 = vpop.f32.mrb[5].mxu0 }
 0x100   :  { %v887_v16 = vadd.f32 %v886_v15, %v885_v12  ;;  %v926_v17 = vpop.f32.mrb[5].mxu1  ;;  %v888_v18 = vpop.f32.mrb[6].mxu0 }
 0x101   :  { %v927_v19 = vadd.f32 %v926_v17, %v925_v14  ;;  %v928_v20 = vpop.f32.mrb[6].mxu1  ;;  %v889_v21 = vpop.f32.mrb[7].mxu0  ;;  %v824_v17 = vunpack.c.h.bf16 %v822_v63 }
 0x102   :  { %v516_v22 = vadd.f32 %v887_v16, %v744_v62  ;;  %v890_v23 = vadd.f32 %v889_v21, %v888_v18  ;;  %v929_v24 = vpop.f32.mrb[7].mxu1  ;;  %v836_v16 = vunpack.c.h.bf16 %v859_v61 }
 0x103   :  { %v930_v25 = vadd.f32 %v929_v24, %v928_v20 }
 0x104   :  { %v519_v26 = vadd.f32 %v890_v23, %v744_v62  ;;  %v581_v27 = vadd.f32 %v927_v19, %v516_v22  ;;  %v832_v23 = vunpack.c.h.bf16 %v858_v0 }
 0x106   :  { %v891_v28 = vpop.f32.mrb[8].mxu0  ;;  %v584_v29 = vadd.f32 %v930_v25, %v519_v26 }
 0x107   :  { %v931_v30 = vpop.f32.mrb[8].mxu1  ;;  %v892_v31 = vpop.f32.mrb[9].mxu0 }
 0x108   :  { %v893_v32 = vadd.f32 %v892_v31, %v891_v28  ;;  %v932_v33 = vpop.f32.mrb[9].mxu1  ;;  %v894_v34 = vpop.f32.mrb[10].mxu0 }
 0x109   :  { %v933_v35 = vadd.f32 %v932_v33, %v931_v30  ;;  %v934_v36 = vpop.f32.mrb[10].mxu1  ;;  %v895_v37 = vpop.f32.mrb[11].mxu0 }
 0x10a   :  { %v524_v38 = vadd.f32 %v893_v32, %v744_v62  ;;  %v896_v39 = vadd.f32 %v895_v37, %v894_v34  ;;  %v935_v40 = vpop.f32.mrb[11].mxu1 }
 0x10b   :  { %v936_v41 = vadd.f32 %v935_v40, %v934_v36 }
 0x10c   :  { %v527_v42 = vadd.f32 %v896_v39, %v744_v62  ;;  %v589_v43 = vadd.f32 %v933_v35, %v524_v38 }
 0x10e   :  { %v897_v44 = vpop.f32.mrb[12].mxu0  ;;  %v592_v45 = vadd.f32 %v936_v41, %v527_v42 }
 0x10f   :  { %v937_v46 = vpop.f32.mrb[12].mxu1  ;;  %v898_v47 = vpop.f32.mrb[13].mxu0 }
 0x110   :  { %v899_v48 = vadd.f32 %v898_v47, %v897_v44  ;;  %v938_v49 = vpop.f32.mrb[13].mxu1  ;;  %v900_v50 = vpop.f32.mrb[14].mxu0 }
 0x111   :  { %v939_v51 = vadd.f32 %v938_v49, %v937_v46  ;;  %v940_v52 = vpop.f32.mrb[14].mxu1  ;;  %v901_v53 = vpop.f32.mrb[15].mxu0 }
 0x112   :  { %v532_v54 = vadd.f32 %v899_v48, %v744_v62  ;;  %v902_v55 = vadd.f32 %v901_v53, %v900_v50  ;;  %v941_v56 = vpop.f32.mrb[15].mxu1 }
 0x113   :  { %v942_v57 = vadd.f32 %v941_v56, %v940_v52 }
 0x114   :  { %v535_v59 = vadd.f32 %v902_v55, %v744_v62  ;;  %v597_v60 = vadd.f32 %v939_v51, %v532_v54 }
 0x116   :  { %v600_v2 = vadd.f32 %v942_v57, %v535_v59 }
 0x117   :  { %v973_v3 = vpop.f32.mrb[16].mxu0 }
 0x118   :  { %v646_v6 = vadd.f32 %v973_v3, %v581_v27  ;;  %v977_v62 = vpop.f32.mrb[16].mxu1  ;;  %v637_v7 = vpop.f32.mrb[17].mxu0 }
 0x119   :  { %v662_v10 = vadd.f32 %v977_v62, %v597_v60  ;;  %v638_v12 = vadd.f32 %v637_v7, %v1271_v11  ;;  %v653_v14 = vpop.f32.mrb[17].mxu1  ;;  %v974_v15 = vpop.f32.mrb[18].mxu0 }
 0x11a   :  { %v686_v18 = vadd.f32 %v827_v1, %v646_v6  ;;  %v654_v19 = vadd.f32 %v653_v14, %v589_v43  ;;  %v649_v20 = vadd.f32 %v974_v15, %v584_v29  ;;  %v978_v21 = vpop.f32.mrb[18].mxu1  ;;  %v640_v22 = vpop.f32.mrb[19].mxu0 }
 0x11b   :  { %v690_v24 = vadd.f32 %v835_v4, %v662_v10  ;;  %v684_v25 = vadd.f32 %v823_v5, %v638_v12  ;;  %v665_v26 = vadd.f32 %v978_v21, %v600_v2  ;;  %v641_v27 = vadd.f32 %v640_v22, %v1273_v13  ;;  %v656_v28 = vpop.f32.mrb[19].mxu1 }
 0x11c   :  { %v688_v30 = vadd.f32 %v831_v8, %v654_v19  ;;  %v687_v31 = vadd.f32 %v828_v9, %v649_v20  ;;  %v657_v32 = vadd.f32 %v656_v28, %v592_v45  ;;  %v694_v34 = vmax.f32 %v686_v18, 0.0 }
 0x11d   :  { %v691_v11 = vadd.f32 %v836_v16, %v665_v26  ;;  %v685_v33 = vadd.f32 %v824_v17, %v641_v27  ;;  %v698_v37 = vmax.f32 %v690_v24, 0.0  ;;  %v692_v38 = vmax.f32 %v684_v25, 0.0 }
 0x11e   :  { %v695_v35 = vmax.f32 %v687_v31, 0.0  ;;  %v689_v36 = vadd.f32 %v832_v23, %v657_v32  ;;  %v696_v40 = vmax.f32 %v688_v30, 0.0 }
 0x11f   :  { %v699_v29 = vmax.f32 %v691_v11, 0.0  ;;  %v693_v39 = vmax.f32 %v685_v33, 0.0 }
 0x120   :  { %v845_v41 = vpack.c.bf16 %v695_v35, %v694_v34  ;;  %v697_v42 = vmax.f32 %v689_v36, 0.0 }
 0x121   :  { %v855_v43 = vpack.c.bf16 %v699_v29, %v698_v37  ;;  %v840_v44 = vpack.c.bf16 %v693_v39, %v692_v38 }
 0x122   :  { %860 = vst [vmem:[%s1305_s4 + $0x8] sm:$0xff] %v845_v41   ;;  %v850_v13 = vpack.c.bf16 %v697_v42, %v696_v40 }
 0x123   :  { %862 = vst [vmem:[%s1305_s4 + $0x18] sm:$0xff] %v855_v43   ;;  %841 = vst [vmem:[%s1305_s4] sm:$0xff] %v840_v44  }
 0x124   :  { %861 = vst [vmem:[%s1305_s4 + $0x10] sm:$0xff] %v850_v13  }

// kernel: _lambda_.32
= control target key start
LH: loop header
LB: loop body
LE: loop exit
PB: predicated region body
PF: predicated region fallthrough
CT: control target
= control target key end

     0   :  { %s1232_s1 = inlined_call_operand.vmem [shape: bf16[640,128], index: 1, kind: input, shape index: {}]   ;;  %s1233_s0 = inlined_call_operand.vmem [shape: bf16[64,640], index: 0, kind: input, shape index: {}]   ;;  %s1234_s2 = inlined_call_operand.vmem [shape: f32[1,128], index: 2, kind: input, shape index: {}]   ;;  %s1235_s3 = inlined_call_operand.vmem [shape: bf16[64,128], index: 3, kind: output, shape index: {}]  }
   0x1   :  { %v949_v0 = vld [vmem:[%s1232_s1 + $0x40] sm:$0xff]   ;;  %v953_v4 = vld [vmem:[%s1232_s1 + $0x48] sm:$0xff]   ;;  %v957_v8 = vld [vmem:[%s1232_s1 + $0x50] sm:$0xff]  }
   0x2   :  { %v950_v1 = vld [vmem:[%s1232_s1 + $0xc0] sm:$0xff]   ;;  %817 = vmatprep.subr.bf16.mxu0 %v949_v0  ;;  %v954_v5 = vld [vmem:[%s1232_s1 + $0xc8] sm:$0xff]   ;;  %v958_v9 = vld [vmem:[%s1232_s1 + $0xd0] sm:$0xff]  }
   0x3   :  { %v951_v2 = vld [vmem:[%s1232_s1] sm:$0xff]   ;;  %857 = vmatprep.subr.bf16.mxu1 %v950_v1  ;;  %v955_v6 = vld [vmem:[%s1232_s1 + $0x8] sm:$0xff]   ;;  %v959_v10 = vld [vmem:[%s1232_s1 + $0x10] sm:$0xff]  }
   0x4   :  { %v952_v3 = vld [vmem:[%s1232_s1 + $0x80] sm:$0xff]   ;;  %818 = vmatpush3.bf16.msra.mxu0 %v951_v2  ;;  %v956_v7 = vld [vmem:[%s1232_s1 + $0x88] sm:$0xff]   ;;  %v960_v11 = vld [vmem:[%s1232_s1 + $0x90] sm:$0xff]  }
   0x5   :  { %858 = vmatpush3.bf16.msra.mxu1 %v952_v3  ;;  %819 = vmatprep.subr.bf16.mxu0 %v953_v4  ;;  %v961_v12 = vld [vmem:[%s1232_s1 + $0x58] sm:$0xff]   ;;  %v965_v16 = vld [vmem:[%s1232_s1 + $0x60] sm:$0xff]   ;;  %v969_v20 = vld [vmem:[%s1232_s1 + $0x68] sm:$0xff]  }
   0x6   :  { %859 = vmatprep.subr.bf16.mxu1 %v954_v5  ;;  %v962_v13 = vld [vmem:[%s1232_s1 + $0xd8] sm:$0xff]   ;;  %v966_v17 = vld [vmem:[%s1232_s1 + $0xe0] sm:$0xff]   ;;  %v970_v21 = vld [vmem:[%s1232_s1 + $0xe8] sm:$0xff]  }
   0x7   :  { %v963_v14 = vld [vmem:[%s1232_s1 + $0x18] sm:$0xff]   ;;  %v967_v18 = vld [vmem:[%s1232_s1 + $0x20] sm:$0xff]   ;;  %v971_v22 = vld [vmem:[%s1232_s1 + $0x28] sm:$0xff]  }
   0x8   :  { %820 = vmatpush3.bf16.msra.mxu0 %v955_v6  ;;  %v964_v15 = vld [vmem:[%s1232_s1 + $0x98] sm:$0xff]   ;;  %v968_v19 = vld [vmem:[%s1232_s1 + $0xa0] sm:$0xff]   ;;  %v972_v23 = vld [vmem:[%s1232_s1 + $0xa8] sm:$0xff]  }
   0x9   :  { %860 = vmatpush3.bf16.msra.mxu1 %v956_v7  ;;  %821 = vmatprep.subr.bf16.mxu0 %v957_v8  ;;  %v973_v24 = vld [vmem:[%s1232_s1 + $0x70] sm:$0xff]   ;;  %v977_v28 = vld [vmem:[%s1232_s1 + $0x78] sm:$0xff]   ;;  %v986_v35 = vld [vmem:[%s1233_s0 + $0xc] ss:$20 sps:$4 sm:$0xff]  }
   0xa   :  { %861 = vmatprep.subr.bf16.mxu1 %v958_v9  ;;  %v974_v25 = vld [vmem:[%s1232_s1 + $0xf0] sm:$0xff]   ;;  %v978_v29 = vld [vmem:[%s1232_s1 + $0xf8] sm:$0xff]   ;;  %v987_v36 = vld [vmem:[%s1232_s1 + $0x100] sm:$0xff]   ;;  %567 = vmatprep.mubr.bf16.mxu1 %v986_v35 }
   0xb   :  { %v975_v26 = vld [vmem:[%s1232_s1 + $0x30] sm:$0xff]   ;;  %v979_v30 = vld [vmem:[%s1232_s1 + $0x38] sm:$0xff]   ;;  %v988_v37 = vld [vmem:[%s1232_s1 + $0x108] sm:$0xff]  }
   0xc   :  { %822 = vmatpush3.bf16.msra.mxu0 %v959_v10  ;;  %v976_v27 = vld [vmem:[%s1232_s1 + $0xb0] sm:$0xff]   ;;  %v980_v31 = vld [vmem:[%s1232_s1 + $0xb8] sm:$0xff]   ;;  %v989_v38 = vld [vmem:[%s1233_s0 + $0x2c] ss:$20 sps:$4 sm:$0xff]  }
   0xd   :  { %862 = vmatpush3.bf16.msra.mxu1 %v960_v11  ;;  %823 = vmatprep.subr.bf16.mxu0 %v961_v12  ;;  %v981_v32 = vld [vmem:[%s1233_s0] ss:$20 sps:$4 sm:$0xff]   ;;  %v983_v33 = vld [vmem:[%s1233_s0 + $0x4] ss:$20 sps:$4 sm:$0xff]   ;;  %v984_v34 = vld [vmem:[%s1233_s0 + $0x8] ss:$20 sps:$4 sm:$0xff]  }
   0xe   :  { %863 = vmatprep.subr.bf16.mxu1 %v962_v13  ;;  %502 = vmatprep.mubr.bf16.mxu0 %v983_v33  ;;  %v991_v39 = vld [vmem:[%s1233_s0 + $0x34] ss:$20 sps:$4 sm:$0xff]   ;;  %v994_v42 = vld [vmem:[%s1233_s0 + $0x30] ss:$20 sps:$4 sm:$0xff]   ;;  %v996_v44 = vld [vmem:[%s1232_s1 + $0x118] sm:$0xff]  }
   0xf   :  { %v993_v40 = vld [vmem:[%s1233_s0 + $0x28] ss:$20 sps:$4 sm:$0xff]   ;;  %v995_v41 = vld [vmem:[%s1232_s1 + $0x110] sm:$0xff]   ;;  %v1003_v46 = vld [vmem:[%s1232_s1 + $0x120] sm:$0xff]  }
  0x10   :  { %824 = vmatpush3.bf16.msra.mxu0 %v963_v14  ;;  %v997_v43 = vld [vmem:[%s1233_s0 + $0x54] ss:$20 sps:$4 sm:$0xff]   ;;  %v999_v45 = vld [vmem:[%s1233_s0 + $0x5c] ss:$20 sps:$4 sm:$0xff]   ;;  %v1002_v48 = vld [vmem:[%s1233_s0 + $0x58] ss:$20 sps:$4 sm:$0xff]  }
  0x11   :  { %864 = vmatpush3.bf16.msra.mxu1 %v964_v15  ;;  %825 = vmatprep.subr.bf16.mxu0 %v965_v16  ;;  %v1001_v47 = vld [vmem:[%s1233_s0 + $0x50] ss:$20 sps:$4 sm:$0xff]   ;;  %v1004_v51 = vld [vmem:[%s1232_s1 + $0x128] sm:$0xff]   ;;  %v1010_v54 = vld [vmem:[%s1233_s0 + $0x80] ss:$20 sps:$4 sm:$0xff]  }
  0x12   :  { %865 = vmatprep.subr.bf16.mxu1 %v966_v17  ;;  %v1005_v49 = vld [vmem:[%s1233_s0 + $0x7c] ss:$20 sps:$4 sm:$0xff]   ;;  %v1007_v50 = vld [vmem:[%s1233_s0 + $0x84] ss:$20 sps:$4 sm:$0xff]   ;;  %v1014_v56 = vld [vmem:[%s1233_s0 + $0x60] ss:$20 sps:$4 sm:$0xff]  }
  0x13   :  { %v1011_v52 = vld [vmem:[%s1232_s1 + $0x130] sm:$0xff]   ;;  %v1009_v53 = vld [vmem:[%s1233_s0 + $0x78] ss:$20 sps:$4 sm:$0xff]   ;;  %v1016_v59 = vld [vmem:[%s1233_s0 + $0x88] ss:$20 sps:$4 sm:$0xff]  }
  0x14   :  { %826 = vmatpush3.bf16.msra.mxu0 %v967_v18  ;;  %v1013_v55 = vld [vmem:[%s1233_s0 + $0x10] ss:$20 sps:$4 sm:$0xff]   ;;  %v1012_v57 = vld [vmem:[%s1232_s1 + $0x138] sm:$0xff]   ;;  %v717_v62 = vld [vmem:[%s1234_s2] ss:$0 sm:$0xff] }
  0x15   :  { %866 = vmatpush3.bf16.msra.mxu1 %v968_v19  ;;  %827 = vmatprep.subr.bf16.mxu0 %v969_v20  ;;  %v1015_v58 = vld [vmem:[%s1233_s0 + $0x38] ss:$20 sps:$4 sm:$0xff]  }
  0x16   :  { %867 = vmatprep.subr.bf16.mxu1 %v970_v21 }
  0x18   :  { %828 = vmatpush3.bf16.msra.mxu0 %v971_v22 }
  0x19   :  { %868 = vmatpush3.bf16.msra.mxu1 %v972_v23  ;;  %829 = vmatprep.subr.bf16.mxu0 %v973_v24 }
  0x1a   :  { %869 = vmatprep.subr.bf16.mxu1 %v974_v25 }
  0x1c   :  { %830 = vmatpush3.bf16.msra.mxu0 %v975_v26 }
  0x1d   :  { %870 = vmatpush3.bf16.msra.mxu1 %v976_v27  ;;  %831 = vmatprep.subr.bf16.mxu0 %v977_v28 }
  0x1e   :  { %871 = vmatprep.subr.bf16.mxu1 %v978_v29 }
  0x20   :  { %832 = vmatpush3.bf16.msra.mxu0 %v979_v30 }
  0x21   :  { %872 = vmatpush3.bf16.msra.mxu1 %v980_v31  ;;  %909 = vmatprep.subr.bf16.mxu0 %v987_v36 }
  0x22   :  { %933 = vmatprep.subr.bf16.mxu1 %v987_v36 }
  0x23   :  { %503 = vmatmul.mubr.bf16.vlgmr.msra.gmra.mrb[0].mxu0 %v981_v32 }
  0x24   :  { %568 = vmatmul.mubr.bf16.vlgmr.msra.gmra.mrb[0].mxu1 %v984_v34  ;;  %910 = vmatpush3.bf16.msra.mxu0 %v987_v36 }
  0x25   :  { %941 = vmatpush3.bf16.msra.mxu1 %v987_v36  ;;  %911 = vmatprep.subr.bf16.mxu0 %v988_v37 }
  0x26   :  { %934 = vmatprep.subr.bf16.mxu1 %v988_v37  ;;  %510 = vmatprep.mubr.bf16.mxu0 %v989_v38 }
  0x27   :  { %575 = vmatprep.mubr.bf16.mxu1 %v991_v39 }
  0x28   :  { %912 = vmatpush3.bf16.msra.mxu0 %v988_v37 }
  0x29   :  { %942 = vmatpush3.bf16.msra.mxu1 %v988_v37  ;;  %913 = vmatprep.subr.bf16.mxu0 %v995_v41 }
  0x2a   :  { %935 = vmatprep.subr.bf16.mxu1 %v995_v41 }
  0x2b   :  { %511 = vmatmul.mubr.bf16.gmra.mrb[4].mxu0 %v993_v40 }
  0x2c   :  { %576 = vmatmul.mubr.bf16.gmra.mrb[4].mxu1 %v994_v42  ;;  %518 = vmatprep.mubr.bf16.mxu0 %v997_v43 }
  0x2d   :  { %914 = vmatpush3.bf16.msra.mxu0 %v995_v41  ;;  %583 = vmatprep.mubr.bf16.mxu1 %v999_v45 }
  0x2e   :  { %943 = vmatpush3.bf16.msra.mxu1 %v995_v41  ;;  %915 = vmatprep.subr.bf16.mxu0 %v996_v44 }
  0x2f   :  { %936 = vmatprep.subr.bf16.mxu1 %v996_v44 }
  0x31   :  { %916 = vmatpush3.bf16.msra.mxu0 %v996_v44 }
  0x32   :  { %944 = vmatpush3.bf16.msra.mxu1 %v996_v44  ;;  %917 = vmatprep.subr.bf16.mxu0 %v1003_v46 }
  0x33   :  { %519 = vmatmul.mubr.bf16.gmra.mrb[8].mxu0 %v1001_v47  ;;  %937 = vmatprep.subr.bf16.mxu1 %v1003_v46 }
  0x34   :  { %584 = vmatmul.mubr.bf16.gmra.mrb[8].mxu1 %v1002_v48  ;;  %526 = vmatprep.mubr.bf16.mxu0 %v1005_v49 }
  0x35   :  { %918 = vmatpush3.bf16.msra.mxu0 %v1003_v46  ;;  %591 = vmatprep.mubr.bf16.mxu1 %v1007_v50 }
  0x36   :  { %945 = vmatpush3.bf16.msra.mxu1 %v1003_v46  ;;  %919 = vmatprep.subr.bf16.mxu0 %v1004_v51 }
  0x37   :  { %938 = vmatprep.subr.bf16.mxu1 %v1004_v51 }
  0x39   :  { %920 = vmatpush3.bf16.msra.mxu0 %v1004_v51 }
  0x3a   :  { %946 = vmatpush3.bf16.msra.mxu1 %v1004_v51  ;;  %921 = vmatprep.subr.bf16.mxu0 %v1011_v52 }
  0x3b   :  { %527 = vmatmul.mubr.bf16.gmra.mrb[12].mxu0 %v1009_v53  ;;  %939 = vmatprep.subr.bf16.mxu1 %v1011_v52 }
  0x3c   :  { %592 = vmatmul.mubr.bf16.gmra.mrb[12].mxu1 %v1010_v54  ;;  %925 = vmatprep.mubr.bf16.mxu0 %v1013_v55 }
  0x3d   :  { %922 = vmatpush3.bf16.msra.mxu0 %v1011_v52  ;;  %929 = vmatprep.mubr.bf16.mxu1 %v1014_v56 }
  0x3e   :  { %947 = vmatpush3.bf16.msra.mxu1 %v1011_v52  ;;  %923 = vmatprep.subr.bf16.mxu0 %v1012_v57 }
  0x3f   :  { %940 = vmatprep.subr.bf16.mxu1 %v1012_v57 }
  0x41   :  { %924 = vmatpush3.bf16.msra.mxu0 %v1012_v57 }
  0x42   :  { %948 = vmatpush3.bf16.msra.mxu1 %v1012_v57 }
  0x44   :  { %926 = vmatmul.mubr.bf16.vlgmr.msra.gmra.mrb[16].mxu0 %v1015_v58 }
  0x45   :  { %930 = vmatmul.mubr.bf16.vlgmr.msra.gmra.mrb[16].mxu1 %v1016_v59 }
  0xf6   :  { %v833_v60 = vpop.f32.mrb[0].mxu0 }
  0xf7   :  { %v873_v61 = vpop.f32.mrb[0].mxu1  ;;  %v834_v63 = vpop.f32.mrb[1].mxu0 }
  0xf8   :  { %v835_v0 = vadd.f32 %v834_v63, %v833_v60  ;;  %v874_v1 = vpop.f32.mrb[1].mxu1  ;;  %v836_v2 = vpop.f32.mrb[2].mxu0 }
  0xf9   :  { %v875_v3 = vadd.f32 %v874_v1, %v873_v61  ;;  %v876_v4 = vpop.f32.mrb[2].mxu1  ;;  %v837_v5 = vpop.f32.mrb[3].mxu0 }
  0xfa   :  { %v505_v6 = vadd.f32 %v835_v0, %v717_v62  ;;  %v838_v7 = vadd.f32 %v837_v5, %v836_v2  ;;  %v877_v8 = vpop.f32.mrb[3].mxu1 }
  0xfb   :  { %v878_v9 = vadd.f32 %v877_v8, %v876_v4 }
  0xfc   :  { %v508_v10 = vadd.f32 %v838_v7, %v717_v62  ;;  %v570_v11 = vadd.f32 %v875_v3, %v505_v6 }
  0xfe   :  { %v839_v12 = vpop.f32.mrb[4].mxu0  ;;  %v573_v13 = vadd.f32 %v878_v9, %v508_v10 }
  0xff   :  { %v879_v14 = vpop.f32.mrb[4].mxu1  ;;  %v840_v15 = vpop.f32.mrb[5].mxu0 }
 0x100   :  { %v841_v16 = vadd.f32 %v840_v15, %v839_v12  ;;  %v880_v17 = vpop.f32.mrb[5].mxu1  ;;  %v842_v18 = vpop.f32.mrb[6].mxu0 }
 0x101   :  { %v881_v19 = vadd.f32 %v880_v17, %v879_v14  ;;  %v882_v20 = vpop.f32.mrb[6].mxu1  ;;  %v843_v21 = vpop.f32.mrb[7].mxu0 }
 0x102   :  { %v513_v22 = vadd.f32 %v841_v16, %v717_v62  ;;  %v844_v23 = vadd.f32 %v843_v21, %v842_v18  ;;  %v883_v24 = vpop.f32.mrb[7].mxu1 }
 0x103   :  { %v884_v25 = vadd.f32 %v883_v24, %v882_v20 }
 0x104   :  { %v516_v26 = vadd.f32 %v844_v23, %v717_v62  ;;  %v578_v27 = vadd.f32 %v881_v19, %v513_v22 }
 0x106   :  { %v845_v28 = vpop.f32.mrb[8].mxu0  ;;  %v581_v29 = vadd.f32 %v884_v25, %v516_v26 }
 0x107   :  { %v885_v30 = vpop.f32.mrb[8].mxu1  ;;  %v846_v31 = vpop.f32.mrb[9].mxu0 }
 0x108   :  { %v847_v32 = vadd.f32 %v846_v31, %v845_v28  ;;  %v886_v33 = vpop.f32.mrb[9].mxu1  ;;  %v848_v34 = vpop.f32.mrb[10].mxu0 }
 0x109   :  { %v887_v35 = vadd.f32 %v886_v33, %v885_v30  ;;  %v888_v36 = vpop.f32.mrb[10].mxu1  ;;  %v849_v37 = vpop.f32.mrb[11].mxu0 }
 0x10a   :  { %v521_v38 = vadd.f32 %v847_v32, %v717_v62  ;;  %v850_v39 = vadd.f32 %v849_v37, %v848_v34  ;;  %v889_v40 = vpop.f32.mrb[11].mxu1 }
 0x10b   :  { %v890_v41 = vadd.f32 %v889_v40, %v888_v36 }
 0x10c   :  { %v524_v42 = vadd.f32 %v850_v39, %v717_v62  ;;  %v586_v43 = vadd.f32 %v887_v35, %v521_v38 }
 0x10e   :  { %v851_v44 = vpop.f32.mrb[12].mxu0  ;;  %v589_v45 = vadd.f32 %v890_v41, %v524_v42 }
 0x10f   :  { %v891_v46 = vpop.f32.mrb[12].mxu1  ;;  %v852_v47 = vpop.f32.mrb[13].mxu0 }
 0x110   :  { %v853_v48 = vadd.f32 %v852_v47, %v851_v44  ;;  %v892_v49 = vpop.f32.mrb[13].mxu1  ;;  %v854_v50 = vpop.f32.mrb[14].mxu0 }
 0x111   :  { %v893_v51 = vadd.f32 %v892_v49, %v891_v46  ;;  %v894_v52 = vpop.f32.mrb[14].mxu1  ;;  %v855_v53 = vpop.f32.mrb[15].mxu0 }
 0x112   :  { %v529_v54 = vadd.f32 %v853_v48, %v717_v62  ;;  %v856_v55 = vadd.f32 %v855_v53, %v854_v50  ;;  %v895_v56 = vpop.f32.mrb[15].mxu1 }
 0x113   :  { %v896_v57 = vadd.f32 %v895_v56, %v894_v52 }
 0x114   :  { %v532_v58 = vadd.f32 %v856_v55, %v717_v62  ;;  %v594_v59 = vadd.f32 %v893_v51, %v529_v54 }
 0x116   :  { %v597_v60 = vadd.f32 %v896_v57, %v532_v58 }
 0x117   :  { %v927_v61 = vpop.f32.mrb[16].mxu0 }
 0x118   :  { %v643_v63 = vadd.f32 %v927_v61, %v578_v27  ;;  %v931_v0 = vpop.f32.mrb[16].mxu1  ;;  %v634_v1 = vpop.f32.mrb[17].mxu0 }
 0x119   :  { %v659_v2 = vadd.f32 %v931_v0, %v594_v59  ;;  %v635_v3 = vadd.f32 %v634_v1, %v570_v11  ;;  %v650_v4 = vpop.f32.mrb[17].mxu1  ;;  %v928_v5 = vpop.f32.mrb[18].mxu0 }
 0x11a   :  { %v651_v6 = vadd.f32 %v650_v4, %v586_v43  ;;  %v646_v7 = vadd.f32 %v928_v5, %v581_v29  ;;  %v932_v8 = vpop.f32.mrb[18].mxu1  ;;  %v637_v9 = vpop.f32.mrb[19].mxu0  ;;  %v667_v15 = vmax.f32 %v643_v63, 0.0 }
 0x11b   :  { %v662_v10 = vadd.f32 %v932_v8, %v597_v60  ;;  %v638_v12 = vadd.f32 %v637_v9, %v573_v13  ;;  %v653_v14 = vpop.f32.mrb[19].mxu1  ;;  %v671_v17 = vmax.f32 %v659_v2, 0.0  ;;  %v665_v18 = vmax.f32 %v635_v3, 0.0 }
 0x11c   :  { %v668_v16 = vmax.f32 %v646_v7, 0.0  ;;  %v654_v62 = vadd.f32 %v653_v14, %v589_v45  ;;  %v669_v21 = vmax.f32 %v651_v6, 0.0 }
 0x11d   :  { %v672_v19 = vmax.f32 %v662_v10, 0.0  ;;  %v666_v20 = vmax.f32 %v638_v12, 0.0 }
 0x11e   :  { %v802_v22 = vpack.c.bf16 %v668_v16, %v667_v15  ;;  %v670_v23 = vmax.f32 %v654_v62, 0.0 }
 0x11f   :  { %v812_v11 = vpack.c.bf16 %v672_v19, %v671_v17  ;;  %v797_v24 = vpack.c.bf16 %v666_v20, %v665_v18 }
 0x120   :  { %814 = vst [vmem:[%s1235_s3 + $0x8] sm:$0xff] %v802_v22   ;;  %v807_v25 = vpack.c.bf16 %v670_v23, %v669_v21 }
 0x121   :  { %816 = vst [vmem:[%s1235_s3 + $0x18] sm:$0xff] %v812_v11   ;;  %798 = vst [vmem:[%s1235_s3] sm:$0xff] %v797_v24  }
 0x122   :  { %815 = vst [vmem:[%s1235_s3 + $0x10] sm:$0xff] %v807_v25  }

// kernel: _lambda_.36
= control target key start
LH: loop header
LB: loop body
LE: loop exit
PB: predicated region body
PF: predicated region fallthrough
CT: control target
= control target key end

     0   :  { %s970_s1 = inlined_call_operand.vmem [shape: bf16[640,128], index: 1, kind: input, shape index: {}]   ;;  %s971_s0 = inlined_call_operand.vmem [shape: bf16[32,640], index: 0, kind: input, shape index: {}]   ;;  %s972_s2 = inlined_call_operand.vmem [shape: f32[1,128], index: 2, kind: input, shape index: {}]   ;;  %s973_s3 = inlined_call_operand.vmem [shape: bf16[32,128], index: 3, kind: output, shape index: {}]  }
   0x1   :  { %v737_v0 = vld [vmem:[%s970_s1 + $0x40] sm:$0xff]   ;;  %v741_v4 = vld [vmem:[%s970_s1 + $0x48] sm:$0xff]   ;;  %v745_v8 = vld [vmem:[%s970_s1 + $0x50] sm:$0xff]  }
   0x2   :  { %v738_v1 = vld [vmem:[%s970_s1] sm:$0xff]   ;;  %651 = vmatprep.subr.bf16.mxu0 %v737_v0  ;;  %v742_v5 = vld [vmem:[%s970_s1 + $0x8] sm:$0xff]   ;;  %v746_v9 = vld [vmem:[%s970_s1 + $0x10] sm:$0xff]  }
   0x3   :  { %v739_v2 = vld [vmem:[%s970_s1 + $0xc0] sm:$0xff]   ;;  %652 = vmatpush3.bf16.msra.mxu0 %v738_v1  ;;  %v743_v6 = vld [vmem:[%s970_s1 + $0xc8] sm:$0xff]   ;;  %v747_v10 = vld [vmem:[%s970_s1 + $0xd0] sm:$0xff]  }
   0x4   :  { %v740_v3 = vld [vmem:[%s970_s1 + $0x80] sm:$0xff]   ;;  %679 = vmatprep.subr.bf16.mxu1 %v739_v2  ;;  %653 = vmatprep.subr.bf16.mxu0 %v741_v4  ;;  %v744_v7 = vld [vmem:[%s970_s1 + $0x88] sm:$0xff]   ;;  %v748_v11 = vld [vmem:[%s970_s1 + $0x90] sm:$0xff]  }
   0x5   :  { %680 = vmatpush3.bf16.msra.mxu1 %v740_v3  ;;  %v749_v12 = vld [vmem:[%s970_s1 + $0x58] sm:$0xff]   ;;  %v753_v16 = vld [vmem:[%s970_s1 + $0x60] sm:$0xff]   ;;  %v757_v20 = vld [vmem:[%s970_s1 + $0x68] sm:$0xff]  }
   0x6   :  { %681 = vmatprep.subr.bf16.mxu1 %v743_v6  ;;  %v750_v13 = vld [vmem:[%s970_s1 + $0x18] sm:$0xff]   ;;  %v754_v17 = vld [vmem:[%s970_s1 + $0x20] sm:$0xff]   ;;  %v758_v21 = vld [vmem:[%s970_s1 + $0x28] sm:$0xff]  }
   0x7   :  { %654 = vmatpush3.bf16.msra.mxu0 %v742_v5  ;;  %v751_v14 = vld [vmem:[%s970_s1 + $0xd8] sm:$0xff]   ;;  %v755_v18 = vld [vmem:[%s970_s1 + $0xe0] sm:$0xff]   ;;  %v759_v22 = vld [vmem:[%s970_s1 + $0xe8] sm:$0xff]  }
   0x8   :  { %655 = vmatprep.subr.bf16.mxu0 %v745_v8  ;;  %v752_v15 = vld [vmem:[%s970_s1 + $0x98] sm:$0xff]   ;;  %v756_v19 = vld [vmem:[%s970_s1 + $0xa0] sm:$0xff]   ;;  %v760_v23 = vld [vmem:[%s970_s1 + $0xa8] sm:$0xff]  }
   0x9   :  { %682 = vmatpush3.bf16.msra.mxu1 %v744_v7  ;;  %v761_v24 = vld [vmem:[%s970_s1 + $0x70] sm:$0xff]   ;;  %v765_v28 = vld [vmem:[%s970_s1 + $0x78] sm:$0xff]   ;;  %v772_v34 = vld [vmem:[%s970_s1 + $0x100] sm:$0xff]  }
   0xa   :  { %683 = vmatprep.subr.bf16.mxu1 %v747_v10  ;;  %v762_v25 = vld [vmem:[%s970_s1 + $0x30] sm:$0xff]   ;;  %v766_v29 = vld [vmem:[%s970_s1 + $0x38] sm:$0xff]   ;;  %v775_v36 = vld [vmem:[%s971_s0 + $0xc] ss:$20 sps:$4 sm:$0xff]  }
   0xb   :  { %656 = vmatpush3.bf16.msra.mxu0 %v746_v9  ;;  %v763_v26 = vld [vmem:[%s970_s1 + $0xf0] sm:$0xff]   ;;  %v767_v30 = vld [vmem:[%s970_s1 + $0xf8] sm:$0xff]   ;;  %v776_v37 = vld [vmem:[%s970_s1 + $0x108] sm:$0xff]   ;;  %487 = vmatprep.mubr.bf16.mxu1 %v775_v36 }
   0xc   :  { %657 = vmatprep.subr.bf16.mxu0 %v749_v12  ;;  %v764_v27 = vld [vmem:[%s970_s1 + $0xb0] sm:$0xff]   ;;  %v770_v32 = vld [vmem:[%s971_s0 + $0x4] ss:$20 sps:$4 sm:$0xff]   ;;  %v773_v35 = vld [vmem:[%s971_s0 + $0x8] ss:$20 sps:$4 sm:$0xff]  }
   0xd   :  { %684 = vmatpush3.bf16.msra.mxu1 %v748_v11  ;;  %v768_v31 = vld [vmem:[%s971_s0] ss:$20 sps:$4 sm:$0xff]   ;;  %v771_v33 = vld [vmem:[%s970_s1 + $0xb8] sm:$0xff]   ;;  %438 = vmatprep.mubr.bf16.mxu0 %v770_v32  ;;  %v786_v43 = vld [vmem:[%s971_s0 + $0x30] ss:$20 sps:$4 sm:$0xff]  }
   0xe   :  { %685 = vmatprep.subr.bf16.mxu1 %v751_v14  ;;  %v777_v38 = vld [vmem:[%s970_s1 + $0x110] sm:$0xff]   ;;  %v780_v39 = vld [vmem:[%s971_s0 + $0x2c] ss:$20 sps:$4 sm:$0xff]   ;;  %v778_v40 = vld [vmem:[%s970_s1 + $0x118] sm:$0xff]  }
   0xf   :  { %658 = vmatpush3.bf16.msra.mxu0 %v750_v13  ;;  %v783_v41 = vld [vmem:[%s971_s0 + $0x28] ss:$20 sps:$4 sm:$0xff]   ;;  %v779_v44 = vld [vmem:[%s970_s1 + $0x120] sm:$0xff]   ;;  %v787_v47 = vld [vmem:[%s970_s1 + $0x130] sm:$0xff]  }
  0x10   :  { %659 = vmatprep.subr.bf16.mxu0 %v753_v16  ;;  %v784_v42 = vld [vmem:[%s971_s0 + $0x34] ss:$20 sps:$4 sm:$0xff]   ;;  %v789_v45 = vld [vmem:[%s971_s0 + $0x10] ss:$20 sps:$4 sm:$0xff]   ;;  %v788_v48 = vld [vmem:[%s970_s1 + $0x138] sm:$0xff]  }
  0x11   :  { %686 = vmatpush3.bf16.msra.mxu1 %v752_v15  ;;  %v782_v46 = vld [vmem:[%s970_s1 + $0x128] sm:$0xff]   ;;  %v581_v51 = vld [vmem:[%s972_s2] ss:$0 sm:$0xff] }
  0x12   :  { %687 = vmatprep.subr.bf16.mxu1 %v755_v18  ;;  %v790_v49 = vld [vmem:[%s971_s0 + $0x38] ss:$20 sps:$4 sm:$0xff]  }
  0x13   :  { %660 = vmatpush3.bf16.msra.mxu0 %v754_v17 }
  0x14   :  { %661 = vmatprep.subr.bf16.mxu0 %v757_v20 }
  0x15   :  { %688 = vmatpush3.bf16.msra.mxu1 %v756_v19 }
  0x16   :  { %689 = vmatprep.subr.bf16.mxu1 %v759_v22 }
  0x17   :  { %662 = vmatpush3.bf16.msra.mxu0 %v758_v21 }
  0x18   :  { %663 = vmatprep.subr.bf16.mxu0 %v761_v24 }
  0x19   :  { %690 = vmatpush3.bf16.msra.mxu1 %v760_v23 }
  0x1a   :  { %691 = vmatprep.subr.bf16.mxu1 %v763_v26 }
  0x1b   :  { %664 = vmatpush3.bf16.msra.mxu0 %v762_v25 }
  0x1c   :  { %665 = vmatprep.subr.bf16.mxu0 %v765_v28 }
  0x1d   :  { %692 = vmatpush3.bf16.msra.mxu1 %v764_v27 }
  0x1e   :  { %693 = vmatprep.subr.bf16.mxu1 %v767_v30 }
  0x1f   :  { %666 = vmatpush3.bf16.msra.mxu0 %v766_v29 }
  0x20   :  { %717 = vmatprep.subr.bf16.mxu0 %v772_v34 }
  0x21   :  { %694 = vmatpush3.bf16.msra.mxu1 %v771_v33 }
  0x22   :  { %439 = vmatmul.mubr.bf16.vlgmr.msra.gmra.mrb[0].mxu0 %v768_v31 }
  0x23   :  { %718 = vmatpush3.bf16.msra.mxu0 %v772_v34  ;;  %446 = vmatprep.mubr.bf16.mxu0 %v780_v39 }
  0x24   :  { %488 = vmatmul.mubr.bf16.vlgmr.msra.gmra.mrb[0].mxu1 %v773_v35  ;;  %719 = vmatprep.subr.bf16.mxu0 %v776_v37 }
  0x25   :  { %495 = vmatprep.mubr.bf16.mxu1 %v784_v42 }
  0x27   :  { %720 = vmatpush3.bf16.msra.mxu0 %v776_v37 }
  0x28   :  { %721 = vmatprep.subr.bf16.mxu0 %v777_v38 }
  0x2a   :  { %447 = vmatmul.mubr.bf16.gmra.mrb[4].mxu0 %v783_v41 }
  0x2b   :  { %722 = vmatpush3.bf16.msra.mxu0 %v777_v38  ;;  %733 = vmatprep.mubr.bf16.mxu0 %v789_v45 }
  0x2c   :  { %723 = vmatprep.subr.bf16.mxu0 %v778_v40  ;;  %496 = vmatmul.mubr.bf16.gmra.mrb[4].mxu1 %v786_v43 }
  0x2f   :  { %724 = vmatpush3.bf16.msra.mxu0 %v778_v40 }
  0x30   :  { %725 = vmatprep.subr.bf16.mxu0 %v779_v44 }
  0x33   :  { %726 = vmatpush3.bf16.msra.mxu0 %v779_v44 }
  0x34   :  { %727 = vmatprep.subr.bf16.mxu0 %v782_v46 }
  0x37   :  { %728 = vmatpush3.bf16.msra.mxu0 %v782_v46 }
  0x38   :  { %729 = vmatprep.subr.bf16.mxu0 %v787_v47 }
  0x3b   :  { %730 = vmatpush3.bf16.msra.mxu0 %v787_v47 }
  0x3c   :  { %731 = vmatprep.subr.bf16.mxu0 %v788_v48 }
  0x3f   :  { %732 = vmatpush3.bf16.msra.mxu0 %v788_v48 }
  0x42   :  { %734 = vmatmul.mubr.bf16.vlgmr.msra.gmra.mrb[8].mxu0 %v790_v49 }
  0xf5   :  { %v667_v50 = vpop.f32.mrb[0].mxu0 }
  0xf6   :  { %v668_v52 = vpop.f32.mrb[1].mxu0 }
  0xf7   :  { %v669_v53 = vadd.f32 %v668_v52, %v667_v50  ;;  %v670_v54 = vpop.f32.mrb[2].mxu0  ;;  %v695_v55 = vpop.f32.mrb[0].mxu1 }
  0xf8   :  { %v671_v56 = vpop.f32.mrb[3].mxu0  ;;  %v696_v59 = vpop.f32.mrb[1].mxu1 }
  0xf9   :  { %v441_v57 = vadd.f32 %v669_v53, %v581_v51  ;;  %v672_v58 = vadd.f32 %v671_v56, %v670_v54  ;;  %v697_v60 = vadd.f32 %v696_v59, %v695_v55  ;;  %v698_v61 = vpop.f32.mrb[2].mxu1 }
  0xfa   :  { %v699_v63 = vpop.f32.mrb[3].mxu1 }
  0xfb   :  { %v444_v62 = vadd.f32 %v672_v58, %v581_v51  ;;  %v700_v0 = vadd.f32 %v699_v63, %v698_v61  ;;  %v490_v1 = vadd.f32 %v697_v60, %v441_v57 }
  0xfd   :  { %v673_v2 = vpop.f32.mrb[4].mxu0  ;;  %v493_v4 = vadd.f32 %v700_v0, %v444_v62 }
  0xfe   :  { %v674_v3 = vpop.f32.mrb[5].mxu0 }
  0xff   :  { %v675_v5 = vadd.f32 %v674_v3, %v673_v2  ;;  %v676_v6 = vpop.f32.mrb[6].mxu0  ;;  %v701_v7 = vpop.f32.mrb[4].mxu1 }
 0x100   :  { %v677_v8 = vpop.f32.mrb[7].mxu0  ;;  %v702_v11 = vpop.f32.mrb[5].mxu1 }
 0x101   :  { %v449_v9 = vadd.f32 %v675_v5, %v581_v51  ;;  %v678_v10 = vadd.f32 %v677_v8, %v676_v6  ;;  %v703_v12 = vadd.f32 %v702_v11, %v701_v7  ;;  %v704_v13 = vpop.f32.mrb[6].mxu1 }
 0x102   :  { %v705_v15 = vpop.f32.mrb[7].mxu1 }
 0x103   :  { %v452_v14 = vadd.f32 %v678_v10, %v581_v51  ;;  %v706_v16 = vadd.f32 %v705_v15, %v704_v13  ;;  %v498_v17 = vadd.f32 %v703_v12, %v449_v9 }
 0x105   :  { %v501_v18 = vadd.f32 %v706_v16, %v452_v14 }
 0x115   :  { %v735_v19 = vpop.f32.mrb[8].mxu0 }
 0x116   :  { %v547_v20 = vadd.f32 %v735_v19, %v498_v17  ;;  %v538_v21 = vpop.f32.mrb[9].mxu0 }
 0x117   :  { %v539_v22 = vadd.f32 %v538_v21, %v490_v1  ;;  %v736_v23 = vpop.f32.mrb[10].mxu0 }
 0x118   :  { %v550_v24 = vadd.f32 %v736_v23, %v501_v18  ;;  %v541_v25 = vpop.f32.mrb[11].mxu0  ;;  %v555_v27 = vmax.f32 %v547_v20, 0.0 }
 0x119   :  { %v542_v26 = vadd.f32 %v541_v25, %v493_v4  ;;  %v553_v29 = vmax.f32 %v539_v22, 0.0 }
 0x11a   :  { %v556_v28 = vmax.f32 %v550_v24, 0.0 }
 0x11b   :  { %v554_v30 = vmax.f32 %v542_v26, 0.0 }
 0x11c   :  { %v648_v31 = vpack.c.bf16 %v556_v28, %v555_v27 }
 0x11d   :  { %v643_v32 = vpack.c.bf16 %v554_v30, %v553_v29 }
 0x11e   :  { %650 = vst [vmem:[%s973_s3 + $0x8] sm:$0xff] %v648_v31  }
 0x11f   :  { %644 = vst [vmem:[%s973_s3] sm:$0xff] %v643_v32  }

// kernel: _lambda_.35
= control target key start
LH: loop header
LB: loop body
LE: loop exit
PB: predicated region body
PF: predicated region fallthrough
CT: control target
= control target key end

     0   :  { %s304_s1 = inlined_call_operand.vmem [shape: bf16[128,128], index: 1, kind: input, shape index: {}]   ;;  %s305_s0 = inlined_call_operand.vmem [shape: bf16[32,128], index: 0, kind: input, shape index: {}]   ;;  %s306_s2 = inlined_call_operand.vmem [shape: f32[1,128], index: 2, kind: input, shape index: {}]   ;;  %s307_s3 = inlined_call_operand.vmem [shape: bf16[32,128], index: 3, kind: output, shape index: {}]  }
   0x1   :  { %v235_v0 = vld [vmem:[%s304_s1] sm:$0xff]   ;;  %v236_v1 = vld [vmem:[%s304_s1 + $0x8] sm:$0xff]   ;;  %v237_v2 = vld [vmem:[%s304_s1 + $0x10] sm:$0xff]  }
   0x2   :  { %215 = vmatprep.subr.bf16.mxu0 %v235_v0  ;;  %v238_v3 = vld [vmem:[%s304_s1 + $0x18] sm:$0xff]   ;;  %v243_v4 = vld [vmem:[%s305_s0] sm:$0xff]   ;;  %v240_v6 = vld [vmem:[%s304_s1 + $0x28] sm:$0xff]  }
   0x3   :  { %216 = vmatpush3.bf16.msra.mxu0 %v235_v0  ;;  %231 = vmatprep.mubr.bf16.mxu0 %v243_v4  ;;  %v239_v5 = vld [vmem:[%s304_s1 + $0x20] sm:$0xff]   ;;  %v241_v7 = vld [vmem:[%s304_s1 + $0x30] sm:$0xff]   ;;  %v242_v8 = vld [vmem:[%s304_s1 + $0x38] sm:$0xff]  }
   0x4   :  { %217 = vmatprep.subr.bf16.mxu0 %v236_v1  ;;  %v244_v9 = vld [vmem:[%s305_s0 + $0x8] sm:$0xff]   ;;  %v175_v11 = vld [vmem:[%s306_s2] ss:$0 sm:$0xff] }
   0x7   :  { %218 = vmatpush3.bf16.msra.mxu0 %v236_v1 }
   0x8   :  { %219 = vmatprep.subr.bf16.mxu0 %v237_v2 }
   0xb   :  { %220 = vmatpush3.bf16.msra.mxu0 %v237_v2 }
   0xc   :  { %221 = vmatprep.subr.bf16.mxu0 %v238_v3 }
   0xf   :  { %222 = vmatpush3.bf16.msra.mxu0 %v238_v3 }
  0x10   :  { %223 = vmatprep.subr.bf16.mxu0 %v239_v5 }
  0x13   :  { %224 = vmatpush3.bf16.msra.mxu0 %v239_v5 }
  0x14   :  { %225 = vmatprep.subr.bf16.mxu0 %v240_v6 }
  0x17   :  { %226 = vmatpush3.bf16.msra.mxu0 %v240_v6 }
  0x18   :  { %227 = vmatprep.subr.bf16.mxu0 %v241_v7 }
  0x1b   :  { %228 = vmatpush3.bf16.msra.mxu0 %v241_v7 }
  0x1c   :  { %229 = vmatprep.subr.bf16.mxu0 %v242_v8 }
  0x1f   :  { %230 = vmatpush3.bf16.msra.mxu0 %v242_v8 }
  0x22   :  { %232 = vmatmul.mubr.bf16.vlgmr.msra.gmra.mrb[0].mxu0 %v244_v9 }
  0xf5   :  { %v233_v10 = vpop.f32.mrb[0].mxu0 }
  0xf6   :  { %v136_v12 = vpop.f32.mrb[1].mxu0  ;;  %v145_v14 = vadd.f32 %v233_v10, %v175_v11 }
  0xf7   :  { %v234_v13 = vpop.f32.mrb[2].mxu0  ;;  %v137_v17 = vadd.f32 %v175_v11, %v136_v12 }
  0xf8   :  { %v148_v15 = vadd.f32 %v234_v13, %v175_v11  ;;  %v139_v16 = vpop.f32.mrb[3].mxu0 }
  0xf9   :  { %v140_v18 = vadd.f32 %v175_v11, %v139_v16 }
  0xfa   :  { %v202_v19 = vpack.c.bf16 %v148_v15, %v145_v14 }
  0xfb   :  { %v197_v20 = vpack.c.bf16 %v140_v18, %v137_v17 }
  0xfc   :  { %204 = vst [vmem:[%s307_s3 + $0x8] sm:$0xff] %v202_v19  }
  0xfd   :  { %198 = vst [vmem:[%s307_s3] sm:$0xff] %v197_v20  }

// kernel: _lambda_.37
= control target key start
LH: loop header
LB: loop body
LE: loop exit
PB: predicated region body
PF: predicated region fallthrough
CT: control target
= control target key end

     0   :  { %s1667_s1 = inlined_call_operand.vmem [shape: bf16[1152,128], index: 1, kind: input, shape index: {}]   ;;  %s1668_s0 = inlined_call_operand.vmem [shape: bf16[32,1152], index: 0, kind: input, shape index: {}]   ;;  %s1669_s2 = inlined_call_operand.vmem [shape: f32[1,128], index: 2, kind: input, shape index: {}]   ;;  %s1670_s3 = inlined_call_operand.vmem [shape: bf16[32,128], index: 3, kind: input, shape index: {}]   ;;  %s1671_s4 = inlined_call_operand.vmem [shape: bf16[32,128], index: 4, kind: output, shape index: {}]  }
   0x1   :  { %v1259_v0 = vld [vmem:[%s1667_s1 + $0x40] sm:$0xff]   ;;  %v1263_v4 = vld [vmem:[%s1667_s1 + $0x48] sm:$0xff]   ;;  %v1267_v8 = vld [vmem:[%s1667_s1 + $0x50] sm:$0xff]  }
   0x2   :  { %v1260_v1 = vld [vmem:[%s1667_s1] sm:$0xff]   ;;  %1117 = vmatprep.subr.bf16.mxu0 %v1259_v0  ;;  %v1264_v5 = vld [vmem:[%s1667_s1 + $0x8] sm:$0xff]   ;;  %v1268_v9 = vld [vmem:[%s1667_s1 + $0x10] sm:$0xff]  }
   0x3   :  { %v1261_v2 = vld [vmem:[%s1667_s1 + $0xc0] sm:$0xff]   ;;  %1118 = vmatpush3.bf16.msra.mxu0 %v1260_v1  ;;  %v1265_v6 = vld [vmem:[%s1667_s1 + $0xc8] sm:$0xff]   ;;  %v1269_v10 = vld [vmem:[%s1667_s1 + $0xd0] sm:$0xff]  }
   0x4   :  { %v1262_v3 = vld [vmem:[%s1667_s1 + $0x80] sm:$0xff]   ;;  %1145 = vmatprep.subr.bf16.mxu1 %v1261_v2  ;;  %1119 = vmatprep.subr.bf16.mxu0 %v1263_v4  ;;  %v1266_v7 = vld [vmem:[%s1667_s1 + $0x88] sm:$0xff]   ;;  %v1270_v11 = vld [vmem:[%s1667_s1 + $0x90] sm:$0xff]  }
   0x5   :  { %1146 = vmatpush3.bf16.msra.mxu1 %v1262_v3  ;;  %v1271_v12 = vld [vmem:[%s1667_s1 + $0x58] sm:$0xff]   ;;  %v1275_v16 = vld [vmem:[%s1667_s1 + $0x60] sm:$0xff]   ;;  %v1279_v20 = vld [vmem:[%s1667_s1 + $0x68] sm:$0xff]  }
   0x6   :  { %1147 = vmatprep.subr.bf16.mxu1 %v1265_v6  ;;  %v1272_v13 = vld [vmem:[%s1667_s1 + $0x18] sm:$0xff]   ;;  %v1276_v17 = vld [vmem:[%s1667_s1 + $0x20] sm:$0xff]   ;;  %v1280_v21 = vld [vmem:[%s1667_s1 + $0x28] sm:$0xff]  }
   0x7   :  { %1120 = vmatpush3.bf16.msra.mxu0 %v1264_v5  ;;  %v1273_v14 = vld [vmem:[%s1667_s1 + $0xd8] sm:$0xff]   ;;  %v1277_v18 = vld [vmem:[%s1667_s1 + $0xe0] sm:$0xff]   ;;  %v1281_v22 = vld [vmem:[%s1667_s1 + $0xe8] sm:$0xff]  }
   0x8   :  { %1121 = vmatprep.subr.bf16.mxu0 %v1267_v8  ;;  %v1274_v15 = vld [vmem:[%s1667_s1 + $0x98] sm:$0xff]   ;;  %v1278_v19 = vld [vmem:[%s1667_s1 + $0xa0] sm:$0xff]   ;;  %v1282_v23 = vld [vmem:[%s1667_s1 + $0xa8] sm:$0xff]  }
   0x9   :  { %1148 = vmatpush3.bf16.msra.mxu1 %v1266_v7  ;;  %v1283_v24 = vld [vmem:[%s1667_s1 + $0x70] sm:$0xff]   ;;  %v1287_v28 = vld [vmem:[%s1667_s1 + $0x78] sm:$0xff]   ;;  %v1290_v31 = vld [vmem:[%s1668_s0] ss:$36 sps:$4 sm:$0xff]  }
   0xa   :  { %1149 = vmatprep.subr.bf16.mxu1 %v1269_v10  ;;  %v1284_v25 = vld [vmem:[%s1667_s1 + $0x30] sm:$0xff]   ;;  %v1288_v29 = vld [vmem:[%s1667_s1 + $0x38] sm:$0xff]   ;;  %v1292_v32 = vld [vmem:[%s1668_s0 + $0x4] ss:$36 sps:$4 sm:$0xff]  }
   0xb   :  { %1122 = vmatpush3.bf16.msra.mxu0 %v1268_v9  ;;  %v1285_v26 = vld [vmem:[%s1667_s1 + $0xf0] sm:$0xff]   ;;  %v1289_v30 = vld [vmem:[%s1667_s1 + $0xf8] sm:$0xff]   ;;  %745 = vmatprep.mubr.bf16.mxu0 %v1292_v32  ;;  %v1294_v34 = vld [vmem:[%s1667_s1 + $0x140] sm:$0xff]  }
   0xc   :  { %1123 = vmatprep.subr.bf16.mxu0 %v1271_v12  ;;  %v1286_v27 = vld [vmem:[%s1667_s1 + $0xb0] sm:$0xff]   ;;  %v1293_v33 = vld [vmem:[%s1667_s1 + $0xb8] sm:$0xff]   ;;  %v1295_v35 = vld [vmem:[%s1668_s0 + $0x8] ss:$36 sps:$4 sm:$0xff]  }
   0xd   :  { %1150 = vmatpush3.bf16.msra.mxu1 %v1270_v11  ;;  %v1297_v36 = vld [vmem:[%s1668_s0 + $0xc] ss:$36 sps:$4 sm:$0xff]   ;;  %v1298_v37 = vld [vmem:[%s1667_s1 + $0x100] sm:$0xff]   ;;  %v1309_v48 = vld [vmem:[%s1667_s1 + $0x158] sm:$0xff]  }
   0xe   :  { %1151 = vmatprep.subr.bf16.mxu1 %v1273_v14  ;;  %794 = vmatprep.mubr.bf16.mxu1 %v1297_v36  ;;  %v1299_v38 = vld [vmem:[%s1667_s1 + $0x1c0] sm:$0xff]   ;;  %v1301_v40 = vld [vmem:[%s1667_s1 + $0x148] sm:$0xff]   ;;  %v1305_v44 = vld [vmem:[%s1667_s1 + $0x150] sm:$0xff]  }
   0xf   :  { %1124 = vmatpush3.bf16.msra.mxu0 %v1272_v13  ;;  %v1300_v39 = vld [vmem:[%s1667_s1 + $0x180] sm:$0xff]   ;;  %v1302_v41 = vld [vmem:[%s1667_s1 + $0x108] sm:$0xff]   ;;  %v1306_v45 = vld [vmem:[%s1667_s1 + $0x110] sm:$0xff]  }
  0x10   :  { %1125 = vmatprep.subr.bf16.mxu0 %v1275_v16  ;;  %v1303_v42 = vld [vmem:[%s1667_s1 + $0x1c8] sm:$0xff]   ;;  %v1307_v46 = vld [vmem:[%s1667_s1 + $0x1d0] sm:$0xff]   ;;  %v1310_v49 = vld [vmem:[%s1667_s1 + $0x118] sm:$0xff]  }
  0x11   :  { %1152 = vmatpush3.bf16.msra.mxu1 %v1274_v15  ;;  %v1304_v43 = vld [vmem:[%s1667_s1 + $0x188] sm:$0xff]   ;;  %v1308_v47 = vld [vmem:[%s1667_s1 + $0x190] sm:$0xff]   ;;  %v1311_v50 = vld [vmem:[%s1667_s1 + $0x1d8] sm:$0xff]  }
  0x12   :  { %1153 = vmatprep.subr.bf16.mxu1 %v1277_v18  ;;  %v1312_v51 = vld [vmem:[%s1667_s1 + $0x198] sm:$0xff]   ;;  %v1313_v52 = vld [vmem:[%s1667_s1 + $0x160] sm:$0xff]   ;;  %v1317_v56 = vld [vmem:[%s1667_s1 + $0x168] sm:$0xff]  }
  0x13   :  { %1126 = vmatpush3.bf16.msra.mxu0 %v1276_v17  ;;  %v1314_v53 = vld [vmem:[%s1667_s1 + $0x120] sm:$0xff]   ;;  %v1318_v57 = vld [vmem:[%s1668_s0 + $0x4c] ss:$36 sps:$4 sm:$0xff]   ;;  %v1323_v61 = vld [vmem:[%s1668_s0 + $0x54] ss:$36 sps:$4 sm:$0xff]  }
  0x14   :  { %1127 = vmatprep.subr.bf16.mxu0 %v1279_v20  ;;  %v1315_v54 = vld [vmem:[%s1667_s1 + $0x1e0] sm:$0xff]   ;;  %v1320_v58 = vld [vmem:[%s1667_s1 + $0x128] sm:$0xff]   ;;  %v1326_v63 = vld [vmem:[%s1668_s0 + $0x50] ss:$36 sps:$4 sm:$0xff]  }
  0x15   :  { %1154 = vmatpush3.bf16.msra.mxu1 %v1278_v19  ;;  %v1316_v55 = vld [vmem:[%s1667_s1 + $0x1a0] sm:$0xff]   ;;  %v1321_v59 = vld [vmem:[%s1668_s0 + $0x48] ss:$36 sps:$4 sm:$0xff]   ;;  %v1327_v0 = vld [vmem:[%s1667_s1 + $0x170] sm:$0xff]  }
  0x16   :  { %1155 = vmatprep.subr.bf16.mxu1 %v1281_v22  ;;  %v1322_v60 = vld [vmem:[%s1667_s1 + $0x1e8] sm:$0xff]   ;;  %v1328_v1 = vld [vmem:[%s1667_s1 + $0x130] sm:$0xff]   ;;  %v1331_v4 = vld [vmem:[%s1667_s1 + $0x178] sm:$0xff]  }
  0x17   :  { %1128 = vmatpush3.bf16.msra.mxu0 %v1280_v21  ;;  %v1325_v62 = vld [vmem:[%s1667_s1 + $0x1a8] sm:$0xff]   ;;  %v1329_v2 = vld [vmem:[%s1667_s1 + $0x1f0] sm:$0xff]   ;;  %v1332_v5 = vld [vmem:[%s1667_s1 + $0x138] sm:$0xff]  }
  0x18   :  { %1129 = vmatprep.subr.bf16.mxu0 %v1283_v24  ;;  %v1330_v3 = vld [vmem:[%s1667_s1 + $0x1b0] sm:$0xff]   ;;  %v1333_v6 = vld [vmem:[%s1667_s1 + $0x1f8] sm:$0xff]   ;;  %v1338_v10 = vld [vmem:[%s1667_s1 + $0x200] sm:$0xff]  }
  0x19   :  { %1156 = vmatpush3.bf16.msra.mxu1 %v1282_v23  ;;  %v1334_v7 = vld [vmem:[%s1668_s0 + $0x10] ss:$36 sps:$4 sm:$0xff]   ;;  %v1337_v9 = vld [vmem:[%s1667_s1 + $0x1b8] sm:$0xff]   ;;  %v1342_v13 = vld [vmem:[%s1667_s1 + $0x208] sm:$0xff]  }
  0x1a   :  { %1157 = vmatprep.subr.bf16.mxu1 %v1285_v26  ;;  %v1336_v8 = vld [vmem:[%s1668_s0 + $0x14] ss:$36 sps:$4 sm:$0xff]   ;;  %v1341_v12 = vld [vmem:[%s1668_s0 + $0x1c] ss:$36 sps:$4 sm:$0xff]   ;;  %v1347_v17 = vld [vmem:[%s1668_s0 + $0x64] ss:$36 sps:$4 sm:$0xff]  }
  0x1b   :  { %1130 = vmatpush3.bf16.msra.mxu0 %v1284_v25  ;;  %v1339_v11 = vld [vmem:[%s1668_s0 + $0x18] ss:$36 sps:$4 sm:$0xff]   ;;  %v1346_v16 = vld [vmem:[%s1667_s1 + $0x210] sm:$0xff]   ;;  %v1349_v18 = vld [vmem:[%s1668_s0 + $0x60] ss:$36 sps:$4 sm:$0xff]  }
  0x1c   :  { %1131 = vmatprep.subr.bf16.mxu0 %v1287_v28  ;;  %v1343_v14 = vld [vmem:[%s1668_s0 + $0x5c] ss:$36 sps:$4 sm:$0xff]   ;;  %v1352_v22 = vld [vmem:[%s1667_s1 + $0x228] sm:$0xff]   ;;  %v1353_v23 = vld [vmem:[%s1667_s1 + $0x230] sm:$0xff]  }
  0x1d   :  { %1158 = vmatpush3.bf16.msra.mxu1 %v1286_v27  ;;  %v1345_v15 = vld [vmem:[%s1668_s0 + $0x58] ss:$36 sps:$4 sm:$0xff]   ;;  %v1351_v20 = vld [vmem:[%s1667_s1 + $0x220] sm:$0xff]   ;;  %v1356_v25 = vld [vmem:[%s1668_s0 + $0x68] ss:$36 sps:$4 sm:$0xff]  }
  0x1e   :  { %1159 = vmatprep.subr.bf16.mxu1 %v1289_v30  ;;  %v1350_v19 = vld [vmem:[%s1667_s1 + $0x218] sm:$0xff]   ;;  %v1355_v21 = vld [vmem:[%s1668_s0 + $0x20] ss:$36 sps:$4 sm:$0xff]  }
  0x1f   :  { %1132 = vmatpush3.bf16.msra.mxu0 %v1288_v29  ;;  %v1354_v24 = vld [vmem:[%s1667_s1 + $0x238] sm:$0xff]   ;;  %v998_v27 = vld [vmem:[%s1669_s2] ss:$0 sm:$0xff] }
  0x20   :  { %1173 = vmatprep.subr.bf16.mxu0 %v1294_v34 }
  0x21   :  { %1160 = vmatpush3.bf16.msra.mxu1 %v1293_v33 }
  0x22   :  { %746 = vmatmul.mubr.bf16.vlgmr.msra.gmra.mrb[0].mxu0 %v1290_v31  ;;  %1201 = vmatprep.subr.bf16.mxu1 %v1299_v38 }
  0x23   :  { %1174 = vmatpush3.bf16.msra.mxu0 %v1298_v37  ;;  %753 = vmatprep.mubr.bf16.mxu0 %v1318_v57 }
  0x24   :  { %795 = vmatmul.mubr.bf16.vlgmr.msra.gmra.mrb[0].mxu1 %v1295_v35  ;;  %1175 = vmatprep.subr.bf16.mxu0 %v1301_v40 }
  0x25   :  { %1202 = vmatpush3.bf16.msra.mxu1 %v1300_v39  ;;  %802 = vmatprep.mubr.bf16.mxu1 %v1323_v61 }
  0x26   :  { %1203 = vmatprep.subr.bf16.mxu1 %v1303_v42 }
  0x27   :  { %1176 = vmatpush3.bf16.msra.mxu0 %v1302_v41 }
  0x28   :  { %1177 = vmatprep.subr.bf16.mxu0 %v1305_v44 }
  0x29   :  { %1204 = vmatpush3.bf16.msra.mxu1 %v1304_v43 }
  0x2a   :  { %1205 = vmatprep.subr.bf16.mxu1 %v1307_v46  ;;  %754 = vmatmul.mubr.bf16.gmra.mrb[4].mxu0 %v1321_v59 }
  0x2b   :  { %1178 = vmatpush3.bf16.msra.mxu0 %v1306_v45  ;;  %843 = vmatprep.mubr.bf16.mxu0 %v1336_v8 }
  0x2c   :  { %1179 = vmatprep.subr.bf16.mxu0 %v1309_v48  ;;  %803 = vmatmul.mubr.bf16.gmra.mrb[4].mxu1 %v1326_v63 }
  0x2d   :  { %1206 = vmatpush3.bf16.msra.mxu1 %v1308_v47  ;;  %892 = vmatprep.mubr.bf16.mxu1 %v1341_v12 }
  0x2e   :  { %1207 = vmatprep.subr.bf16.mxu1 %v1311_v50 }
  0x2f   :  { %1180 = vmatpush3.bf16.msra.mxu0 %v1310_v49 }
  0x30   :  { %1181 = vmatprep.subr.bf16.mxu0 %v1313_v52 }
  0x31   :  { %1208 = vmatpush3.bf16.msra.mxu1 %v1312_v51 }
  0x32   :  { %1209 = vmatprep.subr.bf16.mxu1 %v1315_v54 }
  0x33   :  { %1182 = vmatpush3.bf16.msra.mxu0 %v1314_v53 }
  0x34   :  { %1183 = vmatprep.subr.bf16.mxu0 %v1317_v56 }
  0x35   :  { %1210 = vmatpush3.bf16.msra.mxu1 %v1316_v55 }
  0x36   :  { %1211 = vmatprep.subr.bf16.mxu1 %v1322_v60 }
  0x37   :  { %1184 = vmatpush3.bf16.msra.mxu0 %v1320_v58 }
  0x38   :  { %1185 = vmatprep.subr.bf16.mxu0 %v1327_v0 }
  0x39   :  { %1212 = vmatpush3.bf16.msra.mxu1 %v1325_v62 }
  0x3a   :  { %1213 = vmatprep.subr.bf16.mxu1 %v1329_v2 }
  0x3b   :  { %1186 = vmatpush3.bf16.msra.mxu0 %v1328_v1 }
  0x3c   :  { %1187 = vmatprep.subr.bf16.mxu0 %v1331_v4 }
  0x3d   :  { %1214 = vmatpush3.bf16.msra.mxu1 %v1330_v3 }
  0x3e   :  { %1215 = vmatprep.subr.bf16.mxu1 %v1333_v6 }
  0x3f   :  { %1188 = vmatpush3.bf16.msra.mxu0 %v1332_v5 }
  0x40   :  { %1239 = vmatprep.subr.bf16.mxu0 %v1338_v10 }
  0x41   :  { %1216 = vmatpush3.bf16.msra.mxu1 %v1337_v9 }
  0x42   :  { %844 = vmatmul.mubr.bf16.vlgmr.msra.gmra.mrb[8].mxu0 %v1334_v7 }
  0x43   :  { %1240 = vmatpush3.bf16.msra.mxu0 %v1338_v10  ;;  %851 = vmatprep.mubr.bf16.mxu0 %v1343_v14 }
  0x44   :  { %893 = vmatmul.mubr.bf16.vlgmr.msra.gmra.mrb[8].mxu1 %v1339_v11  ;;  %1241 = vmatprep.subr.bf16.mxu0 %v1342_v13 }
  0x45   :  { %900 = vmatprep.mubr.bf16.mxu1 %v1347_v17 }
  0x47   :  { %1242 = vmatpush3.bf16.msra.mxu0 %v1342_v13 }
  0x48   :  { %1243 = vmatprep.subr.bf16.mxu0 %v1346_v16 }
  0x4a   :  { %852 = vmatmul.mubr.bf16.gmra.mrb[12].mxu0 %v1345_v15 }
  0x4b   :  { %1244 = vmatpush3.bf16.msra.mxu0 %v1346_v16  ;;  %1255 = vmatprep.mubr.bf16.mxu0 %v1355_v21 }
  0x4c   :  { %901 = vmatmul.mubr.bf16.gmra.mrb[12].mxu1 %v1349_v18  ;;  %1245 = vmatprep.subr.bf16.mxu0 %v1350_v19 }
  0x4f   :  { %1246 = vmatpush3.bf16.msra.mxu0 %v1350_v19 }
  0x50   :  { %1247 = vmatprep.subr.bf16.mxu0 %v1351_v20 }
  0x53   :  { %1248 = vmatpush3.bf16.msra.mxu0 %v1351_v20 }
  0x54   :  { %1249 = vmatprep.subr.bf16.mxu0 %v1352_v22 }
  0x57   :  { %1250 = vmatpush3.bf16.msra.mxu0 %v1352_v22 }
  0x58   :  { %1251 = vmatprep.subr.bf16.mxu0 %v1353_v23 }
  0x5b   :  { %1252 = vmatpush3.bf16.msra.mxu0 %v1353_v23 }
  0x5c   :  { %1253 = vmatprep.subr.bf16.mxu0 %v1354_v24 }
  0x5f   :  { %1254 = vmatpush3.bf16.msra.mxu0 %v1354_v24 }
  0x62   :  { %1256 = vmatmul.mubr.bf16.vlgmr.msra.gmra.mrb[16].mxu0 %v1356_v25 }
  0xf5   :  { %v1133_v26 = vpop.f32.mrb[0].mxu0 }
  0xf6   :  { %v1134_v28 = vpop.f32.mrb[1].mxu0 }
  0xf7   :  { %v1135_v29 = vadd.f32 %v1134_v28, %v1133_v26  ;;  %v1136_v30 = vpop.f32.mrb[2].mxu0  ;;  %v1161_v31 = vpop.f32.mrb[0].mxu1  ;;  %v1098_v28 = vld [vmem:[%s1670_s3] sm:$0xff]  }
  0xf8   :  { %v1137_v32 = vpop.f32.mrb[3].mxu0  ;;  %v1162_v35 = vpop.f32.mrb[1].mxu1 }
  0xf9   :  { %v748_v33 = vadd.f32 %v1135_v29, %v998_v27  ;;  %v1138_v34 = vadd.f32 %v1137_v32, %v1136_v30  ;;  %v1163_v36 = vadd.f32 %v1162_v35, %v1161_v31  ;;  %v1164_v37 = vpop.f32.mrb[2].mxu1  ;;  %v1099_v31 = vunpack.c.l.bf16 %v1098_v28 }
  0xfa   :  { %v1165_v39 = vpop.f32.mrb[3].mxu1 }
  0xfb   :  { %v751_v38 = vadd.f32 %v1138_v34, %v998_v27  ;;  %v797_v40 = vadd.f32 %v1163_v36, %v748_v33  ;;  %v1166_v41 = vadd.f32 %v1165_v39, %v1164_v37  ;;  %v1100_v37 = vunpack.c.h.bf16 %v1098_v28 }
  0xfd   :  { %v800_v42 = vadd.f32 %v1166_v41, %v751_v38  ;;  %v1139_v43 = vpop.f32.mrb[4].mxu0 }
  0xfe   :  { %v1140_v44 = vpop.f32.mrb[5].mxu0 }
  0xff   :  { %v1141_v45 = vadd.f32 %v1140_v44, %v1139_v43  ;;  %v1142_v46 = vpop.f32.mrb[6].mxu0  ;;  %v1167_v47 = vpop.f32.mrb[4].mxu1 }
 0x100   :  { %v1143_v48 = vpop.f32.mrb[7].mxu0  ;;  %v1168_v51 = vpop.f32.mrb[5].mxu1 }
 0x101   :  { %v756_v49 = vadd.f32 %v1141_v45, %v998_v27  ;;  %v1144_v50 = vadd.f32 %v1143_v48, %v1142_v46  ;;  %v1169_v52 = vadd.f32 %v1168_v51, %v1167_v47  ;;  %v1170_v53 = vpop.f32.mrb[6].mxu1 }
 0x102   :  { %v1171_v55 = vpop.f32.mrb[7].mxu1 }
 0x103   :  { %v759_v54 = vadd.f32 %v1144_v50, %v998_v27  ;;  %v805_v56 = vadd.f32 %v1169_v52, %v756_v49  ;;  %v1172_v57 = vadd.f32 %v1171_v55, %v1170_v53  ;;  %v1115_v27 = vld [vmem:[%s1670_s3 + $0x8] sm:$0xff]  }
 0x104   :  { %v1103_v29 = vunpack.c.l.bf16 %v1115_v27  ;;  %v1104_v34 = vunpack.c.h.bf16 %v1115_v27 }
 0x105   :  { %v808_v58 = vadd.f32 %v1172_v57, %v759_v54 }
 0x115   :  { %v1189_v59 = vpop.f32.mrb[8].mxu0 }
 0x116   :  { %v1190_v60 = vpop.f32.mrb[9].mxu0 }
 0x117   :  { %v1191_v61 = vadd.f32 %v1190_v60, %v1189_v59  ;;  %v1192_v62 = vpop.f32.mrb[10].mxu0  ;;  %v1217_v63 = vpop.f32.mrb[8].mxu1 }
 0x118   :  { %v1193_v0 = vpop.f32.mrb[11].mxu0  ;;  %v1218_v3 = vpop.f32.mrb[9].mxu1 }
 0x119   :  { %v846_v1 = vadd.f32 %v1191_v61, %v797_v40  ;;  %v1194_v2 = vadd.f32 %v1193_v0, %v1192_v62  ;;  %v1219_v4 = vadd.f32 %v1218_v3, %v1217_v63  ;;  %v1220_v5 = vpop.f32.mrb[10].mxu1 }
 0x11a   :  { %v1221_v7 = vpop.f32.mrb[11].mxu1 }
 0x11b   :  { %v849_v6 = vadd.f32 %v1194_v2, %v800_v42  ;;  %v1222_v8 = vadd.f32 %v1221_v7, %v1220_v5  ;;  %v895_v9 = vadd.f32 %v1219_v4, %v846_v1 }
 0x11d   :  { %v1195_v10 = vpop.f32.mrb[12].mxu0  ;;  %v898_v12 = vadd.f32 %v1222_v8, %v849_v6 }
 0x11e   :  { %v1196_v11 = vpop.f32.mrb[13].mxu0 }
 0x11f   :  { %v1197_v13 = vadd.f32 %v1196_v11, %v1195_v10  ;;  %v1198_v14 = vpop.f32.mrb[14].mxu0  ;;  %v1223_v15 = vpop.f32.mrb[12].mxu1 }
 0x120   :  { %v1199_v16 = vpop.f32.mrb[15].mxu0  ;;  %v1224_v19 = vpop.f32.mrb[13].mxu1 }
 0x121   :  { %v854_v17 = vadd.f32 %v1197_v13, %v805_v56  ;;  %v1200_v18 = vadd.f32 %v1199_v16, %v1198_v14  ;;  %v1225_v20 = vadd.f32 %v1224_v19, %v1223_v15  ;;  %v1226_v21 = vpop.f32.mrb[14].mxu1 }
 0x122   :  { %v1227_v23 = vpop.f32.mrb[15].mxu1 }
 0x123   :  { %v857_v22 = vadd.f32 %v1200_v18, %v808_v58  ;;  %v1228_v24 = vadd.f32 %v1227_v23, %v1226_v21  ;;  %v903_v25 = vadd.f32 %v1225_v20, %v854_v17 }
 0x125   :  { %v906_v26 = vadd.f32 %v1228_v24, %v857_v22 }
 0x135   :  { %v1257_v30 = vpop.f32.mrb[16].mxu0 }
 0x136   :  { %v952_v32 = vadd.f32 %v1257_v30, %v903_v25  ;;  %v943_v33 = vpop.f32.mrb[17].mxu0 }
 0x137   :  { %v944_v35 = vadd.f32 %v943_v33, %v895_v9  ;;  %v1258_v36 = vpop.f32.mrb[18].mxu0 }
 0x138   :  { %v968_v38 = vadd.f32 %v1103_v29, %v952_v32  ;;  %v955_v39 = vadd.f32 %v1258_v36, %v906_v26  ;;  %v946_v40 = vpop.f32.mrb[19].mxu0 }
 0x139   :  { %v966_v41 = vadd.f32 %v1099_v31, %v944_v35  ;;  %v947_v42 = vadd.f32 %v946_v40, %v898_v12 }
 0x13a   :  { %v969_v43 = vadd.f32 %v1104_v34, %v955_v39  ;;  %v972_v45 = vmax.f32 %v968_v38, 0.0 }
 0x13b   :  { %v967_v44 = vadd.f32 %v1100_v37, %v947_v42  ;;  %v970_v47 = vmax.f32 %v966_v41, 0.0 }
 0x13c   :  { %v973_v46 = vmax.f32 %v969_v43, 0.0 }
 0x13d   :  { %v971_v48 = vmax.f32 %v967_v44, 0.0 }
 0x13e   :  { %v1113_v49 = vpack.c.bf16 %v973_v46, %v972_v45 }
 0x13f   :  { %v1108_v50 = vpack.c.bf16 %v971_v48, %v970_v47 }
 0x140   :  { %1116 = vst [vmem:[%s1671_s4 + $0x8] sm:$0xff] %v1113_v49  }
 0x141   :  { %1109 = vst [vmem:[%s1671_s4] sm:$0xff] %v1108_v50  }

// kernel: _lambda_.40
= control target key start
LH: loop header
LB: loop body
LE: loop exit
PB: predicated region body
PF: predicated region fallthrough
CT: control target
= control target key end

     0   :  { %s965_s23 = smov 0   ;;  %s1080_s0 = inlined_call_operand.vmem [shape: bf16[2,9,128], index: 0, kind: input, shape index: {}]   ;;  %s1081_s1 = inlined_call_operand.vmem [shape: bf16[128,256], index: 1, kind: input, shape index: {}]   ;;  %s1082_s2 = inlined_call_operand.vmem [shape: f32[1,256], index: 2, kind: input, shape index: {}]   ;;  %s1083_s3 = inlined_call_operand.vmem [shape: bf16[128,128], index: 3, kind: input, shape index: {}]   ;;  %s1084_s4 = inlined_call_operand.vmem [shape: f32[1,128], index: 4, kind: input, shape index: {}]   ;;  %s1085_s5 = inlined_call_operand.<no memory space> [shape: f32[1,1], index: 5, kind: input, shape index: {}]   ;;  %s1086_s6 = inlined_call_operand.vmem [shape: bf16[2,9,128], index: 6, kind: output, shape index: {}]  }
   0x1   :  { %v11_v0 = vstv %s1085_s5 }
   0x2   :  { %12 = vst [vmem:[#allocation2] sm:$0x1] %v11_v0 }
   0x3 LB: > { %s764_s24 = sadd.s32 4294967295, %s921_s23   ;;  %p768_p0 = scmp.ge.s32.totalorder %s921_s23, 1  ;;  %s921_s23 = sphi %s965_s23, %s18_s23  }
   0x4   : > { %p214_p1 = scmp.lt.s32.totalorder %s921_s23, 3 }
   0x6   : > { %p215_p2 = pnand %p768_p0, %p214_p1 }
   0x7   : > { %v874_v1 = vld [vmem:[%s1081_s1 + $0x4] ss:$8 sps:$4 sm:$0xff] (!%p215_p2)   ;;  %v876_v2 = vld [vmem:[%s1081_s1] ss:$8 sps:$4 sm:$0xff] (!%p215_p2)   ;;  %v923_v3 = vmov (!%p215_p2), 0   ;;  %p244_p3 = scmp.lt.s32.totalorder (!%p215_p2), %s764_s24, 1  ;;  %v275_v21 = vlaneseq (!%p215_p2) }
   0x8   : > { %218 = sbr.rel (%p215_p2) target bundleno = 1023 (0x3ff), region = 44  ;;  %403 = vmatprep.mubr.bf16.mxu0 (!%p215_p2), %v923_v3  ;;  %873 = vset.pattern.permute.xlu0 (!%p215_p2), %v923_v3  ;;  %v877_v4 = vld [vmem:[%s1081_s1 + $0x14] ss:$8 sps:$4 sm:$0xff] (!%p215_p2)   ;;  %v879_v5 = vld [vmem:[%s1081_s1 + $0x10] ss:$8 sps:$4 sm:$0xff] (!%p215_p2)   ;;  %v899_v37 = vld [vmem:[%s1083_s3] sm:$0xff] (!%p215_p2)  }
   0x9   : > { %371 = vmatprep.subr.bf16.mxu0 (!%p215_p2), %v874_v1  ;;  %v880_v6 = vld [vmem:[%s1081_s1 + $0x24] ss:$8 sps:$4 sm:$0xff] (!%p215_p2)   ;;  %v882_v7 = vld [vmem:[%s1081_s1 + $0x20] ss:$8 sps:$4 sm:$0xff] (!%p215_p2)   ;;  %v883_v8 = vld [vmem:[%s1081_s1 + $0x34] ss:$8 sps:$4 sm:$0xff] (!%p215_p2)  }
   0xa   : > { %372 = vmatpush1.bf16.msra.mxu0 (!%p215_p2), %v876_v2  ;;  %v885_v9 = vld [vmem:[%s1081_s1 + $0x30] ss:$8 sps:$4 sm:$0xff] (!%p215_p2)   ;;  %v886_v10 = vld [vmem:[%s1081_s1 + $0x44] ss:$8 sps:$4 sm:$0xff] (!%p215_p2)   ;;  %v888_v11 = vld [vmem:[%s1081_s1 + $0x40] ss:$8 sps:$4 sm:$0xff] (!%p215_p2)  }
   0xb   : > { %373 = vmatprep.subr.bf16.mxu0 (!%p215_p2), %v877_v4  ;;  %v889_v12 = vld [vmem:[%s1081_s1 + $0x54] ss:$8 sps:$4 sm:$0xff] (!%p215_p2)   ;;  %v891_v13 = vld [vmem:[%s1081_s1 + $0x50] ss:$8 sps:$4 sm:$0xff] (!%p215_p2)   ;;  %v892_v14 = vld [vmem:[%s1081_s1 + $0x64] ss:$8 sps:$4 sm:$0xff] (!%p215_p2)  }
   0xc   : > { %v894_v15 = vld [vmem:[%s1081_s1 + $0x60] ss:$8 sps:$4 sm:$0xff] (!%p215_p2)   ;;  %v895_v16 = vld [vmem:[%s1081_s1 + $0x74] ss:$8 sps:$4 sm:$0xff] (!%p215_p2)   ;;  %v897_v17 = vld [vmem:[%s1081_s1 + $0x70] ss:$8 sps:$4 sm:$0xff] (!%p215_p2)  }
   0xd   : > { %v276_v22 = vshrl.u32 (!%p215_p2), %v275_v21, 7  ;;  %v273_v24 = vld [vmem:[%s1082_s2] sm:$0x3] (!%p215_p2)  ;;  %v924_v38 = vmov (!%p215_p2), 0.0   ;;  %vm925_vm0 = vmmov (!%p215_p2), 0   ;;  %v900_v39 = vld [vmem:[%s1083_s3 + $0x8] sm:$0xff] (!%p215_p2)  }
   0xe   : > { %374 = vmatpush1.bf16.msra.mxu0 (!%p215_p2), %v879_v5  ;;  %824 = vmatprep.subr.bf16.mxu1 (!%p215_p2), %v924_v38  ;;  %v901_v40 = vld [vmem:[%s1083_s3 + $0x10] sm:$0xff] (!%p215_p2)   ;;  %v902_v41 = vld [vmem:[%s1083_s3 + $0x18] sm:$0xff] (!%p215_p2)   ;;  %v903_v42 = vld [vmem:[%s1083_s3 + $0x20] sm:$0xff] (!%p215_p2)   ;;  %vm601_vm1 = vcmask (!%p215_p2), 72704   ;;  %vm605_vm2 = vcmask (!%p215_p2), 65536   ;;  %vm630_vm3 = vcmask (!%p215_p2), 1043456  }
   0xf   : > { %375 = vmatprep.subr.bf16.mxu0 %v880_v6  ;;  %s1088_s24 = smov (!%p244_p3, %s764_s24), 1  ;;  %v277_v23 = vsub.s32 0, %v276_v22  ;;  %v281_v25 = vsub.s32 1, %v276_v22  ;;  %840 = vmatprep.mubr.msk.bf16.mxu1 %vm925_vm0, %v924_v38  ;;  %v904_v43 = vld [vmem:[%s1083_s3 + $0x28] sm:$0xff]   ;;  %v905_v44 = vld [vmem:[%s1083_s3 + $0x30] sm:$0xff]   ;;  %v906_v45 = vld [vmem:[%s1083_s3 + $0x38] sm:$0xff]  }
  0x10   : > { %s805_s27 = sshll.u32 %s1088_s24, 3  ;;  %825 = vmatpush3.bf16.msra.mxu1 %v899_v37  ;;  %v790_v63 = vld [vmem:[%s1084_s4] ss:$0 sm:$0xff]  ;;  %vm631_vm4 = vcmask 1044480   ;;  %v926_v4 = vmov 65535   ;;  %vm703_vm5 = vcmask 1040384  }
  0x11   : > { %s248_s10 = scalar_lea.vmem %s1080_s0, %s805_s27  ;;  %v278_v26 = vrot.slane %v273_v24, %v277_v23  ;;  %v282_v28 = vrot.slane %v273_v24, %v281_v25  ;;  %826 = vmatprep.subr.bf16.mxu1 %v924_v38  ;;  %v632_v5 = vsel %vm630_vm3, 4294967295, %v926_v4  ;;  %s253_s13 = scalar_lea.vmem %s1086_s6, %s805_s27  ;;  %vm704_vm6 = vsmask.f32 256 }
  0x12   : > { %376 = vmatpush1.bf16.msra.mxu0 %v882_v7  ;;  %v1029_v18 = vld [vmem:[%s248_s10] sm:$0xf]  ;;  %v1031_v19 = vld [vmem:[%s248_s10 + $0x4] sm:$0x1]  ;;  %v633_v6 = vsel %vm631_vm4, %v632_v5, 0  ;;  %vm705_vm7 = vmand %vm703_vm5, %vm704_vm6 }
  0x13   : > { %377 = vmatprep.subr.bf16.mxu0 %v883_v8  ;;  %v773_v20 = vcombine.low %v1029_v18, %v1031_v19  ;;  %v800_v8 = vld [vmem:[#allocation2] ss:$0 sm:$0xff]  ;;  %v691_v23 = vunpack.c.l.bf16 %v1031_v19 }
  0x14   : > { %827 = vmatpush3.bf16.msra.mxu1 %v900_v39 }
  0x15   : > { %828 = vmatprep.subr.bf16.mxu1 %v924_v38 }
  0x16   : > { %378 = vmatpush1.bf16.msra.mxu0 %v885_v9 }
  0x17   : > { %379 = vmatprep.subr.bf16.mxu0 %v886_v10 }
  0x18   : > { %829 = vmatpush3.bf16.msra.mxu1 %v901_v40 }
  0x19   : > { %830 = vmatprep.subr.bf16.mxu1 %v924_v38 }
  0x1a   : > { %380 = vmatpush1.bf16.msra.mxu0 %v888_v11 }
  0x1b   : > { %381 = vmatprep.subr.bf16.mxu0 %v889_v12 }
  0x1c   : > { %831 = vmatpush3.bf16.msra.mxu1 %v902_v41 }
  0x1d   : > { %832 = vmatprep.subr.bf16.mxu1 %v924_v38 }
  0x1e   : > { %382 = vmatpush1.bf16.msra.mxu0 %v891_v13 }
  0x1f   : > { %383 = vmatprep.subr.bf16.mxu0 %v892_v14 }
  0x20   : > { %833 = vmatpush3.bf16.msra.mxu1 %v903_v42 }
  0x21   : > { %834 = vmatprep.subr.bf16.mxu1 %v924_v38 }
  0x22   : > { %384 = vmatpush1.bf16.msra.mxu0 %v894_v15 }
  0x23   : > { %385 = vmatprep.subr.bf16.mxu0 %v895_v16 }
  0x24   : > { %835 = vmatpush3.bf16.msra.mxu1 %v904_v43 }
  0x25   : > { %836 = vmatprep.subr.bf16.mxu1 %v924_v38 }
  0x26   : > { %386 = vmatpush1.bf16.msra.mxu0 %v897_v17  ;;  %v690_v17 = vunpack.c.l.bf16 %v1029_v18 }
  0x28   : > { %837 = vmatpush3.bf16.msra.mxu1 %v905_v44 }
  0x29   : > { %404 = vmatmul.mubr.bf16.vlgmr.msra.gmra.mrb[0].mxu0 %v773_v20  ;;  %838 = vmatprep.subr.bf16.mxu1 %v924_v38 }
  0x2c   : > { %839 = vmatpush3.bf16.msra.mxu1 %v906_v45 }
  0x2d   : > { %851 = vmatprep.subr.bf16.mxu1 %v924_v38 }
  0x2f   : > { %841 = vmatmul.mubr.bf16.vlgmr.msra.gmra.mrb[0].mxu1 %v773_v20 }
  0x30   : > { %853 = vmatprep.mubr.msk.bf16.mxu1 %vm925_vm0, %v924_v38 }
  0xfc   : > { %v405_v27 = vpop.f32.mrb[0].mxu0 }
  0xfd   : > { %v406_v29 = vadd.f32 %v405_v27, %v278_v26  ;;  %v407_v30 = vpop.f32.mrb[1].mxu0 }
  0xfe   : > { %v409_v31 = vpop.f32.mrb[2].mxu0  ;;  %v408_v33 = vadd.f32 %v407_v30, %v282_v28  ;;  %v706_v30 = vld [vmem:[%s253_s13 + $0x4] sm:$0x1] }
  0xff   : > { %v411_v32 = vpop.f32.mrb[3].mxu0  ;;  %848 = vmatprep.mubr.f32.mxu0 %v406_v29  ;;  %v410_v36 = vadd.f32 %v409_v31, %v278_v26 }
 0x100   : > { %v412_v34 = vadd.f32 %v411_v32, %v282_v28 }
 0x102   : > { %v857_v35 = vpack.c.bf16 %v412_v34, %v408_v33  ;;  %v519_v60 = vpop.f32.mrb[0].mxu1 }
 0x103   : > { %v842_v61 = vpop.f32.mrb[1].mxu1  ;;  %v520_v1 = vadd.f32 %v790_v63, %v519_v60 }
 0x104   : > { %858 = vmatprep.subr.bf16.mxu0 %v857_v35  ;;  %v522_v62 = vpop.f32.mrb[2].mxu1 }
 0x105   : > { %860 = vmatpush3.bf16.xpose.msra.mxu0 %v857_v35  ;;  %v843_v0 = vpop.f32.mrb[3].mxu1  ;;  %v523_v2 = vadd.f32 %v790_v63, %v522_v62 }
 0x107   : > { %v626_v3 = vpack.c.bf16 %v523_v2, %v520_v1 }
 0x109   : > { %v635_v7 = vand.u32 %v633_v6, %v626_v3 }
 0x10b   : > { %852 = vmatpush3.bf16.msra.mxu1 %v635_v7 }
 0x10c   : > { %849 = vmatmul.mubr.f32.vlgmr.msra.gmra.mrb[4].mxu0 %v410_v36 }
 0x1df   : > { %v850_v46 = vpop.f32.mrb[4].mxu0 }
 0x1e0   : > { %v592_v47 = vpop.f32.mrb[5].mxu0  ;;  %v606_v49 = vsel %vm605_vm2, %v850_v46, -inf }
 0x1e1   : > { %v602_v48 = vsel %vm601_vm1, %v592_v47, -inf }
 0x1e2   : > { %603 = vmax.xlane.f32.xlu0 %v602_v48 }
 0x1e6   : > { %607 = vmax.xlane.f32.xlu0 %v606_v49 }
 0x1fc   : > { %685 = vperm.xlu0 %873, %v800_v8  }
 0x26f   : > { %v604_v50 = vpop.xlane.xlu0 %603 }
 0x270   : > { %v609_v51 = vsub.f32 %v592_v47, %v604_v50 }
 0x272   : > { %v611_v52 = vmul.f32 1.442695, %v609_v51 }
 0x273   : > { %v608_v53 = vpop.xlane.xlu0 %607 }
 0x274   : > { %907 = vpow2.f32 %v611_v52  ;;  %v610_v54 = vsub.f32 %v850_v46, %v608_v53 }
 0x276   : > { %v613_v55 = vmul.f32 1.442695, %v610_v54 }
 0x278   : > { %909 = vpow2.f32 %v613_v55 }
 0x27b   : > { %v686_v16 = vpop.permute.xlu0 %685 }
 0x27e   : > { %v908_v56 = vpop.eup %907 }
 0x27f   : > { %v615_v57 = vsel %vm601_vm1, %v908_v56, 0.0 }
 0x280   : > { %616 = vadd.xlane.f32.xlu1 %v615_v57 }
 0x282   : > { %v910_v58 = vpop.eup %909 }
 0x283   : > { %v618_v59 = vsel %vm605_vm2, %v910_v58, 0.0 }
 0x284   : > { %619 = vadd.xlane.f32.xlu1 %v618_v59 }
 0x30d   : > { %v617_v9 = vpop.xlane.xlu1 %616 }
 0x30e   : > { %911 = vrcp.f32 %v617_v9 }
 0x311   : > { %v620_v10 = vpop.xlane.xlu1 %619 }
 0x312   : > { %913 = vrcp.f32 %v620_v10 }
 0x318   : > { %v912_v11 = vpop.eup %911 }
 0x319   : > { %v623_v13 = vmul.f32 %v912_v11, %v908_v56 }
 0x31c   : > { %v914_v12 = vpop.eup %913 }
 0x31d   : > { %v624_v14 = vmul.f32 %v914_v12, %v910_v58 }
 0x31f   : > { %v625_v15 = vpack.c.bf16 %v624_v14, %v623_v13 }
 0x321   : > { %854 = vmatmul.mubr.msk.bf16.vlgmr.msra.gmra.mrb[4].mxu1 %vm601_vm1, %v625_v15 }
 0x3f4   : > { %v671_v20 = vpop.f32.mrb[4].mxu1 }
 0x3f5   : > { %v688_v21 = vmul.f32 %v686_v16, %v671_v20  ;;  %v855_v22 = vpop.f32.mrb[5].mxu1 }
 0x3f6   : > { %v674_v24 = vpop.f32.mrb[6].mxu1 }
 0x3f7   : > { %v692_v25 = vadd.f32 %v690_v17, %v688_v21  ;;  %v689_v26 = vmul.f32 %v686_v16, %v674_v24  ;;  %v856_v27 = vpop.f32.mrb[7].mxu1 }
 0x3f9   : > { %v807_v28 = vpack.c.bf16 %v692_v25, %v692_v25  ;;  %v693_v29 = vadd.f32 %v691_v23, %v689_v26 }
 0x3fb   : > { %702 = vst [vmem:[%s253_s13] sm:$0xf] %v807_v28  ;;  %v808_v18 = vpack.c.bf16 %v693_v29, %v693_v29 }
 0x3fd   : > { %v707_v31 = vsel %vm705_vm7, %v808_v18, %v706_v30 }
 0x3fe   : > { %708 = vst [vmem:[%s253_s13 + $0x4] sm:$0x1] %v707_v31 }
 0x3ff PF: > { %s18_s23 = sadd.s32 1, %s921_s23  }
 0x400   : > { %p15_p4 = scmp.ge.s32.totalorder %s18_s23, 4  }
 0x402   :  { %17 = sbr.rel (!%p15_p4) target bundleno = 3 (0x3), region = 74 }

// kernel: _lambda_.38
= control target key start
LH: loop header
LB: loop body
LE: loop exit
PB: predicated region body
PF: predicated region fallthrough
CT: control target
= control target key end

     0   :  { %s1632_s1 = inlined_call_operand.vmem [shape: bf16[1152,128], index: 1, kind: input, shape index: {}]   ;;  %s1633_s0 = inlined_call_operand.vmem [shape: bf16[32,1152], index: 0, kind: input, shape index: {}]   ;;  %s1634_s2 = inlined_call_operand.vmem [shape: f32[1,128], index: 2, kind: input, shape index: {}]   ;;  %s1635_s3 = inlined_call_operand.vmem [shape: bf16[32,128], index: 3, kind: output, shape index: {}]  }
   0x1   :  { %v1235_v0 = vld [vmem:[%s1632_s1 + $0x40] sm:$0xff]   ;;  %v1239_v4 = vld [vmem:[%s1632_s1 + $0x48] sm:$0xff]   ;;  %v1243_v8 = vld [vmem:[%s1632_s1 + $0x50] sm:$0xff]  }
   0x2   :  { %v1236_v1 = vld [vmem:[%s1632_s1] sm:$0xff]   ;;  %1093 = vmatprep.subr.bf16.mxu0 %v1235_v0  ;;  %v1240_v5 = vld [vmem:[%s1632_s1 + $0x8] sm:$0xff]   ;;  %v1244_v9 = vld [vmem:[%s1632_s1 + $0x10] sm:$0xff]  }
   0x3   :  { %v1237_v2 = vld [vmem:[%s1632_s1 + $0xc0] sm:$0xff]   ;;  %1094 = vmatpush3.bf16.msra.mxu0 %v1236_v1  ;;  %v1241_v6 = vld [vmem:[%s1632_s1 + $0xc8] sm:$0xff]   ;;  %v1245_v10 = vld [vmem:[%s1632_s1 + $0xd0] sm:$0xff]  }
   0x4   :  { %v1238_v3 = vld [vmem:[%s1632_s1 + $0x80] sm:$0xff]   ;;  %1121 = vmatprep.subr.bf16.mxu1 %v1237_v2  ;;  %1095 = vmatprep.subr.bf16.mxu0 %v1239_v4  ;;  %v1242_v7 = vld [vmem:[%s1632_s1 + $0x88] sm:$0xff]   ;;  %v1246_v11 = vld [vmem:[%s1632_s1 + $0x90] sm:$0xff]  }
   0x5   :  { %1122 = vmatpush3.bf16.msra.mxu1 %v1238_v3  ;;  %v1247_v12 = vld [vmem:[%s1632_s1 + $0x58] sm:$0xff]   ;;  %v1251_v16 = vld [vmem:[%s1632_s1 + $0x60] sm:$0xff]   ;;  %v1255_v20 = vld [vmem:[%s1632_s1 + $0x68] sm:$0xff]  }
   0x6   :  { %1123 = vmatprep.subr.bf16.mxu1 %v1241_v6  ;;  %v1248_v13 = vld [vmem:[%s1632_s1 + $0x18] sm:$0xff]   ;;  %v1252_v17 = vld [vmem:[%s1632_s1 + $0x20] sm:$0xff]   ;;  %v1256_v21 = vld [vmem:[%s1632_s1 + $0x28] sm:$0xff]  }
   0x7   :  { %1096 = vmatpush3.bf16.msra.mxu0 %v1240_v5  ;;  %v1249_v14 = vld [vmem:[%s1632_s1 + $0xd8] sm:$0xff]   ;;  %v1253_v18 = vld [vmem:[%s1632_s1 + $0xe0] sm:$0xff]   ;;  %v1257_v22 = vld [vmem:[%s1632_s1 + $0xe8] sm:$0xff]  }
   0x8   :  { %1097 = vmatprep.subr.bf16.mxu0 %v1243_v8  ;;  %v1250_v15 = vld [vmem:[%s1632_s1 + $0x98] sm:$0xff]   ;;  %v1254_v19 = vld [vmem:[%s1632_s1 + $0xa0] sm:$0xff]   ;;  %v1258_v23 = vld [vmem:[%s1632_s1 + $0xa8] sm:$0xff]  }
   0x9   :  { %1124 = vmatpush3.bf16.msra.mxu1 %v1242_v7  ;;  %v1259_v24 = vld [vmem:[%s1632_s1 + $0x70] sm:$0xff]   ;;  %v1263_v28 = vld [vmem:[%s1632_s1 + $0x78] sm:$0xff]   ;;  %v1266_v31 = vld [vmem:[%s1633_s0] ss:$36 sps:$4 sm:$0xff]  }
   0xa   :  { %1125 = vmatprep.subr.bf16.mxu1 %v1245_v10  ;;  %v1260_v25 = vld [vmem:[%s1632_s1 + $0x30] sm:$0xff]   ;;  %v1264_v29 = vld [vmem:[%s1632_s1 + $0x38] sm:$0xff]   ;;  %v1268_v32 = vld [vmem:[%s1633_s0 + $0x4] ss:$36 sps:$4 sm:$0xff]  }
   0xb   :  { %1098 = vmatpush3.bf16.msra.mxu0 %v1244_v9  ;;  %v1261_v26 = vld [vmem:[%s1632_s1 + $0xf0] sm:$0xff]   ;;  %v1265_v30 = vld [vmem:[%s1632_s1 + $0xf8] sm:$0xff]   ;;  %742 = vmatprep.mubr.bf16.mxu0 %v1268_v32  ;;  %v1270_v34 = vld [vmem:[%s1632_s1 + $0x140] sm:$0xff]  }
   0xc   :  { %1099 = vmatprep.subr.bf16.mxu0 %v1247_v12  ;;  %v1262_v27 = vld [vmem:[%s1632_s1 + $0xb0] sm:$0xff]   ;;  %v1269_v33 = vld [vmem:[%s1632_s1 + $0xb8] sm:$0xff]   ;;  %v1271_v35 = vld [vmem:[%s1633_s0 + $0x8] ss:$36 sps:$4 sm:$0xff]  }
   0xd   :  { %1126 = vmatpush3.bf16.msra.mxu1 %v1246_v11  ;;  %v1273_v36 = vld [vmem:[%s1633_s0 + $0xc] ss:$36 sps:$4 sm:$0xff]   ;;  %v1274_v37 = vld [vmem:[%s1632_s1 + $0x100] sm:$0xff]   ;;  %v1285_v48 = vld [vmem:[%s1632_s1 + $0x158] sm:$0xff]  }
   0xe   :  { %1127 = vmatprep.subr.bf16.mxu1 %v1249_v14  ;;  %791 = vmatprep.mubr.bf16.mxu1 %v1273_v36  ;;  %v1275_v38 = vld [vmem:[%s1632_s1 + $0x1c0] sm:$0xff]   ;;  %v1277_v40 = vld [vmem:[%s1632_s1 + $0x148] sm:$0xff]   ;;  %v1281_v44 = vld [vmem:[%s1632_s1 + $0x150] sm:$0xff]  }
   0xf   :  { %1100 = vmatpush3.bf16.msra.mxu0 %v1248_v13  ;;  %v1276_v39 = vld [vmem:[%s1632_s1 + $0x180] sm:$0xff]   ;;  %v1278_v41 = vld [vmem:[%s1632_s1 + $0x108] sm:$0xff]   ;;  %v1282_v45 = vld [vmem:[%s1632_s1 + $0x110] sm:$0xff]  }
  0x10   :  { %1101 = vmatprep.subr.bf16.mxu0 %v1251_v16  ;;  %v1279_v42 = vld [vmem:[%s1632_s1 + $0x1c8] sm:$0xff]   ;;  %v1283_v46 = vld [vmem:[%s1632_s1 + $0x1d0] sm:$0xff]   ;;  %v1286_v49 = vld [vmem:[%s1632_s1 + $0x118] sm:$0xff]  }
  0x11   :  { %1128 = vmatpush3.bf16.msra.mxu1 %v1250_v15  ;;  %v1280_v43 = vld [vmem:[%s1632_s1 + $0x188] sm:$0xff]   ;;  %v1284_v47 = vld [vmem:[%s1632_s1 + $0x190] sm:$0xff]   ;;  %v1287_v50 = vld [vmem:[%s1632_s1 + $0x1d8] sm:$0xff]  }
  0x12   :  { %1129 = vmatprep.subr.bf16.mxu1 %v1253_v18  ;;  %v1288_v51 = vld [vmem:[%s1632_s1 + $0x198] sm:$0xff]   ;;  %v1289_v52 = vld [vmem:[%s1632_s1 + $0x160] sm:$0xff]   ;;  %v1293_v56 = vld [vmem:[%s1632_s1 + $0x168] sm:$0xff]  }
  0x13   :  { %1102 = vmatpush3.bf16.msra.mxu0 %v1252_v17  ;;  %v1290_v53 = vld [vmem:[%s1632_s1 + $0x120] sm:$0xff]   ;;  %v1294_v57 = vld [vmem:[%s1633_s0 + $0x4c] ss:$36 sps:$4 sm:$0xff]   ;;  %v1299_v61 = vld [vmem:[%s1633_s0 + $0x54] ss:$36 sps:$4 sm:$0xff]  }
  0x14   :  { %1103 = vmatprep.subr.bf16.mxu0 %v1255_v20  ;;  %v1291_v54 = vld [vmem:[%s1632_s1 + $0x1e0] sm:$0xff]   ;;  %v1296_v58 = vld [vmem:[%s1632_s1 + $0x128] sm:$0xff]   ;;  %v1302_v63 = vld [vmem:[%s1633_s0 + $0x50] ss:$36 sps:$4 sm:$0xff]  }
  0x15   :  { %1130 = vmatpush3.bf16.msra.mxu1 %v1254_v19  ;;  %v1292_v55 = vld [vmem:[%s1632_s1 + $0x1a0] sm:$0xff]   ;;  %v1297_v59 = vld [vmem:[%s1633_s0 + $0x48] ss:$36 sps:$4 sm:$0xff]   ;;  %v1303_v0 = vld [vmem:[%s1632_s1 + $0x170] sm:$0xff]  }
  0x16   :  { %1131 = vmatprep.subr.bf16.mxu1 %v1257_v22  ;;  %v1298_v60 = vld [vmem:[%s1632_s1 + $0x1e8] sm:$0xff]   ;;  %v1304_v1 = vld [vmem:[%s1632_s1 + $0x130] sm:$0xff]   ;;  %v1307_v4 = vld [vmem:[%s1632_s1 + $0x178] sm:$0xff]  }
  0x17   :  { %1104 = vmatpush3.bf16.msra.mxu0 %v1256_v21  ;;  %v1301_v62 = vld [vmem:[%s1632_s1 + $0x1a8] sm:$0xff]   ;;  %v1305_v2 = vld [vmem:[%s1632_s1 + $0x1f0] sm:$0xff]   ;;  %v1308_v5 = vld [vmem:[%s1632_s1 + $0x138] sm:$0xff]  }
  0x18   :  { %1105 = vmatprep.subr.bf16.mxu0 %v1259_v24  ;;  %v1306_v3 = vld [vmem:[%s1632_s1 + $0x1b0] sm:$0xff]   ;;  %v1309_v6 = vld [vmem:[%s1632_s1 + $0x1f8] sm:$0xff]   ;;  %v1314_v10 = vld [vmem:[%s1632_s1 + $0x200] sm:$0xff]  }
  0x19   :  { %1132 = vmatpush3.bf16.msra.mxu1 %v1258_v23  ;;  %v1310_v7 = vld [vmem:[%s1633_s0 + $0x10] ss:$36 sps:$4 sm:$0xff]   ;;  %v1313_v9 = vld [vmem:[%s1632_s1 + $0x1b8] sm:$0xff]   ;;  %v1318_v13 = vld [vmem:[%s1632_s1 + $0x208] sm:$0xff]  }
  0x1a   :  { %1133 = vmatprep.subr.bf16.mxu1 %v1261_v26  ;;  %v1312_v8 = vld [vmem:[%s1633_s0 + $0x14] ss:$36 sps:$4 sm:$0xff]   ;;  %v1317_v12 = vld [vmem:[%s1633_s0 + $0x1c] ss:$36 sps:$4 sm:$0xff]   ;;  %v1323_v17 = vld [vmem:[%s1633_s0 + $0x64] ss:$36 sps:$4 sm:$0xff]  }
  0x1b   :  { %1106 = vmatpush3.bf16.msra.mxu0 %v1260_v25  ;;  %v1315_v11 = vld [vmem:[%s1633_s0 + $0x18] ss:$36 sps:$4 sm:$0xff]   ;;  %v1322_v16 = vld [vmem:[%s1632_s1 + $0x210] sm:$0xff]   ;;  %v1325_v18 = vld [vmem:[%s1633_s0 + $0x60] ss:$36 sps:$4 sm:$0xff]  }
  0x1c   :  { %1107 = vmatprep.subr.bf16.mxu0 %v1263_v28  ;;  %v1319_v14 = vld [vmem:[%s1633_s0 + $0x5c] ss:$36 sps:$4 sm:$0xff]   ;;  %v1328_v22 = vld [vmem:[%s1632_s1 + $0x228] sm:$0xff]   ;;  %v1329_v23 = vld [vmem:[%s1632_s1 + $0x230] sm:$0xff]  }
  0x1d   :  { %1134 = vmatpush3.bf16.msra.mxu1 %v1262_v27  ;;  %v1321_v15 = vld [vmem:[%s1633_s0 + $0x58] ss:$36 sps:$4 sm:$0xff]   ;;  %v1327_v20 = vld [vmem:[%s1632_s1 + $0x220] sm:$0xff]   ;;  %v1332_v25 = vld [vmem:[%s1633_s0 + $0x68] ss:$36 sps:$4 sm:$0xff]  }
  0x1e   :  { %1135 = vmatprep.subr.bf16.mxu1 %v1265_v30  ;;  %v1326_v19 = vld [vmem:[%s1632_s1 + $0x218] sm:$0xff]   ;;  %v1331_v21 = vld [vmem:[%s1633_s0 + $0x20] ss:$36 sps:$4 sm:$0xff]  }
  0x1f   :  { %1108 = vmatpush3.bf16.msra.mxu0 %v1264_v29  ;;  %v1330_v24 = vld [vmem:[%s1632_s1 + $0x238] sm:$0xff]   ;;  %v983_v27 = vld [vmem:[%s1634_s2] ss:$0 sm:$0xff] }
  0x20   :  { %1149 = vmatprep.subr.bf16.mxu0 %v1270_v34 }
  0x21   :  { %1136 = vmatpush3.bf16.msra.mxu1 %v1269_v33 }
  0x22   :  { %743 = vmatmul.mubr.bf16.vlgmr.msra.gmra.mrb[0].mxu0 %v1266_v31  ;;  %1177 = vmatprep.subr.bf16.mxu1 %v1275_v38 }
  0x23   :  { %1150 = vmatpush3.bf16.msra.mxu0 %v1274_v37  ;;  %750 = vmatprep.mubr.bf16.mxu0 %v1294_v57 }
  0x24   :  { %792 = vmatmul.mubr.bf16.vlgmr.msra.gmra.mrb[0].mxu1 %v1271_v35  ;;  %1151 = vmatprep.subr.bf16.mxu0 %v1277_v40 }
  0x25   :  { %1178 = vmatpush3.bf16.msra.mxu1 %v1276_v39  ;;  %799 = vmatprep.mubr.bf16.mxu1 %v1299_v61 }
  0x26   :  { %1179 = vmatprep.subr.bf16.mxu1 %v1279_v42 }
  0x27   :  { %1152 = vmatpush3.bf16.msra.mxu0 %v1278_v41 }
  0x28   :  { %1153 = vmatprep.subr.bf16.mxu0 %v1281_v44 }
  0x29   :  { %1180 = vmatpush3.bf16.msra.mxu1 %v1280_v43 }
  0x2a   :  { %1181 = vmatprep.subr.bf16.mxu1 %v1283_v46  ;;  %751 = vmatmul.mubr.bf16.gmra.mrb[4].mxu0 %v1297_v59 }
  0x2b   :  { %1154 = vmatpush3.bf16.msra.mxu0 %v1282_v45  ;;  %840 = vmatprep.mubr.bf16.mxu0 %v1312_v8 }
  0x2c   :  { %1155 = vmatprep.subr.bf16.mxu0 %v1285_v48  ;;  %800 = vmatmul.mubr.bf16.gmra.mrb[4].mxu1 %v1302_v63 }
  0x2d   :  { %1182 = vmatpush3.bf16.msra.mxu1 %v1284_v47  ;;  %889 = vmatprep.mubr.bf16.mxu1 %v1317_v12 }
  0x2e   :  { %1183 = vmatprep.subr.bf16.mxu1 %v1287_v50 }
  0x2f   :  { %1156 = vmatpush3.bf16.msra.mxu0 %v1286_v49 }
  0x30   :  { %1157 = vmatprep.subr.bf16.mxu0 %v1289_v52 }
  0x31   :  { %1184 = vmatpush3.bf16.msra.mxu1 %v1288_v51 }
  0x32   :  { %1185 = vmatprep.subr.bf16.mxu1 %v1291_v54 }
  0x33   :  { %1158 = vmatpush3.bf16.msra.mxu0 %v1290_v53 }
  0x34   :  { %1159 = vmatprep.subr.bf16.mxu0 %v1293_v56 }
  0x35   :  { %1186 = vmatpush3.bf16.msra.mxu1 %v1292_v55 }
  0x36   :  { %1187 = vmatprep.subr.bf16.mxu1 %v1298_v60 }
  0x37   :  { %1160 = vmatpush3.bf16.msra.mxu0 %v1296_v58 }
  0x38   :  { %1161 = vmatprep.subr.bf16.mxu0 %v1303_v0 }
  0x39   :  { %1188 = vmatpush3.bf16.msra.mxu1 %v1301_v62 }
  0x3a   :  { %1189 = vmatprep.subr.bf16.mxu1 %v1305_v2 }
  0x3b   :  { %1162 = vmatpush3.bf16.msra.mxu0 %v1304_v1 }
  0x3c   :  { %1163 = vmatprep.subr.bf16.mxu0 %v1307_v4 }
  0x3d   :  { %1190 = vmatpush3.bf16.msra.mxu1 %v1306_v3 }
  0x3e   :  { %1191 = vmatprep.subr.bf16.mxu1 %v1309_v6 }
  0x3f   :  { %1164 = vmatpush3.bf16.msra.mxu0 %v1308_v5 }
  0x40   :  { %1215 = vmatprep.subr.bf16.mxu0 %v1314_v10 }
  0x41   :  { %1192 = vmatpush3.bf16.msra.mxu1 %v1313_v9 }
  0x42   :  { %841 = vmatmul.mubr.bf16.vlgmr.msra.gmra.mrb[8].mxu0 %v1310_v7 }
  0x43   :  { %1216 = vmatpush3.bf16.msra.mxu0 %v1314_v10  ;;  %848 = vmatprep.mubr.bf16.mxu0 %v1319_v14 }
  0x44   :  { %890 = vmatmul.mubr.bf16.vlgmr.msra.gmra.mrb[8].mxu1 %v1315_v11  ;;  %1217 = vmatprep.subr.bf16.mxu0 %v1318_v13 }
  0x45   :  { %897 = vmatprep.mubr.bf16.mxu1 %v1323_v17 }
  0x47   :  { %1218 = vmatpush3.bf16.msra.mxu0 %v1318_v13 }
  0x48   :  { %1219 = vmatprep.subr.bf16.mxu0 %v1322_v16 }
  0x4a   :  { %849 = vmatmul.mubr.bf16.gmra.mrb[12].mxu0 %v1321_v15 }
  0x4b   :  { %1220 = vmatpush3.bf16.msra.mxu0 %v1322_v16  ;;  %1231 = vmatprep.mubr.bf16.mxu0 %v1331_v21 }
  0x4c   :  { %898 = vmatmul.mubr.bf16.gmra.mrb[12].mxu1 %v1325_v18  ;;  %1221 = vmatprep.subr.bf16.mxu0 %v1326_v19 }
  0x4f   :  { %1222 = vmatpush3.bf16.msra.mxu0 %v1326_v19 }
  0x50   :  { %1223 = vmatprep.subr.bf16.mxu0 %v1327_v20 }
  0x53   :  { %1224 = vmatpush3.bf16.msra.mxu0 %v1327_v20 }
  0x54   :  { %1225 = vmatprep.subr.bf16.mxu0 %v1328_v22 }
  0x57   :  { %1226 = vmatpush3.bf16.msra.mxu0 %v1328_v22 }
  0x58   :  { %1227 = vmatprep.subr.bf16.mxu0 %v1329_v23 }
  0x5b   :  { %1228 = vmatpush3.bf16.msra.mxu0 %v1329_v23 }
  0x5c   :  { %1229 = vmatprep.subr.bf16.mxu0 %v1330_v24 }
  0x5f   :  { %1230 = vmatpush3.bf16.msra.mxu0 %v1330_v24 }
  0x62   :  { %1232 = vmatmul.mubr.bf16.vlgmr.msra.gmra.mrb[16].mxu0 %v1332_v25 }
  0xf5   :  { %v1109_v26 = vpop.f32.mrb[0].mxu0 }
  0xf6   :  { %v1110_v28 = vpop.f32.mrb[1].mxu0 }
  0xf7   :  { %v1111_v29 = vadd.f32 %v1110_v28, %v1109_v26  ;;  %v1112_v30 = vpop.f32.mrb[2].mxu0  ;;  %v1137_v31 = vpop.f32.mrb[0].mxu1 }
  0xf8   :  { %v1113_v32 = vpop.f32.mrb[3].mxu0  ;;  %v1138_v35 = vpop.f32.mrb[1].mxu1 }
  0xf9   :  { %v745_v33 = vadd.f32 %v1111_v29, %v983_v27  ;;  %v1114_v34 = vadd.f32 %v1113_v32, %v1112_v30  ;;  %v1139_v36 = vadd.f32 %v1138_v35, %v1137_v31  ;;  %v1140_v37 = vpop.f32.mrb[2].mxu1 }
  0xfa   :  { %v1141_v39 = vpop.f32.mrb[3].mxu1 }
  0xfb   :  { %v748_v38 = vadd.f32 %v1114_v34, %v983_v27  ;;  %v794_v40 = vadd.f32 %v1139_v36, %v745_v33  ;;  %v1142_v41 = vadd.f32 %v1141_v39, %v1140_v37 }
  0xfd   :  { %v797_v42 = vadd.f32 %v1142_v41, %v748_v38  ;;  %v1115_v43 = vpop.f32.mrb[4].mxu0 }
  0xfe   :  { %v1116_v44 = vpop.f32.mrb[5].mxu0 }
  0xff   :  { %v1117_v45 = vadd.f32 %v1116_v44, %v1115_v43  ;;  %v1118_v46 = vpop.f32.mrb[6].mxu0  ;;  %v1143_v47 = vpop.f32.mrb[4].mxu1 }
 0x100   :  { %v1119_v48 = vpop.f32.mrb[7].mxu0  ;;  %v1144_v51 = vpop.f32.mrb[5].mxu1 }
 0x101   :  { %v753_v49 = vadd.f32 %v1117_v45, %v983_v27  ;;  %v1120_v50 = vadd.f32 %v1119_v48, %v1118_v46  ;;  %v1145_v52 = vadd.f32 %v1144_v51, %v1143_v47  ;;  %v1146_v53 = vpop.f32.mrb[6].mxu1 }
 0x102   :  { %v1147_v55 = vpop.f32.mrb[7].mxu1 }
 0x103   :  { %v756_v54 = vadd.f32 %v1120_v50, %v983_v27  ;;  %v802_v56 = vadd.f32 %v1145_v52, %v753_v49  ;;  %v1148_v57 = vadd.f32 %v1147_v55, %v1146_v53 }
 0x105   :  { %v805_v58 = vadd.f32 %v1148_v57, %v756_v54 }
 0x115   :  { %v1165_v59 = vpop.f32.mrb[8].mxu0 }
 0x116   :  { %v1166_v60 = vpop.f32.mrb[9].mxu0 }
 0x117   :  { %v1167_v61 = vadd.f32 %v1166_v60, %v1165_v59  ;;  %v1168_v62 = vpop.f32.mrb[10].mxu0  ;;  %v1193_v63 = vpop.f32.mrb[8].mxu1 }
 0x118   :  { %v1169_v0 = vpop.f32.mrb[11].mxu0  ;;  %v1194_v3 = vpop.f32.mrb[9].mxu1 }
 0x119   :  { %v843_v1 = vadd.f32 %v1167_v61, %v794_v40  ;;  %v1170_v2 = vadd.f32 %v1169_v0, %v1168_v62  ;;  %v1195_v4 = vadd.f32 %v1194_v3, %v1193_v63  ;;  %v1196_v5 = vpop.f32.mrb[10].mxu1 }
 0x11a   :  { %v1197_v7 = vpop.f32.mrb[11].mxu1 }
 0x11b   :  { %v846_v6 = vadd.f32 %v1170_v2, %v797_v42  ;;  %v1198_v8 = vadd.f32 %v1197_v7, %v1196_v5  ;;  %v892_v9 = vadd.f32 %v1195_v4, %v843_v1 }
 0x11d   :  { %v1171_v10 = vpop.f32.mrb[12].mxu0  ;;  %v895_v12 = vadd.f32 %v1198_v8, %v846_v6 }
 0x11e   :  { %v1172_v11 = vpop.f32.mrb[13].mxu0 }
 0x11f   :  { %v1173_v13 = vadd.f32 %v1172_v11, %v1171_v10  ;;  %v1174_v14 = vpop.f32.mrb[14].mxu0  ;;  %v1199_v15 = vpop.f32.mrb[12].mxu1 }
 0x120   :  { %v1175_v16 = vpop.f32.mrb[15].mxu0  ;;  %v1200_v19 = vpop.f32.mrb[13].mxu1 }
 0x121   :  { %v851_v17 = vadd.f32 %v1173_v13, %v802_v56  ;;  %v1176_v18 = vadd.f32 %v1175_v16, %v1174_v14  ;;  %v1201_v20 = vadd.f32 %v1200_v19, %v1199_v15  ;;  %v1202_v21 = vpop.f32.mrb[14].mxu1 }
 0x122   :  { %v1203_v23 = vpop.f32.mrb[15].mxu1 }
 0x123   :  { %v854_v22 = vadd.f32 %v1176_v18, %v805_v58  ;;  %v1204_v24 = vadd.f32 %v1203_v23, %v1202_v21  ;;  %v900_v25 = vadd.f32 %v1201_v20, %v851_v17 }
 0x125   :  { %v903_v26 = vadd.f32 %v1204_v24, %v854_v22 }
 0x135   :  { %v1233_v27 = vpop.f32.mrb[16].mxu0 }
 0x136   :  { %v949_v28 = vadd.f32 %v1233_v27, %v900_v25  ;;  %v940_v29 = vpop.f32.mrb[17].mxu0 }
 0x137   :  { %v941_v30 = vadd.f32 %v940_v29, %v892_v9  ;;  %v1234_v31 = vpop.f32.mrb[18].mxu0 }
 0x138   :  { %v952_v32 = vadd.f32 %v1234_v31, %v903_v26  ;;  %v943_v33 = vpop.f32.mrb[19].mxu0  ;;  %v957_v35 = vmax.f32 %v949_v28, 0.0 }
 0x139   :  { %v944_v34 = vadd.f32 %v943_v33, %v895_v12  ;;  %v955_v37 = vmax.f32 %v941_v30, 0.0 }
 0x13a   :  { %v958_v36 = vmax.f32 %v952_v32, 0.0 }
 0x13b   :  { %v956_v38 = vmax.f32 %v944_v34, 0.0 }
 0x13c   :  { %v1090_v39 = vpack.c.bf16 %v958_v36, %v957_v35 }
 0x13d   :  { %v1085_v40 = vpack.c.bf16 %v956_v38, %v955_v37 }
 0x13e   :  { %1092 = vst [vmem:[%s1635_s3 + $0x8] sm:$0xff] %v1090_v39  }
 0x13f   :  { %1086 = vst [vmem:[%s1635_s3] sm:$0xff] %v1085_v40  }

// kernel: _lambda_.42
= control target key start
LH: loop header
LB: loop body
LE: loop exit
PB: predicated region body
PF: predicated region fallthrough
CT: control target
= control target key end

     0   :  { %s2080_s1 = inlined_call_operand.vmem [shape: bf16[1152,256], index: 1, kind: input, shape index: {}]   ;;  %s2081_s0 = inlined_call_operand.vmem [shape: bf16[16,1152], index: 0, kind: input, shape index: {}]   ;;  %s2082_s2 = inlined_call_operand.vmem [shape: f32[1,256], index: 2, kind: input, shape index: {}]   ;;  %s2083_s3 = inlined_call_operand.vmem [shape: bf16[16,256], index: 3, kind: output, shape index: {}]  }
   0x1   :  { %v1362_v0 = vld [vmem:[%s2080_s1 + $0x4] ss:$8 sps:$4 sm:$0xff]   ;;  %v1366_v2 = vld [vmem:[%s2080_s1] ss:$8 sps:$4 sm:$0xff]   ;;  %v1368_v4 = vld [vmem:[%s2080_s1 + $0x14] ss:$8 sps:$4 sm:$0xff]  }
   0x2   :  { %v1364_v1 = vld [vmem:[%s2080_s1 + $0x204] ss:$8 sps:$4 sm:$0xff]   ;;  %947 = vmatprep.subr.bf16.mxu1 %v1362_v0  ;;  %v1367_v3 = vld [vmem:[%s2080_s1 + $0x200] ss:$8 sps:$4 sm:$0xff]   ;;  %v1370_v5 = vld [vmem:[%s2080_s1 + $0x214] ss:$8 sps:$4 sm:$0xff]  }
   0x3   :  { %1033 = vmatprep.subr.bf16.mxu0 %v1364_v1  ;;  %948 = vmatpush1.bf16.msra.mxu1 %v1366_v2  ;;  %v1372_v6 = vld [vmem:[%s2080_s1 + $0x10] ss:$8 sps:$4 sm:$0xff]   ;;  %v1374_v8 = vld [vmem:[%s2080_s1 + $0x24] ss:$8 sps:$4 sm:$0xff]   ;;  %v1378_v10 = vld [vmem:[%s2080_s1 + $0x20] ss:$8 sps:$4 sm:$0xff]  }
   0x4   :  { %1034 = vmatpush1.bf16.msra.mxu0 %v1367_v3  ;;  %949 = vmatprep.subr.bf16.mxu1 %v1368_v4  ;;  %v1373_v7 = vld [vmem:[%s2080_s1 + $0x210] ss:$8 sps:$4 sm:$0xff]   ;;  %v1376_v9 = vld [vmem:[%s2080_s1 + $0x224] ss:$8 sps:$4 sm:$0xff]   ;;  %v1379_v11 = vld [vmem:[%s2080_s1 + $0x220] ss:$8 sps:$4 sm:$0xff]  }
   0x5   :  { %1035 = vmatprep.subr.bf16.mxu0 %v1370_v5  ;;  %v1380_v12 = vld [vmem:[%s2080_s1 + $0x34] ss:$8 sps:$4 sm:$0xff]   ;;  %v1384_v14 = vld [vmem:[%s2080_s1 + $0x30] ss:$8 sps:$4 sm:$0xff]   ;;  %v1386_v16 = vld [vmem:[%s2080_s1 + $0x44] ss:$8 sps:$4 sm:$0xff]  }
   0x6   :  { %v1382_v13 = vld [vmem:[%s2080_s1 + $0x234] ss:$8 sps:$4 sm:$0xff]   ;;  %v1385_v15 = vld [vmem:[%s2080_s1 + $0x230] ss:$8 sps:$4 sm:$0xff]   ;;  %v1388_v17 = vld [vmem:[%s2080_s1 + $0x244] ss:$8 sps:$4 sm:$0xff]  }
   0x7   :  { %950 = vmatpush1.bf16.msra.mxu1 %v1372_v6  ;;  %v1390_v18 = vld [vmem:[%s2080_s1 + $0x40] ss:$8 sps:$4 sm:$0xff]   ;;  %v1392_v20 = vld [vmem:[%s2080_s1 + $0x54] ss:$8 sps:$4 sm:$0xff]   ;;  %v1396_v22 = vld [vmem:[%s2080_s1 + $0x50] ss:$8 sps:$4 sm:$0xff]  }
   0x8   :  { %1036 = vmatpush1.bf16.msra.mxu0 %v1373_v7  ;;  %951 = vmatprep.subr.bf16.mxu1 %v1374_v8  ;;  %v1391_v19 = vld [vmem:[%s2080_s1 + $0x240] ss:$8 sps:$4 sm:$0xff]   ;;  %v1394_v21 = vld [vmem:[%s2080_s1 + $0x254] ss:$8 sps:$4 sm:$0xff]   ;;  %v1397_v23 = vld [vmem:[%s2080_s1 + $0x250] ss:$8 sps:$4 sm:$0xff]  }
   0x9   :  { %1037 = vmatprep.subr.bf16.mxu0 %v1376_v9  ;;  %v1398_v24 = vld [vmem:[%s2080_s1 + $0x64] ss:$8 sps:$4 sm:$0xff]   ;;  %v1402_v26 = vld [vmem:[%s2080_s1 + $0x60] ss:$8 sps:$4 sm:$0xff]   ;;  %v1404_v28 = vld [vmem:[%s2080_s1 + $0x74] ss:$8 sps:$4 sm:$0xff]  }
   0xa   :  { %v1400_v25 = vld [vmem:[%s2080_s1 + $0x264] ss:$8 sps:$4 sm:$0xff]   ;;  %v1403_v27 = vld [vmem:[%s2080_s1 + $0x260] ss:$8 sps:$4 sm:$0xff]   ;;  %v1406_v29 = vld [vmem:[%s2080_s1 + $0x274] ss:$8 sps:$4 sm:$0xff]  }
   0xb   :  { %952 = vmatpush1.bf16.msra.mxu1 %v1378_v10  ;;  %v1408_v30 = vld [vmem:[%s2080_s1 + $0x70] ss:$8 sps:$4 sm:$0xff]   ;;  %v1410_v32 = vld [vmem:[%s2080_s1 + $0x84] ss:$8 sps:$4 sm:$0xff]   ;;  %v1414_v34 = vld [vmem:[%s2080_s1 + $0x80] ss:$8 sps:$4 sm:$0xff]  }
   0xc   :  { %1038 = vmatpush1.bf16.msra.mxu0 %v1379_v11  ;;  %953 = vmatprep.subr.bf16.mxu1 %v1380_v12  ;;  %v1409_v31 = vld [vmem:[%s2080_s1 + $0x270] ss:$8 sps:$4 sm:$0xff]   ;;  %v1412_v33 = vld [vmem:[%s2080_s1 + $0x284] ss:$8 sps:$4 sm:$0xff]   ;;  %v1415_v35 = vld [vmem:[%s2080_s1 + $0x280] ss:$8 sps:$4 sm:$0xff]  }
   0xd   :  { %1039 = vmatprep.subr.bf16.mxu0 %v1382_v13  ;;  %v1416_v36 = vld [vmem:[%s2080_s1 + $0x94] ss:$8 sps:$4 sm:$0xff]   ;;  %v1420_v38 = vld [vmem:[%s2080_s1 + $0x90] ss:$8 sps:$4 sm:$0xff]   ;;  %v1422_v40 = vld [vmem:[%s2080_s1 + $0xa4] ss:$8 sps:$4 sm:$0xff]  }
   0xe   :  { %v1418_v37 = vld [vmem:[%s2080_s1 + $0x294] ss:$8 sps:$4 sm:$0xff]   ;;  %v1421_v39 = vld [vmem:[%s2080_s1 + $0x290] ss:$8 sps:$4 sm:$0xff]   ;;  %v1424_v41 = vld [vmem:[%s2080_s1 + $0x2a4] ss:$8 sps:$4 sm:$0xff]  }
   0xf   :  { %954 = vmatpush1.bf16.msra.mxu1 %v1384_v14  ;;  %v1426_v42 = vld [vmem:[%s2080_s1 + $0xa0] ss:$8 sps:$4 sm:$0xff]   ;;  %v1428_v44 = vld [vmem:[%s2080_s1 + $0xb4] ss:$8 sps:$4 sm:$0xff]   ;;  %v1432_v46 = vld [vmem:[%s2080_s1 + $0xb0] ss:$8 sps:$4 sm:$0xff]  }
  0x10   :  { %1040 = vmatpush1.bf16.msra.mxu0 %v1385_v15  ;;  %955 = vmatprep.subr.bf16.mxu1 %v1386_v16  ;;  %v1427_v43 = vld [vmem:[%s2080_s1 + $0x2a0] ss:$8 sps:$4 sm:$0xff]   ;;  %v1430_v45 = vld [vmem:[%s2080_s1 + $0x2b4] ss:$8 sps:$4 sm:$0xff]   ;;  %v1433_v47 = vld [vmem:[%s2080_s1 + $0x2b0] ss:$8 sps:$4 sm:$0xff]  }
  0x11   :  { %1041 = vmatprep.subr.bf16.mxu0 %v1388_v17  ;;  %v1460_v48 = vld [vmem:[%s2081_s0 + $0x4] ss:$36 sps:$4 sm:$0xff]   ;;  %v1466_v51 = vld [vmem:[%s2081_s0 + $0x14] ss:$36 sps:$4 sm:$0xff]  }
  0x12   :  { %v1434_v49 = vld [vmem:[%s2080_s1 + $0xc4] ss:$8 sps:$4 sm:$0xff]   ;;  %979 = vmatprep.mubr.bf16.mxu1 %v1460_v48  ;;  %v1438_v52 = vld [vmem:[%s2080_s1 + $0xc0] ss:$8 sps:$4 sm:$0xff]   ;;  %v1440_v54 = vld [vmem:[%s2080_s1 + $0xd4] ss:$8 sps:$4 sm:$0xff]   ;;  %1065 = vmatprep.mubr.bf16.mxu0 %v1466_v51 }
  0x13   :  { %956 = vmatpush1.bf16.msra.mxu1 %v1390_v18  ;;  %v1436_v50 = vld [vmem:[%s2080_s1 + $0x2c4] ss:$8 sps:$4 sm:$0xff]   ;;  %v1439_v53 = vld [vmem:[%s2080_s1 + $0x2c0] ss:$8 sps:$4 sm:$0xff]   ;;  %v1442_v55 = vld [vmem:[%s2080_s1 + $0x2d4] ss:$8 sps:$4 sm:$0xff]  }
  0x14   :  { %1042 = vmatpush1.bf16.msra.mxu0 %v1391_v19  ;;  %957 = vmatprep.subr.bf16.mxu1 %v1392_v20  ;;  %v1444_v56 = vld [vmem:[%s2080_s1 + $0xd0] ss:$8 sps:$4 sm:$0xff]   ;;  %v1446_v58 = vld [vmem:[%s2080_s1 + $0xe4] ss:$8 sps:$4 sm:$0xff]   ;;  %v1450_v60 = vld [vmem:[%s2080_s1 + $0xe0] ss:$8 sps:$4 sm:$0xff]  }
  0x15   :  { %1043 = vmatprep.subr.bf16.mxu0 %v1394_v21  ;;  %v1445_v57 = vld [vmem:[%s2080_s1 + $0x2d0] ss:$8 sps:$4 sm:$0xff]   ;;  %v1448_v59 = vld [vmem:[%s2080_s1 + $0x2e4] ss:$8 sps:$4 sm:$0xff]   ;;  %v1451_v61 = vld [vmem:[%s2080_s1 + $0x2e0] ss:$8 sps:$4 sm:$0xff]  }
  0x16   :  { %v1452_v62 = vld [vmem:[%s2080_s1 + $0xf4] ss:$8 sps:$4 sm:$0xff]   ;;  %v1456_v0 = vld [vmem:[%s2080_s1 + $0xf0] ss:$8 sps:$4 sm:$0xff]   ;;  %v1463_v2 = vld [vmem:[%s2080_s1 + $0x104] ss:$8 sps:$4 sm:$0xff]  }
  0x17   :  { %958 = vmatpush1.bf16.msra.mxu1 %v1396_v22  ;;  %v1454_v63 = vld [vmem:[%s2080_s1 + $0x2f4] ss:$8 sps:$4 sm:$0xff]   ;;  %v1457_v1 = vld [vmem:[%s2080_s1 + $0x2f0] ss:$8 sps:$4 sm:$0xff]   ;;  %v1469_v3 = vld [vmem:[%s2080_s1 + $0x304] ss:$8 sps:$4 sm:$0xff]  }
  0x18   :  { %1044 = vmatpush1.bf16.msra.mxu0 %v1397_v23  ;;  %959 = vmatprep.subr.bf16.mxu1 %v1398_v24  ;;  %v1458_v4 = vld [vmem:[%s2081_s0] ss:$36 sps:$4 sm:$0xff]   ;;  %v1464_v6 = vld [vmem:[%s2081_s0 + $0x10] ss:$36 sps:$4 sm:$0xff]  }
  0x19   :  { %1045 = vmatprep.subr.bf16.mxu0 %v1400_v25  ;;  %v1461_v5 = vld [vmem:[%s2080_s1 + $0x100] ss:$8 sps:$4 sm:$0xff]   ;;  %v1472_v8 = vld [vmem:[%s2080_s1 + $0x114] ss:$8 sps:$4 sm:$0xff]   ;;  %v1470_v10 = vld [vmem:[%s2080_s1 + $0x110] ss:$8 sps:$4 sm:$0xff]  }
  0x1a   :  { %v1467_v7 = vld [vmem:[%s2080_s1 + $0x300] ss:$8 sps:$4 sm:$0xff]   ;;  %v1475_v9 = vld [vmem:[%s2080_s1 + $0x314] ss:$8 sps:$4 sm:$0xff]   ;;  %v1473_v11 = vld [vmem:[%s2080_s1 + $0x310] ss:$8 sps:$4 sm:$0xff]  }
  0x1b   :  { %960 = vmatpush1.bf16.msra.mxu1 %v1402_v26  ;;  %v1478_v12 = vld [vmem:[%s2080_s1 + $0x124] ss:$8 sps:$4 sm:$0xff]   ;;  %v1476_v14 = vld [vmem:[%s2080_s1 + $0x120] ss:$8 sps:$4 sm:$0xff]   ;;  %v1484_v16 = vld [vmem:[%s2080_s1 + $0x134] ss:$8 sps:$4 sm:$0xff]  }
  0x1c   :  { %1046 = vmatpush1.bf16.msra.mxu0 %v1403_v27  ;;  %961 = vmatprep.subr.bf16.mxu1 %v1404_v28  ;;  %v1481_v13 = vld [vmem:[%s2080_s1 + $0x324] ss:$8 sps:$4 sm:$0xff]   ;;  %v1479_v15 = vld [vmem:[%s2080_s1 + $0x320] ss:$8 sps:$4 sm:$0xff]   ;;  %v1487_v17 = vld [vmem:[%s2080_s1 + $0x334] ss:$8 sps:$4 sm:$0xff]  }
  0x1d   :  { %1047 = vmatprep.subr.bf16.mxu0 %v1406_v29  ;;  %v1482_v18 = vld [vmem:[%s2080_s1 + $0x130] ss:$8 sps:$4 sm:$0xff]   ;;  %v1490_v20 = vld [vmem:[%s2080_s1 + $0x144] ss:$8 sps:$4 sm:$0xff]   ;;  %v1488_v22 = vld [vmem:[%s2080_s1 + $0x140] ss:$8 sps:$4 sm:$0xff]  }
  0x1e   :  { %v1485_v19 = vld [vmem:[%s2080_s1 + $0x330] ss:$8 sps:$4 sm:$0xff]   ;;  %v1493_v21 = vld [vmem:[%s2080_s1 + $0x344] ss:$8 sps:$4 sm:$0xff]   ;;  %v1491_v23 = vld [vmem:[%s2080_s1 + $0x340] ss:$8 sps:$4 sm:$0xff]  }
  0x1f   :  { %962 = vmatpush1.bf16.msra.mxu1 %v1408_v30  ;;  %v1496_v24 = vld [vmem:[%s2080_s1 + $0x154] ss:$8 sps:$4 sm:$0xff]   ;;  %v1494_v26 = vld [vmem:[%s2080_s1 + $0x150] ss:$8 sps:$4 sm:$0xff]   ;;  %v1502_v28 = vld [vmem:[%s2080_s1 + $0x164] ss:$8 sps:$4 sm:$0xff]  }
  0x20   :  { %1048 = vmatpush1.bf16.msra.mxu0 %v1409_v31  ;;  %963 = vmatprep.subr.bf16.mxu1 %v1410_v32  ;;  %v1499_v25 = vld [vmem:[%s2080_s1 + $0x354] ss:$8 sps:$4 sm:$0xff]   ;;  %v1497_v27 = vld [vmem:[%s2080_s1 + $0x350] ss:$8 sps:$4 sm:$0xff]   ;;  %v1505_v29 = vld [vmem:[%s2080_s1 + $0x364] ss:$8 sps:$4 sm:$0xff]  }
  0x21   :  { %1049 = vmatprep.subr.bf16.mxu0 %v1412_v33  ;;  %v1500_v30 = vld [vmem:[%s2080_s1 + $0x160] ss:$8 sps:$4 sm:$0xff]   ;;  %v1508_v32 = vld [vmem:[%s2080_s1 + $0x174] ss:$8 sps:$4 sm:$0xff]  }
  0x22   :  { %v1503_v31 = vld [vmem:[%s2080_s1 + $0x360] ss:$8 sps:$4 sm:$0xff]   ;;  %v1511_v33 = vld [vmem:[%s2080_s1 + $0x374] ss:$8 sps:$4 sm:$0xff]  }
  0x23   :  { %964 = vmatpush1.bf16.msra.mxu1 %v1414_v34  ;;  %v1562_v34 = vld [vmem:[%s2081_s0 + $0xc] ss:$36 sps:$4 sm:$0xff]   ;;  %v1524_v48 = vld [vmem:[%s2080_s1 + $0x1a0] ss:$8 sps:$4 sm:$0xff]   ;;  %v1535_v51 = vld [vmem:[%s2080_s1 + $0x3b4] ss:$8 sps:$4 sm:$0xff]  }
  0x24   :  { %1050 = vmatpush1.bf16.msra.mxu0 %v1415_v35  ;;  %965 = vmatprep.subr.bf16.mxu1 %v1416_v36  ;;  %v1565_v35 = vld [vmem:[%s2081_s0 + $0x1c] ss:$36 sps:$4 sm:$0xff]   ;;  %v1506_v36 = vld [vmem:[%s2080_s1 + $0x170] ss:$8 sps:$4 sm:$0xff]  }
  0x25   :  { %1051 = vmatprep.subr.bf16.mxu0 %v1418_v37  ;;  %v1509_v37 = vld [vmem:[%s2080_s1 + $0x370] ss:$8 sps:$4 sm:$0xff]  }
  0x27   :  { %966 = vmatpush1.bf16.msra.mxu1 %v1420_v38  ;;  %v1514_v38 = vld [vmem:[%s2080_s1 + $0x184] ss:$8 sps:$4 sm:$0xff]  }
  0x28   :  { %1052 = vmatpush1.bf16.msra.mxu0 %v1421_v39  ;;  %967 = vmatprep.subr.bf16.mxu1 %v1422_v40  ;;  %v1517_v39 = vld [vmem:[%s2080_s1 + $0x384] ss:$8 sps:$4 sm:$0xff]   ;;  %v1512_v40 = vld [vmem:[%s2080_s1 + $0x180] ss:$8 sps:$4 sm:$0xff]  }
  0x29   :  { %1053 = vmatprep.subr.bf16.mxu0 %v1424_v41  ;;  %v1515_v41 = vld [vmem:[%s2080_s1 + $0x380] ss:$8 sps:$4 sm:$0xff]  }
  0x2b   :  { %968 = vmatpush1.bf16.msra.mxu1 %v1426_v42  ;;  %v1520_v42 = vld [vmem:[%s2080_s1 + $0x194] ss:$8 sps:$4 sm:$0xff]  }
  0x2c   :  { %1054 = vmatpush1.bf16.msra.mxu0 %v1427_v43  ;;  %969 = vmatprep.subr.bf16.mxu1 %v1428_v44  ;;  %v1523_v43 = vld [vmem:[%s2080_s1 + $0x394] ss:$8 sps:$4 sm:$0xff]   ;;  %v1518_v44 = vld [vmem:[%s2080_s1 + $0x190] ss:$8 sps:$4 sm:$0xff]  }
  0x2d   :  { %1055 = vmatprep.subr.bf16.mxu0 %v1430_v45  ;;  %v1521_v45 = vld [vmem:[%s2080_s1 + $0x390] ss:$8 sps:$4 sm:$0xff]  }
  0x2f   :  { %970 = vmatpush1.bf16.msra.mxu1 %v1432_v46  ;;  %v1526_v46 = vld [vmem:[%s2080_s1 + $0x1a4] ss:$8 sps:$4 sm:$0xff]  }
  0x30   :  { %1056 = vmatpush1.bf16.msra.mxu0 %v1433_v47  ;;  %971 = vmatprep.subr.bf16.mxu1 %v1434_v49  ;;  %v1529_v47 = vld [vmem:[%s2080_s1 + $0x3a4] ss:$8 sps:$4 sm:$0xff]   ;;  %v1527_v49 = vld [vmem:[%s2080_s1 + $0x3a0] ss:$8 sps:$4 sm:$0xff]  }
  0x31   :  { %1057 = vmatprep.subr.bf16.mxu0 %v1436_v50  ;;  %v1532_v50 = vld [vmem:[%s2080_s1 + $0x1b4] ss:$8 sps:$4 sm:$0xff]  }
  0x33   :  { %972 = vmatpush1.bf16.msra.mxu1 %v1438_v52  ;;  %v1530_v52 = vld [vmem:[%s2080_s1 + $0x1b0] ss:$8 sps:$4 sm:$0xff]  }
  0x34   :  { %1058 = vmatpush1.bf16.msra.mxu0 %v1439_v53  ;;  %973 = vmatprep.subr.bf16.mxu1 %v1440_v54  ;;  %v1533_v53 = vld [vmem:[%s2080_s1 + $0x3b0] ss:$8 sps:$4 sm:$0xff]   ;;  %v1538_v54 = vld [vmem:[%s2080_s1 + $0x1c4] ss:$8 sps:$4 sm:$0xff]  }
  0x35   :  { %1059 = vmatprep.subr.bf16.mxu0 %v1442_v55  ;;  %v1541_v55 = vld [vmem:[%s2080_s1 + $0x3c4] ss:$8 sps:$4 sm:$0xff]  }
  0x37   :  { %974 = vmatpush1.bf16.msra.mxu1 %v1444_v56  ;;  %v1536_v56 = vld [vmem:[%s2080_s1 + $0x1c0] ss:$8 sps:$4 sm:$0xff]  }
  0x38   :  { %1060 = vmatpush1.bf16.msra.mxu0 %v1445_v57  ;;  %975 = vmatprep.subr.bf16.mxu1 %v1446_v58  ;;  %v1539_v57 = vld [vmem:[%s2080_s1 + $0x3c0] ss:$8 sps:$4 sm:$0xff]   ;;  %v1544_v58 = vld [vmem:[%s2080_s1 + $0x1d4] ss:$8 sps:$4 sm:$0xff]  }
  0x39   :  { %1061 = vmatprep.subr.bf16.mxu0 %v1448_v59  ;;  %v1547_v59 = vld [vmem:[%s2080_s1 + $0x3d4] ss:$8 sps:$4 sm:$0xff]  }
  0x3b   :  { %976 = vmatpush1.bf16.msra.mxu1 %v1450_v60  ;;  %v1542_v60 = vld [vmem:[%s2080_s1 + $0x1d0] ss:$8 sps:$4 sm:$0xff]  }
  0x3c   :  { %1062 = vmatpush1.bf16.msra.mxu0 %v1451_v61  ;;  %977 = vmatprep.subr.bf16.mxu1 %v1452_v62  ;;  %v1545_v61 = vld [vmem:[%s2080_s1 + $0x3d0] ss:$8 sps:$4 sm:$0xff]   ;;  %v1550_v62 = vld [vmem:[%s2080_s1 + $0x1e4] ss:$8 sps:$4 sm:$0xff]  }
  0x3d   :  { %1063 = vmatprep.subr.bf16.mxu0 %v1454_v63  ;;  %v1553_v63 = vld [vmem:[%s2080_s1 + $0x3e4] ss:$8 sps:$4 sm:$0xff]  }
  0x3f   :  { %978 = vmatpush1.bf16.msra.mxu1 %v1456_v0  ;;  %v1548_v0 = vld [vmem:[%s2080_s1 + $0x1e0] ss:$8 sps:$4 sm:$0xff]  }
  0x40   :  { %1064 = vmatpush1.bf16.msra.mxu0 %v1457_v1  ;;  %990 = vmatprep.subr.bf16.mxu1 %v1463_v2  ;;  %v1551_v1 = vld [vmem:[%s2080_s1 + $0x3e0] ss:$8 sps:$4 sm:$0xff]   ;;  %v1556_v2 = vld [vmem:[%s2080_s1 + $0x1f4] ss:$8 sps:$4 sm:$0xff]  }
  0x41   :  { %1076 = vmatprep.subr.bf16.mxu0 %v1469_v3  ;;  %v1559_v3 = vld [vmem:[%s2080_s1 + $0x3f4] ss:$8 sps:$4 sm:$0xff]  }
  0x42   :  { %980 = vmatmul.mubr.bf16.vlgmr.msra.gmra.mrb[0].mxu1 %v1458_v4  ;;  %v1554_v4 = vld [vmem:[%s2080_s1 + $0x1f0] ss:$8 sps:$4 sm:$0xff]  }
  0x43   :  { %1066 = vmatmul.mubr.bf16.vlgmr.msra.gmra.mrb[0].mxu0 %v1464_v6  ;;  %991 = vmatpush1.bf16.msra.mxu1 %v1461_v5  ;;  %v1557_v5 = vld [vmem:[%s2080_s1 + $0x3f0] ss:$8 sps:$4 sm:$0xff]   ;;  %v1568_v6 = vld [vmem:[%s2080_s1 + $0x404] ss:$8 sps:$4 sm:$0xff]  }
  0x44   :  { %1077 = vmatpush1.bf16.msra.mxu0 %v1467_v7  ;;  %992 = vmatprep.subr.bf16.mxu1 %v1472_v8  ;;  %v1560_v7 = vld [vmem:[%s2081_s0 + $0x8] ss:$36 sps:$4 sm:$0xff]   ;;  %v1563_v8 = vld [vmem:[%s2081_s0 + $0x18] ss:$36 sps:$4 sm:$0xff]  }
  0x45   :  { %1078 = vmatprep.subr.bf16.mxu0 %v1475_v9  ;;  %1022 = vmatprep.mubr.bf16.mxu1 %v1562_v34  ;;  %v1566_v9 = vld [vmem:[%s2080_s1 + $0x400] ss:$8 sps:$4 sm:$0xff]  }
  0x46   :  { %1108 = vmatprep.mubr.bf16.mxu0 %v1565_v35 }
  0x47   :  { %993 = vmatpush1.bf16.msra.mxu1 %v1470_v10  ;;  %v1571_v10 = vld [vmem:[%s2080_s1 + $0x414] ss:$8 sps:$4 sm:$0xff]  }
  0x48   :  { %1079 = vmatpush1.bf16.msra.mxu0 %v1473_v11  ;;  %994 = vmatprep.subr.bf16.mxu1 %v1478_v12  ;;  %v1569_v11 = vld [vmem:[%s2080_s1 + $0x410] ss:$8 sps:$4 sm:$0xff]   ;;  %v1591_v12 = vmov 0  }
  0x49   :  { %1080 = vmatprep.subr.bf16.mxu0 %v1481_v13  ;;  %v1574_v13 = vld [vmem:[%s2080_s1 + $0x424] ss:$8 sps:$4 sm:$0xff]  }
  0x4b   :  { %995 = vmatpush1.bf16.msra.mxu1 %v1476_v14  ;;  %v1572_v14 = vld [vmem:[%s2080_s1 + $0x420] ss:$8 sps:$4 sm:$0xff]  }
  0x4c   :  { %1081 = vmatpush1.bf16.msra.mxu0 %v1479_v15  ;;  %996 = vmatprep.subr.bf16.mxu1 %v1484_v16  ;;  %v1577_v15 = vld [vmem:[%s2080_s1 + $0x434] ss:$8 sps:$4 sm:$0xff]   ;;  %v1575_v16 = vld [vmem:[%s2080_s1 + $0x430] ss:$8 sps:$4 sm:$0xff]  }
  0x4d   :  { %1082 = vmatprep.subr.bf16.mxu0 %v1487_v17  ;;  %v1580_v17 = vld [vmem:[%s2080_s1 + $0x444] ss:$8 sps:$4 sm:$0xff]  }
  0x4f   :  { %997 = vmatpush1.bf16.msra.mxu1 %v1482_v18  ;;  %v1578_v18 = vld [vmem:[%s2080_s1 + $0x440] ss:$8 sps:$4 sm:$0xff]  }
  0x50   :  { %1083 = vmatpush1.bf16.msra.mxu0 %v1485_v19  ;;  %998 = vmatprep.subr.bf16.mxu1 %v1490_v20  ;;  %v1583_v19 = vld [vmem:[%s2080_s1 + $0x454] ss:$8 sps:$4 sm:$0xff]   ;;  %v1581_v20 = vld [vmem:[%s2080_s1 + $0x450] ss:$8 sps:$4 sm:$0xff]  }
  0x51   :  { %1084 = vmatprep.subr.bf16.mxu0 %v1493_v21  ;;  %v1586_v21 = vld [vmem:[%s2080_s1 + $0x464] ss:$8 sps:$4 sm:$0xff]  }
  0x53   :  { %999 = vmatpush1.bf16.msra.mxu1 %v1488_v22  ;;  %v1584_v22 = vld [vmem:[%s2080_s1 + $0x460] ss:$8 sps:$4 sm:$0xff]  }
  0x54   :  { %1085 = vmatpush1.bf16.msra.mxu0 %v1491_v23  ;;  %1000 = vmatprep.subr.bf16.mxu1 %v1496_v24  ;;  %v1589_v23 = vld [vmem:[%s2080_s1 + $0x474] ss:$8 sps:$4 sm:$0xff]   ;;  %v1587_v24 = vld [vmem:[%s2080_s1 + $0x470] ss:$8 sps:$4 sm:$0xff]  }
  0x55   :  { %1086 = vmatprep.subr.bf16.mxu0 %v1499_v25  ;;  %v1590_v25 = vld [vmem:[%s2081_s0 + $0x20] ss:$36 sps:$4 sm:$0xff]  }
  0x57   :  { %1001 = vmatpush1.bf16.msra.mxu1 %v1494_v26 }
  0x58   :  { %1087 = vmatpush1.bf16.msra.mxu0 %v1497_v27  ;;  %1002 = vmatprep.subr.bf16.mxu1 %v1502_v28 }
  0x59   :  { %1088 = vmatprep.subr.bf16.mxu0 %v1505_v29 }
  0x5b   :  { %1003 = vmatpush1.bf16.msra.mxu1 %v1500_v30  ;;  %v171_v30 = vlaneseq }
  0x5c   :  { %1089 = vmatpush1.bf16.msra.mxu0 %v1503_v31  ;;  %1004 = vmatprep.subr.bf16.mxu1 %v1508_v32 }
  0x5d   :  { %1090 = vmatprep.subr.bf16.mxu0 %v1511_v33  ;;  %v172_v31 = vshrl.u32 %v171_v30, 7  ;;  %v169_v33 = vld [vmem:[%s2082_s2] sm:$0x3] }
  0x5f   :  { %1005 = vmatpush1.bf16.msra.mxu1 %v1506_v36  ;;  %v173_v32 = vsub.s32 0, %v172_v31  ;;  %v177_v34 = vsub.s32 1, %v172_v31 }
  0x60   :  { %1091 = vmatpush1.bf16.msra.mxu0 %v1509_v37  ;;  %1006 = vmatprep.subr.bf16.mxu1 %v1514_v38 }
  0x61   :  { %1092 = vmatprep.subr.bf16.mxu0 %v1517_v39  ;;  %v174_v35 = vrot.slane %v169_v33, %v173_v32  ;;  %v178_v36 = vrot.slane %v169_v33, %v177_v34 }
  0x63   :  { %1007 = vmatpush1.bf16.msra.mxu1 %v1512_v40 }
  0x64   :  { %1093 = vmatpush1.bf16.msra.mxu0 %v1515_v41  ;;  %1008 = vmatprep.subr.bf16.mxu1 %v1520_v42 }
  0x65   :  { %1094 = vmatprep.subr.bf16.mxu0 %v1523_v43 }
  0x67   :  { %1009 = vmatpush1.bf16.msra.mxu1 %v1518_v44 }
  0x68   :  { %1095 = vmatpush1.bf16.msra.mxu0 %v1521_v45  ;;  %1010 = vmatprep.subr.bf16.mxu1 %v1526_v46 }
  0x69   :  { %1096 = vmatprep.subr.bf16.mxu0 %v1529_v47 }
  0x6b   :  { %1011 = vmatpush1.bf16.msra.mxu1 %v1524_v48 }
  0x6c   :  { %1097 = vmatpush1.bf16.msra.mxu0 %v1527_v49  ;;  %1012 = vmatprep.subr.bf16.mxu1 %v1532_v50 }
  0x6d   :  { %1098 = vmatprep.subr.bf16.mxu0 %v1535_v51 }
  0x6f   :  { %1013 = vmatpush1.bf16.msra.mxu1 %v1530_v52 }
  0x70   :  { %1099 = vmatpush1.bf16.msra.mxu0 %v1533_v53  ;;  %1014 = vmatprep.subr.bf16.mxu1 %v1538_v54 }
  0x71   :  { %1100 = vmatprep.subr.bf16.mxu0 %v1541_v55 }
  0x73   :  { %1015 = vmatpush1.bf16.msra.mxu1 %v1536_v56 }
  0x74   :  { %1101 = vmatpush1.bf16.msra.mxu0 %v1539_v57  ;;  %1016 = vmatprep.subr.bf16.mxu1 %v1544_v58 }
  0x75   :  { %1102 = vmatprep.subr.bf16.mxu0 %v1547_v59 }
  0x77   :  { %1017 = vmatpush1.bf16.msra.mxu1 %v1542_v60 }
  0x78   :  { %1103 = vmatpush1.bf16.msra.mxu0 %v1545_v61  ;;  %1018 = vmatprep.subr.bf16.mxu1 %v1550_v62 }
  0x79   :  { %1104 = vmatprep.subr.bf16.mxu0 %v1553_v63 }
  0x7b   :  { %1019 = vmatpush1.bf16.msra.mxu1 %v1548_v0 }
  0x7c   :  { %1105 = vmatpush1.bf16.msra.mxu0 %v1551_v1  ;;  %1020 = vmatprep.subr.bf16.mxu1 %v1556_v2 }
  0x7d   :  { %1106 = vmatprep.subr.bf16.mxu0 %v1559_v3 }
  0x7f   :  { %1021 = vmatpush1.bf16.msra.mxu1 %v1554_v4 }
  0x80   :  { %1107 = vmatpush1.bf16.msra.mxu0 %v1557_v5 }
  0x81   :  { %1119 = vmatprep.subr.bf16.mxu0 %v1568_v6 }
  0x82   :  { %1023 = vmatmul.mubr.bf16.vlgmr.msra.gmra.mrb[0].mxu1 %v1560_v7 }
  0x83   :  { %1109 = vmatmul.mubr.bf16.vlgmr.msra.gmra.mrb[0].mxu0 %v1563_v8 }
  0x84   :  { %1120 = vmatpush1.bf16.msra.mxu0 %v1566_v9  ;;  %1151 = vmatprep.mubr.bf16.mxu0 %v1591_v12 }
  0x85   :  { %1121 = vmatprep.subr.bf16.mxu0 %v1571_v10 }
  0x88   :  { %1122 = vmatpush1.bf16.msra.mxu0 %v1569_v11 }
  0x89   :  { %1123 = vmatprep.subr.bf16.mxu0 %v1574_v13 }
  0x8c   :  { %1124 = vmatpush1.bf16.msra.mxu0 %v1572_v14 }
  0x8d   :  { %1125 = vmatprep.subr.bf16.mxu0 %v1577_v15 }
  0x90   :  { %1126 = vmatpush1.bf16.msra.mxu0 %v1575_v16 }
  0x91   :  { %1127 = vmatprep.subr.bf16.mxu0 %v1580_v17 }
  0x94   :  { %1128 = vmatpush1.bf16.msra.mxu0 %v1578_v18 }
  0x95   :  { %1129 = vmatprep.subr.bf16.mxu0 %v1583_v19 }
  0x98   :  { %1130 = vmatpush1.bf16.msra.mxu0 %v1581_v20 }
  0x99   :  { %1131 = vmatprep.subr.bf16.mxu0 %v1586_v21 }
  0x9c   :  { %1132 = vmatpush1.bf16.msra.mxu0 %v1584_v22 }
  0x9d   :  { %1133 = vmatprep.subr.bf16.mxu0 %v1589_v23 }
  0xa0   :  { %1134 = vmatpush1.bf16.msra.mxu0 %v1587_v24 }
  0xa3   :  { %1152 = vmatmul.mubr.bf16.vlgmr.msra.gmra.mrb[0].mxu0 %v1590_v25 }
 0x155   :  { %v1024_v26 = vpop.f32.mrb[0].mxu1 }
 0x156   :  { %v1026_v27 = vpop.f32.mrb[1].mxu1  ;;  %v1341_v37 = vadd.f32 %v1024_v26, %v174_v35 }
 0x157   :  { %v1028_v28 = vpop.f32.mrb[2].mxu1  ;;  %v1343_v38 = vadd.f32 %v1026_v27, %v178_v36 }
 0x158   :  { %v1030_v29 = vpop.f32.mrb[3].mxu1  ;;  %v1345_v40 = vadd.f32 %v1028_v28, %v174_v35 }
 0x159   :  { %v1347_v43 = vadd.f32 %v1030_v29, %v178_v36 }
 0x176   :  { %v1153_v39 = vpop.f32.mrb[0].mxu0 }
 0x177   :  { %v1342_v41 = vadd.f32 %v1341_v37, %v1153_v39  ;;  %v1155_v42 = vpop.f32.mrb[1].mxu0 }
 0x178   :  { %v1344_v44 = vadd.f32 %v1343_v38, %v1155_v42  ;;  %v1157_v45 = vpop.f32.mrb[2].mxu0 }
 0x179   :  { %v1162_v46 = vmax.f32 %v1342_v41, 0.0  ;;  %v1346_v47 = vadd.f32 %v1345_v40, %v1157_v45  ;;  %v1159_v48 = vpop.f32.mrb[3].mxu0 }
 0x17a   :  { %v1163_v49 = vmax.f32 %v1344_v44, 0.0  ;;  %v1348_v50 = vadd.f32 %v1347_v43, %v1159_v48 }
 0x17b   :  { %v1164_v51 = vmax.f32 %v1346_v47, 0.0 }
 0x17c   :  { %v1339_v52 = vpack.c.bf16 %v1163_v49, %v1162_v46  ;;  %v1165_v53 = vmax.f32 %v1348_v50, 0.0 }
 0x17e   :  { %1178 = vst [vmem:[%s2083_s3] sm:$0xff] %v1339_v52  ;;  %v1340_v54 = vpack.c.bf16 %v1165_v53, %v1164_v51 }
 0x180   :  { %1179 = vst [vmem:[%s2083_s3 + $0x8] sm:$0xff] %v1340_v54 }

// kernel: _lambda_.41
= control target key start
LH: loop header
LB: loop body
LE: loop exit
PB: predicated region body
PF: predicated region fallthrough
CT: control target
= control target key end

     0   :  { %v239_v1 = vmov 0   ;;  %v35_v18 = vlaneseq  ;;  %s320_s1 = inlined_call_operand.vmem [shape: bf16[128,256], index: 1, kind: input, shape index: {}]   ;;  %s321_s0 = inlined_call_operand.vmem [shape: bf16[16,128], index: 0, kind: input, shape index: {}]   ;;  %s322_s2 = inlined_call_operand.vmem [shape: f32[1,256], index: 2, kind: input, shape index: {}]   ;;  %s323_s3 = inlined_call_operand.vmem [shape: bf16[16,256], index: 3, kind: output, shape index: {}]  }
   0x1   :  { %v214_v0 = vld [vmem:[%s320_s1 + $0x4] ss:$8 sps:$4 sm:$0xff]   ;;  %163 = vmatprep.mubr.bf16.mxu0 %v239_v1  ;;  %v216_v2 = vld [vmem:[%s320_s1] ss:$8 sps:$4 sm:$0xff]   ;;  %v217_v3 = vld [vmem:[%s320_s1 + $0x14] ss:$8 sps:$4 sm:$0xff]  }
   0x2   :  { %131 = vmatprep.subr.bf16.mxu0 %v214_v0  ;;  %v219_v4 = vld [vmem:[%s320_s1 + $0x10] ss:$8 sps:$4 sm:$0xff]   ;;  %v220_v5 = vld [vmem:[%s320_s1 + $0x24] ss:$8 sps:$4 sm:$0xff]   ;;  %v222_v6 = vld [vmem:[%s320_s1 + $0x20] ss:$8 sps:$4 sm:$0xff]  }
   0x3   :  { %132 = vmatpush1.bf16.msra.mxu0 %v216_v2  ;;  %v223_v7 = vld [vmem:[%s320_s1 + $0x34] ss:$8 sps:$4 sm:$0xff]   ;;  %v225_v8 = vld [vmem:[%s320_s1 + $0x30] ss:$8 sps:$4 sm:$0xff]   ;;  %v226_v9 = vld [vmem:[%s320_s1 + $0x44] ss:$8 sps:$4 sm:$0xff]  }
   0x4   :  { %133 = vmatprep.subr.bf16.mxu0 %v217_v3  ;;  %v228_v10 = vld [vmem:[%s320_s1 + $0x40] ss:$8 sps:$4 sm:$0xff]   ;;  %v229_v11 = vld [vmem:[%s320_s1 + $0x54] ss:$8 sps:$4 sm:$0xff]   ;;  %v231_v12 = vld [vmem:[%s320_s1 + $0x50] ss:$8 sps:$4 sm:$0xff]  }
   0x5   :  { %v232_v13 = vld [vmem:[%s320_s1 + $0x64] ss:$8 sps:$4 sm:$0xff]   ;;  %v234_v14 = vld [vmem:[%s320_s1 + $0x60] ss:$8 sps:$4 sm:$0xff]   ;;  %v235_v15 = vld [vmem:[%s320_s1 + $0x74] ss:$8 sps:$4 sm:$0xff]  }
   0x6   :  { %v237_v16 = vld [vmem:[%s320_s1 + $0x70] ss:$8 sps:$4 sm:$0xff]   ;;  %v238_v17 = vld [vmem:[%s321_s0] sm:$0xff]   ;;  %v36_v19 = vshrl.u32 %v35_v18, 7 }
   0x7   :  { %134 = vmatpush1.bf16.msra.mxu0 %v219_v4  ;;  %v33_v21 = vld [vmem:[%s322_s2] sm:$0x3] }
   0x8   :  { %135 = vmatprep.subr.bf16.mxu0 %v220_v5  ;;  %v37_v20 = vsub.s32 0, %v36_v19  ;;  %v41_v22 = vsub.s32 1, %v36_v19 }
   0xa   :  { %v38_v23 = vrot.slane %v33_v21, %v37_v20  ;;  %v42_v24 = vrot.slane %v33_v21, %v41_v22 }
   0xb   :  { %136 = vmatpush1.bf16.msra.mxu0 %v222_v6 }
   0xc   :  { %137 = vmatprep.subr.bf16.mxu0 %v223_v7 }
   0xf   :  { %138 = vmatpush1.bf16.msra.mxu0 %v225_v8 }
  0x10   :  { %139 = vmatprep.subr.bf16.mxu0 %v226_v9 }
  0x13   :  { %140 = vmatpush1.bf16.msra.mxu0 %v228_v10 }
  0x14   :  { %141 = vmatprep.subr.bf16.mxu0 %v229_v11 }
  0x17   :  { %142 = vmatpush1.bf16.msra.mxu0 %v231_v12 }
  0x18   :  { %143 = vmatprep.subr.bf16.mxu0 %v232_v13 }
  0x1b   :  { %144 = vmatpush1.bf16.msra.mxu0 %v234_v14 }
  0x1c   :  { %145 = vmatprep.subr.bf16.mxu0 %v235_v15 }
  0x1f   :  { %146 = vmatpush1.bf16.msra.mxu0 %v237_v16 }
  0x22   :  { %164 = vmatmul.mubr.bf16.vlgmr.msra.gmra.mrb[0].mxu0 %v238_v17 }
  0xf5   :  { %v165_v25 = vpop.f32.mrb[0].mxu0 }
  0xf6   :  { %v166_v26 = vadd.f32 %v165_v25, %v38_v23  ;;  %v167_v27 = vpop.f32.mrb[1].mxu0 }
  0xf7   :  { %v168_v28 = vadd.f32 %v167_v27, %v42_v24  ;;  %v169_v29 = vpop.f32.mrb[2].mxu0 }
  0xf8   :  { %v170_v30 = vadd.f32 %v169_v29, %v38_v23  ;;  %v171_v31 = vpop.f32.mrb[3].mxu0 }
  0xf9   :  { %v211_v32 = vpack.c.bf16 %v168_v28, %v166_v26  ;;  %v172_v33 = vadd.f32 %v171_v31, %v42_v24 }
  0xfb   :  { %186 = vst [vmem:[%s323_s3] sm:$0xff] %v211_v32  ;;  %v212_v34 = vpack.c.bf16 %v172_v33, %v170_v30 }
  0xfd   :  { %187 = vst [vmem:[%s323_s3 + $0x8] sm:$0xff] %v212_v34 }

// kernel: _lambda_.44
= control target key start
LH: loop header
LB: loop body
LE: loop exit
PB: predicated region body
PF: predicated region fallthrough
CT: control target
= control target key end

     0   :  { %s4023_s1 = inlined_call_operand.vmem [shape: bf16[2304,256], index: 1, kind: input, shape index: {}]   ;;  %s4024_s0 = inlined_call_operand.vmem [shape: bf16[16,2304], index: 0, kind: input, shape index: {}]   ;;  %s4025_s2 = inlined_call_operand.vmem [shape: f32[1,256], index: 2, kind: input, shape index: {}]   ;;  %s4026_s3 = inlined_call_operand.vmem [shape: bf16[16,256], index: 3, kind: output, shape index: {}]  }
   0x1   :  { %v2617_v0 = vld [vmem:[%s4023_s1 + $0x4] ss:$8 sps:$4 sm:$0xff]   ;;  %v2621_v2 = vld [vmem:[%s4023_s1] ss:$8 sps:$4 sm:$0xff]   ;;  %v2623_v4 = vld [vmem:[%s4023_s1 + $0x14] ss:$8 sps:$4 sm:$0xff]  }
   0x2   :  { %v2619_v1 = vld [vmem:[%s4023_s1 + $0x404] ss:$8 sps:$4 sm:$0xff]   ;;  %1862 = vmatprep.subr.bf16.mxu1 %v2617_v0  ;;  %v2622_v3 = vld [vmem:[%s4023_s1 + $0x400] ss:$8 sps:$4 sm:$0xff]   ;;  %v2625_v5 = vld [vmem:[%s4023_s1 + $0x414] ss:$8 sps:$4 sm:$0xff]  }
   0x3   :  { %2034 = vmatprep.subr.bf16.mxu0 %v2619_v1  ;;  %1863 = vmatpush1.bf16.msra.mxu1 %v2621_v2  ;;  %v2627_v6 = vld [vmem:[%s4023_s1 + $0x10] ss:$8 sps:$4 sm:$0xff]   ;;  %v2629_v8 = vld [vmem:[%s4023_s1 + $0x24] ss:$8 sps:$4 sm:$0xff]   ;;  %v2633_v10 = vld [vmem:[%s4023_s1 + $0x20] ss:$8 sps:$4 sm:$0xff]  }
   0x4   :  { %2035 = vmatpush1.bf16.msra.mxu0 %v2622_v3  ;;  %1864 = vmatprep.subr.bf16.mxu1 %v2623_v4  ;;  %v2628_v7 = vld [vmem:[%s4023_s1 + $0x410] ss:$8 sps:$4 sm:$0xff]   ;;  %v2631_v9 = vld [vmem:[%s4023_s1 + $0x424] ss:$8 sps:$4 sm:$0xff]   ;;  %v2634_v11 = vld [vmem:[%s4023_s1 + $0x420] ss:$8 sps:$4 sm:$0xff]  }
   0x5   :  { %2036 = vmatprep.subr.bf16.mxu0 %v2625_v5  ;;  %v2635_v12 = vld [vmem:[%s4023_s1 + $0x34] ss:$8 sps:$4 sm:$0xff]   ;;  %v2639_v14 = vld [vmem:[%s4023_s1 + $0x30] ss:$8 sps:$4 sm:$0xff]   ;;  %v2641_v16 = vld [vmem:[%s4023_s1 + $0x44] ss:$8 sps:$4 sm:$0xff]  }
   0x6   :  { %v2637_v13 = vld [vmem:[%s4023_s1 + $0x434] ss:$8 sps:$4 sm:$0xff]   ;;  %v2640_v15 = vld [vmem:[%s4023_s1 + $0x430] ss:$8 sps:$4 sm:$0xff]   ;;  %v2643_v17 = vld [vmem:[%s4023_s1 + $0x444] ss:$8 sps:$4 sm:$0xff]  }
   0x7   :  { %1865 = vmatpush1.bf16.msra.mxu1 %v2627_v6  ;;  %v2645_v18 = vld [vmem:[%s4023_s1 + $0x40] ss:$8 sps:$4 sm:$0xff]   ;;  %v2647_v20 = vld [vmem:[%s4023_s1 + $0x54] ss:$8 sps:$4 sm:$0xff]   ;;  %v2651_v22 = vld [vmem:[%s4023_s1 + $0x50] ss:$8 sps:$4 sm:$0xff]  }
   0x8   :  { %2037 = vmatpush1.bf16.msra.mxu0 %v2628_v7  ;;  %1866 = vmatprep.subr.bf16.mxu1 %v2629_v8  ;;  %v2646_v19 = vld [vmem:[%s4023_s1 + $0x440] ss:$8 sps:$4 sm:$0xff]   ;;  %v2649_v21 = vld [vmem:[%s4023_s1 + $0x454] ss:$8 sps:$4 sm:$0xff]   ;;  %v2652_v23 = vld [vmem:[%s4023_s1 + $0x450] ss:$8 sps:$4 sm:$0xff]  }
   0x9   :  { %2038 = vmatprep.subr.bf16.mxu0 %v2631_v9  ;;  %v2653_v24 = vld [vmem:[%s4023_s1 + $0x64] ss:$8 sps:$4 sm:$0xff]   ;;  %v2657_v26 = vld [vmem:[%s4023_s1 + $0x60] ss:$8 sps:$4 sm:$0xff]   ;;  %v2659_v28 = vld [vmem:[%s4023_s1 + $0x74] ss:$8 sps:$4 sm:$0xff]  }
   0xa   :  { %v2655_v25 = vld [vmem:[%s4023_s1 + $0x464] ss:$8 sps:$4 sm:$0xff]   ;;  %v2658_v27 = vld [vmem:[%s4023_s1 + $0x460] ss:$8 sps:$4 sm:$0xff]   ;;  %v2661_v29 = vld [vmem:[%s4023_s1 + $0x474] ss:$8 sps:$4 sm:$0xff]  }
   0xb   :  { %1867 = vmatpush1.bf16.msra.mxu1 %v2633_v10  ;;  %v2663_v30 = vld [vmem:[%s4023_s1 + $0x70] ss:$8 sps:$4 sm:$0xff]   ;;  %v2665_v32 = vld [vmem:[%s4023_s1 + $0x84] ss:$8 sps:$4 sm:$0xff]   ;;  %v2669_v34 = vld [vmem:[%s4023_s1 + $0x80] ss:$8 sps:$4 sm:$0xff]  }
   0xc   :  { %2039 = vmatpush1.bf16.msra.mxu0 %v2634_v11  ;;  %1868 = vmatprep.subr.bf16.mxu1 %v2635_v12  ;;  %v2664_v31 = vld [vmem:[%s4023_s1 + $0x470] ss:$8 sps:$4 sm:$0xff]   ;;  %v2667_v33 = vld [vmem:[%s4023_s1 + $0x484] ss:$8 sps:$4 sm:$0xff]   ;;  %v2670_v35 = vld [vmem:[%s4023_s1 + $0x480] ss:$8 sps:$4 sm:$0xff]  }
   0xd   :  { %2040 = vmatprep.subr.bf16.mxu0 %v2637_v13  ;;  %v2671_v36 = vld [vmem:[%s4023_s1 + $0x94] ss:$8 sps:$4 sm:$0xff]   ;;  %v2675_v38 = vld [vmem:[%s4023_s1 + $0x90] ss:$8 sps:$4 sm:$0xff]   ;;  %v2677_v40 = vld [vmem:[%s4023_s1 + $0xa4] ss:$8 sps:$4 sm:$0xff]  }
   0xe   :  { %v2673_v37 = vld [vmem:[%s4023_s1 + $0x494] ss:$8 sps:$4 sm:$0xff]   ;;  %v2676_v39 = vld [vmem:[%s4023_s1 + $0x490] ss:$8 sps:$4 sm:$0xff]   ;;  %v2679_v41 = vld [vmem:[%s4023_s1 + $0x4a4] ss:$8 sps:$4 sm:$0xff]  }
   0xf   :  { %1869 = vmatpush1.bf16.msra.mxu1 %v2639_v14  ;;  %v2681_v42 = vld [vmem:[%s4023_s1 + $0xa0] ss:$8 sps:$4 sm:$0xff]   ;;  %v2683_v44 = vld [vmem:[%s4023_s1 + $0xb4] ss:$8 sps:$4 sm:$0xff]   ;;  %v2687_v46 = vld [vmem:[%s4023_s1 + $0xb0] ss:$8 sps:$4 sm:$0xff]  }
  0x10   :  { %2041 = vmatpush1.bf16.msra.mxu0 %v2640_v15  ;;  %1870 = vmatprep.subr.bf16.mxu1 %v2641_v16  ;;  %v2682_v43 = vld [vmem:[%s4023_s1 + $0x4a0] ss:$8 sps:$4 sm:$0xff]   ;;  %v2685_v45 = vld [vmem:[%s4023_s1 + $0x4b4] ss:$8 sps:$4 sm:$0xff]   ;;  %v2688_v47 = vld [vmem:[%s4023_s1 + $0x4b0] ss:$8 sps:$4 sm:$0xff]  }
  0x11   :  { %2042 = vmatprep.subr.bf16.mxu0 %v2643_v17  ;;  %v2715_v48 = vld [vmem:[%s4024_s0 + $0x4] ss:$72 sps:$4 sm:$0xff]   ;;  %v2693_v52 = vld [vmem:[%s4023_s1 + $0xc0] ss:$8 sps:$4 sm:$0xff]   ;;  %v2695_v54 = vld [vmem:[%s4023_s1 + $0xd4] ss:$8 sps:$4 sm:$0xff]  }
  0x12   :  { %v2689_v49 = vld [vmem:[%s4023_s1 + $0xc4] ss:$8 sps:$4 sm:$0xff]   ;;  %1894 = vmatprep.mubr.bf16.mxu1 %v2715_v48  ;;  %v2694_v53 = vld [vmem:[%s4023_s1 + $0x4c0] ss:$8 sps:$4 sm:$0xff]   ;;  %v2697_v55 = vld [vmem:[%s4023_s1 + $0x4d4] ss:$8 sps:$4 sm:$0xff]  }
  0x13   :  { %1871 = vmatpush1.bf16.msra.mxu1 %v2645_v18  ;;  %v2691_v50 = vld [vmem:[%s4023_s1 + $0x4c4] ss:$8 sps:$4 sm:$0xff]   ;;  %v2699_v56 = vld [vmem:[%s4023_s1 + $0xd0] ss:$8 sps:$4 sm:$0xff]   ;;  %v2705_v60 = vld [vmem:[%s4023_s1 + $0xe0] ss:$8 sps:$4 sm:$0xff]  }
  0x14   :  { %2043 = vmatpush1.bf16.msra.mxu0 %v2646_v19  ;;  %1872 = vmatprep.subr.bf16.mxu1 %v2647_v20  ;;  %v2721_v51 = vld [vmem:[%s4024_s0 + $0x24] ss:$72 sps:$4 sm:$0xff]   ;;  %v2700_v57 = vld [vmem:[%s4023_s1 + $0x4d0] ss:$8 sps:$4 sm:$0xff]   ;;  %v2706_v61 = vld [vmem:[%s4023_s1 + $0x4e0] ss:$8 sps:$4 sm:$0xff]  }
  0x15   :  { %2044 = vmatprep.subr.bf16.mxu0 %v2649_v21  ;;  %2066 = vmatprep.mubr.bf16.mxu0 %v2721_v51  ;;  %v2701_v58 = vld [vmem:[%s4023_s1 + $0xe4] ss:$8 sps:$4 sm:$0xff]   ;;  %v2707_v62 = vld [vmem:[%s4023_s1 + $0xf4] ss:$8 sps:$4 sm:$0xff]   ;;  %v2711_v0 = vld [vmem:[%s4023_s1 + $0xf0] ss:$8 sps:$4 sm:$0xff]  }
  0x16   :  { %v2703_v59 = vld [vmem:[%s4023_s1 + $0x4e4] ss:$8 sps:$4 sm:$0xff]   ;;  %v2709_v63 = vld [vmem:[%s4023_s1 + $0x4f4] ss:$8 sps:$4 sm:$0xff]   ;;  %v2712_v1 = vld [vmem:[%s4023_s1 + $0x4f0] ss:$8 sps:$4 sm:$0xff]  }
  0x17   :  { %1873 = vmatpush1.bf16.msra.mxu1 %v2651_v22  ;;  %v2718_v2 = vld [vmem:[%s4023_s1 + $0x104] ss:$8 sps:$4 sm:$0xff]   ;;  %v2713_v4 = vld [vmem:[%s4024_s0] ss:$72 sps:$4 sm:$0xff]   ;;  %v2727_v8 = vld [vmem:[%s4023_s1 + $0x114] ss:$8 sps:$4 sm:$0xff]  }
  0x18   :  { %2045 = vmatpush1.bf16.msra.mxu0 %v2652_v23  ;;  %1874 = vmatprep.subr.bf16.mxu1 %v2653_v24  ;;  %v2724_v3 = vld [vmem:[%s4023_s1 + $0x504] ss:$8 sps:$4 sm:$0xff]   ;;  %v2716_v5 = vld [vmem:[%s4023_s1 + $0x100] ss:$8 sps:$4 sm:$0xff]   ;;  %v2730_v9 = vld [vmem:[%s4023_s1 + $0x514] ss:$8 sps:$4 sm:$0xff]  }
  0x19   :  { %2046 = vmatprep.subr.bf16.mxu0 %v2655_v25  ;;  %v2719_v6 = vld [vmem:[%s4024_s0 + $0x20] ss:$72 sps:$4 sm:$0xff]   ;;  %v2725_v10 = vld [vmem:[%s4023_s1 + $0x110] ss:$8 sps:$4 sm:$0xff]   ;;  %v2733_v12 = vld [vmem:[%s4023_s1 + $0x124] ss:$8 sps:$4 sm:$0xff]  }
  0x1a   :  { %v2722_v7 = vld [vmem:[%s4023_s1 + $0x500] ss:$8 sps:$4 sm:$0xff]   ;;  %v2728_v11 = vld [vmem:[%s4023_s1 + $0x510] ss:$8 sps:$4 sm:$0xff]   ;;  %v2736_v13 = vld [vmem:[%s4023_s1 + $0x524] ss:$8 sps:$4 sm:$0xff]  }
  0x1b   :  { %1875 = vmatpush1.bf16.msra.mxu1 %v2657_v26  ;;  %v2731_v14 = vld [vmem:[%s4023_s1 + $0x120] ss:$8 sps:$4 sm:$0xff]   ;;  %v2739_v16 = vld [vmem:[%s4023_s1 + $0x134] ss:$8 sps:$4 sm:$0xff]   ;;  %v2737_v18 = vld [vmem:[%s4023_s1 + $0x130] ss:$8 sps:$4 sm:$0xff]  }
  0x1c   :  { %2047 = vmatpush1.bf16.msra.mxu0 %v2658_v27  ;;  %1876 = vmatprep.subr.bf16.mxu1 %v2659_v28  ;;  %v2734_v15 = vld [vmem:[%s4023_s1 + $0x520] ss:$8 sps:$4 sm:$0xff]   ;;  %v2742_v17 = vld [vmem:[%s4023_s1 + $0x534] ss:$8 sps:$4 sm:$0xff]   ;;  %v2740_v19 = vld [vmem:[%s4023_s1 + $0x530] ss:$8 sps:$4 sm:$0xff]  }
  0x1d   :  { %2048 = vmatprep.subr.bf16.mxu0 %v2661_v29  ;;  %v2745_v20 = vld [vmem:[%s4023_s1 + $0x144] ss:$8 sps:$4 sm:$0xff]   ;;  %v2743_v22 = vld [vmem:[%s4023_s1 + $0x140] ss:$8 sps:$4 sm:$0xff]   ;;  %v2751_v24 = vld [vmem:[%s4023_s1 + $0x154] ss:$8 sps:$4 sm:$0xff]  }
  0x1e   :  { %v2748_v21 = vld [vmem:[%s4023_s1 + $0x544] ss:$8 sps:$4 sm:$0xff]   ;;  %v2746_v23 = vld [vmem:[%s4023_s1 + $0x540] ss:$8 sps:$4 sm:$0xff]   ;;  %v2754_v25 = vld [vmem:[%s4023_s1 + $0x554] ss:$8 sps:$4 sm:$0xff]  }
  0x1f   :  { %1877 = vmatpush1.bf16.msra.mxu1 %v2663_v30  ;;  %v2749_v26 = vld [vmem:[%s4023_s1 + $0x150] ss:$8 sps:$4 sm:$0xff]   ;;  %v2757_v28 = vld [vmem:[%s4023_s1 + $0x164] ss:$8 sps:$4 sm:$0xff]   ;;  %v2755_v30 = vld [vmem:[%s4023_s1 + $0x160] ss:$8 sps:$4 sm:$0xff]  }
  0x20   :  { %2049 = vmatpush1.bf16.msra.mxu0 %v2664_v31  ;;  %1878 = vmatprep.subr.bf16.mxu1 %v2665_v32  ;;  %v2752_v27 = vld [vmem:[%s4023_s1 + $0x550] ss:$8 sps:$4 sm:$0xff]   ;;  %v2760_v29 = vld [vmem:[%s4023_s1 + $0x564] ss:$8 sps:$4 sm:$0xff]   ;;  %v2758_v31 = vld [vmem:[%s4023_s1 + $0x560] ss:$8 sps:$4 sm:$0xff]  }
  0x21   :  { %2050 = vmatprep.subr.bf16.mxu0 %v2667_v33  ;;  %v2763_v32 = vld [vmem:[%s4023_s1 + $0x174] ss:$8 sps:$4 sm:$0xff]   ;;  %v2779_v48 = vld [vmem:[%s4023_s1 + $0x1a0] ss:$8 sps:$4 sm:$0xff]  }
  0x22   :  { %v2766_v33 = vld [vmem:[%s4023_s1 + $0x574] ss:$8 sps:$4 sm:$0xff]  }
  0x23   :  { %1879 = vmatpush1.bf16.msra.mxu1 %v2669_v34  ;;  %v2817_v34 = vld [vmem:[%s4024_s0 + $0xc] ss:$72 sps:$4 sm:$0xff]  }
  0x24   :  { %2051 = vmatpush1.bf16.msra.mxu0 %v2670_v35  ;;  %1880 = vmatprep.subr.bf16.mxu1 %v2671_v36  ;;  %v2761_v35 = vld [vmem:[%s4023_s1 + $0x170] ss:$8 sps:$4 sm:$0xff]   ;;  %v2790_v51 = vld [vmem:[%s4023_s1 + $0x5b4] ss:$8 sps:$4 sm:$0xff]  }
  0x25   :  { %2052 = vmatprep.subr.bf16.mxu0 %v2673_v37  ;;  %v2764_v36 = vld [vmem:[%s4023_s1 + $0x570] ss:$8 sps:$4 sm:$0xff]   ;;  %v2823_v37 = vld [vmem:[%s4024_s0 + $0x2c] ss:$72 sps:$4 sm:$0xff]  }
  0x27   :  { %1881 = vmatpush1.bf16.msra.mxu1 %v2675_v38  ;;  %v2769_v38 = vld [vmem:[%s4023_s1 + $0x184] ss:$8 sps:$4 sm:$0xff]  }
  0x28   :  { %2053 = vmatpush1.bf16.msra.mxu0 %v2676_v39  ;;  %1882 = vmatprep.subr.bf16.mxu1 %v2677_v40  ;;  %v2772_v39 = vld [vmem:[%s4023_s1 + $0x584] ss:$8 sps:$4 sm:$0xff]   ;;  %v2767_v40 = vld [vmem:[%s4023_s1 + $0x180] ss:$8 sps:$4 sm:$0xff]  }
  0x29   :  { %2054 = vmatprep.subr.bf16.mxu0 %v2679_v41  ;;  %v2770_v41 = vld [vmem:[%s4023_s1 + $0x580] ss:$8 sps:$4 sm:$0xff]  }
  0x2b   :  { %1883 = vmatpush1.bf16.msra.mxu1 %v2681_v42  ;;  %v2775_v42 = vld [vmem:[%s4023_s1 + $0x194] ss:$8 sps:$4 sm:$0xff]  }
  0x2c   :  { %2055 = vmatpush1.bf16.msra.mxu0 %v2682_v43  ;;  %1884 = vmatprep.subr.bf16.mxu1 %v2683_v44  ;;  %v2778_v43 = vld [vmem:[%s4023_s1 + $0x594] ss:$8 sps:$4 sm:$0xff]   ;;  %v2773_v44 = vld [vmem:[%s4023_s1 + $0x190] ss:$8 sps:$4 sm:$0xff]  }
  0x2d   :  { %2056 = vmatprep.subr.bf16.mxu0 %v2685_v45  ;;  %v2776_v45 = vld [vmem:[%s4023_s1 + $0x590] ss:$8 sps:$4 sm:$0xff]  }
  0x2f   :  { %1885 = vmatpush1.bf16.msra.mxu1 %v2687_v46  ;;  %v2781_v46 = vld [vmem:[%s4023_s1 + $0x1a4] ss:$8 sps:$4 sm:$0xff]  }
  0x30   :  { %2057 = vmatpush1.bf16.msra.mxu0 %v2688_v47  ;;  %1886 = vmatprep.subr.bf16.mxu1 %v2689_v49  ;;  %v2784_v47 = vld [vmem:[%s4023_s1 + $0x5a4] ss:$8 sps:$4 sm:$0xff]   ;;  %v2782_v49 = vld [vmem:[%s4023_s1 + $0x5a0] ss:$8 sps:$4 sm:$0xff]  }
  0x31   :  { %2058 = vmatprep.subr.bf16.mxu0 %v2691_v50  ;;  %v2787_v50 = vld [vmem:[%s4023_s1 + $0x1b4] ss:$8 sps:$4 sm:$0xff]  }
  0x33   :  { %1887 = vmatpush1.bf16.msra.mxu1 %v2693_v52  ;;  %v2785_v52 = vld [vmem:[%s4023_s1 + $0x1b0] ss:$8 sps:$4 sm:$0xff]  }
  0x34   :  { %2059 = vmatpush1.bf16.msra.mxu0 %v2694_v53  ;;  %1888 = vmatprep.subr.bf16.mxu1 %v2695_v54  ;;  %v2788_v53 = vld [vmem:[%s4023_s1 + $0x5b0] ss:$8 sps:$4 sm:$0xff]   ;;  %v2793_v54 = vld [vmem:[%s4023_s1 + $0x1c4] ss:$8 sps:$4 sm:$0xff]  }
  0x35   :  { %2060 = vmatprep.subr.bf16.mxu0 %v2697_v55  ;;  %v2796_v55 = vld [vmem:[%s4023_s1 + $0x5c4] ss:$8 sps:$4 sm:$0xff]  }
  0x37   :  { %1889 = vmatpush1.bf16.msra.mxu1 %v2699_v56  ;;  %v2791_v56 = vld [vmem:[%s4023_s1 + $0x1c0] ss:$8 sps:$4 sm:$0xff]  }
  0x38   :  { %2061 = vmatpush1.bf16.msra.mxu0 %v2700_v57  ;;  %1890 = vmatprep.subr.bf16.mxu1 %v2701_v58  ;;  %v2794_v57 = vld [vmem:[%s4023_s1 + $0x5c0] ss:$8 sps:$4 sm:$0xff]   ;;  %v2799_v58 = vld [vmem:[%s4023_s1 + $0x1d4] ss:$8 sps:$4 sm:$0xff]  }
  0x39   :  { %2062 = vmatprep.subr.bf16.mxu0 %v2703_v59  ;;  %v2802_v59 = vld [vmem:[%s4023_s1 + $0x5d4] ss:$8 sps:$4 sm:$0xff]  }
  0x3b   :  { %1891 = vmatpush1.bf16.msra.mxu1 %v2705_v60  ;;  %v2797_v60 = vld [vmem:[%s4023_s1 + $0x1d0] ss:$8 sps:$4 sm:$0xff]  }
  0x3c   :  { %2063 = vmatpush1.bf16.msra.mxu0 %v2706_v61  ;;  %1892 = vmatprep.subr.bf16.mxu1 %v2707_v62  ;;  %v2800_v61 = vld [vmem:[%s4023_s1 + $0x5d0] ss:$8 sps:$4 sm:$0xff]   ;;  %v2805_v62 = vld [vmem:[%s4023_s1 + $0x1e4] ss:$8 sps:$4 sm:$0xff]  }
  0x3d   :  { %2064 = vmatprep.subr.bf16.mxu0 %v2709_v63  ;;  %v2808_v63 = vld [vmem:[%s4023_s1 + $0x5e4] ss:$8 sps:$4 sm:$0xff]  }
  0x3f   :  { %1893 = vmatpush1.bf16.msra.mxu1 %v2711_v0  ;;  %v2803_v0 = vld [vmem:[%s4023_s1 + $0x1e0] ss:$8 sps:$4 sm:$0xff]  }
  0x40   :  { %2065 = vmatpush1.bf16.msra.mxu0 %v2712_v1  ;;  %1905 = vmatprep.subr.bf16.mxu1 %v2718_v2  ;;  %v2806_v1 = vld [vmem:[%s4023_s1 + $0x5e0] ss:$8 sps:$4 sm:$0xff]   ;;  %v2811_v2 = vld [vmem:[%s4023_s1 + $0x1f4] ss:$8 sps:$4 sm:$0xff]  }
  0x41   :  { %2077 = vmatprep.subr.bf16.mxu0 %v2724_v3  ;;  %v2814_v3 = vld [vmem:[%s4023_s1 + $0x5f4] ss:$8 sps:$4 sm:$0xff]  }
  0x42   :  { %1895 = vmatmul.mubr.bf16.vlgmr.msra.gmra.mrb[0].mxu1 %v2713_v4  ;;  %v2809_v4 = vld [vmem:[%s4023_s1 + $0x1f0] ss:$8 sps:$4 sm:$0xff]  }
  0x43   :  { %2067 = vmatmul.mubr.bf16.vlgmr.msra.gmra.mrb[0].mxu0 %v2719_v6  ;;  %1906 = vmatpush1.bf16.msra.mxu1 %v2716_v5  ;;  %v2812_v5 = vld [vmem:[%s4023_s1 + $0x5f0] ss:$8 sps:$4 sm:$0xff]   ;;  %v2820_v6 = vld [vmem:[%s4023_s1 + $0x204] ss:$8 sps:$4 sm:$0xff]  }
  0x44   :  { %2078 = vmatpush1.bf16.msra.mxu0 %v2722_v7  ;;  %1907 = vmatprep.subr.bf16.mxu1 %v2727_v8  ;;  %v2826_v7 = vld [vmem:[%s4023_s1 + $0x604] ss:$8 sps:$4 sm:$0xff]   ;;  %v2815_v8 = vld [vmem:[%s4024_s0 + $0x8] ss:$72 sps:$4 sm:$0xff]  }
  0x45   :  { %2079 = vmatprep.subr.bf16.mxu0 %v2730_v9  ;;  %1937 = vmatprep.mubr.bf16.mxu1 %v2817_v34  ;;  %v2818_v9 = vld [vmem:[%s4023_s1 + $0x200] ss:$8 sps:$4 sm:$0xff]   ;;  %v2859_v34 = vld [vmem:[%s4023_s1 + $0x264] ss:$8 sps:$4 sm:$0xff]  }
  0x46   :  { %2109 = vmatprep.mubr.bf16.mxu0 %v2823_v37  ;;  %v2860_v37 = vld [vmem:[%s4023_s1 + $0x660] ss:$8 sps:$4 sm:$0xff]  }
  0x47   :  { %1908 = vmatpush1.bf16.msra.mxu1 %v2725_v10  ;;  %v2821_v10 = vld [vmem:[%s4024_s0 + $0x28] ss:$72 sps:$4 sm:$0xff]  }
  0x48   :  { %2080 = vmatpush1.bf16.msra.mxu0 %v2728_v11  ;;  %1909 = vmatprep.subr.bf16.mxu1 %v2733_v12  ;;  %v2824_v11 = vld [vmem:[%s4023_s1 + $0x600] ss:$8 sps:$4 sm:$0xff]   ;;  %v2829_v12 = vld [vmem:[%s4023_s1 + $0x214] ss:$8 sps:$4 sm:$0xff]  }
  0x49   :  { %2081 = vmatprep.subr.bf16.mxu0 %v2736_v13  ;;  %v2832_v13 = vld [vmem:[%s4023_s1 + $0x614] ss:$8 sps:$4 sm:$0xff]  }
  0x4b   :  { %1910 = vmatpush1.bf16.msra.mxu1 %v2731_v14  ;;  %v2827_v14 = vld [vmem:[%s4023_s1 + $0x210] ss:$8 sps:$4 sm:$0xff]  }
  0x4c   :  { %2082 = vmatpush1.bf16.msra.mxu0 %v2734_v15  ;;  %1911 = vmatprep.subr.bf16.mxu1 %v2739_v16  ;;  %v2830_v15 = vld [vmem:[%s4023_s1 + $0x610] ss:$8 sps:$4 sm:$0xff]   ;;  %v2835_v16 = vld [vmem:[%s4023_s1 + $0x224] ss:$8 sps:$4 sm:$0xff]  }
  0x4d   :  { %2083 = vmatprep.subr.bf16.mxu0 %v2742_v17  ;;  %v2838_v17 = vld [vmem:[%s4023_s1 + $0x624] ss:$8 sps:$4 sm:$0xff]  }
  0x4f   :  { %1912 = vmatpush1.bf16.msra.mxu1 %v2737_v18  ;;  %v2833_v18 = vld [vmem:[%s4023_s1 + $0x220] ss:$8 sps:$4 sm:$0xff]  }
  0x50   :  { %2084 = vmatpush1.bf16.msra.mxu0 %v2740_v19  ;;  %1913 = vmatprep.subr.bf16.mxu1 %v2745_v20  ;;  %v2919_v19 = vld [vmem:[%s4024_s0 + $0x14] ss:$72 sps:$4 sm:$0xff]   ;;  %v2836_v20 = vld [vmem:[%s4023_s1 + $0x620] ss:$8 sps:$4 sm:$0xff]  }
  0x51   :  { %2085 = vmatprep.subr.bf16.mxu0 %v2748_v21  ;;  %v2841_v21 = vld [vmem:[%s4023_s1 + $0x234] ss:$8 sps:$4 sm:$0xff]  }
  0x53   :  { %1914 = vmatpush1.bf16.msra.mxu1 %v2743_v22  ;;  %v2844_v22 = vld [vmem:[%s4023_s1 + $0x634] ss:$8 sps:$4 sm:$0xff]  }
  0x54   :  { %2086 = vmatpush1.bf16.msra.mxu0 %v2746_v23  ;;  %1915 = vmatprep.subr.bf16.mxu1 %v2751_v24  ;;  %v2925_v23 = vld [vmem:[%s4024_s0 + $0x34] ss:$72 sps:$4 sm:$0xff]   ;;  %v2839_v24 = vld [vmem:[%s4023_s1 + $0x230] ss:$8 sps:$4 sm:$0xff]  }
  0x55   :  { %2087 = vmatprep.subr.bf16.mxu0 %v2754_v25  ;;  %v2842_v25 = vld [vmem:[%s4023_s1 + $0x630] ss:$8 sps:$4 sm:$0xff]  }
  0x57   :  { %1916 = vmatpush1.bf16.msra.mxu1 %v2749_v26  ;;  %v2847_v26 = vld [vmem:[%s4023_s1 + $0x244] ss:$8 sps:$4 sm:$0xff]  }
  0x58   :  { %2088 = vmatpush1.bf16.msra.mxu0 %v2752_v27  ;;  %1917 = vmatprep.subr.bf16.mxu1 %v2757_v28  ;;  %v2850_v27 = vld [vmem:[%s4023_s1 + $0x644] ss:$8 sps:$4 sm:$0xff]   ;;  %v2845_v28 = vld [vmem:[%s4023_s1 + $0x240] ss:$8 sps:$4 sm:$0xff]  }
  0x59   :  { %2089 = vmatprep.subr.bf16.mxu0 %v2760_v29  ;;  %v2848_v29 = vld [vmem:[%s4023_s1 + $0x640] ss:$8 sps:$4 sm:$0xff]  }
  0x5b   :  { %1918 = vmatpush1.bf16.msra.mxu1 %v2755_v30  ;;  %v2853_v30 = vld [vmem:[%s4023_s1 + $0x254] ss:$8 sps:$4 sm:$0xff]  }
  0x5c   :  { %2090 = vmatpush1.bf16.msra.mxu0 %v2758_v31  ;;  %1919 = vmatprep.subr.bf16.mxu1 %v2763_v32  ;;  %v2856_v31 = vld [vmem:[%s4023_s1 + $0x654] ss:$8 sps:$4 sm:$0xff]   ;;  %v2851_v32 = vld [vmem:[%s4023_s1 + $0x250] ss:$8 sps:$4 sm:$0xff]  }
  0x5d   :  { %2091 = vmatprep.subr.bf16.mxu0 %v2766_v33  ;;  %v2854_v33 = vld [vmem:[%s4023_s1 + $0x650] ss:$8 sps:$4 sm:$0xff]  }
  0x5f   :  { %1920 = vmatpush1.bf16.msra.mxu1 %v2761_v35  ;;  %v2862_v35 = vld [vmem:[%s4023_s1 + $0x664] ss:$8 sps:$4 sm:$0xff]  }
  0x60   :  { %2092 = vmatpush1.bf16.msra.mxu0 %v2764_v36  ;;  %1921 = vmatprep.subr.bf16.mxu1 %v2769_v38  ;;  %v2857_v36 = vld [vmem:[%s4023_s1 + $0x260] ss:$8 sps:$4 sm:$0xff]   ;;  %v2865_v38 = vld [vmem:[%s4023_s1 + $0x274] ss:$8 sps:$4 sm:$0xff]  }
  0x61   :  { %2093 = vmatprep.subr.bf16.mxu0 %v2772_v39  ;;  %v2868_v39 = vld [vmem:[%s4023_s1 + $0x674] ss:$8 sps:$4 sm:$0xff]  }
  0x63   :  { %1922 = vmatpush1.bf16.msra.mxu1 %v2767_v40  ;;  %v2863_v40 = vld [vmem:[%s4023_s1 + $0x270] ss:$8 sps:$4 sm:$0xff]  }
  0x64   :  { %2094 = vmatpush1.bf16.msra.mxu0 %v2770_v41  ;;  %1923 = vmatprep.subr.bf16.mxu1 %v2775_v42  ;;  %v2866_v41 = vld [vmem:[%s4023_s1 + $0x670] ss:$8 sps:$4 sm:$0xff]   ;;  %v2871_v42 = vld [vmem:[%s4023_s1 + $0x284] ss:$8 sps:$4 sm:$0xff]  }
  0x65   :  { %2095 = vmatprep.subr.bf16.mxu0 %v2778_v43  ;;  %v2874_v43 = vld [vmem:[%s4023_s1 + $0x684] ss:$8 sps:$4 sm:$0xff]  }
  0x67   :  { %1924 = vmatpush1.bf16.msra.mxu1 %v2773_v44  ;;  %v2869_v44 = vld [vmem:[%s4023_s1 + $0x280] ss:$8 sps:$4 sm:$0xff]  }
  0x68   :  { %2096 = vmatpush1.bf16.msra.mxu0 %v2776_v45  ;;  %1925 = vmatprep.subr.bf16.mxu1 %v2781_v46  ;;  %v2872_v45 = vld [vmem:[%s4023_s1 + $0x680] ss:$8 sps:$4 sm:$0xff]   ;;  %v2877_v46 = vld [vmem:[%s4023_s1 + $0x294] ss:$8 sps:$4 sm:$0xff]  }
  0x69   :  { %2097 = vmatprep.subr.bf16.mxu0 %v2784_v47  ;;  %v2880_v47 = vld [vmem:[%s4023_s1 + $0x694] ss:$8 sps:$4 sm:$0xff]  }
  0x6b   :  { %1926 = vmatpush1.bf16.msra.mxu1 %v2779_v48  ;;  %v2875_v48 = vld [vmem:[%s4023_s1 + $0x290] ss:$8 sps:$4 sm:$0xff]  }
  0x6c   :  { %2098 = vmatpush1.bf16.msra.mxu0 %v2782_v49  ;;  %1927 = vmatprep.subr.bf16.mxu1 %v2787_v50  ;;  %v2878_v49 = vld [vmem:[%s4023_s1 + $0x690] ss:$8 sps:$4 sm:$0xff]   ;;  %v2883_v50 = vld [vmem:[%s4023_s1 + $0x2a4] ss:$8 sps:$4 sm:$0xff]  }
  0x6d   :  { %2099 = vmatprep.subr.bf16.mxu0 %v2790_v51  ;;  %v2886_v51 = vld [vmem:[%s4023_s1 + $0x6a4] ss:$8 sps:$4 sm:$0xff]  }
  0x6f   :  { %1928 = vmatpush1.bf16.msra.mxu1 %v2785_v52  ;;  %v2881_v52 = vld [vmem:[%s4023_s1 + $0x2a0] ss:$8 sps:$4 sm:$0xff]  }
  0x70   :  { %2100 = vmatpush1.bf16.msra.mxu0 %v2788_v53  ;;  %1929 = vmatprep.subr.bf16.mxu1 %v2793_v54  ;;  %v2884_v53 = vld [vmem:[%s4023_s1 + $0x6a0] ss:$8 sps:$4 sm:$0xff]   ;;  %v2889_v54 = vld [vmem:[%s4023_s1 + $0x2b4] ss:$8 sps:$4 sm:$0xff]  }
  0x71   :  { %2101 = vmatprep.subr.bf16.mxu0 %v2796_v55  ;;  %v2892_v55 = vld [vmem:[%s4023_s1 + $0x6b4] ss:$8 sps:$4 sm:$0xff]  }
  0x73   :  { %1930 = vmatpush1.bf16.msra.mxu1 %v2791_v56  ;;  %v2887_v56 = vld [vmem:[%s4023_s1 + $0x2b0] ss:$8 sps:$4 sm:$0xff]  }
  0x74   :  { %2102 = vmatpush1.bf16.msra.mxu0 %v2794_v57  ;;  %1931 = vmatprep.subr.bf16.mxu1 %v2799_v58  ;;  %v2890_v57 = vld [vmem:[%s4023_s1 + $0x6b0] ss:$8 sps:$4 sm:$0xff]   ;;  %v2895_v58 = vld [vmem:[%s4023_s1 + $0x2c4] ss:$8 sps:$4 sm:$0xff]  }
  0x75   :  { %2103 = vmatprep.subr.bf16.mxu0 %v2802_v59  ;;  %v2898_v59 = vld [vmem:[%s4023_s1 + $0x6c4] ss:$8 sps:$4 sm:$0xff]  }
  0x77   :  { %1932 = vmatpush1.bf16.msra.mxu1 %v2797_v60  ;;  %v2893_v60 = vld [vmem:[%s4023_s1 + $0x2c0] ss:$8 sps:$4 sm:$0xff]  }
  0x78   :  { %2104 = vmatpush1.bf16.msra.mxu0 %v2800_v61  ;;  %1933 = vmatprep.subr.bf16.mxu1 %v2805_v62  ;;  %v2896_v61 = vld [vmem:[%s4023_s1 + $0x6c0] ss:$8 sps:$4 sm:$0xff]   ;;  %v2901_v62 = vld [vmem:[%s4023_s1 + $0x2d4] ss:$8 sps:$4 sm:$0xff]  }
  0x79   :  { %2105 = vmatprep.subr.bf16.mxu0 %v2808_v63  ;;  %v2904_v63 = vld [vmem:[%s4023_s1 + $0x6d4] ss:$8 sps:$4 sm:$0xff]  }
  0x7b   :  { %1934 = vmatpush1.bf16.msra.mxu1 %v2803_v0  ;;  %v2899_v0 = vld [vmem:[%s4023_s1 + $0x2d0] ss:$8 sps:$4 sm:$0xff]  }
  0x7c   :  { %2106 = vmatpush1.bf16.msra.mxu0 %v2806_v1  ;;  %1935 = vmatprep.subr.bf16.mxu1 %v2811_v2  ;;  %v2902_v1 = vld [vmem:[%s4023_s1 + $0x6d0] ss:$8 sps:$4 sm:$0xff]   ;;  %v2907_v2 = vld [vmem:[%s4023_s1 + $0x2e4] ss:$8 sps:$4 sm:$0xff]  }
  0x7d   :  { %2107 = vmatprep.subr.bf16.mxu0 %v2814_v3  ;;  %v2910_v3 = vld [vmem:[%s4023_s1 + $0x6e4] ss:$8 sps:$4 sm:$0xff]  }
  0x7f   :  { %1936 = vmatpush1.bf16.msra.mxu1 %v2809_v4  ;;  %v2905_v4 = vld [vmem:[%s4023_s1 + $0x2e0] ss:$8 sps:$4 sm:$0xff]  }
  0x80   :  { %2108 = vmatpush1.bf16.msra.mxu0 %v2812_v5  ;;  %1948 = vmatprep.subr.bf16.mxu1 %v2820_v6  ;;  %v2908_v5 = vld [vmem:[%s4023_s1 + $0x6e0] ss:$8 sps:$4 sm:$0xff]   ;;  %v2913_v6 = vld [vmem:[%s4023_s1 + $0x2f4] ss:$8 sps:$4 sm:$0xff]  }
  0x81   :  { %2120 = vmatprep.subr.bf16.mxu0 %v2826_v7  ;;  %v2916_v7 = vld [vmem:[%s4023_s1 + $0x6f4] ss:$8 sps:$4 sm:$0xff]  }
  0x82   :  { %1938 = vmatmul.mubr.bf16.vlgmr.msra.gmra.mrb[0].mxu1 %v2815_v8  ;;  %v2911_v8 = vld [vmem:[%s4023_s1 + $0x2f0] ss:$8 sps:$4 sm:$0xff]  }
  0x83   :  { %2110 = vmatmul.mubr.bf16.vlgmr.msra.gmra.mrb[0].mxu0 %v2821_v10  ;;  %1949 = vmatpush1.bf16.msra.mxu1 %v2818_v9  ;;  %v2914_v9 = vld [vmem:[%s4023_s1 + $0x6f0] ss:$8 sps:$4 sm:$0xff]   ;;  %v2922_v10 = vld [vmem:[%s4023_s1 + $0x304] ss:$8 sps:$4 sm:$0xff]  }
  0x84   :  { %2121 = vmatpush1.bf16.msra.mxu0 %v2824_v11  ;;  %1950 = vmatprep.subr.bf16.mxu1 %v2829_v12  ;;  %v2928_v11 = vld [vmem:[%s4023_s1 + $0x704] ss:$8 sps:$4 sm:$0xff]   ;;  %v2917_v12 = vld [vmem:[%s4024_s0 + $0x10] ss:$72 sps:$4 sm:$0xff]  }
  0x85   :  { %2122 = vmatprep.subr.bf16.mxu0 %v2832_v13  ;;  %1980 = vmatprep.mubr.bf16.mxu1 %v2919_v19  ;;  %v2920_v13 = vld [vmem:[%s4023_s1 + $0x300] ss:$8 sps:$4 sm:$0xff]   ;;  %v3024_v19 = vld [vmem:[%s4024_s0 + $0x3c] ss:$72 sps:$4 sm:$0xff]  }
  0x86   :  { %2152 = vmatprep.mubr.bf16.mxu0 %v2925_v23  ;;  %v2940_v23 = vld [vmem:[%s4023_s1 + $0x724] ss:$8 sps:$4 sm:$0xff]  }
  0x87   :  { %1951 = vmatpush1.bf16.msra.mxu1 %v2827_v14  ;;  %v2923_v14 = vld [vmem:[%s4024_s0 + $0x30] ss:$72 sps:$4 sm:$0xff]  }
  0x88   :  { %2123 = vmatpush1.bf16.msra.mxu0 %v2830_v15  ;;  %1952 = vmatprep.subr.bf16.mxu1 %v2835_v16  ;;  %v2926_v15 = vld [vmem:[%s4023_s1 + $0x700] ss:$8 sps:$4 sm:$0xff]   ;;  %v2931_v16 = vld [vmem:[%s4023_s1 + $0x314] ss:$8 sps:$4 sm:$0xff]  }
  0x89   :  { %2124 = vmatprep.subr.bf16.mxu0 %v2838_v17  ;;  %v2934_v17 = vld [vmem:[%s4023_s1 + $0x714] ss:$8 sps:$4 sm:$0xff]  }
  0x8b   :  { %1953 = vmatpush1.bf16.msra.mxu1 %v2833_v18  ;;  %v3021_v18 = vld [vmem:[%s4024_s0 + $0x1c] ss:$72 sps:$4 sm:$0xff]  }
  0x8c   :  { %2125 = vmatpush1.bf16.msra.mxu0 %v2836_v20  ;;  %1954 = vmatprep.subr.bf16.mxu1 %v2841_v21  ;;  %v2929_v20 = vld [vmem:[%s4023_s1 + $0x310] ss:$8 sps:$4 sm:$0xff]  }
  0x8d   :  { %2126 = vmatprep.subr.bf16.mxu0 %v2844_v22  ;;  %v2932_v21 = vld [vmem:[%s4023_s1 + $0x710] ss:$8 sps:$4 sm:$0xff]   ;;  %v2937_v22 = vld [vmem:[%s4023_s1 + $0x324] ss:$8 sps:$4 sm:$0xff]  }
  0x8f   :  { %1955 = vmatpush1.bf16.msra.mxu1 %v2839_v24  ;;  %v2935_v24 = vld [vmem:[%s4023_s1 + $0x320] ss:$8 sps:$4 sm:$0xff]  }
  0x90   :  { %2127 = vmatpush1.bf16.msra.mxu0 %v2842_v25  ;;  %1956 = vmatprep.subr.bf16.mxu1 %v2847_v26  ;;  %v2938_v25 = vld [vmem:[%s4023_s1 + $0x720] ss:$8 sps:$4 sm:$0xff]   ;;  %v2943_v26 = vld [vmem:[%s4023_s1 + $0x334] ss:$8 sps:$4 sm:$0xff]  }
  0x91   :  { %2128 = vmatprep.subr.bf16.mxu0 %v2850_v27  ;;  %v2946_v27 = vld [vmem:[%s4023_s1 + $0x734] ss:$8 sps:$4 sm:$0xff]  }
  0x93   :  { %1957 = vmatpush1.bf16.msra.mxu1 %v2845_v28  ;;  %v2941_v28 = vld [vmem:[%s4023_s1 + $0x330] ss:$8 sps:$4 sm:$0xff]  }
  0x94   :  { %2129 = vmatpush1.bf16.msra.mxu0 %v2848_v29  ;;  %1958 = vmatprep.subr.bf16.mxu1 %v2853_v30  ;;  %v2944_v29 = vld [vmem:[%s4023_s1 + $0x730] ss:$8 sps:$4 sm:$0xff]   ;;  %v2949_v30 = vld [vmem:[%s4023_s1 + $0x344] ss:$8 sps:$4 sm:$0xff]  }
  0x95   :  { %2130 = vmatprep.subr.bf16.mxu0 %v2856_v31  ;;  %v2952_v31 = vld [vmem:[%s4023_s1 + $0x744] ss:$8 sps:$4 sm:$0xff]  }
  0x97   :  { %1959 = vmatpush1.bf16.msra.mxu1 %v2851_v32  ;;  %v2947_v32 = vld [vmem:[%s4023_s1 + $0x340] ss:$8 sps:$4 sm:$0xff]  }
  0x98   :  { %2131 = vmatpush1.bf16.msra.mxu0 %v2854_v33  ;;  %1960 = vmatprep.subr.bf16.mxu1 %v2859_v34  ;;  %v2950_v33 = vld [vmem:[%s4023_s1 + $0x740] ss:$8 sps:$4 sm:$0xff]   ;;  %v2955_v34 = vld [vmem:[%s4023_s1 + $0x354] ss:$8 sps:$4 sm:$0xff]  }
  0x99   :  { %2132 = vmatprep.subr.bf16.mxu0 %v2862_v35  ;;  %v2958_v35 = vld [vmem:[%s4023_s1 + $0x754] ss:$8 sps:$4 sm:$0xff]  }
  0x9b   :  { %1961 = vmatpush1.bf16.msra.mxu1 %v2857_v36  ;;  %v2953_v36 = vld [vmem:[%s4023_s1 + $0x350] ss:$8 sps:$4 sm:$0xff]  }
  0x9c   :  { %2133 = vmatpush1.bf16.msra.mxu0 %v2860_v37  ;;  %1962 = vmatprep.subr.bf16.mxu1 %v2865_v38  ;;  %v2956_v37 = vld [vmem:[%s4023_s1 + $0x750] ss:$8 sps:$4 sm:$0xff]   ;;  %v2961_v38 = vld [vmem:[%s4023_s1 + $0x364] ss:$8 sps:$4 sm:$0xff]  }
  0x9d   :  { %2134 = vmatprep.subr.bf16.mxu0 %v2868_v39  ;;  %v2964_v39 = vld [vmem:[%s4023_s1 + $0x764] ss:$8 sps:$4 sm:$0xff]  }
  0x9f   :  { %1963 = vmatpush1.bf16.msra.mxu1 %v2863_v40  ;;  %v2959_v40 = vld [vmem:[%s4023_s1 + $0x360] ss:$8 sps:$4 sm:$0xff]  }
  0xa0   :  { %2135 = vmatpush1.bf16.msra.mxu0 %v2866_v41  ;;  %1964 = vmatprep.subr.bf16.mxu1 %v2871_v42  ;;  %v2962_v41 = vld [vmem:[%s4023_s1 + $0x760] ss:$8 sps:$4 sm:$0xff]   ;;  %v2967_v42 = vld [vmem:[%s4023_s1 + $0x374] ss:$8 sps:$4 sm:$0xff]  }
  0xa1   :  { %2136 = vmatprep.subr.bf16.mxu0 %v2874_v43  ;;  %v2970_v43 = vld [vmem:[%s4023_s1 + $0x774] ss:$8 sps:$4 sm:$0xff]  }
  0xa3   :  { %1965 = vmatpush1.bf16.msra.mxu1 %v2869_v44  ;;  %v2965_v44 = vld [vmem:[%s4023_s1 + $0x370] ss:$8 sps:$4 sm:$0xff]  }
  0xa4   :  { %2137 = vmatpush1.bf16.msra.mxu0 %v2872_v45  ;;  %1966 = vmatprep.subr.bf16.mxu1 %v2877_v46  ;;  %v2968_v45 = vld [vmem:[%s4023_s1 + $0x770] ss:$8 sps:$4 sm:$0xff]   ;;  %v2973_v46 = vld [vmem:[%s4023_s1 + $0x384] ss:$8 sps:$4 sm:$0xff]  }
  0xa5   :  { %2138 = vmatprep.subr.bf16.mxu0 %v2880_v47  ;;  %v2976_v47 = vld [vmem:[%s4023_s1 + $0x784] ss:$8 sps:$4 sm:$0xff]  }
  0xa7   :  { %1967 = vmatpush1.bf16.msra.mxu1 %v2875_v48  ;;  %v2971_v48 = vld [vmem:[%s4023_s1 + $0x380] ss:$8 sps:$4 sm:$0xff]  }
  0xa8   :  { %2139 = vmatpush1.bf16.msra.mxu0 %v2878_v49  ;;  %1968 = vmatprep.subr.bf16.mxu1 %v2883_v50  ;;  %v2974_v49 = vld [vmem:[%s4023_s1 + $0x780] ss:$8 sps:$4 sm:$0xff]   ;;  %v2979_v50 = vld [vmem:[%s4023_s1 + $0x394] ss:$8 sps:$4 sm:$0xff]  }
  0xa9   :  { %2140 = vmatprep.subr.bf16.mxu0 %v2886_v51  ;;  %v2982_v51 = vld [vmem:[%s4023_s1 + $0x794] ss:$8 sps:$4 sm:$0xff]  }
  0xab   :  { %1969 = vmatpush1.bf16.msra.mxu1 %v2881_v52  ;;  %v2977_v52 = vld [vmem:[%s4023_s1 + $0x390] ss:$8 sps:$4 sm:$0xff]  }
  0xac   :  { %2141 = vmatpush1.bf16.msra.mxu0 %v2884_v53  ;;  %1970 = vmatprep.subr.bf16.mxu1 %v2889_v54  ;;  %v2980_v53 = vld [vmem:[%s4023_s1 + $0x790] ss:$8 sps:$4 sm:$0xff]   ;;  %v2985_v54 = vld [vmem:[%s4023_s1 + $0x3a4] ss:$8 sps:$4 sm:$0xff]  }
  0xad   :  { %2142 = vmatprep.subr.bf16.mxu0 %v2892_v55  ;;  %v2988_v55 = vld [vmem:[%s4023_s1 + $0x7a4] ss:$8 sps:$4 sm:$0xff]  }
  0xaf   :  { %1971 = vmatpush1.bf16.msra.mxu1 %v2887_v56  ;;  %v2983_v56 = vld [vmem:[%s4023_s1 + $0x3a0] ss:$8 sps:$4 sm:$0xff]  }
  0xb0   :  { %2143 = vmatpush1.bf16.msra.mxu0 %v2890_v57  ;;  %1972 = vmatprep.subr.bf16.mxu1 %v2895_v58  ;;  %v2986_v57 = vld [vmem:[%s4023_s1 + $0x7a0] ss:$8 sps:$4 sm:$0xff]   ;;  %v2991_v58 = vld [vmem:[%s4023_s1 + $0x3b4] ss:$8 sps:$4 sm:$0xff]  }
  0xb1   :  { %2144 = vmatprep.subr.bf16.mxu0 %v2898_v59  ;;  %v2994_v59 = vld [vmem:[%s4023_s1 + $0x7b4] ss:$8 sps:$4 sm:$0xff]  }
  0xb3   :  { %1973 = vmatpush1.bf16.msra.mxu1 %v2893_v60  ;;  %v2989_v60 = vld [vmem:[%s4023_s1 + $0x3b0] ss:$8 sps:$4 sm:$0xff]  }
  0xb4   :  { %2145 = vmatpush1.bf16.msra.mxu0 %v2896_v61  ;;  %1974 = vmatprep.subr.bf16.mxu1 %v2901_v62  ;;  %v2992_v61 = vld [vmem:[%s4023_s1 + $0x7b0] ss:$8 sps:$4 sm:$0xff]   ;;  %v2997_v62 = vld [vmem:[%s4023_s1 + $0x3c4] ss:$8 sps:$4 sm:$0xff]  }
  0xb5   :  { %2146 = vmatprep.subr.bf16.mxu0 %v2904_v63  ;;  %v3000_v63 = vld [vmem:[%s4023_s1 + $0x7c4] ss:$8 sps:$4 sm:$0xff]  }
  0xb7   :  { %1975 = vmatpush1.bf16.msra.mxu1 %v2899_v0  ;;  %v2995_v0 = vld [vmem:[%s4023_s1 + $0x3c0] ss:$8 sps:$4 sm:$0xff]  }
  0xb8   :  { %2147 = vmatpush1.bf16.msra.mxu0 %v2902_v1  ;;  %1976 = vmatprep.subr.bf16.mxu1 %v2907_v2  ;;  %v2998_v1 = vld [vmem:[%s4023_s1 + $0x7c0] ss:$8 sps:$4 sm:$0xff]   ;;  %v3003_v2 = vld [vmem:[%s4023_s1 + $0x3d4] ss:$8 sps:$4 sm:$0xff]  }
  0xb9   :  { %2148 = vmatprep.subr.bf16.mxu0 %v2910_v3  ;;  %v3006_v3 = vld [vmem:[%s4023_s1 + $0x7d4] ss:$8 sps:$4 sm:$0xff]  }
  0xbb   :  { %1977 = vmatpush1.bf16.msra.mxu1 %v2905_v4  ;;  %v3001_v4 = vld [vmem:[%s4023_s1 + $0x3d0] ss:$8 sps:$4 sm:$0xff]  }
  0xbc   :  { %2149 = vmatpush1.bf16.msra.mxu0 %v2908_v5  ;;  %1978 = vmatprep.subr.bf16.mxu1 %v2913_v6  ;;  %v3004_v5 = vld [vmem:[%s4023_s1 + $0x7d0] ss:$8 sps:$4 sm:$0xff]   ;;  %v3009_v6 = vld [vmem:[%s4023_s1 + $0x3e4] ss:$8 sps:$4 sm:$0xff]  }
  0xbd   :  { %2150 = vmatprep.subr.bf16.mxu0 %v2916_v7  ;;  %v3012_v7 = vld [vmem:[%s4023_s1 + $0x7e4] ss:$8 sps:$4 sm:$0xff]  }
  0xbf   :  { %1979 = vmatpush1.bf16.msra.mxu1 %v2911_v8  ;;  %v3007_v8 = vld [vmem:[%s4023_s1 + $0x3e0] ss:$8 sps:$4 sm:$0xff]  }
  0xc0   :  { %2151 = vmatpush1.bf16.msra.mxu0 %v2914_v9  ;;  %1991 = vmatprep.subr.bf16.mxu1 %v2922_v10  ;;  %v3010_v9 = vld [vmem:[%s4023_s1 + $0x7e0] ss:$8 sps:$4 sm:$0xff]   ;;  %v3015_v10 = vld [vmem:[%s4023_s1 + $0x3f4] ss:$8 sps:$4 sm:$0xff]  }
  0xc1   :  { %2163 = vmatprep.subr.bf16.mxu0 %v2928_v11  ;;  %v3018_v11 = vld [vmem:[%s4023_s1 + $0x7f4] ss:$8 sps:$4 sm:$0xff]  }
  0xc2   :  { %1981 = vmatmul.mubr.bf16.vlgmr.msra.gmra.mrb[0].mxu1 %v2917_v12  ;;  %v3013_v12 = vld [vmem:[%s4023_s1 + $0x3f0] ss:$8 sps:$4 sm:$0xff]  }
  0xc3   :  { %2153 = vmatmul.mubr.bf16.vlgmr.msra.gmra.mrb[0].mxu0 %v2923_v14  ;;  %1992 = vmatpush1.bf16.msra.mxu1 %v2920_v13  ;;  %v3016_v13 = vld [vmem:[%s4023_s1 + $0x7f0] ss:$8 sps:$4 sm:$0xff]   ;;  %v3027_v14 = vld [vmem:[%s4023_s1 + $0x804] ss:$8 sps:$4 sm:$0xff]  }
  0xc4   :  { %2164 = vmatpush1.bf16.msra.mxu0 %v2926_v15  ;;  %1993 = vmatprep.subr.bf16.mxu1 %v2931_v16  ;;  %v3019_v15 = vld [vmem:[%s4024_s0 + $0x18] ss:$72 sps:$4 sm:$0xff]  }
  0xc5   :  { %2165 = vmatprep.subr.bf16.mxu0 %v2934_v17  ;;  %2023 = vmatprep.mubr.bf16.mxu1 %v3021_v18  ;;  %v3022_v16 = vld [vmem:[%s4024_s0 + $0x38] ss:$72 sps:$4 sm:$0xff]   ;;  %v3075_v18 = vld [vmem:[%s4024_s0 + $0x44] ss:$72 sps:$4 sm:$0xff]  }
  0xc6   :  { %2195 = vmatprep.mubr.bf16.mxu0 %v3024_v19  ;;  %v3025_v17 = vld [vmem:[%s4023_s1 + $0x800] ss:$8 sps:$4 sm:$0xff]   ;;  %v3030_v19 = vld [vmem:[%s4023_s1 + $0x814] ss:$8 sps:$4 sm:$0xff]  }
  0xc7   :  { %1994 = vmatpush1.bf16.msra.mxu1 %v2929_v20  ;;  %v3028_v20 = vld [vmem:[%s4023_s1 + $0x810] ss:$8 sps:$4 sm:$0xff]  }
  0xc8   :  { %2166 = vmatpush1.bf16.msra.mxu0 %v2932_v21  ;;  %1995 = vmatprep.subr.bf16.mxu1 %v2937_v22  ;;  %v3033_v21 = vld [vmem:[%s4023_s1 + $0x824] ss:$8 sps:$4 sm:$0xff]   ;;  %v3031_v22 = vld [vmem:[%s4023_s1 + $0x820] ss:$8 sps:$4 sm:$0xff]  }
  0xc9   :  { %2167 = vmatprep.subr.bf16.mxu0 %v2940_v23  ;;  %v3036_v23 = vld [vmem:[%s4023_s1 + $0x834] ss:$8 sps:$4 sm:$0xff]  }
  0xcb   :  { %1996 = vmatpush1.bf16.msra.mxu1 %v2935_v24  ;;  %v3034_v24 = vld [vmem:[%s4023_s1 + $0x830] ss:$8 sps:$4 sm:$0xff]  }
  0xcc   :  { %2168 = vmatpush1.bf16.msra.mxu0 %v2938_v25  ;;  %1997 = vmatprep.subr.bf16.mxu1 %v2943_v26  ;;  %v3039_v25 = vld [vmem:[%s4023_s1 + $0x844] ss:$8 sps:$4 sm:$0xff]   ;;  %v3037_v26 = vld [vmem:[%s4023_s1 + $0x840] ss:$8 sps:$4 sm:$0xff]  }
  0xcd   :  { %2169 = vmatprep.subr.bf16.mxu0 %v2946_v27  ;;  %v3042_v27 = vld [vmem:[%s4023_s1 + $0x854] ss:$8 sps:$4 sm:$0xff]  }
  0xcf   :  { %1998 = vmatpush1.bf16.msra.mxu1 %v2941_v28  ;;  %v3040_v28 = vld [vmem:[%s4023_s1 + $0x850] ss:$8 sps:$4 sm:$0xff]  }
  0xd0   :  { %2170 = vmatpush1.bf16.msra.mxu0 %v2944_v29  ;;  %1999 = vmatprep.subr.bf16.mxu1 %v2949_v30  ;;  %v3045_v29 = vld [vmem:[%s4023_s1 + $0x864] ss:$8 sps:$4 sm:$0xff]   ;;  %v3043_v30 = vld [vmem:[%s4023_s1 + $0x860] ss:$8 sps:$4 sm:$0xff]  }
  0xd1   :  { %2171 = vmatprep.subr.bf16.mxu0 %v2952_v31  ;;  %v3048_v31 = vld [vmem:[%s4023_s1 + $0x874] ss:$8 sps:$4 sm:$0xff]  }
  0xd3   :  { %2000 = vmatpush1.bf16.msra.mxu1 %v2947_v32  ;;  %v3046_v32 = vld [vmem:[%s4023_s1 + $0x870] ss:$8 sps:$4 sm:$0xff]  }
  0xd4   :  { %2172 = vmatpush1.bf16.msra.mxu0 %v2950_v33  ;;  %2001 = vmatprep.subr.bf16.mxu1 %v2955_v34  ;;  %v3051_v33 = vld [vmem:[%s4023_s1 + $0x884] ss:$8 sps:$4 sm:$0xff]   ;;  %v3049_v34 = vld [vmem:[%s4023_s1 + $0x880] ss:$8 sps:$4 sm:$0xff]  }
  0xd5   :  { %2173 = vmatprep.subr.bf16.mxu0 %v2958_v35  ;;  %v3054_v35 = vld [vmem:[%s4023_s1 + $0x894] ss:$8 sps:$4 sm:$0xff]  }
  0xd7   :  { %2002 = vmatpush1.bf16.msra.mxu1 %v2953_v36  ;;  %v3052_v36 = vld [vmem:[%s4023_s1 + $0x890] ss:$8 sps:$4 sm:$0xff]  }
  0xd8   :  { %2174 = vmatpush1.bf16.msra.mxu0 %v2956_v37  ;;  %2003 = vmatprep.subr.bf16.mxu1 %v2961_v38  ;;  %v3057_v37 = vld [vmem:[%s4023_s1 + $0x8a4] ss:$8 sps:$4 sm:$0xff]   ;;  %v3055_v38 = vld [vmem:[%s4023_s1 + $0x8a0] ss:$8 sps:$4 sm:$0xff]  }
  0xd9   :  { %2175 = vmatprep.subr.bf16.mxu0 %v2964_v39  ;;  %v3060_v39 = vld [vmem:[%s4023_s1 + $0x8b4] ss:$8 sps:$4 sm:$0xff]  }
  0xdb   :  { %2004 = vmatpush1.bf16.msra.mxu1 %v2959_v40  ;;  %v3058_v40 = vld [vmem:[%s4023_s1 + $0x8b0] ss:$8 sps:$4 sm:$0xff]  }
  0xdc   :  { %2176 = vmatpush1.bf16.msra.mxu0 %v2962_v41  ;;  %2005 = vmatprep.subr.bf16.mxu1 %v2967_v42  ;;  %v3063_v41 = vld [vmem:[%s4023_s1 + $0x8c4] ss:$8 sps:$4 sm:$0xff]   ;;  %v3061_v42 = vld [vmem:[%s4023_s1 + $0x8c0] ss:$8 sps:$4 sm:$0xff]  }
  0xdd   :  { %2177 = vmatprep.subr.bf16.mxu0 %v2970_v43  ;;  %v3066_v43 = vld [vmem:[%s4023_s1 + $0x8d4] ss:$8 sps:$4 sm:$0xff]  }
  0xdf   :  { %2006 = vmatpush1.bf16.msra.mxu1 %v2965_v44  ;;  %v3064_v44 = vld [vmem:[%s4023_s1 + $0x8d0] ss:$8 sps:$4 sm:$0xff]  }
  0xe0   :  { %2178 = vmatpush1.bf16.msra.mxu0 %v2968_v45  ;;  %2007 = vmatprep.subr.bf16.mxu1 %v2973_v46  ;;  %v3069_v45 = vld [vmem:[%s4023_s1 + $0x8e4] ss:$8 sps:$4 sm:$0xff]   ;;  %v3067_v46 = vld [vmem:[%s4023_s1 + $0x8e0] ss:$8 sps:$4 sm:$0xff]  }
  0xe1   :  { %2179 = vmatprep.subr.bf16.mxu0 %v2976_v47  ;;  %v3072_v47 = vld [vmem:[%s4023_s1 + $0x8f4] ss:$8 sps:$4 sm:$0xff]  }
  0xe3   :  { %2008 = vmatpush1.bf16.msra.mxu1 %v2971_v48  ;;  %v3070_v48 = vld [vmem:[%s4023_s1 + $0x8f0] ss:$8 sps:$4 sm:$0xff]  }
  0xe4   :  { %2180 = vmatpush1.bf16.msra.mxu0 %v2974_v49  ;;  %2009 = vmatprep.subr.bf16.mxu1 %v2979_v50  ;;  %v3073_v49 = vld [vmem:[%s4024_s0 + $0x40] ss:$72 sps:$4 sm:$0xff]  }
  0xe5   :  { %2181 = vmatprep.subr.bf16.mxu0 %v2982_v51 }
  0xe7   :  { %2010 = vmatpush1.bf16.msra.mxu1 %v2977_v52 }
  0xe8   :  { %2182 = vmatpush1.bf16.msra.mxu0 %v2980_v53  ;;  %2011 = vmatprep.subr.bf16.mxu1 %v2985_v54  ;;  %v322_v54 = vlaneseq }
  0xe9   :  { %2183 = vmatprep.subr.bf16.mxu0 %v2988_v55 }
  0xea   :  { %v323_v55 = vshrl.u32 %v322_v54, 7 }
  0xeb   :  { %2012 = vmatpush1.bf16.msra.mxu1 %v2983_v56 }
  0xec   :  { %2184 = vmatpush1.bf16.msra.mxu0 %v2986_v57  ;;  %2013 = vmatprep.subr.bf16.mxu1 %v2991_v58  ;;  %v324_v56 = vsub.s32 0, %v323_v55  ;;  %v320_v57 = vld [vmem:[%s4025_s2] sm:$0x3]  ;;  %v328_v58 = vsub.s32 1, %v323_v55 }
  0xed   :  { %2185 = vmatprep.subr.bf16.mxu0 %v2994_v59 }
  0xee   :  { %v325_v59 = vrot.slane %v320_v57, %v324_v56 }
  0xef   :  { %2014 = vmatpush1.bf16.msra.mxu1 %v2989_v60  ;;  %v329_v60 = vrot.slane %v320_v57, %v328_v58 }
  0xf0   :  { %2186 = vmatpush1.bf16.msra.mxu0 %v2992_v61  ;;  %2015 = vmatprep.subr.bf16.mxu1 %v2997_v62 }
  0xf1   :  { %2187 = vmatprep.subr.bf16.mxu0 %v3000_v63 }
  0xf3   :  { %2016 = vmatpush1.bf16.msra.mxu1 %v2995_v0 }
  0xf4   :  { %2188 = vmatpush1.bf16.msra.mxu0 %v2998_v1  ;;  %2017 = vmatprep.subr.bf16.mxu1 %v3003_v2 }
  0xf5   :  { %2189 = vmatprep.subr.bf16.mxu0 %v3006_v3 }
  0xf7   :  { %2018 = vmatpush1.bf16.msra.mxu1 %v3001_v4 }
  0xf8   :  { %2190 = vmatpush1.bf16.msra.mxu0 %v3004_v5  ;;  %2019 = vmatprep.subr.bf16.mxu1 %v3009_v6 }
  0xf9   :  { %2191 = vmatprep.subr.bf16.mxu0 %v3012_v7 }
  0xfb   :  { %2020 = vmatpush1.bf16.msra.mxu1 %v3007_v8 }
  0xfc   :  { %2192 = vmatpush1.bf16.msra.mxu0 %v3010_v9  ;;  %2021 = vmatprep.subr.bf16.mxu1 %v3015_v10 }
  0xfd   :  { %2193 = vmatprep.subr.bf16.mxu0 %v3018_v11 }
  0xff   :  { %2022 = vmatpush1.bf16.msra.mxu1 %v3013_v12 }
 0x100   :  { %2194 = vmatpush1.bf16.msra.mxu0 %v3016_v13 }
 0x101   :  { %2206 = vmatprep.subr.bf16.mxu0 %v3027_v14 }
 0x102   :  { %2024 = vmatmul.mubr.bf16.vlgmr.msra.gmra.mrb[0].mxu1 %v3019_v15 }
 0x103   :  { %2196 = vmatmul.mubr.bf16.vlgmr.msra.gmra.mrb[0].mxu0 %v3022_v16 }
 0x104   :  { %2207 = vmatpush1.bf16.msra.mxu0 %v3025_v17  ;;  %2238 = vmatprep.mubr.bf16.mxu0 %v3075_v18 }
 0x105   :  { %2208 = vmatprep.subr.bf16.mxu0 %v3030_v19 }
 0x108   :  { %2209 = vmatpush1.bf16.msra.mxu0 %v3028_v20 }
 0x109   :  { %2210 = vmatprep.subr.bf16.mxu0 %v3033_v21 }
 0x10c   :  { %2211 = vmatpush1.bf16.msra.mxu0 %v3031_v22 }
 0x10d   :  { %2212 = vmatprep.subr.bf16.mxu0 %v3036_v23 }
 0x110   :  { %2213 = vmatpush1.bf16.msra.mxu0 %v3034_v24 }
 0x111   :  { %2214 = vmatprep.subr.bf16.mxu0 %v3039_v25 }
 0x114   :  { %2215 = vmatpush1.bf16.msra.mxu0 %v3037_v26 }
 0x115   :  { %2216 = vmatprep.subr.bf16.mxu0 %v3042_v27 }
 0x118   :  { %2217 = vmatpush1.bf16.msra.mxu0 %v3040_v28 }
 0x119   :  { %2218 = vmatprep.subr.bf16.mxu0 %v3045_v29 }
 0x11c   :  { %2219 = vmatpush1.bf16.msra.mxu0 %v3043_v30 }
 0x11d   :  { %2220 = vmatprep.subr.bf16.mxu0 %v3048_v31 }
 0x120   :  { %2221 = vmatpush1.bf16.msra.mxu0 %v3046_v32 }
 0x121   :  { %2222 = vmatprep.subr.bf16.mxu0 %v3051_v33 }
 0x124   :  { %2223 = vmatpush1.bf16.msra.mxu0 %v3049_v34 }
 0x125   :  { %2224 = vmatprep.subr.bf16.mxu0 %v3054_v35 }
 0x128   :  { %2225 = vmatpush1.bf16.msra.mxu0 %v3052_v36 }
 0x129   :  { %2226 = vmatprep.subr.bf16.mxu0 %v3057_v37 }
 0x12c   :  { %2227 = vmatpush1.bf16.msra.mxu0 %v3055_v38 }
 0x12d   :  { %2228 = vmatprep.subr.bf16.mxu0 %v3060_v39 }
 0x130   :  { %2229 = vmatpush1.bf16.msra.mxu0 %v3058_v40 }
 0x131   :  { %2230 = vmatprep.subr.bf16.mxu0 %v3063_v41 }
 0x134   :  { %2231 = vmatpush1.bf16.msra.mxu0 %v3061_v42 }
 0x135   :  { %2232 = vmatprep.subr.bf16.mxu0 %v3066_v43 }
 0x138   :  { %2233 = vmatpush1.bf16.msra.mxu0 %v3064_v44 }
 0x139   :  { %2234 = vmatprep.subr.bf16.mxu0 %v3069_v45 }
 0x13c   :  { %2235 = vmatpush1.bf16.msra.mxu0 %v3067_v46 }
 0x13d   :  { %2236 = vmatprep.subr.bf16.mxu0 %v3072_v47 }
 0x140   :  { %2237 = vmatpush1.bf16.msra.mxu0 %v3070_v48 }
 0x143   :  { %2239 = vmatmul.mubr.bf16.vlgmr.msra.gmra.mrb[0].mxu0 %v3073_v49 }
 0x1d5   :  { %v2025_v50 = vpop.f32.mrb[0].mxu1 }
 0x1d6   :  { %v2027_v51 = vpop.f32.mrb[1].mxu1  ;;  %v2581_v61 = vadd.f32 %v2025_v50, %v325_v59 }
 0x1d7   :  { %v2029_v52 = vpop.f32.mrb[2].mxu1  ;;  %v2583_v62 = vadd.f32 %v2027_v51, %v329_v60 }
 0x1d8   :  { %v2031_v53 = vpop.f32.mrb[3].mxu1  ;;  %v2585_v0 = vadd.f32 %v2029_v52, %v325_v59 }
 0x1d9   :  { %v2587_v3 = vadd.f32 %v2031_v53, %v329_v60 }
 0x216   :  { %v2240_v63 = vpop.f32.mrb[0].mxu0 }
 0x217   :  { %v2582_v1 = vadd.f32 %v2581_v61, %v2240_v63  ;;  %v2242_v2 = vpop.f32.mrb[1].mxu0 }
 0x218   :  { %v2584_v4 = vadd.f32 %v2583_v62, %v2242_v2  ;;  %v2244_v5 = vpop.f32.mrb[2].mxu0 }
 0x219   :  { %v2249_v6 = vmax.f32 %v2582_v1, 0.0  ;;  %v2586_v7 = vadd.f32 %v2585_v0, %v2244_v5  ;;  %v2246_v8 = vpop.f32.mrb[3].mxu0 }
 0x21a   :  { %v2250_v9 = vmax.f32 %v2584_v4, 0.0  ;;  %v2588_v10 = vadd.f32 %v2587_v3, %v2246_v8 }
 0x21b   :  { %v2251_v11 = vmax.f32 %v2586_v7, 0.0 }
 0x21c   :  { %v2579_v12 = vpack.c.bf16 %v2250_v9, %v2249_v6  ;;  %v2252_v13 = vmax.f32 %v2588_v10, 0.0 }
 0x21e   :  { %2265 = vst [vmem:[%s4026_s3] sm:$0xff] %v2579_v12  ;;  %v2580_v14 = vpack.c.bf16 %v2252_v13, %v2251_v11 }
 0x220   :  { %2266 = vst [vmem:[%s4026_s3 + $0x8] sm:$0xff] %v2580_v14 }

// kernel: _lambda_.43
= control target key start
LH: loop header
LB: loop body
LE: loop exit
PB: predicated region body
PF: predicated region fallthrough
CT: control target
= control target key end

     0   :  { %s4047_s1 = inlined_call_operand.vmem [shape: bf16[2304,256], index: 1, kind: input, shape index: {}]   ;;  %s4048_s0 = inlined_call_operand.vmem [shape: bf16[16,2304], index: 0, kind: input, shape index: {}]   ;;  %s4049_s2 = inlined_call_operand.vmem [shape: f32[1,256], index: 2, kind: input, shape index: {}]   ;;  %s4050_s3 = inlined_call_operand.vmem [shape: bf16[16,256], index: 3, kind: input, shape index: {}]   ;;  %s4051_s4 = inlined_call_operand.vmem [shape: bf16[16,256], index: 4, kind: output, shape index: {}]  }
   0x1   :  { %v2630_v0 = vld [vmem:[%s4047_s1 + $0x4] ss:$8 sps:$4 sm:$0xff]   ;;  %v2634_v2 = vld [vmem:[%s4047_s1] ss:$8 sps:$4 sm:$0xff]   ;;  %v2636_v4 = vld [vmem:[%s4047_s1 + $0x14] ss:$8 sps:$4 sm:$0xff]  }
   0x2   :  { %v2632_v1 = vld [vmem:[%s4047_s1 + $0x404] ss:$8 sps:$4 sm:$0xff]   ;;  %1865 = vmatprep.subr.bf16.mxu1 %v2630_v0  ;;  %v2635_v3 = vld [vmem:[%s4047_s1 + $0x400] ss:$8 sps:$4 sm:$0xff]   ;;  %v2638_v5 = vld [vmem:[%s4047_s1 + $0x414] ss:$8 sps:$4 sm:$0xff]  }
   0x3   :  { %2037 = vmatprep.subr.bf16.mxu0 %v2632_v1  ;;  %1866 = vmatpush1.bf16.msra.mxu1 %v2634_v2  ;;  %v2640_v6 = vld [vmem:[%s4047_s1 + $0x10] ss:$8 sps:$4 sm:$0xff]   ;;  %v2642_v8 = vld [vmem:[%s4047_s1 + $0x24] ss:$8 sps:$4 sm:$0xff]   ;;  %v2646_v10 = vld [vmem:[%s4047_s1 + $0x20] ss:$8 sps:$4 sm:$0xff]  }
   0x4   :  { %2038 = vmatpush1.bf16.msra.mxu0 %v2635_v3  ;;  %1867 = vmatprep.subr.bf16.mxu1 %v2636_v4  ;;  %v2641_v7 = vld [vmem:[%s4047_s1 + $0x410] ss:$8 sps:$4 sm:$0xff]   ;;  %v2644_v9 = vld [vmem:[%s4047_s1 + $0x424] ss:$8 sps:$4 sm:$0xff]   ;;  %v2647_v11 = vld [vmem:[%s4047_s1 + $0x420] ss:$8 sps:$4 sm:$0xff]  }
   0x5   :  { %2039 = vmatprep.subr.bf16.mxu0 %v2638_v5  ;;  %v2648_v12 = vld [vmem:[%s4047_s1 + $0x34] ss:$8 sps:$4 sm:$0xff]   ;;  %v2652_v14 = vld [vmem:[%s4047_s1 + $0x30] ss:$8 sps:$4 sm:$0xff]   ;;  %v2654_v16 = vld [vmem:[%s4047_s1 + $0x44] ss:$8 sps:$4 sm:$0xff]  }
   0x6   :  { %v2650_v13 = vld [vmem:[%s4047_s1 + $0x434] ss:$8 sps:$4 sm:$0xff]   ;;  %v2653_v15 = vld [vmem:[%s4047_s1 + $0x430] ss:$8 sps:$4 sm:$0xff]   ;;  %v2656_v17 = vld [vmem:[%s4047_s1 + $0x444] ss:$8 sps:$4 sm:$0xff]  }
   0x7   :  { %1868 = vmatpush1.bf16.msra.mxu1 %v2640_v6  ;;  %v2658_v18 = vld [vmem:[%s4047_s1 + $0x40] ss:$8 sps:$4 sm:$0xff]   ;;  %v2660_v20 = vld [vmem:[%s4047_s1 + $0x54] ss:$8 sps:$4 sm:$0xff]   ;;  %v2664_v22 = vld [vmem:[%s4047_s1 + $0x50] ss:$8 sps:$4 sm:$0xff]  }
   0x8   :  { %2040 = vmatpush1.bf16.msra.mxu0 %v2641_v7  ;;  %1869 = vmatprep.subr.bf16.mxu1 %v2642_v8  ;;  %v2659_v19 = vld [vmem:[%s4047_s1 + $0x440] ss:$8 sps:$4 sm:$0xff]   ;;  %v2662_v21 = vld [vmem:[%s4047_s1 + $0x454] ss:$8 sps:$4 sm:$0xff]   ;;  %v2665_v23 = vld [vmem:[%s4047_s1 + $0x450] ss:$8 sps:$4 sm:$0xff]  }
   0x9   :  { %2041 = vmatprep.subr.bf16.mxu0 %v2644_v9  ;;  %v2666_v24 = vld [vmem:[%s4047_s1 + $0x64] ss:$8 sps:$4 sm:$0xff]   ;;  %v2670_v26 = vld [vmem:[%s4047_s1 + $0x60] ss:$8 sps:$4 sm:$0xff]   ;;  %v2672_v28 = vld [vmem:[%s4047_s1 + $0x74] ss:$8 sps:$4 sm:$0xff]  }
   0xa   :  { %v2668_v25 = vld [vmem:[%s4047_s1 + $0x464] ss:$8 sps:$4 sm:$0xff]   ;;  %v2671_v27 = vld [vmem:[%s4047_s1 + $0x460] ss:$8 sps:$4 sm:$0xff]   ;;  %v2674_v29 = vld [vmem:[%s4047_s1 + $0x474] ss:$8 sps:$4 sm:$0xff]  }
   0xb   :  { %1870 = vmatpush1.bf16.msra.mxu1 %v2646_v10  ;;  %v2676_v30 = vld [vmem:[%s4047_s1 + $0x70] ss:$8 sps:$4 sm:$0xff]   ;;  %v2678_v32 = vld [vmem:[%s4047_s1 + $0x84] ss:$8 sps:$4 sm:$0xff]   ;;  %v2682_v34 = vld [vmem:[%s4047_s1 + $0x80] ss:$8 sps:$4 sm:$0xff]  }
   0xc   :  { %2042 = vmatpush1.bf16.msra.mxu0 %v2647_v11  ;;  %1871 = vmatprep.subr.bf16.mxu1 %v2648_v12  ;;  %v2677_v31 = vld [vmem:[%s4047_s1 + $0x470] ss:$8 sps:$4 sm:$0xff]   ;;  %v2680_v33 = vld [vmem:[%s4047_s1 + $0x484] ss:$8 sps:$4 sm:$0xff]   ;;  %v2683_v35 = vld [vmem:[%s4047_s1 + $0x480] ss:$8 sps:$4 sm:$0xff]  }
   0xd   :  { %2043 = vmatprep.subr.bf16.mxu0 %v2650_v13  ;;  %v2684_v36 = vld [vmem:[%s4047_s1 + $0x94] ss:$8 sps:$4 sm:$0xff]   ;;  %v2688_v38 = vld [vmem:[%s4047_s1 + $0x90] ss:$8 sps:$4 sm:$0xff]   ;;  %v2690_v40 = vld [vmem:[%s4047_s1 + $0xa4] ss:$8 sps:$4 sm:$0xff]  }
   0xe   :  { %v2686_v37 = vld [vmem:[%s4047_s1 + $0x494] ss:$8 sps:$4 sm:$0xff]   ;;  %v2689_v39 = vld [vmem:[%s4047_s1 + $0x490] ss:$8 sps:$4 sm:$0xff]   ;;  %v2692_v41 = vld [vmem:[%s4047_s1 + $0x4a4] ss:$8 sps:$4 sm:$0xff]  }
   0xf   :  { %1872 = vmatpush1.bf16.msra.mxu1 %v2652_v14  ;;  %v2694_v42 = vld [vmem:[%s4047_s1 + $0xa0] ss:$8 sps:$4 sm:$0xff]   ;;  %v2696_v44 = vld [vmem:[%s4047_s1 + $0xb4] ss:$8 sps:$4 sm:$0xff]   ;;  %v2700_v46 = vld [vmem:[%s4047_s1 + $0xb0] ss:$8 sps:$4 sm:$0xff]  }
  0x10   :  { %2044 = vmatpush1.bf16.msra.mxu0 %v2653_v15  ;;  %1873 = vmatprep.subr.bf16.mxu1 %v2654_v16  ;;  %v2695_v43 = vld [vmem:[%s4047_s1 + $0x4a0] ss:$8 sps:$4 sm:$0xff]   ;;  %v2698_v45 = vld [vmem:[%s4047_s1 + $0x4b4] ss:$8 sps:$4 sm:$0xff]   ;;  %v2701_v47 = vld [vmem:[%s4047_s1 + $0x4b0] ss:$8 sps:$4 sm:$0xff]  }
  0x11   :  { %2045 = vmatprep.subr.bf16.mxu0 %v2656_v17  ;;  %v2728_v48 = vld [vmem:[%s4048_s0 + $0x4] ss:$72 sps:$4 sm:$0xff]   ;;  %v2706_v52 = vld [vmem:[%s4047_s1 + $0xc0] ss:$8 sps:$4 sm:$0xff]   ;;  %v2708_v54 = vld [vmem:[%s4047_s1 + $0xd4] ss:$8 sps:$4 sm:$0xff]  }
  0x12   :  { %v2702_v49 = vld [vmem:[%s4047_s1 + $0xc4] ss:$8 sps:$4 sm:$0xff]   ;;  %1897 = vmatprep.mubr.bf16.mxu1 %v2728_v48  ;;  %v2707_v53 = vld [vmem:[%s4047_s1 + $0x4c0] ss:$8 sps:$4 sm:$0xff]   ;;  %v2710_v55 = vld [vmem:[%s4047_s1 + $0x4d4] ss:$8 sps:$4 sm:$0xff]  }
  0x13   :  { %1874 = vmatpush1.bf16.msra.mxu1 %v2658_v18  ;;  %v2704_v50 = vld [vmem:[%s4047_s1 + $0x4c4] ss:$8 sps:$4 sm:$0xff]   ;;  %v2712_v56 = vld [vmem:[%s4047_s1 + $0xd0] ss:$8 sps:$4 sm:$0xff]   ;;  %v2718_v60 = vld [vmem:[%s4047_s1 + $0xe0] ss:$8 sps:$4 sm:$0xff]  }
  0x14   :  { %2046 = vmatpush1.bf16.msra.mxu0 %v2659_v19  ;;  %1875 = vmatprep.subr.bf16.mxu1 %v2660_v20  ;;  %v2734_v51 = vld [vmem:[%s4048_s0 + $0x24] ss:$72 sps:$4 sm:$0xff]   ;;  %v2713_v57 = vld [vmem:[%s4047_s1 + $0x4d0] ss:$8 sps:$4 sm:$0xff]   ;;  %v2719_v61 = vld [vmem:[%s4047_s1 + $0x4e0] ss:$8 sps:$4 sm:$0xff]  }
  0x15   :  { %2047 = vmatprep.subr.bf16.mxu0 %v2662_v21  ;;  %2069 = vmatprep.mubr.bf16.mxu0 %v2734_v51  ;;  %v2714_v58 = vld [vmem:[%s4047_s1 + $0xe4] ss:$8 sps:$4 sm:$0xff]   ;;  %v2720_v62 = vld [vmem:[%s4047_s1 + $0xf4] ss:$8 sps:$4 sm:$0xff]   ;;  %v2724_v0 = vld [vmem:[%s4047_s1 + $0xf0] ss:$8 sps:$4 sm:$0xff]  }
  0x16   :  { %v2716_v59 = vld [vmem:[%s4047_s1 + $0x4e4] ss:$8 sps:$4 sm:$0xff]   ;;  %v2722_v63 = vld [vmem:[%s4047_s1 + $0x4f4] ss:$8 sps:$4 sm:$0xff]   ;;  %v2725_v1 = vld [vmem:[%s4047_s1 + $0x4f0] ss:$8 sps:$4 sm:$0xff]  }
  0x17   :  { %1876 = vmatpush1.bf16.msra.mxu1 %v2664_v22  ;;  %v2731_v2 = vld [vmem:[%s4047_s1 + $0x104] ss:$8 sps:$4 sm:$0xff]   ;;  %v2726_v4 = vld [vmem:[%s4048_s0] ss:$72 sps:$4 sm:$0xff]   ;;  %v2740_v8 = vld [vmem:[%s4047_s1 + $0x114] ss:$8 sps:$4 sm:$0xff]  }
  0x18   :  { %2048 = vmatpush1.bf16.msra.mxu0 %v2665_v23  ;;  %1877 = vmatprep.subr.bf16.mxu1 %v2666_v24  ;;  %v2737_v3 = vld [vmem:[%s4047_s1 + $0x504] ss:$8 sps:$4 sm:$0xff]   ;;  %v2729_v5 = vld [vmem:[%s4047_s1 + $0x100] ss:$8 sps:$4 sm:$0xff]   ;;  %v2743_v9 = vld [vmem:[%s4047_s1 + $0x514] ss:$8 sps:$4 sm:$0xff]  }
  0x19   :  { %2049 = vmatprep.subr.bf16.mxu0 %v2668_v25  ;;  %v2732_v6 = vld [vmem:[%s4048_s0 + $0x20] ss:$72 sps:$4 sm:$0xff]   ;;  %v2738_v10 = vld [vmem:[%s4047_s1 + $0x110] ss:$8 sps:$4 sm:$0xff]   ;;  %v2746_v12 = vld [vmem:[%s4047_s1 + $0x124] ss:$8 sps:$4 sm:$0xff]  }
  0x1a   :  { %v2735_v7 = vld [vmem:[%s4047_s1 + $0x500] ss:$8 sps:$4 sm:$0xff]   ;;  %v2741_v11 = vld [vmem:[%s4047_s1 + $0x510] ss:$8 sps:$4 sm:$0xff]   ;;  %v2749_v13 = vld [vmem:[%s4047_s1 + $0x524] ss:$8 sps:$4 sm:$0xff]  }
  0x1b   :  { %1878 = vmatpush1.bf16.msra.mxu1 %v2670_v26  ;;  %v2744_v14 = vld [vmem:[%s4047_s1 + $0x120] ss:$8 sps:$4 sm:$0xff]   ;;  %v2752_v16 = vld [vmem:[%s4047_s1 + $0x134] ss:$8 sps:$4 sm:$0xff]   ;;  %v2750_v18 = vld [vmem:[%s4047_s1 + $0x130] ss:$8 sps:$4 sm:$0xff]  }
  0x1c   :  { %2050 = vmatpush1.bf16.msra.mxu0 %v2671_v27  ;;  %1879 = vmatprep.subr.bf16.mxu1 %v2672_v28  ;;  %v2747_v15 = vld [vmem:[%s4047_s1 + $0x520] ss:$8 sps:$4 sm:$0xff]   ;;  %v2755_v17 = vld [vmem:[%s4047_s1 + $0x534] ss:$8 sps:$4 sm:$0xff]   ;;  %v2753_v19 = vld [vmem:[%s4047_s1 + $0x530] ss:$8 sps:$4 sm:$0xff]  }
  0x1d   :  { %2051 = vmatprep.subr.bf16.mxu0 %v2674_v29  ;;  %v2758_v20 = vld [vmem:[%s4047_s1 + $0x144] ss:$8 sps:$4 sm:$0xff]   ;;  %v2756_v22 = vld [vmem:[%s4047_s1 + $0x140] ss:$8 sps:$4 sm:$0xff]   ;;  %v2764_v24 = vld [vmem:[%s4047_s1 + $0x154] ss:$8 sps:$4 sm:$0xff]  }
  0x1e   :  { %v2761_v21 = vld [vmem:[%s4047_s1 + $0x544] ss:$8 sps:$4 sm:$0xff]   ;;  %v2759_v23 = vld [vmem:[%s4047_s1 + $0x540] ss:$8 sps:$4 sm:$0xff]   ;;  %v2767_v25 = vld [vmem:[%s4047_s1 + $0x554] ss:$8 sps:$4 sm:$0xff]  }
  0x1f   :  { %1880 = vmatpush1.bf16.msra.mxu1 %v2676_v30  ;;  %v2762_v26 = vld [vmem:[%s4047_s1 + $0x150] ss:$8 sps:$4 sm:$0xff]   ;;  %v2770_v28 = vld [vmem:[%s4047_s1 + $0x164] ss:$8 sps:$4 sm:$0xff]   ;;  %v2768_v30 = vld [vmem:[%s4047_s1 + $0x160] ss:$8 sps:$4 sm:$0xff]  }
  0x20   :  { %2052 = vmatpush1.bf16.msra.mxu0 %v2677_v31  ;;  %1881 = vmatprep.subr.bf16.mxu1 %v2678_v32  ;;  %v2765_v27 = vld [vmem:[%s4047_s1 + $0x550] ss:$8 sps:$4 sm:$0xff]   ;;  %v2773_v29 = vld [vmem:[%s4047_s1 + $0x564] ss:$8 sps:$4 sm:$0xff]   ;;  %v2771_v31 = vld [vmem:[%s4047_s1 + $0x560] ss:$8 sps:$4 sm:$0xff]  }
  0x21   :  { %2053 = vmatprep.subr.bf16.mxu0 %v2680_v33  ;;  %v2776_v32 = vld [vmem:[%s4047_s1 + $0x174] ss:$8 sps:$4 sm:$0xff]   ;;  %v2792_v48 = vld [vmem:[%s4047_s1 + $0x1a0] ss:$8 sps:$4 sm:$0xff]  }
  0x22   :  { %v2779_v33 = vld [vmem:[%s4047_s1 + $0x574] ss:$8 sps:$4 sm:$0xff]  }
  0x23   :  { %1882 = vmatpush1.bf16.msra.mxu1 %v2682_v34  ;;  %v2830_v34 = vld [vmem:[%s4048_s0 + $0xc] ss:$72 sps:$4 sm:$0xff]  }
  0x24   :  { %2054 = vmatpush1.bf16.msra.mxu0 %v2683_v35  ;;  %1883 = vmatprep.subr.bf16.mxu1 %v2684_v36  ;;  %v2774_v35 = vld [vmem:[%s4047_s1 + $0x170] ss:$8 sps:$4 sm:$0xff]   ;;  %v2803_v51 = vld [vmem:[%s4047_s1 + $0x5b4] ss:$8 sps:$4 sm:$0xff]  }
  0x25   :  { %2055 = vmatprep.subr.bf16.mxu0 %v2686_v37  ;;  %v2777_v36 = vld [vmem:[%s4047_s1 + $0x570] ss:$8 sps:$4 sm:$0xff]   ;;  %v2836_v37 = vld [vmem:[%s4048_s0 + $0x2c] ss:$72 sps:$4 sm:$0xff]  }
  0x27   :  { %1884 = vmatpush1.bf16.msra.mxu1 %v2688_v38  ;;  %v2782_v38 = vld [vmem:[%s4047_s1 + $0x184] ss:$8 sps:$4 sm:$0xff]  }
  0x28   :  { %2056 = vmatpush1.bf16.msra.mxu0 %v2689_v39  ;;  %1885 = vmatprep.subr.bf16.mxu1 %v2690_v40  ;;  %v2785_v39 = vld [vmem:[%s4047_s1 + $0x584] ss:$8 sps:$4 sm:$0xff]   ;;  %v2780_v40 = vld [vmem:[%s4047_s1 + $0x180] ss:$8 sps:$4 sm:$0xff]  }
  0x29   :  { %2057 = vmatprep.subr.bf16.mxu0 %v2692_v41  ;;  %v2783_v41 = vld [vmem:[%s4047_s1 + $0x580] ss:$8 sps:$4 sm:$0xff]  }
  0x2b   :  { %1886 = vmatpush1.bf16.msra.mxu1 %v2694_v42  ;;  %v2788_v42 = vld [vmem:[%s4047_s1 + $0x194] ss:$8 sps:$4 sm:$0xff]  }
  0x2c   :  { %2058 = vmatpush1.bf16.msra.mxu0 %v2695_v43  ;;  %1887 = vmatprep.subr.bf16.mxu1 %v2696_v44  ;;  %v2791_v43 = vld [vmem:[%s4047_s1 + $0x594] ss:$8 sps:$4 sm:$0xff]   ;;  %v2786_v44 = vld [vmem:[%s4047_s1 + $0x190] ss:$8 sps:$4 sm:$0xff]  }
  0x2d   :  { %2059 = vmatprep.subr.bf16.mxu0 %v2698_v45  ;;  %v2789_v45 = vld [vmem:[%s4047_s1 + $0x590] ss:$8 sps:$4 sm:$0xff]  }
  0x2f   :  { %1888 = vmatpush1.bf16.msra.mxu1 %v2700_v46  ;;  %v2794_v46 = vld [vmem:[%s4047_s1 + $0x1a4] ss:$8 sps:$4 sm:$0xff]  }
  0x30   :  { %2060 = vmatpush1.bf16.msra.mxu0 %v2701_v47  ;;  %1889 = vmatprep.subr.bf16.mxu1 %v2702_v49  ;;  %v2797_v47 = vld [vmem:[%s4047_s1 + $0x5a4] ss:$8 sps:$4 sm:$0xff]   ;;  %v2795_v49 = vld [vmem:[%s4047_s1 + $0x5a0] ss:$8 sps:$4 sm:$0xff]  }
  0x31   :  { %2061 = vmatprep.subr.bf16.mxu0 %v2704_v50  ;;  %v2800_v50 = vld [vmem:[%s4047_s1 + $0x1b4] ss:$8 sps:$4 sm:$0xff]  }
  0x33   :  { %1890 = vmatpush1.bf16.msra.mxu1 %v2706_v52  ;;  %v2798_v52 = vld [vmem:[%s4047_s1 + $0x1b0] ss:$8 sps:$4 sm:$0xff]  }
  0x34   :  { %2062 = vmatpush1.bf16.msra.mxu0 %v2707_v53  ;;  %1891 = vmatprep.subr.bf16.mxu1 %v2708_v54  ;;  %v2801_v53 = vld [vmem:[%s4047_s1 + $0x5b0] ss:$8 sps:$4 sm:$0xff]   ;;  %v2806_v54 = vld [vmem:[%s4047_s1 + $0x1c4] ss:$8 sps:$4 sm:$0xff]  }
  0x35   :  { %2063 = vmatprep.subr.bf16.mxu0 %v2710_v55  ;;  %v2809_v55 = vld [vmem:[%s4047_s1 + $0x5c4] ss:$8 sps:$4 sm:$0xff]  }
  0x37   :  { %1892 = vmatpush1.bf16.msra.mxu1 %v2712_v56  ;;  %v2804_v56 = vld [vmem:[%s4047_s1 + $0x1c0] ss:$8 sps:$4 sm:$0xff]  }
  0x38   :  { %2064 = vmatpush1.bf16.msra.mxu0 %v2713_v57  ;;  %1893 = vmatprep.subr.bf16.mxu1 %v2714_v58  ;;  %v2807_v57 = vld [vmem:[%s4047_s1 + $0x5c0] ss:$8 sps:$4 sm:$0xff]   ;;  %v2812_v58 = vld [vmem:[%s4047_s1 + $0x1d4] ss:$8 sps:$4 sm:$0xff]  }
  0x39   :  { %2065 = vmatprep.subr.bf16.mxu0 %v2716_v59  ;;  %v2815_v59 = vld [vmem:[%s4047_s1 + $0x5d4] ss:$8 sps:$4 sm:$0xff]  }
  0x3b   :  { %1894 = vmatpush1.bf16.msra.mxu1 %v2718_v60  ;;  %v2810_v60 = vld [vmem:[%s4047_s1 + $0x1d0] ss:$8 sps:$4 sm:$0xff]  }
  0x3c   :  { %2066 = vmatpush1.bf16.msra.mxu0 %v2719_v61  ;;  %1895 = vmatprep.subr.bf16.mxu1 %v2720_v62  ;;  %v2813_v61 = vld [vmem:[%s4047_s1 + $0x5d0] ss:$8 sps:$4 sm:$0xff]   ;;  %v2818_v62 = vld [vmem:[%s4047_s1 + $0x1e4] ss:$8 sps:$4 sm:$0xff]  }
  0x3d   :  { %2067 = vmatprep.subr.bf16.mxu0 %v2722_v63  ;;  %v2821_v63 = vld [vmem:[%s4047_s1 + $0x5e4] ss:$8 sps:$4 sm:$0xff]  }
  0x3f   :  { %1896 = vmatpush1.bf16.msra.mxu1 %v2724_v0  ;;  %v2816_v0 = vld [vmem:[%s4047_s1 + $0x1e0] ss:$8 sps:$4 sm:$0xff]  }
  0x40   :  { %2068 = vmatpush1.bf16.msra.mxu0 %v2725_v1  ;;  %1908 = vmatprep.subr.bf16.mxu1 %v2731_v2  ;;  %v2819_v1 = vld [vmem:[%s4047_s1 + $0x5e0] ss:$8 sps:$4 sm:$0xff]   ;;  %v2824_v2 = vld [vmem:[%s4047_s1 + $0x1f4] ss:$8 sps:$4 sm:$0xff]  }
  0x41   :  { %2080 = vmatprep.subr.bf16.mxu0 %v2737_v3  ;;  %v2827_v3 = vld [vmem:[%s4047_s1 + $0x5f4] ss:$8 sps:$4 sm:$0xff]  }
  0x42   :  { %1898 = vmatmul.mubr.bf16.vlgmr.msra.gmra.mrb[0].mxu1 %v2726_v4  ;;  %v2822_v4 = vld [vmem:[%s4047_s1 + $0x1f0] ss:$8 sps:$4 sm:$0xff]  }
  0x43   :  { %2070 = vmatmul.mubr.bf16.vlgmr.msra.gmra.mrb[0].mxu0 %v2732_v6  ;;  %1909 = vmatpush1.bf16.msra.mxu1 %v2729_v5  ;;  %v2825_v5 = vld [vmem:[%s4047_s1 + $0x5f0] ss:$8 sps:$4 sm:$0xff]   ;;  %v2833_v6 = vld [vmem:[%s4047_s1 + $0x204] ss:$8 sps:$4 sm:$0xff]  }
  0x44   :  { %2081 = vmatpush1.bf16.msra.mxu0 %v2735_v7  ;;  %1910 = vmatprep.subr.bf16.mxu1 %v2740_v8  ;;  %v2839_v7 = vld [vmem:[%s4047_s1 + $0x604] ss:$8 sps:$4 sm:$0xff]   ;;  %v2828_v8 = vld [vmem:[%s4048_s0 + $0x8] ss:$72 sps:$4 sm:$0xff]  }
  0x45   :  { %2082 = vmatprep.subr.bf16.mxu0 %v2743_v9  ;;  %1940 = vmatprep.mubr.bf16.mxu1 %v2830_v34  ;;  %v2831_v9 = vld [vmem:[%s4047_s1 + $0x200] ss:$8 sps:$4 sm:$0xff]   ;;  %v2872_v34 = vld [vmem:[%s4047_s1 + $0x264] ss:$8 sps:$4 sm:$0xff]  }
  0x46   :  { %2112 = vmatprep.mubr.bf16.mxu0 %v2836_v37  ;;  %v2873_v37 = vld [vmem:[%s4047_s1 + $0x660] ss:$8 sps:$4 sm:$0xff]  }
  0x47   :  { %1911 = vmatpush1.bf16.msra.mxu1 %v2738_v10  ;;  %v2834_v10 = vld [vmem:[%s4048_s0 + $0x28] ss:$72 sps:$4 sm:$0xff]  }
  0x48   :  { %2083 = vmatpush1.bf16.msra.mxu0 %v2741_v11  ;;  %1912 = vmatprep.subr.bf16.mxu1 %v2746_v12  ;;  %v2837_v11 = vld [vmem:[%s4047_s1 + $0x600] ss:$8 sps:$4 sm:$0xff]   ;;  %v2842_v12 = vld [vmem:[%s4047_s1 + $0x214] ss:$8 sps:$4 sm:$0xff]  }
  0x49   :  { %2084 = vmatprep.subr.bf16.mxu0 %v2749_v13  ;;  %v2845_v13 = vld [vmem:[%s4047_s1 + $0x614] ss:$8 sps:$4 sm:$0xff]  }
  0x4b   :  { %1913 = vmatpush1.bf16.msra.mxu1 %v2744_v14  ;;  %v2840_v14 = vld [vmem:[%s4047_s1 + $0x210] ss:$8 sps:$4 sm:$0xff]  }
  0x4c   :  { %2085 = vmatpush1.bf16.msra.mxu0 %v2747_v15  ;;  %1914 = vmatprep.subr.bf16.mxu1 %v2752_v16  ;;  %v2843_v15 = vld [vmem:[%s4047_s1 + $0x610] ss:$8 sps:$4 sm:$0xff]   ;;  %v2848_v16 = vld [vmem:[%s4047_s1 + $0x224] ss:$8 sps:$4 sm:$0xff]  }
  0x4d   :  { %2086 = vmatprep.subr.bf16.mxu0 %v2755_v17  ;;  %v2851_v17 = vld [vmem:[%s4047_s1 + $0x624] ss:$8 sps:$4 sm:$0xff]  }
  0x4f   :  { %1915 = vmatpush1.bf16.msra.mxu1 %v2750_v18  ;;  %v2846_v18 = vld [vmem:[%s4047_s1 + $0x220] ss:$8 sps:$4 sm:$0xff]  }
  0x50   :  { %2087 = vmatpush1.bf16.msra.mxu0 %v2753_v19  ;;  %1916 = vmatprep.subr.bf16.mxu1 %v2758_v20  ;;  %v2932_v19 = vld [vmem:[%s4048_s0 + $0x14] ss:$72 sps:$4 sm:$0xff]   ;;  %v2849_v20 = vld [vmem:[%s4047_s1 + $0x620] ss:$8 sps:$4 sm:$0xff]  }
  0x51   :  { %2088 = vmatprep.subr.bf16.mxu0 %v2761_v21  ;;  %v2854_v21 = vld [vmem:[%s4047_s1 + $0x234] ss:$8 sps:$4 sm:$0xff]  }
  0x53   :  { %1917 = vmatpush1.bf16.msra.mxu1 %v2756_v22  ;;  %v2857_v22 = vld [vmem:[%s4047_s1 + $0x634] ss:$8 sps:$4 sm:$0xff]  }
  0x54   :  { %2089 = vmatpush1.bf16.msra.mxu0 %v2759_v23  ;;  %1918 = vmatprep.subr.bf16.mxu1 %v2764_v24  ;;  %v2938_v23 = vld [vmem:[%s4048_s0 + $0x34] ss:$72 sps:$4 sm:$0xff]   ;;  %v2852_v24 = vld [vmem:[%s4047_s1 + $0x230] ss:$8 sps:$4 sm:$0xff]  }
  0x55   :  { %2090 = vmatprep.subr.bf16.mxu0 %v2767_v25  ;;  %v2855_v25 = vld [vmem:[%s4047_s1 + $0x630] ss:$8 sps:$4 sm:$0xff]  }
  0x57   :  { %1919 = vmatpush1.bf16.msra.mxu1 %v2762_v26  ;;  %v2860_v26 = vld [vmem:[%s4047_s1 + $0x244] ss:$8 sps:$4 sm:$0xff]  }
  0x58   :  { %2091 = vmatpush1.bf16.msra.mxu0 %v2765_v27  ;;  %1920 = vmatprep.subr.bf16.mxu1 %v2770_v28  ;;  %v2863_v27 = vld [vmem:[%s4047_s1 + $0x644] ss:$8 sps:$4 sm:$0xff]   ;;  %v2858_v28 = vld [vmem:[%s4047_s1 + $0x240] ss:$8 sps:$4 sm:$0xff]  }
  0x59   :  { %2092 = vmatprep.subr.bf16.mxu0 %v2773_v29  ;;  %v2861_v29 = vld [vmem:[%s4047_s1 + $0x640] ss:$8 sps:$4 sm:$0xff]  }
  0x5b   :  { %1921 = vmatpush1.bf16.msra.mxu1 %v2768_v30  ;;  %v2866_v30 = vld [vmem:[%s4047_s1 + $0x254] ss:$8 sps:$4 sm:$0xff]  }
  0x5c   :  { %2093 = vmatpush1.bf16.msra.mxu0 %v2771_v31  ;;  %1922 = vmatprep.subr.bf16.mxu1 %v2776_v32  ;;  %v2869_v31 = vld [vmem:[%s4047_s1 + $0x654] ss:$8 sps:$4 sm:$0xff]   ;;  %v2864_v32 = vld [vmem:[%s4047_s1 + $0x250] ss:$8 sps:$4 sm:$0xff]  }
  0x5d   :  { %2094 = vmatprep.subr.bf16.mxu0 %v2779_v33  ;;  %v2867_v33 = vld [vmem:[%s4047_s1 + $0x650] ss:$8 sps:$4 sm:$0xff]  }
  0x5f   :  { %1923 = vmatpush1.bf16.msra.mxu1 %v2774_v35  ;;  %v2875_v35 = vld [vmem:[%s4047_s1 + $0x664] ss:$8 sps:$4 sm:$0xff]  }
  0x60   :  { %2095 = vmatpush1.bf16.msra.mxu0 %v2777_v36  ;;  %1924 = vmatprep.subr.bf16.mxu1 %v2782_v38  ;;  %v2870_v36 = vld [vmem:[%s4047_s1 + $0x260] ss:$8 sps:$4 sm:$0xff]   ;;  %v2878_v38 = vld [vmem:[%s4047_s1 + $0x274] ss:$8 sps:$4 sm:$0xff]  }
  0x61   :  { %2096 = vmatprep.subr.bf16.mxu0 %v2785_v39  ;;  %v2881_v39 = vld [vmem:[%s4047_s1 + $0x674] ss:$8 sps:$4 sm:$0xff]  }
  0x63   :  { %1925 = vmatpush1.bf16.msra.mxu1 %v2780_v40  ;;  %v2876_v40 = vld [vmem:[%s4047_s1 + $0x270] ss:$8 sps:$4 sm:$0xff]  }
  0x64   :  { %2097 = vmatpush1.bf16.msra.mxu0 %v2783_v41  ;;  %1926 = vmatprep.subr.bf16.mxu1 %v2788_v42  ;;  %v2879_v41 = vld [vmem:[%s4047_s1 + $0x670] ss:$8 sps:$4 sm:$0xff]   ;;  %v2884_v42 = vld [vmem:[%s4047_s1 + $0x284] ss:$8 sps:$4 sm:$0xff]  }
  0x65   :  { %2098 = vmatprep.subr.bf16.mxu0 %v2791_v43  ;;  %v2887_v43 = vld [vmem:[%s4047_s1 + $0x684] ss:$8 sps:$4 sm:$0xff]  }
  0x67   :  { %1927 = vmatpush1.bf16.msra.mxu1 %v2786_v44  ;;  %v2882_v44 = vld [vmem:[%s4047_s1 + $0x280] ss:$8 sps:$4 sm:$0xff]  }
  0x68   :  { %2099 = vmatpush1.bf16.msra.mxu0 %v2789_v45  ;;  %1928 = vmatprep.subr.bf16.mxu1 %v2794_v46  ;;  %v2885_v45 = vld [vmem:[%s4047_s1 + $0x680] ss:$8 sps:$4 sm:$0xff]   ;;  %v2890_v46 = vld [vmem:[%s4047_s1 + $0x294] ss:$8 sps:$4 sm:$0xff]  }
  0x69   :  { %2100 = vmatprep.subr.bf16.mxu0 %v2797_v47  ;;  %v2893_v47 = vld [vmem:[%s4047_s1 + $0x694] ss:$8 sps:$4 sm:$0xff]  }
  0x6b   :  { %1929 = vmatpush1.bf16.msra.mxu1 %v2792_v48  ;;  %v2888_v48 = vld [vmem:[%s4047_s1 + $0x290] ss:$8 sps:$4 sm:$0xff]  }
  0x6c   :  { %2101 = vmatpush1.bf16.msra.mxu0 %v2795_v49  ;;  %1930 = vmatprep.subr.bf16.mxu1 %v2800_v50  ;;  %v2891_v49 = vld [vmem:[%s4047_s1 + $0x690] ss:$8 sps:$4 sm:$0xff]   ;;  %v2896_v50 = vld [vmem:[%s4047_s1 + $0x2a4] ss:$8 sps:$4 sm:$0xff]  }
  0x6d   :  { %2102 = vmatprep.subr.bf16.mxu0 %v2803_v51  ;;  %v2899_v51 = vld [vmem:[%s4047_s1 + $0x6a4] ss:$8 sps:$4 sm:$0xff]  }
  0x6f   :  { %1931 = vmatpush1.bf16.msra.mxu1 %v2798_v52  ;;  %v2894_v52 = vld [vmem:[%s4047_s1 + $0x2a0] ss:$8 sps:$4 sm:$0xff]  }
  0x70   :  { %2103 = vmatpush1.bf16.msra.mxu0 %v2801_v53  ;;  %1932 = vmatprep.subr.bf16.mxu1 %v2806_v54  ;;  %v2897_v53 = vld [vmem:[%s4047_s1 + $0x6a0] ss:$8 sps:$4 sm:$0xff]   ;;  %v2902_v54 = vld [vmem:[%s4047_s1 + $0x2b4] ss:$8 sps:$4 sm:$0xff]  }
  0x71   :  { %2104 = vmatprep.subr.bf16.mxu0 %v2809_v55  ;;  %v2905_v55 = vld [vmem:[%s4047_s1 + $0x6b4] ss:$8 sps:$4 sm:$0xff]  }
  0x73   :  { %1933 = vmatpush1.bf16.msra.mxu1 %v2804_v56  ;;  %v2900_v56 = vld [vmem:[%s4047_s1 + $0x2b0] ss:$8 sps:$4 sm:$0xff]  }
  0x74   :  { %2105 = vmatpush1.bf16.msra.mxu0 %v2807_v57  ;;  %1934 = vmatprep.subr.bf16.mxu1 %v2812_v58  ;;  %v2903_v57 = vld [vmem:[%s4047_s1 + $0x6b0] ss:$8 sps:$4 sm:$0xff]   ;;  %v2908_v58 = vld [vmem:[%s4047_s1 + $0x2c4] ss:$8 sps:$4 sm:$0xff]  }
  0x75   :  { %2106 = vmatprep.subr.bf16.mxu0 %v2815_v59  ;;  %v2911_v59 = vld [vmem:[%s4047_s1 + $0x6c4] ss:$8 sps:$4 sm:$0xff]  }
  0x77   :  { %1935 = vmatpush1.bf16.msra.mxu1 %v2810_v60  ;;  %v2906_v60 = vld [vmem:[%s4047_s1 + $0x2c0] ss:$8 sps:$4 sm:$0xff]  }
  0x78   :  { %2107 = vmatpush1.bf16.msra.mxu0 %v2813_v61  ;;  %1936 = vmatprep.subr.bf16.mxu1 %v2818_v62  ;;  %v2909_v61 = vld [vmem:[%s4047_s1 + $0x6c0] ss:$8 sps:$4 sm:$0xff]   ;;  %v2914_v62 = vld [vmem:[%s4047_s1 + $0x2d4] ss:$8 sps:$4 sm:$0xff]  }
  0x79   :  { %2108 = vmatprep.subr.bf16.mxu0 %v2821_v63  ;;  %v2917_v63 = vld [vmem:[%s4047_s1 + $0x6d4] ss:$8 sps:$4 sm:$0xff]  }
  0x7b   :  { %1937 = vmatpush1.bf16.msra.mxu1 %v2816_v0  ;;  %v2912_v0 = vld [vmem:[%s4047_s1 + $0x2d0] ss:$8 sps:$4 sm:$0xff]  }
  0x7c   :  { %2109 = vmatpush1.bf16.msra.mxu0 %v2819_v1  ;;  %1938 = vmatprep.subr.bf16.mxu1 %v2824_v2  ;;  %v2915_v1 = vld [vmem:[%s4047_s1 + $0x6d0] ss:$8 sps:$4 sm:$0xff]   ;;  %v2920_v2 = vld [vmem:[%s4047_s1 + $0x2e4] ss:$8 sps:$4 sm:$0xff]  }
  0x7d   :  { %2110 = vmatprep.subr.bf16.mxu0 %v2827_v3  ;;  %v2923_v3 = vld [vmem:[%s4047_s1 + $0x6e4] ss:$8 sps:$4 sm:$0xff]  }
  0x7f   :  { %1939 = vmatpush1.bf16.msra.mxu1 %v2822_v4  ;;  %v2918_v4 = vld [vmem:[%s4047_s1 + $0x2e0] ss:$8 sps:$4 sm:$0xff]  }
  0x80   :  { %2111 = vmatpush1.bf16.msra.mxu0 %v2825_v5  ;;  %1951 = vmatprep.subr.bf16.mxu1 %v2833_v6  ;;  %v2921_v5 = vld [vmem:[%s4047_s1 + $0x6e0] ss:$8 sps:$4 sm:$0xff]   ;;  %v2926_v6 = vld [vmem:[%s4047_s1 + $0x2f4] ss:$8 sps:$4 sm:$0xff]  }
  0x81   :  { %2123 = vmatprep.subr.bf16.mxu0 %v2839_v7  ;;  %v2929_v7 = vld [vmem:[%s4047_s1 + $0x6f4] ss:$8 sps:$4 sm:$0xff]  }
  0x82   :  { %1941 = vmatmul.mubr.bf16.vlgmr.msra.gmra.mrb[0].mxu1 %v2828_v8  ;;  %v2924_v8 = vld [vmem:[%s4047_s1 + $0x2f0] ss:$8 sps:$4 sm:$0xff]  }
  0x83   :  { %2113 = vmatmul.mubr.bf16.vlgmr.msra.gmra.mrb[0].mxu0 %v2834_v10  ;;  %1952 = vmatpush1.bf16.msra.mxu1 %v2831_v9  ;;  %v2927_v9 = vld [vmem:[%s4047_s1 + $0x6f0] ss:$8 sps:$4 sm:$0xff]   ;;  %v2935_v10 = vld [vmem:[%s4047_s1 + $0x304] ss:$8 sps:$4 sm:$0xff]  }
  0x84   :  { %2124 = vmatpush1.bf16.msra.mxu0 %v2837_v11  ;;  %1953 = vmatprep.subr.bf16.mxu1 %v2842_v12  ;;  %v2941_v11 = vld [vmem:[%s4047_s1 + $0x704] ss:$8 sps:$4 sm:$0xff]   ;;  %v2930_v12 = vld [vmem:[%s4048_s0 + $0x10] ss:$72 sps:$4 sm:$0xff]  }
  0x85   :  { %2125 = vmatprep.subr.bf16.mxu0 %v2845_v13  ;;  %1983 = vmatprep.mubr.bf16.mxu1 %v2932_v19  ;;  %v2933_v13 = vld [vmem:[%s4047_s1 + $0x300] ss:$8 sps:$4 sm:$0xff]   ;;  %v3037_v19 = vld [vmem:[%s4048_s0 + $0x3c] ss:$72 sps:$4 sm:$0xff]  }
  0x86   :  { %2155 = vmatprep.mubr.bf16.mxu0 %v2938_v23  ;;  %v2953_v23 = vld [vmem:[%s4047_s1 + $0x724] ss:$8 sps:$4 sm:$0xff]  }
  0x87   :  { %1954 = vmatpush1.bf16.msra.mxu1 %v2840_v14  ;;  %v2936_v14 = vld [vmem:[%s4048_s0 + $0x30] ss:$72 sps:$4 sm:$0xff]  }
  0x88   :  { %2126 = vmatpush1.bf16.msra.mxu0 %v2843_v15  ;;  %1955 = vmatprep.subr.bf16.mxu1 %v2848_v16  ;;  %v2939_v15 = vld [vmem:[%s4047_s1 + $0x700] ss:$8 sps:$4 sm:$0xff]   ;;  %v2944_v16 = vld [vmem:[%s4047_s1 + $0x314] ss:$8 sps:$4 sm:$0xff]  }
  0x89   :  { %2127 = vmatprep.subr.bf16.mxu0 %v2851_v17  ;;  %v2947_v17 = vld [vmem:[%s4047_s1 + $0x714] ss:$8 sps:$4 sm:$0xff]  }
  0x8b   :  { %1956 = vmatpush1.bf16.msra.mxu1 %v2846_v18  ;;  %v3034_v18 = vld [vmem:[%s4048_s0 + $0x1c] ss:$72 sps:$4 sm:$0xff]  }
  0x8c   :  { %2128 = vmatpush1.bf16.msra.mxu0 %v2849_v20  ;;  %1957 = vmatprep.subr.bf16.mxu1 %v2854_v21  ;;  %v2942_v20 = vld [vmem:[%s4047_s1 + $0x310] ss:$8 sps:$4 sm:$0xff]  }
  0x8d   :  { %2129 = vmatprep.subr.bf16.mxu0 %v2857_v22  ;;  %v2945_v21 = vld [vmem:[%s4047_s1 + $0x710] ss:$8 sps:$4 sm:$0xff]   ;;  %v2950_v22 = vld [vmem:[%s4047_s1 + $0x324] ss:$8 sps:$4 sm:$0xff]  }
  0x8f   :  { %1958 = vmatpush1.bf16.msra.mxu1 %v2852_v24  ;;  %v2948_v24 = vld [vmem:[%s4047_s1 + $0x320] ss:$8 sps:$4 sm:$0xff]  }
  0x90   :  { %2130 = vmatpush1.bf16.msra.mxu0 %v2855_v25  ;;  %1959 = vmatprep.subr.bf16.mxu1 %v2860_v26  ;;  %v2951_v25 = vld [vmem:[%s4047_s1 + $0x720] ss:$8 sps:$4 sm:$0xff]   ;;  %v2956_v26 = vld [vmem:[%s4047_s1 + $0x334] ss:$8 sps:$4 sm:$0xff]  }
  0x91   :  { %2131 = vmatprep.subr.bf16.mxu0 %v2863_v27  ;;  %v2959_v27 = vld [vmem:[%s4047_s1 + $0x734] ss:$8 sps:$4 sm:$0xff]  }
  0x93   :  { %1960 = vmatpush1.bf16.msra.mxu1 %v2858_v28  ;;  %v2954_v28 = vld [vmem:[%s4047_s1 + $0x330] ss:$8 sps:$4 sm:$0xff]  }
  0x94   :  { %2132 = vmatpush1.bf16.msra.mxu0 %v2861_v29  ;;  %1961 = vmatprep.subr.bf16.mxu1 %v2866_v30  ;;  %v2957_v29 = vld [vmem:[%s4047_s1 + $0x730] ss:$8 sps:$4 sm:$0xff]   ;;  %v2962_v30 = vld [vmem:[%s4047_s1 + $0x344] ss:$8 sps:$4 sm:$0xff]  }
  0x95   :  { %2133 = vmatprep.subr.bf16.mxu0 %v2869_v31  ;;  %v2965_v31 = vld [vmem:[%s4047_s1 + $0x744] ss:$8 sps:$4 sm:$0xff]  }
  0x97   :  { %1962 = vmatpush1.bf16.msra.mxu1 %v2864_v32  ;;  %v2960_v32 = vld [vmem:[%s4047_s1 + $0x340] ss:$8 sps:$4 sm:$0xff]  }
  0x98   :  { %2134 = vmatpush1.bf16.msra.mxu0 %v2867_v33  ;;  %1963 = vmatprep.subr.bf16.mxu1 %v2872_v34  ;;  %v2963_v33 = vld [vmem:[%s4047_s1 + $0x740] ss:$8 sps:$4 sm:$0xff]   ;;  %v2968_v34 = vld [vmem:[%s4047_s1 + $0x354] ss:$8 sps:$4 sm:$0xff]  }
  0x99   :  { %2135 = vmatprep.subr.bf16.mxu0 %v2875_v35  ;;  %v2971_v35 = vld [vmem:[%s4047_s1 + $0x754] ss:$8 sps:$4 sm:$0xff]  }
  0x9b   :  { %1964 = vmatpush1.bf16.msra.mxu1 %v2870_v36  ;;  %v2966_v36 = vld [vmem:[%s4047_s1 + $0x350] ss:$8 sps:$4 sm:$0xff]  }
  0x9c   :  { %2136 = vmatpush1.bf16.msra.mxu0 %v2873_v37  ;;  %1965 = vmatprep.subr.bf16.mxu1 %v2878_v38  ;;  %v2969_v37 = vld [vmem:[%s4047_s1 + $0x750] ss:$8 sps:$4 sm:$0xff]   ;;  %v2974_v38 = vld [vmem:[%s4047_s1 + $0x364] ss:$8 sps:$4 sm:$0xff]  }
  0x9d   :  { %2137 = vmatprep.subr.bf16.mxu0 %v2881_v39  ;;  %v2977_v39 = vld [vmem:[%s4047_s1 + $0x764] ss:$8 sps:$4 sm:$0xff]  }
  0x9f   :  { %1966 = vmatpush1.bf16.msra.mxu1 %v2876_v40  ;;  %v2972_v40 = vld [vmem:[%s4047_s1 + $0x360] ss:$8 sps:$4 sm:$0xff]  }
  0xa0   :  { %2138 = vmatpush1.bf16.msra.mxu0 %v2879_v41  ;;  %1967 = vmatprep.subr.bf16.mxu1 %v2884_v42  ;;  %v2975_v41 = vld [vmem:[%s4047_s1 + $0x760] ss:$8 sps:$4 sm:$0xff]   ;;  %v2980_v42 = vld [vmem:[%s4047_s1 + $0x374] ss:$8 sps:$4 sm:$0xff]  }
  0xa1   :  { %2139 = vmatprep.subr.bf16.mxu0 %v2887_v43  ;;  %v2983_v43 = vld [vmem:[%s4047_s1 + $0x774] ss:$8 sps:$4 sm:$0xff]  }
  0xa3   :  { %1968 = vmatpush1.bf16.msra.mxu1 %v2882_v44  ;;  %v2978_v44 = vld [vmem:[%s4047_s1 + $0x370] ss:$8 sps:$4 sm:$0xff]  }
  0xa4   :  { %2140 = vmatpush1.bf16.msra.mxu0 %v2885_v45  ;;  %1969 = vmatprep.subr.bf16.mxu1 %v2890_v46  ;;  %v2981_v45 = vld [vmem:[%s4047_s1 + $0x770] ss:$8 sps:$4 sm:$0xff]   ;;  %v2986_v46 = vld [vmem:[%s4047_s1 + $0x384] ss:$8 sps:$4 sm:$0xff]  }
  0xa5   :  { %2141 = vmatprep.subr.bf16.mxu0 %v2893_v47  ;;  %v2989_v47 = vld [vmem:[%s4047_s1 + $0x784] ss:$8 sps:$4 sm:$0xff]  }
  0xa7   :  { %1970 = vmatpush1.bf16.msra.mxu1 %v2888_v48  ;;  %v2984_v48 = vld [vmem:[%s4047_s1 + $0x380] ss:$8 sps:$4 sm:$0xff]  }
  0xa8   :  { %2142 = vmatpush1.bf16.msra.mxu0 %v2891_v49  ;;  %1971 = vmatprep.subr.bf16.mxu1 %v2896_v50  ;;  %v2987_v49 = vld [vmem:[%s4047_s1 + $0x780] ss:$8 sps:$4 sm:$0xff]   ;;  %v2992_v50 = vld [vmem:[%s4047_s1 + $0x394] ss:$8 sps:$4 sm:$0xff]  }
  0xa9   :  { %2143 = vmatprep.subr.bf16.mxu0 %v2899_v51  ;;  %v2995_v51 = vld [vmem:[%s4047_s1 + $0x794] ss:$8 sps:$4 sm:$0xff]  }
  0xab   :  { %1972 = vmatpush1.bf16.msra.mxu1 %v2894_v52  ;;  %v2990_v52 = vld [vmem:[%s4047_s1 + $0x390] ss:$8 sps:$4 sm:$0xff]  }
  0xac   :  { %2144 = vmatpush1.bf16.msra.mxu0 %v2897_v53  ;;  %1973 = vmatprep.subr.bf16.mxu1 %v2902_v54  ;;  %v2993_v53 = vld [vmem:[%s4047_s1 + $0x790] ss:$8 sps:$4 sm:$0xff]   ;;  %v2998_v54 = vld [vmem:[%s4047_s1 + $0x3a4] ss:$8 sps:$4 sm:$0xff]  }
  0xad   :  { %2145 = vmatprep.subr.bf16.mxu0 %v2905_v55  ;;  %v3001_v55 = vld [vmem:[%s4047_s1 + $0x7a4] ss:$8 sps:$4 sm:$0xff]  }
  0xaf   :  { %1974 = vmatpush1.bf16.msra.mxu1 %v2900_v56  ;;  %v2996_v56 = vld [vmem:[%s4047_s1 + $0x3a0] ss:$8 sps:$4 sm:$0xff]  }
  0xb0   :  { %2146 = vmatpush1.bf16.msra.mxu0 %v2903_v57  ;;  %1975 = vmatprep.subr.bf16.mxu1 %v2908_v58  ;;  %v2999_v57 = vld [vmem:[%s4047_s1 + $0x7a0] ss:$8 sps:$4 sm:$0xff]   ;;  %v3004_v58 = vld [vmem:[%s4047_s1 + $0x3b4] ss:$8 sps:$4 sm:$0xff]  }
  0xb1   :  { %2147 = vmatprep.subr.bf16.mxu0 %v2911_v59  ;;  %v3007_v59 = vld [vmem:[%s4047_s1 + $0x7b4] ss:$8 sps:$4 sm:$0xff]  }
  0xb3   :  { %1976 = vmatpush1.bf16.msra.mxu1 %v2906_v60  ;;  %v3002_v60 = vld [vmem:[%s4047_s1 + $0x3b0] ss:$8 sps:$4 sm:$0xff]  }
  0xb4   :  { %2148 = vmatpush1.bf16.msra.mxu0 %v2909_v61  ;;  %1977 = vmatprep.subr.bf16.mxu1 %v2914_v62  ;;  %v3005_v61 = vld [vmem:[%s4047_s1 + $0x7b0] ss:$8 sps:$4 sm:$0xff]   ;;  %v3010_v62 = vld [vmem:[%s4047_s1 + $0x3c4] ss:$8 sps:$4 sm:$0xff]  }
  0xb5   :  { %2149 = vmatprep.subr.bf16.mxu0 %v2917_v63  ;;  %v3013_v63 = vld [vmem:[%s4047_s1 + $0x7c4] ss:$8 sps:$4 sm:$0xff]  }
  0xb7   :  { %1978 = vmatpush1.bf16.msra.mxu1 %v2912_v0  ;;  %v3008_v0 = vld [vmem:[%s4047_s1 + $0x3c0] ss:$8 sps:$4 sm:$0xff]  }
  0xb8   :  { %2150 = vmatpush1.bf16.msra.mxu0 %v2915_v1  ;;  %1979 = vmatprep.subr.bf16.mxu1 %v2920_v2  ;;  %v3011_v1 = vld [vmem:[%s4047_s1 + $0x7c0] ss:$8 sps:$4 sm:$0xff]   ;;  %v3016_v2 = vld [vmem:[%s4047_s1 + $0x3d4] ss:$8 sps:$4 sm:$0xff]  }
  0xb9   :  { %2151 = vmatprep.subr.bf16.mxu0 %v2923_v3  ;;  %v3019_v3 = vld [vmem:[%s4047_s1 + $0x7d4] ss:$8 sps:$4 sm:$0xff]  }
  0xbb   :  { %1980 = vmatpush1.bf16.msra.mxu1 %v2918_v4  ;;  %v3014_v4 = vld [vmem:[%s4047_s1 + $0x3d0] ss:$8 sps:$4 sm:$0xff]  }
  0xbc   :  { %2152 = vmatpush1.bf16.msra.mxu0 %v2921_v5  ;;  %1981 = vmatprep.subr.bf16.mxu1 %v2926_v6  ;;  %v3017_v5 = vld [vmem:[%s4047_s1 + $0x7d0] ss:$8 sps:$4 sm:$0xff]   ;;  %v3022_v6 = vld [vmem:[%s4047_s1 + $0x3e4] ss:$8 sps:$4 sm:$0xff]  }
  0xbd   :  { %2153 = vmatprep.subr.bf16.mxu0 %v2929_v7  ;;  %v3025_v7 = vld [vmem:[%s4047_s1 + $0x7e4] ss:$8 sps:$4 sm:$0xff]  }
  0xbf   :  { %1982 = vmatpush1.bf16.msra.mxu1 %v2924_v8  ;;  %v3020_v8 = vld [vmem:[%s4047_s1 + $0x3e0] ss:$8 sps:$4 sm:$0xff]  }
  0xc0   :  { %2154 = vmatpush1.bf16.msra.mxu0 %v2927_v9  ;;  %1994 = vmatprep.subr.bf16.mxu1 %v2935_v10  ;;  %v3023_v9 = vld [vmem:[%s4047_s1 + $0x7e0] ss:$8 sps:$4 sm:$0xff]   ;;  %v3028_v10 = vld [vmem:[%s4047_s1 + $0x3f4] ss:$8 sps:$4 sm:$0xff]  }
  0xc1   :  { %2166 = vmatprep.subr.bf16.mxu0 %v2941_v11  ;;  %v3031_v11 = vld [vmem:[%s4047_s1 + $0x7f4] ss:$8 sps:$4 sm:$0xff]  }
  0xc2   :  { %1984 = vmatmul.mubr.bf16.vlgmr.msra.gmra.mrb[0].mxu1 %v2930_v12  ;;  %v3026_v12 = vld [vmem:[%s4047_s1 + $0x3f0] ss:$8 sps:$4 sm:$0xff]  }
  0xc3   :  { %2156 = vmatmul.mubr.bf16.vlgmr.msra.gmra.mrb[0].mxu0 %v2936_v14  ;;  %1995 = vmatpush1.bf16.msra.mxu1 %v2933_v13  ;;  %v3029_v13 = vld [vmem:[%s4047_s1 + $0x7f0] ss:$8 sps:$4 sm:$0xff]   ;;  %v3040_v14 = vld [vmem:[%s4047_s1 + $0x804] ss:$8 sps:$4 sm:$0xff]  }
  0xc4   :  { %2167 = vmatpush1.bf16.msra.mxu0 %v2939_v15  ;;  %1996 = vmatprep.subr.bf16.mxu1 %v2944_v16  ;;  %v3032_v15 = vld [vmem:[%s4048_s0 + $0x18] ss:$72 sps:$4 sm:$0xff]  }
  0xc5   :  { %2168 = vmatprep.subr.bf16.mxu0 %v2947_v17  ;;  %2026 = vmatprep.mubr.bf16.mxu1 %v3034_v18  ;;  %v3035_v16 = vld [vmem:[%s4048_s0 + $0x38] ss:$72 sps:$4 sm:$0xff]   ;;  %v3088_v18 = vld [vmem:[%s4048_s0 + $0x44] ss:$72 sps:$4 sm:$0xff]  }
  0xc6   :  { %2198 = vmatprep.mubr.bf16.mxu0 %v3037_v19  ;;  %v3038_v17 = vld [vmem:[%s4047_s1 + $0x800] ss:$8 sps:$4 sm:$0xff]   ;;  %v3043_v19 = vld [vmem:[%s4047_s1 + $0x814] ss:$8 sps:$4 sm:$0xff]  }
  0xc7   :  { %1997 = vmatpush1.bf16.msra.mxu1 %v2942_v20  ;;  %v3041_v20 = vld [vmem:[%s4047_s1 + $0x810] ss:$8 sps:$4 sm:$0xff]  }
  0xc8   :  { %2169 = vmatpush1.bf16.msra.mxu0 %v2945_v21  ;;  %1998 = vmatprep.subr.bf16.mxu1 %v2950_v22  ;;  %v3046_v21 = vld [vmem:[%s4047_s1 + $0x824] ss:$8 sps:$4 sm:$0xff]   ;;  %v3044_v22 = vld [vmem:[%s4047_s1 + $0x820] ss:$8 sps:$4 sm:$0xff]  }
  0xc9   :  { %2170 = vmatprep.subr.bf16.mxu0 %v2953_v23  ;;  %v3049_v23 = vld [vmem:[%s4047_s1 + $0x834] ss:$8 sps:$4 sm:$0xff]  }
  0xcb   :  { %1999 = vmatpush1.bf16.msra.mxu1 %v2948_v24  ;;  %v3047_v24 = vld [vmem:[%s4047_s1 + $0x830] ss:$8 sps:$4 sm:$0xff]  }
  0xcc   :  { %2171 = vmatpush1.bf16.msra.mxu0 %v2951_v25  ;;  %2000 = vmatprep.subr.bf16.mxu1 %v2956_v26  ;;  %v3052_v25 = vld [vmem:[%s4047_s1 + $0x844] ss:$8 sps:$4 sm:$0xff]   ;;  %v3050_v26 = vld [vmem:[%s4047_s1 + $0x840] ss:$8 sps:$4 sm:$0xff]  }
  0xcd   :  { %2172 = vmatprep.subr.bf16.mxu0 %v2959_v27  ;;  %v3055_v27 = vld [vmem:[%s4047_s1 + $0x854] ss:$8 sps:$4 sm:$0xff]  }
  0xcf   :  { %2001 = vmatpush1.bf16.msra.mxu1 %v2954_v28  ;;  %v3053_v28 = vld [vmem:[%s4047_s1 + $0x850] ss:$8 sps:$4 sm:$0xff]  }
  0xd0   :  { %2173 = vmatpush1.bf16.msra.mxu0 %v2957_v29  ;;  %2002 = vmatprep.subr.bf16.mxu1 %v2962_v30  ;;  %v3058_v29 = vld [vmem:[%s4047_s1 + $0x864] ss:$8 sps:$4 sm:$0xff]   ;;  %v3056_v30 = vld [vmem:[%s4047_s1 + $0x860] ss:$8 sps:$4 sm:$0xff]  }
  0xd1   :  { %2174 = vmatprep.subr.bf16.mxu0 %v2965_v31  ;;  %v3061_v31 = vld [vmem:[%s4047_s1 + $0x874] ss:$8 sps:$4 sm:$0xff]  }
  0xd3   :  { %2003 = vmatpush1.bf16.msra.mxu1 %v2960_v32  ;;  %v3059_v32 = vld [vmem:[%s4047_s1 + $0x870] ss:$8 sps:$4 sm:$0xff]  }
  0xd4   :  { %2175 = vmatpush1.bf16.msra.mxu0 %v2963_v33  ;;  %2004 = vmatprep.subr.bf16.mxu1 %v2968_v34  ;;  %v3064_v33 = vld [vmem:[%s4047_s1 + $0x884] ss:$8 sps:$4 sm:$0xff]   ;;  %v3062_v34 = vld [vmem:[%s4047_s1 + $0x880] ss:$8 sps:$4 sm:$0xff]  }
  0xd5   :  { %2176 = vmatprep.subr.bf16.mxu0 %v2971_v35  ;;  %v3067_v35 = vld [vmem:[%s4047_s1 + $0x894] ss:$8 sps:$4 sm:$0xff]  }
  0xd7   :  { %2005 = vmatpush1.bf16.msra.mxu1 %v2966_v36  ;;  %v3065_v36 = vld [vmem:[%s4047_s1 + $0x890] ss:$8 sps:$4 sm:$0xff]  }
  0xd8   :  { %2177 = vmatpush1.bf16.msra.mxu0 %v2969_v37  ;;  %2006 = vmatprep.subr.bf16.mxu1 %v2974_v38  ;;  %v3070_v37 = vld [vmem:[%s4047_s1 + $0x8a4] ss:$8 sps:$4 sm:$0xff]   ;;  %v3068_v38 = vld [vmem:[%s4047_s1 + $0x8a0] ss:$8 sps:$4 sm:$0xff]  }
  0xd9   :  { %2178 = vmatprep.subr.bf16.mxu0 %v2977_v39  ;;  %v3073_v39 = vld [vmem:[%s4047_s1 + $0x8b4] ss:$8 sps:$4 sm:$0xff]  }
  0xdb   :  { %2007 = vmatpush1.bf16.msra.mxu1 %v2972_v40  ;;  %v3071_v40 = vld [vmem:[%s4047_s1 + $0x8b0] ss:$8 sps:$4 sm:$0xff]  }
  0xdc   :  { %2179 = vmatpush1.bf16.msra.mxu0 %v2975_v41  ;;  %2008 = vmatprep.subr.bf16.mxu1 %v2980_v42  ;;  %v3076_v41 = vld [vmem:[%s4047_s1 + $0x8c4] ss:$8 sps:$4 sm:$0xff]   ;;  %v3074_v42 = vld [vmem:[%s4047_s1 + $0x8c0] ss:$8 sps:$4 sm:$0xff]  }
  0xdd   :  { %2180 = vmatprep.subr.bf16.mxu0 %v2983_v43  ;;  %v3079_v43 = vld [vmem:[%s4047_s1 + $0x8d4] ss:$8 sps:$4 sm:$0xff]  }
  0xdf   :  { %2009 = vmatpush1.bf16.msra.mxu1 %v2978_v44  ;;  %v3077_v44 = vld [vmem:[%s4047_s1 + $0x8d0] ss:$8 sps:$4 sm:$0xff]  }
  0xe0   :  { %2181 = vmatpush1.bf16.msra.mxu0 %v2981_v45  ;;  %2010 = vmatprep.subr.bf16.mxu1 %v2986_v46  ;;  %v3082_v45 = vld [vmem:[%s4047_s1 + $0x8e4] ss:$8 sps:$4 sm:$0xff]   ;;  %v3080_v46 = vld [vmem:[%s4047_s1 + $0x8e0] ss:$8 sps:$4 sm:$0xff]  }
  0xe1   :  { %2182 = vmatprep.subr.bf16.mxu0 %v2989_v47  ;;  %v3085_v47 = vld [vmem:[%s4047_s1 + $0x8f4] ss:$8 sps:$4 sm:$0xff]  }
  0xe3   :  { %2011 = vmatpush1.bf16.msra.mxu1 %v2984_v48  ;;  %v3083_v48 = vld [vmem:[%s4047_s1 + $0x8f0] ss:$8 sps:$4 sm:$0xff]  }
  0xe4   :  { %2183 = vmatpush1.bf16.msra.mxu0 %v2987_v49  ;;  %2012 = vmatprep.subr.bf16.mxu1 %v2992_v50  ;;  %v3086_v49 = vld [vmem:[%s4048_s0 + $0x40] ss:$72 sps:$4 sm:$0xff]  }
  0xe5   :  { %2184 = vmatprep.subr.bf16.mxu0 %v2995_v51 }
  0xe7   :  { %2013 = vmatpush1.bf16.msra.mxu1 %v2990_v52 }
  0xe8   :  { %2185 = vmatpush1.bf16.msra.mxu0 %v2993_v53  ;;  %2014 = vmatprep.subr.bf16.mxu1 %v2998_v54  ;;  %v325_v54 = vlaneseq }
  0xe9   :  { %2186 = vmatprep.subr.bf16.mxu0 %v3001_v55 }
  0xea   :  { %v326_v55 = vshrl.u32 %v325_v54, 7 }
  0xeb   :  { %2015 = vmatpush1.bf16.msra.mxu1 %v2996_v56 }
  0xec   :  { %2187 = vmatpush1.bf16.msra.mxu0 %v2999_v57  ;;  %2016 = vmatprep.subr.bf16.mxu1 %v3004_v58  ;;  %v327_v56 = vsub.s32 0, %v326_v55  ;;  %v323_v57 = vld [vmem:[%s4049_s2] sm:$0x3]  ;;  %v331_v58 = vsub.s32 1, %v326_v55 }
  0xed   :  { %2188 = vmatprep.subr.bf16.mxu0 %v3007_v59 }
  0xee   :  { %v328_v59 = vrot.slane %v323_v57, %v327_v56 }
  0xef   :  { %2017 = vmatpush1.bf16.msra.mxu1 %v3002_v60  ;;  %v332_v60 = vrot.slane %v323_v57, %v331_v58 }
  0xf0   :  { %2189 = vmatpush1.bf16.msra.mxu0 %v3005_v61  ;;  %2018 = vmatprep.subr.bf16.mxu1 %v3010_v62  ;;  %v2252_v61 = vld [vmem:[%s4050_s3] sm:$0xff]  ;;  %v2253_v62 = vld [vmem:[%s4050_s3 + $0x8] sm:$0xff] }
  0xf1   :  { %2190 = vmatprep.subr.bf16.mxu0 %v3013_v63 }
  0xf3   :  { %2019 = vmatpush1.bf16.msra.mxu1 %v3008_v0  ;;  %v2254_v0 = vunpack.c.l.bf16 %v2252_v61 }
  0xf4   :  { %2191 = vmatpush1.bf16.msra.mxu0 %v3011_v1  ;;  %2020 = vmatprep.subr.bf16.mxu1 %v3016_v2 }
  0xf5   :  { %2192 = vmatprep.subr.bf16.mxu0 %v3019_v3  ;;  %v2255_v3 = vunpack.c.h.bf16 %v2252_v61 }
  0xf7   :  { %2021 = vmatpush1.bf16.msra.mxu1 %v3014_v4 }
  0xf8   :  { %2193 = vmatpush1.bf16.msra.mxu0 %v3017_v5  ;;  %2022 = vmatprep.subr.bf16.mxu1 %v3022_v6 }
  0xf9   :  { %2194 = vmatprep.subr.bf16.mxu0 %v3025_v7  ;;  %v2256_v7 = vunpack.c.l.bf16 %v2253_v62 }
  0xfb   :  { %2023 = vmatpush1.bf16.msra.mxu1 %v3020_v8 }
  0xfc   :  { %2195 = vmatpush1.bf16.msra.mxu0 %v3023_v9  ;;  %2024 = vmatprep.subr.bf16.mxu1 %v3028_v10 }
  0xfd   :  { %2196 = vmatprep.subr.bf16.mxu0 %v3031_v11  ;;  %v2257_v11 = vunpack.c.h.bf16 %v2253_v62 }
  0xff   :  { %2025 = vmatpush1.bf16.msra.mxu1 %v3026_v12 }
 0x100   :  { %2197 = vmatpush1.bf16.msra.mxu0 %v3029_v13 }
 0x101   :  { %2209 = vmatprep.subr.bf16.mxu0 %v3040_v14 }
 0x102   :  { %2027 = vmatmul.mubr.bf16.vlgmr.msra.gmra.mrb[0].mxu1 %v3032_v15 }
 0x103   :  { %2199 = vmatmul.mubr.bf16.vlgmr.msra.gmra.mrb[0].mxu0 %v3035_v16 }
 0x104   :  { %2210 = vmatpush1.bf16.msra.mxu0 %v3038_v17  ;;  %2241 = vmatprep.mubr.bf16.mxu0 %v3088_v18 }
 0x105   :  { %2211 = vmatprep.subr.bf16.mxu0 %v3043_v19 }
 0x108   :  { %2212 = vmatpush1.bf16.msra.mxu0 %v3041_v20 }
 0x109   :  { %2213 = vmatprep.subr.bf16.mxu0 %v3046_v21 }
 0x10c   :  { %2214 = vmatpush1.bf16.msra.mxu0 %v3044_v22 }
 0x10d   :  { %2215 = vmatprep.subr.bf16.mxu0 %v3049_v23 }
 0x110   :  { %2216 = vmatpush1.bf16.msra.mxu0 %v3047_v24 }
 0x111   :  { %2217 = vmatprep.subr.bf16.mxu0 %v3052_v25 }
 0x114   :  { %2218 = vmatpush1.bf16.msra.mxu0 %v3050_v26 }
 0x115   :  { %2219 = vmatprep.subr.bf16.mxu0 %v3055_v27 }
 0x118   :  { %2220 = vmatpush1.bf16.msra.mxu0 %v3053_v28 }
 0x119   :  { %2221 = vmatprep.subr.bf16.mxu0 %v3058_v29 }
 0x11c   :  { %2222 = vmatpush1.bf16.msra.mxu0 %v3056_v30 }
 0x11d   :  { %2223 = vmatprep.subr.bf16.mxu0 %v3061_v31 }
 0x120   :  { %2224 = vmatpush1.bf16.msra.mxu0 %v3059_v32 }
 0x121   :  { %2225 = vmatprep.subr.bf16.mxu0 %v3064_v33 }
 0x124   :  { %2226 = vmatpush1.bf16.msra.mxu0 %v3062_v34 }
 0x125   :  { %2227 = vmatprep.subr.bf16.mxu0 %v3067_v35 }
 0x128   :  { %2228 = vmatpush1.bf16.msra.mxu0 %v3065_v36 }
 0x129   :  { %2229 = vmatprep.subr.bf16.mxu0 %v3070_v37 }
 0x12c   :  { %2230 = vmatpush1.bf16.msra.mxu0 %v3068_v38 }
 0x12d   :  { %2231 = vmatprep.subr.bf16.mxu0 %v3073_v39 }
 0x130   :  { %2232 = vmatpush1.bf16.msra.mxu0 %v3071_v40 }
 0x131   :  { %2233 = vmatprep.subr.bf16.mxu0 %v3076_v41 }
 0x134   :  { %2234 = vmatpush1.bf16.msra.mxu0 %v3074_v42 }
 0x135   :  { %2235 = vmatprep.subr.bf16.mxu0 %v3079_v43 }
 0x138   :  { %2236 = vmatpush1.bf16.msra.mxu0 %v3077_v44 }
 0x139   :  { %2237 = vmatprep.subr.bf16.mxu0 %v3082_v45 }
 0x13c   :  { %2238 = vmatpush1.bf16.msra.mxu0 %v3080_v46 }
 0x13d   :  { %2239 = vmatprep.subr.bf16.mxu0 %v3085_v47 }
 0x140   :  { %2240 = vmatpush1.bf16.msra.mxu0 %v3083_v48 }
 0x143   :  { %2242 = vmatmul.mubr.bf16.vlgmr.msra.gmra.mrb[0].mxu0 %v3086_v49 }
 0x1d5   :  { %v2028_v50 = vpop.f32.mrb[0].mxu1 }
 0x1d6   :  { %v2030_v51 = vpop.f32.mrb[1].mxu1  ;;  %v2594_v63 = vadd.f32 %v2028_v50, %v328_v59 }
 0x1d7   :  { %v2032_v52 = vpop.f32.mrb[2].mxu1  ;;  %v2596_v1 = vadd.f32 %v2030_v51, %v332_v60 }
 0x1d8   :  { %v2034_v53 = vpop.f32.mrb[3].mxu1  ;;  %v2598_v4 = vadd.f32 %v2032_v52, %v328_v59 }
 0x1d9   :  { %v2600_v8 = vadd.f32 %v2034_v53, %v332_v60 }
 0x216   :  { %v2243_v2 = vpop.f32.mrb[0].mxu0 }
 0x217   :  { %v2595_v5 = vadd.f32 %v2594_v63, %v2243_v2  ;;  %v2245_v6 = vpop.f32.mrb[1].mxu0 }
 0x218   :  { %v2597_v9 = vadd.f32 %v2596_v1, %v2245_v6  ;;  %v2247_v10 = vpop.f32.mrb[2].mxu0 }
 0x219   :  { %v2258_v12 = vadd.f32 %v2595_v5, %v2254_v0  ;;  %v2599_v13 = vadd.f32 %v2598_v4, %v2247_v10  ;;  %v2249_v14 = vpop.f32.mrb[3].mxu0 }
 0x21a   :  { %v2259_v15 = vadd.f32 %v2597_v9, %v2255_v3  ;;  %v2601_v16 = vadd.f32 %v2600_v8, %v2249_v14 }
 0x21b   :  { %v2262_v17 = vmax.f32 %v2258_v12, 0.0  ;;  %v2260_v18 = vadd.f32 %v2599_v13, %v2256_v7 }
 0x21c   :  { %v2263_v19 = vmax.f32 %v2259_v15, 0.0  ;;  %v2261_v20 = vadd.f32 %v2601_v16, %v2257_v11 }
 0x21d   :  { %v2264_v21 = vmax.f32 %v2260_v18, 0.0 }
 0x21e   :  { %v2592_v22 = vpack.c.bf16 %v2263_v19, %v2262_v17  ;;  %v2265_v23 = vmax.f32 %v2261_v20, 0.0 }
 0x220   :  { %2278 = vst [vmem:[%s4051_s4] sm:$0xff] %v2592_v22  ;;  %v2593_v24 = vpack.c.bf16 %v2265_v23, %v2264_v21 }
 0x222   :  { %2279 = vst [vmem:[%s4051_s4 + $0x8] sm:$0xff] %v2593_v24 }

</bundles_post_ra>
